<compile_context>
chip_gen: v7x
topology: tpu7x:2x2x1
jax: 0.10.0
libtpu: 0.0.40
codegen_flags: <defaults>
</compile_context>

<pallas_src>
import jax
import jax.numpy as jnp
from jax.experimental import pallas as pl
from jax.experimental.pallas import tpu as pltpu

LEAK = 0.2
BN_EPS = 1e-5
TM_MAX = 8192  # lane-tile upper bound; per-block VMEM stays at ~1-2 MiB


# ----------------------------- Pallas kernels -----------------------------

def _gemm_stats_kernel(w_ref, p_ref, b_ref, y_ref, sum_ref, sq_ref):
    """Transposed conv-GEMM + bias: y (N, tm) = w (N, K) @ p (K, tm) + b.

    Also accumulates per-channel sum / sum-of-squares of y across the
    sequential M-tile axis (grid axis 1) for BatchNorm batch statistics.
    Stats blocks are per parallel-core (grid axis 0)."""
    i = pl.program_id(1)
    y = jnp.dot(w_ref[...], p_ref[...], preferred_element_type=jnp.float32)
    y = y + b_ref[...]                       # (N, 1) broadcast along lanes
    y_ref[...] = y

    @pl.when(i == 0)
    def _():
        sum_ref[...] = jnp.zeros_like(sum_ref)
        sq_ref[...] = jnp.zeros_like(sq_ref)

    sum_ref[...] += jnp.sum(y, axis=1, keepdims=True)[None]
    sq_ref[...] += jnp.sum(y * y, axis=1, keepdims=True)[None]


def _bn_lrelu_kernel(y_ref, scale_ref, shift_ref, o_ref):
    """Fused BatchNorm affine + LeakyReLU(0.2); writes bf16 activation."""
    z = y_ref[...] * scale_ref[...] + shift_ref[...]
    o_ref[...] = jnp.where(z >= 0, z, LEAK * z).astype(o_ref.dtype)


# ----------------------------- kernel wrappers -----------------------------

def _choose_tiles(M):
    """Pick a lane-tile size tm (divisor of M, multiple of 128, <= TM_MAX)
    and a 2-way core split when possible (v7x megacore)."""
    if M < 256 or M % 256 != 0:
        return M, 1
    tm = 128
    d = 128
    while d <= min(M // 2, TM_MAX):
        if M % d == 0 and (M // d) % 2 == 0:
            tm = d
        d *= 2
    return tm, 2


def conv_gemm_with_stats(w_mat, patches, bias):
    """y (N, M) f32 = w (N, K) bf16 @ p (K, M) bf16 + bias, with fused
    per-channel sum / sum-of-squares.  Returns (y, sum (N,), sumsq (N,))."""
    N, K = w_mat.shape
    K2, M = patches.shape
    assert K == K2
    tm, cores = _choose_tiles(M)
    steps = M // (cores * tm)

    y, s, sq = pl.pallas_call(
        _gemm_stats_kernel,
        out_shape=(jax.ShapeDtypeStruct((N, M), jnp.float32),
                   jax.ShapeDtypeStruct((cores, N, 1), jnp.float32),
                   jax.ShapeDtypeStruct((cores, N, 1), jnp.float32)),
        grid=(cores, steps),
        in_specs=[
            pl.BlockSpec((N, K), lambda c, i: (0, 0)),          # weights
            pl.BlockSpec((K, tm), lambda c, i: (0, c * steps + i)),  # patches
            pl.BlockSpec((N, 1), lambda c, i: (0, 0)),           # bias
        ],
        out_specs=(
            pl.BlockSpec((N, tm), lambda c, i: (0, c * steps + i)),
            pl.BlockSpec((1, N, 1), lambda c, i: (c, 0, 0)),
            pl.BlockSpec((1, N, 1), lambda c, i: (c, 0, 0)),
        ),
        compiler_params=pltpu.CompilerParams(
            dimension_semantics=("parallel", "arbitrary")),
    )(w_mat, patches, bias.reshape(N, 1))
    return y, s.sum(axis=0)[:, 0], sq.sum(axis=0)[:, 0]


def bn_lrelu(y, scale, shift):
    """Elementwise BN-affine + LeakyReLU on (N, M) f32 -> (N, M) bf16."""
    N, M = y.shape
    tm, _ = _choose_tiles(M)
    return pl.pallas_call(
        _bn_lrelu_kernel,
        out_shape=jax.ShapeDtypeStruct((N, M), jnp.bfloat16),
        grid=(M // tm,),
        in_specs=[pl.BlockSpec((N, tm), lambda i: (0, i)),
                  pl.BlockSpec((N, 1), lambda i: (0, 0)),
                  pl.BlockSpec((N, 1), lambda i: (0, 0))],
        out_specs=pl.BlockSpec((N, tm), lambda i: (0, i)),
        compiler_params=pltpu.CompilerParams(
            dimension_semantics=("parallel",)),
    )(y, scale.reshape(N, 1), shift.reshape(N, 1))


# ----------------------------- JAX glue (im2col) -----------------------------

def im2col_3d_cf(x, ksize, stride, pad):
    """Channels-first im2col.

    x: (C, B, D, H, W)  ->  patches (C*k^3, B*Do*Ho*Wo)
    K rows ordered (c, kd, kh, kw) to match the PyTorch weight reshape
    (Cout, Cin*k^3); M columns ordered (b, d, h, w).  No transposes — only
    strided slices, a stack along a new axis and a contiguous reshape."""
    C, B, D, H, W = x.shape
    if pad:
        x = jnp.pad(x, ((0, 0), (0, 0), (pad, pad), (pad, pad), (pad, pad)))
    Do = (D + 2 * pad - ksize) // stride + 1
    Ho = (H + 2 * pad - ksize) // stride + 1
    Wo = (W + 2 * pad - ksize) // stride + 1
    taps = []
    for kd in range(ksize):
        for kh in range(ksize):
            for kw in range(ksize):
                taps.append(x[:, :,
                              kd:kd + stride * Do:stride,
                              kh:kh + stride * Ho:stride,
                              kw:kw + stride * Wo:stride])
    p = jnp.stack(taps, axis=1)                 # (C, k^3, B, Do, Ho, Wo)
    return p.reshape(C * ksize ** 3, B * Do * Ho * Wo), (Do, Ho, Wo)


def conv_bn_lrelu_layer(x_cf, w, b, gamma, beta, pad):
    """Conv3d(k=4,s=2,pad) -> BatchNorm3d (batch stats) -> LeakyReLU(0.2).

    x_cf: (Cin, B, D, H, W) bf16   ->   (Cout, B, Do, Ho, Wo) bf16."""
    Cout = w.shape[0]
    B = x_cf.shape[1]
    patches, (Do, Ho, Wo) = im2col_3d_cf(x_cf, 4, 2, pad)     # (K, M) bf16
    w_mat = w.reshape(Cout, -1).astype(jnp.bfloat16)          # (N, K)
    M = patches.shape[1]

    y, s, sq = conv_gemm_with_stats(w_mat, patches, b)        # y (N, M) f32
    mean = s / M
    var = jnp.maximum(sq / M - mean * mean, 0.0)              # biased var
    scale = gamma / jnp.sqrt(var + BN_EPS)
    shift = beta - mean * scale
    out = bn_lrelu(y, scale, shift)                           # (N, M) bf16
    return out.reshape(Cout, B, Do, Ho, Wo)                   # pure view


def conv_tanh_layer(x_cf, w, b):
    """Conv3d(k=4,s=2,pad=0) -> Tanh.  Spatial collapses to 1^3, M == B:
    trivial work, so plain jnp beats a pallas_call here."""
    Cout = w.shape[0]
    patches, _ = im2col_3d_cf(x_cf, 4, 2, 0)                  # (K, B) bf16
    w_mat = w.reshape(Cout, -1)                               # (N, K) f32
    y = jnp.tanh(jnp.dot(w_mat, patches.astype(jnp.float32),
                         preferred_element_type=jnp.float32) + b[:, None])
    return y.T                                                # (B, Cout)


# ----------------------------- full encoder -----------------------------

def init_params(key, f_dim):
    chans = [1, f_dim // 16, f_dim // 8, f_dim // 4, f_dim // 2, f_dim]
    params = []
    for li in range(5):
        cin, cout = chans[li], chans[li + 1]
        key, kw, kb = jax.random.split(key, 3)
        w = jax.random.normal(kw, (cout, cin, 4, 4, 4), jnp.float32) * 0.05
        b = jax.random.normal(kb, (cout,), jnp.float32) * 0.05
        if li < 4:  # BN params: PyTorch default init (gamma=1, beta=0)
            gamma = jnp.ones((cout,), jnp.float32)
            beta = jnp.zeros((cout,), jnp.float32)
            params.append((w, b, gamma, beta))
        else:
            params.append((w, b))
    return params


def voxel_encoder64(x, params):
    """x: (B, 1, 64, 64, 64) NCDHW float32 -> (B, f_dim)."""
    # Channels-first (C, B, D, H, W) bf16 carried end-to-end.
    out = jnp.transpose(x, (1, 0, 2, 3, 4)).astype(jnp.bfloat16)
    for li in range(4):
        w, b, gamma, beta = params[li]
        out = conv_bn_lrelu_layer(out, w, b, gamma, beta, pad=1)
    w, b = params[4]
    return conv_tanh_layer(out, w, b)


if __name__ == "__main__":
    # Spatial must be 64 (arch needs /16 -> 4 before the final valid conv);
    # keep channels small via f_dim=32.
    B, F_DIM = 2, 32
    key = jax.random.PRNGKey(0)
    kx, kp = jax.random.split(key)
    x = jax.random.normal(kx, (B, 1, 64, 64, 64), jnp.float32)
    params = init_params(kp, F_DIM)

    out = jax.jit(voxel_encoder64)(x, params)
    out = jax.block_until_ready(out)
    assert out.shape == (B, F_DIM), out.shape
    assert bool(jnp.all(jnp.isfinite(out)))
    print("KERNEL_OK")
</pallas_src>

<mosaic_0001>
module attributes {stable_mosaic.version = 11 : i64} {
  func.func @_gemm_stats_kernel(%arg0: i32, %arg1: i32, %arg2: memref<2x64xbf16, #tpu.memory_space<vmem>>, %arg3: memref<64x8192xbf16, #tpu.memory_space<vmem>>, %arg4: memref<2x1xf32, #tpu.memory_space<vmem>>, %arg5: memref<2x8192xf32, #tpu.memory_space<vmem>>, %arg6: memref<1x2x1xf32, #tpu.memory_space<vmem>>, %arg7: memref<1x2x1xf32, #tpu.memory_space<vmem>>) attributes {dimension_semantics = [#tpu.dimension_semantics<parallel>, #tpu.dimension_semantics<arbitrary>], iteration_bounds = array<i64: 2, 4>, scalar_prefetch = 0 : i64, scratch_operands = 0 : i64, tpu.core_type = #tpu.core_type<tc>, window_params = [{pipeline_mode = #tpu.pipeline_mode<synchronous>, transform_indices = @transform_0, window_bounds = array<i64: 2, 64>}, {transform_indices = @transform_1, window_bounds = array<i64: 64, 8192>}, {pipeline_mode = #tpu.pipeline_mode<synchronous>, transform_indices = @transform_2, window_bounds = array<i64: 2, 1>}, {transform_indices = @transform_3, window_bounds = array<i64: 2, 8192>}, {transform_indices = @transform_4, window_bounds = array<i64: 1, 2, 1>}, {transform_indices = @transform_5, window_bounds = array<i64: 1, 2, 1>}]} {
    %c0 = arith.constant 0 : index
    %c0_0 = arith.constant 0 : index
    %0 = vector.load %arg2[%c0, %c0_0] : memref<2x64xbf16, #tpu.memory_space<vmem>>, vector<2x64xbf16>
    %c0_1 = arith.constant 0 : index
    %c0_2 = arith.constant 0 : index
    %1 = vector.load %arg3[%c0_1, %c0_2] : memref<64x8192xbf16, #tpu.memory_space<vmem>>, vector<64x8192xbf16>
    %cst = arith.constant dense<0.000000e+00> : vector<2x8192xf32>
    %2 = tpu.matmul %0, %1, %cst {dimension_numbers = #tpu.dot_dimension_numbers<[1], [0], [0], [1], [0, 0, 1, 1], [], []>} : vector<2x64xbf16>, vector<64x8192xbf16>, vector<2x8192xf32> -> vector<2x8192xf32>
    %c0_3 = arith.constant 0 : index
    %c0_4 = arith.constant 0 : index
    %3 = vector.load %arg4[%c0_3, %c0_4] : memref<2x1xf32, #tpu.memory_space<vmem>>, vector<2x1xf32>
    %4 = vector.broadcast %3 : vector<2x1xf32> to vector<2x8192xf32>
    %5 = arith.addf %2, %4 : vector<2x8192xf32>
    %c0_5 = arith.constant 0 : index
    %c0_6 = arith.constant 0 : index
    %6 = vector.load %arg5[%c0_5, %c0_6] : memref<2x8192xf32, #tpu.memory_space<vmem>>, vector<2x8192xf32>
    tpu.vector_store %arg5[%c0_5, %c0_6], %5 {strides = array<i32>} : memref<2x8192xf32, #tpu.memory_space<vmem>>, vector<2x8192xf32>,
    %c0_i32 = arith.constant 0 : i32
    %7 = arith.cmpi eq, %arg1, %c0_i32 : i32
    %8 = arith.extui %7 : i1 to i32
    %c0_i32_7 = arith.constant 0 : i32
    %9 = arith.cmpi ne, %8, %c0_i32_7 : i32
    scf.if %9 {
      %cst_22 = arith.constant 0.000000e+00 : f32
      %23 = vector.broadcast %cst_22 : f32 to vector<1x2x1xf32>
      %c0_23 = arith.constant 0 : index
      %c0_24 = arith.constant 0 : index
      %c0_25 = arith.constant 0 : index
      %24 = vector.load %arg6[%c0_23, %c0_24, %c0_25] : memref<1x2x1xf32, #tpu.memory_space<vmem>>, vector<1x2x1xf32>
      tpu.vector_store %arg6[%c0_23, %c0_24, %c0_25], %23 {strides = array<i32>} : memref<1x2x1xf32, #tpu.memory_space<vmem>>, vector<1x2x1xf32>,
      %cst_26 = arith.constant 0.000000e+00 : f32
      %25 = vector.broadcast %cst_26 : f32 to vector<1x2x1xf32>
      %c0_27 = arith.constant 0 : index
      %c0_28 = arith.constant 0 : index
      %c0_29 = arith.constant 0 : index
      %26 = vector.load %arg7[%c0_27, %c0_28, %c0_29] : memref<1x2x1xf32, #tpu.memory_space<vmem>>, vector<1x2x1xf32>
      tpu.vector_store %arg7[%c0_27, %c0_28, %c0_29], %25 {strides = array<i32>} : memref<1x2x1xf32, #tpu.memory_space<vmem>>, vector<1x2x1xf32>,
    } else {
    }
    %c0_8 = arith.constant 0 : index
    %c0_9 = arith.constant 0 : index
    %c0_10 = arith.constant 0 : index
    %10 = vector.load %arg6[%c0_8, %c0_9, %c0_10] : memref<1x2x1xf32, #tpu.memory_space<vmem>>, vector<1x2x1xf32>
    %cst_11 = arith.constant dense<0.000000e+00> : vector<2xf32>
    %11 = vector.multi_reduction <add>, %5, %cst_11 [1] : vector<2x8192xf32> to vector<2xf32>
    %12 = vector.shape_cast %11 : vector<2xf32> to vector<2x1xf32>
    %13 = vector.shape_cast %12 : vector<2x1xf32> to vector<1x2x1xf32>
    %14 = arith.addf %10, %13 : vector<1x2x1xf32>
    %c0_12 = arith.constant 0 : index
    %c0_13 = arith.constant 0 : index
    %c0_14 = arith.constant 0 : index
    %15 = vector.load %arg6[%c0_12, %c0_13, %c0_14] : memref<1x2x1xf32, #tpu.memory_space<vmem>>, vector<1x2x1xf32>
    tpu.vector_store %arg6[%c0_12, %c0_13, %c0_14], %14 {strides = array<i32>} : memref<1x2x1xf32, #tpu.memory_space<vmem>>, vector<1x2x1xf32>,
    %c0_15 = arith.constant 0 : index
    %c0_16 = arith.constant 0 : index
    %c0_17 = arith.constant 0 : index
    %16 = vector.load %arg7[%c0_15, %c0_16, %c0_17] : memref<1x2x1xf32, #tpu.memory_space<vmem>>, vector<1x2x1xf32>
    %17 = arith.mulf %5, %5 : vector<2x8192xf32>
    %cst_18 = arith.constant dense<0.000000e+00> : vector<2xf32>
    %18 = vector.multi_reduction <add>, %17, %cst_18 [1] : vector<2x8192xf32> to vector<2xf32>
    %19 = vector.shape_cast %18 : vector<2xf32> to vector<2x1xf32>
    %20 = vector.shape_cast %19 : vector<2x1xf32> to vector<1x2x1xf32>
    %21 = arith.addf %16, %20 : vector<1x2x1xf32>
    %c0_19 = arith.constant 0 : index
    %c0_20 = arith.constant 0 : index
    %c0_21 = arith.constant 0 : index
    %22 = vector.load %arg7[%c0_19, %c0_20, %c0_21] : memref<1x2x1xf32, #tpu.memory_space<vmem>>, vector<1x2x1xf32>
    tpu.vector_store %arg7[%c0_19, %c0_20, %c0_21], %21 {strides = array<i32>} : memref<1x2x1xf32, #tpu.memory_space<vmem>>, vector<1x2x1xf32>,
    return
  }
  func.func @transform_0(%arg0: i32, %arg1: i32) -> (i32, i32) {
    %c0_i32 = arith.constant 0 : i32
    %c0_i32_0 = arith.constant 0 : i32
    %c0_i32_1 = arith.constant 0 : i32
    return %c0_i32, %c0_i32_0 : i32, i32
  }
  func.func @transform_1(%arg0: i32, %arg1: i32) -> (i32, i32) {
    %c4_i32 = arith.constant 4 : i32
    %0 = arith.muli %arg0, %c4_i32 : i32
    %1 = arith.addi %0, %arg1 : i32
    %c0_i32 = arith.constant 0 : i32
    %c0_i32_0 = arith.constant 0 : i32
    return %c0_i32, %1 : i32, i32
  }
  func.func @transform_2(%arg0: i32, %arg1: i32) -> (i32, i32) {
    %c0_i32 = arith.constant 0 : i32
    %c0_i32_0 = arith.constant 0 : i32
    %c0_i32_1 = arith.constant 0 : i32
    return %c0_i32, %c0_i32_0 : i32, i32
  }
  func.func @transform_3(%arg0: i32, %arg1: i32) -> (i32, i32) {
    %c4_i32 = arith.constant 4 : i32
    %0 = arith.muli %arg0, %c4_i32 : i32
    %1 = arith.addi %0, %arg1 : i32
    %c0_i32 = arith.constant 0 : i32
    %c0_i32_0 = arith.constant 0 : i32
    return %c0_i32, %1 : i32, i32
  }
  func.func @transform_4(%arg0: i32, %arg1: i32) -> (i32, i32, i32) {
    %c0_i32 = arith.constant 0 : i32
    %c0_i32_0 = arith.constant 0 : i32
    %c0_i32_1 = arith.constant 0 : i32
    return %arg0, %c0_i32, %c0_i32_0 : i32, i32, i32
  }
  func.func @transform_5(%arg0: i32, %arg1: i32) -> (i32, i32, i32) {
    %c0_i32 = arith.constant 0 : i32
    %c0_i32_0 = arith.constant 0 : i32
    %c0_i32_1 = arith.constant 0 : i32
    return %arg0, %c0_i32, %c0_i32_0 : i32, i32, i32
  }
}

module attributes {stable_mosaic.version = 11 : i64} {
  func.func @_bn_lrelu_kernel(%arg0: i32, %arg1: memref<2x8192xf32, #tpu.memory_space<vmem>>, %arg2: memref<2x1xf32, #tpu.memory_space<vmem>>, %arg3: memref<2x1xf32, #tpu.memory_space<vmem>>, %arg4: memref<2x8192xbf16, #tpu.memory_space<vmem>>) attributes {dimension_semantics = [#tpu.dimension_semantics<parallel>], iteration_bounds = array<i64: 8>, scalar_prefetch = 0 : i64, scratch_operands = 0 : i64, tpu.core_type = #tpu.core_type<tc>, window_params = [{transform_indices = @transform_0, window_bounds = array<i64: 2, 8192>}, {pipeline_mode = #tpu.pipeline_mode<synchronous>, transform_indices = @transform_1, window_bounds = array<i64: 2, 1>}, {pipeline_mode = #tpu.pipeline_mode<synchronous>, transform_indices = @transform_2, window_bounds = array<i64: 2, 1>}, {transform_indices = @transform_3, window_bounds = array<i64: 2, 8192>}]} {
    %c0 = arith.constant 0 : index
    %c0_0 = arith.constant 0 : index
    %0 = vector.load %arg1[%c0, %c0_0] : memref<2x8192xf32, #tpu.memory_space<vmem>>, vector<2x8192xf32>
    %c0_1 = arith.constant 0 : index
    %c0_2 = arith.constant 0 : index
    %1 = vector.load %arg2[%c0_1, %c0_2] : memref<2x1xf32, #tpu.memory_space<vmem>>, vector<2x1xf32>
    %2 = vector.broadcast %1 : vector<2x1xf32> to vector<2x8192xf32>
    %3 = arith.mulf %0, %2 : vector<2x8192xf32>
    %c0_3 = arith.constant 0 : index
    %c0_4 = arith.constant 0 : index
    %4 = vector.load %arg3[%c0_3, %c0_4] : memref<2x1xf32, #tpu.memory_space<vmem>>, vector<2x1xf32>
    %5 = vector.broadcast %4 : vector<2x1xf32> to vector<2x8192xf32>
    %6 = arith.addf %3, %5 : vector<2x8192xf32>
    %cst = arith.constant 0.000000e+00 : f32
    %7 = vector.broadcast %cst : f32 to vector<2x8192xf32>
    %8 = arith.cmpf oge, %6, %7 : vector<2x8192xf32>
    %cst_5 = arith.constant 2.000000e-01 : f32
    %9 = vector.broadcast %cst_5 : f32 to vector<2x8192xf32>
    %10 = arith.mulf %9, %6 : vector<2x8192xf32>
    %11 = arith.select %8, %6, %10 : vector<2x8192xi1>, vector<2x8192xf32>
    %12 = arith.truncf %11 : vector<2x8192xf32> to vector<2x8192xbf16>
    %c0_6 = arith.constant 0 : index
    %c0_7 = arith.constant 0 : index
    %13 = vector.load %arg4[%c0_6, %c0_7] : memref<2x8192xbf16, #tpu.memory_space<vmem>>, vector<2x8192xbf16>
    tpu.vector_store %arg4[%c0_6, %c0_7], %12 {strides = array<i32>} : memref<2x8192xbf16, #tpu.memory_space<vmem>>, vector<2x8192xbf16>,
    return
  }
  func.func @transform_0(%arg0: i32) -> (i32, i32) {
    %c0_i32 = arith.constant 0 : i32
    %c0_i32_0 = arith.constant 0 : i32
    return %c0_i32, %arg0 : i32, i32
  }
  func.func @transform_1(%arg0: i32) -> (i32, i32) {
    %c0_i32 = arith.constant 0 : i32
    %c0_i32_0 = arith.constant 0 : i32
    %c0_i32_1 = arith.constant 0 : i32
    return %c0_i32, %c0_i32_0 : i32, i32
  }
  func.func @transform_2(%arg0: i32) -> (i32, i32) {
    %c0_i32 = arith.constant 0 : i32
    %c0_i32_0 = arith.constant 0 : i32
    %c0_i32_1 = arith.constant 0 : i32
    return %c0_i32, %c0_i32_0 : i32, i32
  }
  func.func @transform_3(%arg0: i32) -> (i32, i32) {
    %c0_i32 = arith.constant 0 : i32
    %c0_i32_0 = arith.constant 0 : i32
    return %c0_i32, %arg0 : i32, i32
  }
}

module attributes {stable_mosaic.version = 11 : i64} {
  func.func @_gemm_stats_kernel(%arg0: i32, %arg1: i32, %arg2: memref<4x128xbf16, #tpu.memory_space<vmem>>, %arg3: memref<128x4096xbf16, #tpu.memory_space<vmem>>, %arg4: memref<4x1xf32, #tpu.memory_space<vmem>>, %arg5: memref<4x4096xf32, #tpu.memory_space<vmem>>, %arg6: memref<1x4x1xf32, #tpu.memory_space<vmem>>, %arg7: memref<1x4x1xf32, #tpu.memory_space<vmem>>) attributes {dimension_semantics = [#tpu.dimension_semantics<parallel>, #tpu.dimension_semantics<arbitrary>], iteration_bounds = array<i64: 2, 1>, scalar_prefetch = 0 : i64, scratch_operands = 0 : i64, tpu.core_type = #tpu.core_type<tc>, window_params = [{pipeline_mode = #tpu.pipeline_mode<synchronous>, transform_indices = @transform_0, window_bounds = array<i64: 4, 128>}, {transform_indices = @transform_1, window_bounds = array<i64: 128, 4096>}, {pipeline_mode = #tpu.pipeline_mode<synchronous>, transform_indices = @transform_2, window_bounds = array<i64: 4, 1>}, {transform_indices = @transform_3, window_bounds = array<i64: 4, 4096>}, {transform_indices = @transform_4, window_bounds = array<i64: 1, 4, 1>}, {transform_indices = @transform_5, window_bounds = array<i64: 1, 4, 1>}]} {
    %c0 = arith.constant 0 : index
    %c0_0 = arith.constant 0 : index
    %0 = vector.load %arg2[%c0, %c0_0] : memref<4x128xbf16, #tpu.memory_space<vmem>>, vector<4x128xbf16>
    %c0_1 = arith.constant 0 : index
    %c0_2 = arith.constant 0 : index
    %1 = vector.load %arg3[%c0_1, %c0_2] : memref<128x4096xbf16, #tpu.memory_space<vmem>>, vector<128x4096xbf16>
    %cst = arith.constant dense<0.000000e+00> : vector<4x4096xf32>
    %2 = tpu.matmul %0, %1, %cst {dimension_numbers = #tpu.dot_dimension_numbers<[1], [0], [0], [1], [0, 0, 1, 1], [], []>} : vector<4x128xbf16>, vector<128x4096xbf16>, vector<4x4096xf32> -> vector<4x4096xf32>
    %c0_3 = arith.constant 0 : index
    %c0_4 = arith.constant 0 : index
    %3 = vector.load %arg4[%c0_3, %c0_4] : memref<4x1xf32, #tpu.memory_space<vmem>>, vector<4x1xf32>
    %4 = vector.broadcast %3 : vector<4x1xf32> to vector<4x4096xf32>
    %5 = arith.addf %2, %4 : vector<4x4096xf32>
    %c0_5 = arith.constant 0 : index
    %c0_6 = arith.constant 0 : index
    %6 = vector.load %arg5[%c0_5, %c0_6] : memref<4x4096xf32, #tpu.memory_space<vmem>>, vector<4x4096xf32>
    tpu.vector_store %arg5[%c0_5, %c0_6], %5 {strides = array<i32>} : memref<4x4096xf32, #tpu.memory_space<vmem>>, vector<4x4096xf32>,
    %c0_i32 = arith.constant 0 : i32
    %7 = arith.cmpi eq, %arg1, %c0_i32 : i32
    %8 = arith.extui %7 : i1 to i32
    %c0_i32_7 = arith.constant 0 : i32
    %9 = arith.cmpi ne, %8, %c0_i32_7 : i32
    scf.if %9 {
      %cst_22 = arith.constant 0.000000e+00 : f32
      %23 = vector.broadcast %cst_22 : f32 to vector<1x4x1xf32>
      %c0_23 = arith.constant 0 : index
      %c0_24 = arith.constant 0 : index
      %c0_25 = arith.constant 0 : index
      %24 = vector.load %arg6[%c0_23, %c0_24, %c0_25] : memref<1x4x1xf32, #tpu.memory_space<vmem>>, vector<1x4x1xf32>
      tpu.vector_store %arg6[%c0_23, %c0_24, %c0_25], %23 {strides = array<i32>} : memref<1x4x1xf32, #tpu.memory_space<vmem>>, vector<1x4x1xf32>,
      %cst_26 = arith.constant 0.000000e+00 : f32
      %25 = vector.broadcast %cst_26 : f32 to vector<1x4x1xf32>
      %c0_27 = arith.constant 0 : index
      %c0_28 = arith.constant 0 : index
      %c0_29 = arith.constant 0 : index
      %26 = vector.load %arg7[%c0_27, %c0_28, %c0_29] : memref<1x4x1xf32, #tpu.memory_space<vmem>>, vector<1x4x1xf32>
      tpu.vector_store %arg7[%c0_27, %c0_28, %c0_29], %25 {strides = array<i32>} : memref<1x4x1xf32, #tpu.memory_space<vmem>>, vector<1x4x1xf32>,
    } else {
    }
    %c0_8 = arith.constant 0 : index
    %c0_9 = arith.constant 0 : index
    %c0_10 = arith.constant 0 : index
    %10 = vector.load %arg6[%c0_8, %c0_9, %c0_10] : memref<1x4x1xf32, #tpu.memory_space<vmem>>, vector<1x4x1xf32>
    %cst_11 = arith.constant dense<0.000000e+00> : vector<4xf32>
    %11 = vector.multi_reduction <add>, %5, %cst_11 [1] : vector<4x4096xf32> to vector<4xf32>
    %12 = vector.shape_cast %11 : vector<4xf32> to vector<4x1xf32>
    %13 = vector.shape_cast %12 : vector<4x1xf32> to vector<1x4x1xf32>
    %14 = arith.addf %10, %13 : vector<1x4x1xf32>
    %c0_12 = arith.constant 0 : index
    %c0_13 = arith.constant 0 : index
    %c0_14 = arith.constant 0 : index
    %15 = vector.load %arg6[%c0_12, %c0_13, %c0_14] : memref<1x4x1xf32, #tpu.memory_space<vmem>>, vector<1x4x1xf32>
    tpu.vector_store %arg6[%c0_12, %c0_13, %c0_14], %14 {strides = array<i32>} : memref<1x4x1xf32, #tpu.memory_space<vmem>>, vector<1x4x1xf32>,
    %c0_15 = arith.constant 0 : index
    %c0_16 = arith.constant 0 : index
    %c0_17 = arith.constant 0 : index
    %16 = vector.load %arg7[%c0_15, %c0_16, %c0_17] : memref<1x4x1xf32, #tpu.memory_space<vmem>>, vector<1x4x1xf32>
    %17 = arith.mulf %5, %5 : vector<4x4096xf32>
    %cst_18 = arith.constant dense<0.000000e+00> : vector<4xf32>
    %18 = vector.multi_reduction <add>, %17, %cst_18 [1] : vector<4x4096xf32> to vector<4xf32>
    %19 = vector.shape_cast %18 : vector<4xf32> to vector<4x1xf32>
    %20 = vector.shape_cast %19 : vector<4x1xf32> to vector<1x4x1xf32>
    %21 = arith.addf %16, %20 : vector<1x4x1xf32>
    %c0_19 = arith.constant 0 : index
    %c0_20 = arith.constant 0 : index
    %c0_21 = arith.constant 0 : index
    %22 = vector.load %arg7[%c0_19, %c0_20, %c0_21] : memref<1x4x1xf32, #tpu.memory_space<vmem>>, vector<1x4x1xf32>
    tpu.vector_store %arg7[%c0_19, %c0_20, %c0_21], %21 {strides = array<i32>} : memref<1x4x1xf32, #tpu.memory_space<vmem>>, vector<1x4x1xf32>,
    return
  }
  func.func @transform_0(%arg0: i32, %arg1: i32) -> (i32, i32) {
    %c0_i32 = arith.constant 0 : i32
    %c0_i32_0 = arith.constant 0 : i32
    %c0_i32_1 = arith.constant 0 : i32
    return %c0_i32, %c0_i32_0 : i32, i32
  }
  func.func @transform_1(%arg0: i32, %arg1: i32) -> (i32, i32) {
    %c1_i32 = arith.constant 1 : i32
    %0 = arith.muli %arg0, %c1_i32 : i32
    %1 = arith.addi %0, %arg1 : i32
    %c0_i32 = arith.constant 0 : i32
    %c0_i32_0 = arith.constant 0 : i32
    return %c0_i32, %1 : i32, i32
  }
  func.func @transform_2(%arg0: i32, %arg1: i32) -> (i32, i32) {
    %c0_i32 = arith.constant 0 : i32
    %c0_i32_0 = arith.constant 0 : i32
    %c0_i32_1 = arith.constant 0 : i32
    return %c0_i32, %c0_i32_0 : i32, i32
  }
  func.func @transform_3(%arg0: i32, %arg1: i32) -> (i32, i32) {
    %c1_i32 = arith.constant 1 : i32
    %0 = arith.muli %arg0, %c1_i32 : i32
    %1 = arith.addi %0, %arg1 : i32
    %c0_i32 = arith.constant 0 : i32
    %c0_i32_0 = arith.constant 0 : i32
    return %c0_i32, %1 : i32, i32
  }
  func.func @transform_4(%arg0: i32, %arg1: i32) -> (i32, i32, i32) {
    %c0_i32 = arith.constant 0 : i32
    %c0_i32_0 = arith.constant 0 : i32
    %c0_i32_1 = arith.constant 0 : i32
    return %arg0, %c0_i32, %c0_i32_0 : i32, i32, i32
  }
  func.func @transform_5(%arg0: i32, %arg1: i32) -> (i32, i32, i32) {
    %c0_i32 = arith.constant 0 : i32
    %c0_i32_0 = arith.constant 0 : i32
    %c0_i32_1 = arith.constant 0 : i32
    return %arg0, %c0_i32, %c0_i32_0 : i32, i32, i32
  }
}

module attributes {stable_mosaic.version = 11 : i64} {
  func.func @_bn_lrelu_kernel(%arg0: i32, %arg1: memref<4x4096xf32, #tpu.memory_space<vmem>>, %arg2: memref<4x1xf32, #tpu.memory_space<vmem>>, %arg3: memref<4x1xf32, #tpu.memory_space<vmem>>, %arg4: memref<4x4096xbf16, #tpu.memory_space<vmem>>) attributes {dimension_semantics = [#tpu.dimension_semantics<parallel>], iteration_bounds = array<i64: 2>, scalar_prefetch = 0 : i64, scratch_operands = 0 : i64, tpu.core_type = #tpu.core_type<tc>, window_params = [{transform_indices = @transform_0, window_bounds = array<i64: 4, 4096>}, {pipeline_mode = #tpu.pipeline_mode<synchronous>, transform_indices = @transform_1, window_bounds = array<i64: 4, 1>}, {pipeline_mode = #tpu.pipeline_mode<synchronous>, transform_indices = @transform_2, window_bounds = array<i64: 4, 1>}, {transform_indices = @transform_3, window_bounds = array<i64: 4, 4096>}]} {
    %c0 = arith.constant 0 : index
    %c0_0 = arith.constant 0 : index
    %0 = vector.load %arg1[%c0, %c0_0] : memref<4x4096xf32, #tpu.memory_space<vmem>>, vector<4x4096xf32>
    %c0_1 = arith.constant 0 : index
    %c0_2 = arith.constant 0 : index
    %1 = vector.load %arg2[%c0_1, %c0_2] : memref<4x1xf32, #tpu.memory_space<vmem>>, vector<4x1xf32>
    %2 = vector.broadcast %1 : vector<4x1xf32> to vector<4x4096xf32>
    %3 = arith.mulf %0, %2 : vector<4x4096xf32>
    %c0_3 = arith.constant 0 : index
    %c0_4 = arith.constant 0 : index
    %4 = vector.load %arg3[%c0_3, %c0_4] : memref<4x1xf32, #tpu.memory_space<vmem>>, vector<4x1xf32>
    %5 = vector.broadcast %4 : vector<4x1xf32> to vector<4x4096xf32>
    %6 = arith.addf %3, %5 : vector<4x4096xf32>
    %cst = arith.constant 0.000000e+00 : f32
    %7 = vector.broadcast %cst : f32 to vector<4x4096xf32>
    %8 = arith.cmpf oge, %6, %7 : vector<4x4096xf32>
    %cst_5 = arith.constant 2.000000e-01 : f32
    %9 = vector.broadcast %cst_5 : f32 to vector<4x4096xf32>
    %10 = arith.mulf %9, %6 : vector<4x4096xf32>
    %11 = arith.select %8, %6, %10 : vector<4x4096xi1>, vector<4x4096xf32>
    %12 = arith.truncf %11 : vector<4x4096xf32> to vector<4x4096xbf16>
    %c0_6 = arith.constant 0 : index
    %c0_7 = arith.constant 0 : index
    %13 = vector.load %arg4[%c0_6, %c0_7] : memref<4x4096xbf16, #tpu.memory_space<vmem>>, vector<4x4096xbf16>
    tpu.vector_store %arg4[%c0_6, %c0_7], %12 {strides = array<i32>} : memref<4x4096xbf16, #tpu.memory_space<vmem>>, vector<4x4096xbf16>,
    return
  }
  func.func @transform_0(%arg0: i32) -> (i32, i32) {
    %c0_i32 = arith.constant 0 : i32
    %c0_i32_0 = arith.constant 0 : i32
    return %c0_i32, %arg0 : i32, i32
  }
  func.func @transform_1(%arg0: i32) -> (i32, i32) {
    %c0_i32 = arith.constant 0 : i32
    %c0_i32_0 = arith.constant 0 : i32
    %c0_i32_1 = arith.constant 0 : i32
    return %c0_i32, %c0_i32_0 : i32, i32
  }
  func.func @transform_2(%arg0: i32) -> (i32, i32) {
    %c0_i32 = arith.constant 0 : i32
    %c0_i32_0 = arith.constant 0 : i32
    %c0_i32_1 = arith.constant 0 : i32
    return %c0_i32, %c0_i32_0 : i32, i32
  }
  func.func @transform_3(%arg0: i32) -> (i32, i32) {
    %c0_i32 = arith.constant 0 : i32
    %c0_i32_0 = arith.constant 0 : i32
    return %c0_i32, %arg0 : i32, i32
  }
}

module attributes {stable_mosaic.version = 11 : i64} {
  func.func @_bn_lrelu_kernel(%arg0: i32, %arg1: memref<8x512xf32, #tpu.memory_space<vmem>>, %arg2: memref<8x1xf32, #tpu.memory_space<vmem>>, %arg3: memref<8x1xf32, #tpu.memory_space<vmem>>, %arg4: memref<8x512xbf16, #tpu.memory_space<vmem>>) attributes {dimension_semantics = [#tpu.dimension_semantics<parallel>], iteration_bounds = array<i64: 2>, scalar_prefetch = 0 : i64, scratch_operands = 0 : i64, tpu.core_type = #tpu.core_type<tc>, window_params = [{transform_indices = @transform_0, window_bounds = array<i64: 8, 512>}, {pipeline_mode = #tpu.pipeline_mode<synchronous>, transform_indices = @transform_1, window_bounds = array<i64: 8, 1>}, {pipeline_mode = #tpu.pipeline_mode<synchronous>, transform_indices = @transform_2, window_bounds = array<i64: 8, 1>}, {transform_indices = @transform_3, window_bounds = array<i64: 8, 512>}]} {
    %c0 = arith.constant 0 : index
    %c0_0 = arith.constant 0 : index
    %0 = vector.load %arg1[%c0, %c0_0] : memref<8x512xf32, #tpu.memory_space<vmem>>, vector<8x512xf32>
    %c0_1 = arith.constant 0 : index
    %c0_2 = arith.constant 0 : index
    %1 = vector.load %arg2[%c0_1, %c0_2] : memref<8x1xf32, #tpu.memory_space<vmem>>, vector<8x1xf32>
    %2 = vector.broadcast %1 : vector<8x1xf32> to vector<8x512xf32>
    %3 = arith.mulf %0, %2 : vector<8x512xf32>
    %c0_3 = arith.constant 0 : index
    %c0_4 = arith.constant 0 : index
    %4 = vector.load %arg3[%c0_3, %c0_4] : memref<8x1xf32, #tpu.memory_space<vmem>>, vector<8x1xf32>
    %5 = vector.broadcast %4 : vector<8x1xf32> to vector<8x512xf32>
    %6 = arith.addf %3, %5 : vector<8x512xf32>
    %cst = arith.constant 0.000000e+00 : f32
    %7 = vector.broadcast %cst : f32 to vector<8x512xf32>
    %8 = arith.cmpf oge, %6, %7 : vector<8x512xf32>
    %cst_5 = arith.constant 2.000000e-01 : f32
    %9 = vector.broadcast %cst_5 : f32 to vector<8x512xf32>
    %10 = arith.mulf %9, %6 : vector<8x512xf32>
    %11 = arith.select %8, %6, %10 : vector<8x512xi1>, vector<8x512xf32>
    %12 = arith.truncf %11 : vector<8x512xf32> to vector<8x512xbf16>
    %c0_6 = arith.constant 0 : index
    %c0_7 = arith.constant 0 : index
    %13 = vector.load %arg4[%c0_6, %c0_7] : memref<8x512xbf16, #tpu.memory_space<vmem>>, vector<8x512xbf16>
    tpu.vector_store %arg4[%c0_6, %c0_7], %12 {strides = array<i32>} : memref<8x512xbf16, #tpu.memory_space<vmem>>, vector<8x512xbf16>,
    return
  }
  func.func @transform_0(%arg0: i32) -> (i32, i32) {
    %c0_i32 = arith.constant 0 : i32
    %c0_i32_0 = arith.constant 0 : i32
    return %c0_i32, %arg0 : i32, i32
  }
  func.func @transform_1(%arg0: i32) -> (i32, i32) {
    %c0_i32 = arith.constant 0 : i32
    %c0_i32_0 = arith.constant 0 : i32
    %c0_i32_1 = arith.constant 0 : i32
    return %c0_i32, %c0_i32_0 : i32, i32
  }
  func.func @transform_2(%arg0: i32) -> (i32, i32) {
    %c0_i32 = arith.constant 0 : i32
    %c0_i32_0 = arith.constant 0 : i32
    %c0_i32_1 = arith.constant 0 : i32
    return %c0_i32, %c0_i32_0 : i32, i32
  }
  func.func @transform_3(%arg0: i32) -> (i32, i32) {
    %c0_i32 = arith.constant 0 : i32
    %c0_i32_0 = arith.constant 0 : i32
    return %c0_i32, %arg0 : i32, i32
  }
}

module attributes {stable_mosaic.version = 11 : i64} {
  func.func @_gemm_stats_kernel(%arg0: i32, %arg1: i32, %arg2: memref<8x256xbf16, #tpu.memory_space<vmem>>, %arg3: memref<256x512xbf16, #tpu.memory_space<vmem>>, %arg4: memref<8x1xf32, #tpu.memory_space<vmem>>, %arg5: memref<8x512xf32, #tpu.memory_space<vmem>>, %arg6: memref<1x8x1xf32, #tpu.memory_space<vmem>>, %arg7: memref<1x8x1xf32, #tpu.memory_space<vmem>>) attributes {dimension_semantics = [#tpu.dimension_semantics<parallel>, #tpu.dimension_semantics<arbitrary>], iteration_bounds = array<i64: 2, 1>, scalar_prefetch = 0 : i64, scratch_operands = 0 : i64, tpu.core_type = #tpu.core_type<tc>, window_params = [{pipeline_mode = #tpu.pipeline_mode<synchronous>, transform_indices = @transform_0, window_bounds = array<i64: 8, 256>}, {transform_indices = @transform_1, window_bounds = array<i64: 256, 512>}, {pipeline_mode = #tpu.pipeline_mode<synchronous>, transform_indices = @transform_2, window_bounds = array<i64: 8, 1>}, {transform_indices = @transform_3, window_bounds = array<i64: 8, 512>}, {transform_indices = @transform_4, window_bounds = array<i64: 1, 8, 1>}, {transform_indices = @transform_5, window_bounds = array<i64: 1, 8, 1>}]} {
    %c0 = arith.constant 0 : index
    %c0_0 = arith.constant 0 : index
    %0 = vector.load %arg2[%c0, %c0_0] : memref<8x256xbf16, #tpu.memory_space<vmem>>, vector<8x256xbf16>
    %c0_1 = arith.constant 0 : index
    %c0_2 = arith.constant 0 : index
    %1 = vector.load %arg3[%c0_1, %c0_2] : memref<256x512xbf16, #tpu.memory_space<vmem>>, vector<256x512xbf16>
    %cst = arith.constant dense<0.000000e+00> : vector<8x512xf32>
    %2 = tpu.matmul %0, %1, %cst {dimension_numbers = #tpu.dot_dimension_numbers<[1], [0], [0], [1], [0, 0, 1, 1], [], []>} : vector<8x256xbf16>, vector<256x512xbf16>, vector<8x512xf32> -> vector<8x512xf32>
    %c0_3 = arith.constant 0 : index
    %c0_4 = arith.constant 0 : index
    %3 = vector.load %arg4[%c0_3, %c0_4] : memref<8x1xf32, #tpu.memory_space<vmem>>, vector<8x1xf32>
    %4 = vector.broadcast %3 : vector<8x1xf32> to vector<8x512xf32>
    %5 = arith.addf %2, %4 : vector<8x512xf32>
    %c0_5 = arith.constant 0 : index
    %c0_6 = arith.constant 0 : index
    %6 = vector.load %arg5[%c0_5, %c0_6] : memref<8x512xf32, #tpu.memory_space<vmem>>, vector<8x512xf32>
    tpu.vector_store %arg5[%c0_5, %c0_6], %5 {strides = array<i32>} : memref<8x512xf32, #tpu.memory_space<vmem>>, vector<8x512xf32>,
    %c0_i32 = arith.constant 0 : i32
    %7 = arith.cmpi eq, %arg1, %c0_i32 : i32
    %8 = arith.extui %7 : i1 to i32
    %c0_i32_7 = arith.constant 0 : i32
    %9 = arith.cmpi ne, %8, %c0_i32_7 : i32
    scf.if %9 {
      %cst_22 = arith.constant 0.000000e+00 : f32
      %23 = vector.broadcast %cst_22 : f32 to vector<1x8x1xf32>
      %c0_23 = arith.constant 0 : index
      %c0_24 = arith.constant 0 : index
      %c0_25 = arith.constant 0 : index
      %24 = vector.load %arg6[%c0_23, %c0_24, %c0_25] : memref<1x8x1xf32, #tpu.memory_space<vmem>>, vector<1x8x1xf32>
      tpu.vector_store %arg6[%c0_23, %c0_24, %c0_25], %23 {strides = array<i32>} : memref<1x8x1xf32, #tpu.memory_space<vmem>>, vector<1x8x1xf32>,
      %cst_26 = arith.constant 0.000000e+00 : f32
      %25 = vector.broadcast %cst_26 : f32 to vector<1x8x1xf32>
      %c0_27 = arith.constant 0 : index
      %c0_28 = arith.constant 0 : index
      %c0_29 = arith.constant 0 : index
      %26 = vector.load %arg7[%c0_27, %c0_28, %c0_29] : memref<1x8x1xf32, #tpu.memory_space<vmem>>, vector<1x8x1xf32>
      tpu.vector_store %arg7[%c0_27, %c0_28, %c0_29], %25 {strides = array<i32>} : memref<1x8x1xf32, #tpu.memory_space<vmem>>, vector<1x8x1xf32>,
    } else {
    }
    %c0_8 = arith.constant 0 : index
    %c0_9 = arith.constant 0 : index
    %c0_10 = arith.constant 0 : index
    %10 = vector.load %arg6[%c0_8, %c0_9, %c0_10] : memref<1x8x1xf32, #tpu.memory_space<vmem>>, vector<1x8x1xf32>
    %cst_11 = arith.constant dense<0.000000e+00> : vector<8xf32>
    %11 = vector.multi_reduction <add>, %5, %cst_11 [1] : vector<8x512xf32> to vector<8xf32>
    %12 = vector.shape_cast %11 : vector<8xf32> to vector<8x1xf32>
    %13 = vector.shape_cast %12 : vector<8x1xf32> to vector<1x8x1xf32>
    %14 = arith.addf %10, %13 : vector<1x8x1xf32>
    %c0_12 = arith.constant 0 : index
    %c0_13 = arith.constant 0 : index
    %c0_14 = arith.constant 0 : index
    %15 = vector.load %arg6[%c0_12, %c0_13, %c0_14] : memref<1x8x1xf32, #tpu.memory_space<vmem>>, vector<1x8x1xf32>
    tpu.vector_store %arg6[%c0_12, %c0_13, %c0_14], %14 {strides = array<i32>} : memref<1x8x1xf32, #tpu.memory_space<vmem>>, vector<1x8x1xf32>,
    %c0_15 = arith.constant 0 : index
    %c0_16 = arith.constant 0 : index
    %c0_17 = arith.constant 0 : index
    %16 = vector.load %arg7[%c0_15, %c0_16, %c0_17] : memref<1x8x1xf32, #tpu.memory_space<vmem>>, vector<1x8x1xf32>
    %17 = arith.mulf %5, %5 : vector<8x512xf32>
    %cst_18 = arith.constant dense<0.000000e+00> : vector<8xf32>
    %18 = vector.multi_reduction <add>, %17, %cst_18 [1] : vector<8x512xf32> to vector<8xf32>
    %19 = vector.shape_cast %18 : vector<8xf32> to vector<8x1xf32>
    %20 = vector.shape_cast %19 : vector<8x1xf32> to vector<1x8x1xf32>
    %21 = arith.addf %16, %20 : vector<1x8x1xf32>
    %c0_19 = arith.constant 0 : index
    %c0_20 = arith.constant 0 : index
    %c0_21 = arith.constant 0 : index
    %22 = vector.load %arg7[%c0_19, %c0_20, %c0_21] : memref<1x8x1xf32, #tpu.memory_space<vmem>>, vector<1x8x1xf32>
    tpu.vector_store %arg7[%c0_19, %c0_20, %c0_21], %21 {strides = array<i32>} : memref<1x8x1xf32, #tpu.memory_space<vmem>>, vector<1x8x1xf32>,
    return
  }
  func.func @transform_0(%arg0: i32, %arg1: i32) -> (i32, i32) {
    %c0_i32 = arith.constant 0 : i32
    %c0_i32_0 = arith.constant 0 : i32
    %c0_i32_1 = arith.constant 0 : i32
    return %c0_i32, %c0_i32_0 : i32, i32
  }
  func.func @transform_1(%arg0: i32, %arg1: i32) -> (i32, i32) {
    %c1_i32 = arith.constant 1 : i32
    %0 = arith.muli %arg0, %c1_i32 : i32
    %1 = arith.addi %0, %arg1 : i32
    %c0_i32 = arith.constant 0 : i32
    %c0_i32_0 = arith.constant 0 : i32
    return %c0_i32, %1 : i32, i32
  }
  func.func @transform_2(%arg0: i32, %arg1: i32) -> (i32, i32) {
    %c0_i32 = arith.constant 0 : i32
    %c0_i32_0 = arith.constant 0 : i32
    %c0_i32_1 = arith.constant 0 : i32
    return %c0_i32, %c0_i32_0 : i32, i32
  }
  func.func @transform_3(%arg0: i32, %arg1: i32) -> (i32, i32) {
    %c1_i32 = arith.constant 1 : i32
    %0 = arith.muli %arg0, %c1_i32 : i32
    %1 = arith.addi %0, %arg1 : i32
    %c0_i32 = arith.constant 0 : i32
    %c0_i32_0 = arith.constant 0 : i32
    return %c0_i32, %1 : i32, i32
  }
  func.func @transform_4(%arg0: i32, %arg1: i32) -> (i32, i32, i32) {
    %c0_i32 = arith.constant 0 : i32
    %c0_i32_0 = arith.constant 0 : i32
    %c0_i32_1 = arith.constant 0 : i32
    return %arg0, %c0_i32, %c0_i32_0 : i32, i32, i32
  }
  func.func @transform_5(%arg0: i32, %arg1: i32) -> (i32, i32, i32) {
    %c0_i32 = arith.constant 0 : i32
    %c0_i32_0 = arith.constant 0 : i32
    %c0_i32_1 = arith.constant 0 : i32
    return %arg0, %c0_i32, %c0_i32_0 : i32, i32, i32
  }
}

module attributes {stable_mosaic.version = 11 : i64} {
  func.func @_gemm_stats_kernel(%arg0: i32, %arg1: i32, %arg2: memref<16x512xbf16, #tpu.memory_space<vmem>>, %arg3: memref<512x128xbf16, #tpu.memory_space<vmem>>, %arg4: memref<16x1xf32, #tpu.memory_space<vmem>>, %arg5: memref<16x128xf32, #tpu.memory_space<vmem>>, %arg6: memref<1x16x1xf32, #tpu.memory_space<vmem>>, %arg7: memref<1x16x1xf32, #tpu.memory_space<vmem>>) attributes {dimension_semantics = [#tpu.dimension_semantics<parallel>, #tpu.dimension_semantics<arbitrary>], iteration_bounds = array<i64: 1, 1>, scalar_prefetch = 0 : i64, scratch_operands = 0 : i64, tpu.core_type = #tpu.core_type<tc>, window_params = [{pipeline_mode = #tpu.pipeline_mode<synchronous>, transform_indices = @transform_0, window_bounds = array<i64: 16, 512>}, {transform_indices = @transform_1, window_bounds = array<i64: 512, 128>}, {pipeline_mode = #tpu.pipeline_mode<synchronous>, transform_indices = @transform_2, window_bounds = array<i64: 16, 1>}, {transform_indices = @transform_3, window_bounds = array<i64: 16, 128>}, {transform_indices = @transform_4, window_bounds = array<i64: 1, 16, 1>}, {transform_indices = @transform_5, window_bounds = array<i64: 1, 16, 1>}]} {
    %c0 = arith.constant 0 : index
    %c0_0 = arith.constant 0 : index
    %0 = vector.load %arg2[%c0, %c0_0] : memref<16x512xbf16, #tpu.memory_space<vmem>>, vector<16x512xbf16>
    %c0_1 = arith.constant 0 : index
    %c0_2 = arith.constant 0 : index
    %1 = vector.load %arg3[%c0_1, %c0_2] : memref<512x128xbf16, #tpu.memory_space<vmem>>, vector<512x128xbf16>
    %cst = arith.constant dense<0.000000e+00> : vector<16x128xf32>
    %2 = tpu.matmul %0, %1, %cst {dimension_numbers = #tpu.dot_dimension_numbers<[1], [0], [0], [1], [0, 0, 1, 1], [], []>} : vector<16x512xbf16>, vector<512x128xbf16>, vector<16x128xf32> -> vector<16x128xf32>
    %c0_3 = arith.constant 0 : index
    %c0_4 = arith.constant 0 : index
    %3 = vector.load %arg4[%c0_3, %c0_4] : memref<16x1xf32, #tpu.memory_space<vmem>>, vector<16x1xf32>
    %4 = vector.broadcast %3 : vector<16x1xf32> to vector<16x128xf32>
    %5 = arith.addf %2, %4 : vector<16x128xf32>
    %c0_5 = arith.constant 0 : index
    %c0_6 = arith.constant 0 : index
    %6 = vector.load %arg5[%c0_5, %c0_6] : memref<16x128xf32, #tpu.memory_space<vmem>>, vector<16x128xf32>
    tpu.vector_store %arg5[%c0_5, %c0_6], %5 {strides = array<i32>} : memref<16x128xf32, #tpu.memory_space<vmem>>, vector<16x128xf32>,
    %c0_i32 = arith.constant 0 : i32
    %7 = arith.cmpi eq, %arg1, %c0_i32 : i32
    %8 = arith.extui %7 : i1 to i32
    %c0_i32_7 = arith.constant 0 : i32
    %9 = arith.cmpi ne, %8, %c0_i32_7 : i32
    scf.if %9 {
      %cst_22 = arith.constant 0.000000e+00 : f32
      %23 = vector.broadcast %cst_22 : f32 to vector<1x16x1xf32>
      %c0_23 = arith.constant 0 : index
      %c0_24 = arith.constant 0 : index
      %c0_25 = arith.constant 0 : index
      %24 = vector.load %arg6[%c0_23, %c0_24, %c0_25] : memref<1x16x1xf32, #tpu.memory_space<vmem>>, vector<1x16x1xf32>
      tpu.vector_store %arg6[%c0_23, %c0_24, %c0_25], %23 {strides = array<i32>} : memref<1x16x1xf32, #tpu.memory_space<vmem>>, vector<1x16x1xf32>,
      %cst_26 = arith.constant 0.000000e+00 : f32
      %25 = vector.broadcast %cst_26 : f32 to vector<1x16x1xf32>
      %c0_27 = arith.constant 0 : index
      %c0_28 = arith.constant 0 : index
      %c0_29 = arith.constant 0 : index
      %26 = vector.load %arg7[%c0_27, %c0_28, %c0_29] : memref<1x16x1xf32, #tpu.memory_space<vmem>>, vector<1x16x1xf32>
      tpu.vector_store %arg7[%c0_27, %c0_28, %c0_29], %25 {strides = array<i32>} : memref<1x16x1xf32, #tpu.memory_space<vmem>>, vector<1x16x1xf32>,
    } else {
    }
    %c0_8 = arith.constant 0 : index
    %c0_9 = arith.constant 0 : index
    %c0_10 = arith.constant 0 : index
    %10 = vector.load %arg6[%c0_8, %c0_9, %c0_10] : memref<1x16x1xf32, #tpu.memory_space<vmem>>, vector<1x16x1xf32>
    %cst_11 = arith.constant dense<0.000000e+00> : vector<16xf32>
    %11 = vector.multi_reduction <add>, %5, %cst_11 [1] : vector<16x128xf32> to vector<16xf32>
    %12 = vector.shape_cast %11 : vector<16xf32> to vector<16x1xf32>
    %13 = vector.shape_cast %12 : vector<16x1xf32> to vector<1x16x1xf32>
    %14 = arith.addf %10, %13 : vector<1x16x1xf32>
    %c0_12 = arith.constant 0 : index
    %c0_13 = arith.constant 0 : index
    %c0_14 = arith.constant 0 : index
    %15 = vector.load %arg6[%c0_12, %c0_13, %c0_14] : memref<1x16x1xf32, #tpu.memory_space<vmem>>, vector<1x16x1xf32>
    tpu.vector_store %arg6[%c0_12, %c0_13, %c0_14], %14 {strides = array<i32>} : memref<1x16x1xf32, #tpu.memory_space<vmem>>, vector<1x16x1xf32>,
    %c0_15 = arith.constant 0 : index
    %c0_16 = arith.constant 0 : index
    %c0_17 = arith.constant 0 : index
    %16 = vector.load %arg7[%c0_15, %c0_16, %c0_17] : memref<1x16x1xf32, #tpu.memory_space<vmem>>, vector<1x16x1xf32>
    %17 = arith.mulf %5, %5 : vector<16x128xf32>
    %cst_18 = arith.constant dense<0.000000e+00> : vector<16xf32>
    %18 = vector.multi_reduction <add>, %17, %cst_18 [1] : vector<16x128xf32> to vector<16xf32>
    %19 = vector.shape_cast %18 : vector<16xf32> to vector<16x1xf32>
    %20 = vector.shape_cast %19 : vector<16x1xf32> to vector<1x16x1xf32>
    %21 = arith.addf %16, %20 : vector<1x16x1xf32>
    %c0_19 = arith.constant 0 : index
    %c0_20 = arith.constant 0 : index
    %c0_21 = arith.constant 0 : index
    %22 = vector.load %arg7[%c0_19, %c0_20, %c0_21] : memref<1x16x1xf32, #tpu.memory_space<vmem>>, vector<1x16x1xf32>
    tpu.vector_store %arg7[%c0_19, %c0_20, %c0_21], %21 {strides = array<i32>} : memref<1x16x1xf32, #tpu.memory_space<vmem>>, vector<1x16x1xf32>,
    return
  }
  func.func @transform_0(%arg0: i32, %arg1: i32) -> (i32, i32) {
    %c0_i32 = arith.constant 0 : i32
    %c0_i32_0 = arith.constant 0 : i32
    %c0_i32_1 = arith.constant 0 : i32
    return %c0_i32, %c0_i32_0 : i32, i32
  }
  func.func @transform_1(%arg0: i32, %arg1: i32) -> (i32, i32) {
    %c1_i32 = arith.constant 1 : i32
    %0 = arith.muli %arg0, %c1_i32 : i32
    %1 = arith.addi %0, %arg1 : i32
    %c0_i32 = arith.constant 0 : i32
    %c0_i32_0 = arith.constant 0 : i32
    return %c0_i32, %1 : i32, i32
  }
  func.func @transform_2(%arg0: i32, %arg1: i32) -> (i32, i32) {
    %c0_i32 = arith.constant 0 : i32
    %c0_i32_0 = arith.constant 0 : i32
    %c0_i32_1 = arith.constant 0 : i32
    return %c0_i32, %c0_i32_0 : i32, i32
  }
  func.func @transform_3(%arg0: i32, %arg1: i32) -> (i32, i32) {
    %c1_i32 = arith.constant 1 : i32
    %0 = arith.muli %arg0, %c1_i32 : i32
    %1 = arith.addi %0, %arg1 : i32
    %c0_i32 = arith.constant 0 : i32
    %c0_i32_0 = arith.constant 0 : i32
    return %c0_i32, %1 : i32, i32
  }
  func.func @transform_4(%arg0: i32, %arg1: i32) -> (i32, i32, i32) {
    %c0_i32 = arith.constant 0 : i32
    %c0_i32_0 = arith.constant 0 : i32
    %c0_i32_1 = arith.constant 0 : i32
    return %arg0, %c0_i32, %c0_i32_0 : i32, i32, i32
  }
  func.func @transform_5(%arg0: i32, %arg1: i32) -> (i32, i32, i32) {
    %c0_i32 = arith.constant 0 : i32
    %c0_i32_0 = arith.constant 0 : i32
    %c0_i32_1 = arith.constant 0 : i32
    return %arg0, %c0_i32, %c0_i32_0 : i32, i32, i32
  }
}

module attributes {stable_mosaic.version = 11 : i64} {
  func.func @_bn_lrelu_kernel(%arg0: i32, %arg1: memref<16x128xf32, #tpu.memory_space<vmem>>, %arg2: memref<16x1xf32, #tpu.memory_space<vmem>>, %arg3: memref<16x1xf32, #tpu.memory_space<vmem>>, %arg4: memref<16x128xbf16, #tpu.memory_space<vmem>>) attributes {dimension_semantics = [#tpu.dimension_semantics<parallel>], iteration_bounds = array<i64: 1>, scalar_prefetch = 0 : i64, scratch_operands = 0 : i64, tpu.core_type = #tpu.core_type<tc>, window_params = [{transform_indices = @transform_0, window_bounds = array<i64: 16, 128>}, {pipeline_mode = #tpu.pipeline_mode<synchronous>, transform_indices = @transform_1, window_bounds = array<i64: 16, 1>}, {pipeline_mode = #tpu.pipeline_mode<synchronous>, transform_indices = @transform_2, window_bounds = array<i64: 16, 1>}, {transform_indices = @transform_3, window_bounds = array<i64: 16, 128>}]} {
    %c0 = arith.constant 0 : index
    %c0_0 = arith.constant 0 : index
    %0 = vector.load %arg1[%c0, %c0_0] : memref<16x128xf32, #tpu.memory_space<vmem>>, vector<16x128xf32>
    %c0_1 = arith.constant 0 : index
    %c0_2 = arith.constant 0 : index
    %1 = vector.load %arg2[%c0_1, %c0_2] : memref<16x1xf32, #tpu.memory_space<vmem>>, vector<16x1xf32>
    %2 = vector.broadcast %1 : vector<16x1xf32> to vector<16x128xf32>
    %3 = arith.mulf %0, %2 : vector<16x128xf32>
    %c0_3 = arith.constant 0 : index
    %c0_4 = arith.constant 0 : index
    %4 = vector.load %arg3[%c0_3, %c0_4] : memref<16x1xf32, #tpu.memory_space<vmem>>, vector<16x1xf32>
    %5 = vector.broadcast %4 : vector<16x1xf32> to vector<16x128xf32>
    %6 = arith.addf %3, %5 : vector<16x128xf32>
    %cst = arith.constant 0.000000e+00 : f32
    %7 = vector.broadcast %cst : f32 to vector<16x128xf32>
    %8 = arith.cmpf oge, %6, %7 : vector<16x128xf32>
    %cst_5 = arith.constant 2.000000e-01 : f32
    %9 = vector.broadcast %cst_5 : f32 to vector<16x128xf32>
    %10 = arith.mulf %9, %6 : vector<16x128xf32>
    %11 = arith.select %8, %6, %10 : vector<16x128xi1>, vector<16x128xf32>
    %12 = arith.truncf %11 : vector<16x128xf32> to vector<16x128xbf16>
    %c0_6 = arith.constant 0 : index
    %c0_7 = arith.constant 0 : index
    %13 = vector.load %arg4[%c0_6, %c0_7] : memref<16x128xbf16, #tpu.memory_space<vmem>>, vector<16x128xbf16>
    tpu.vector_store %arg4[%c0_6, %c0_7], %12 {strides = array<i32>} : memref<16x128xbf16, #tpu.memory_space<vmem>>, vector<16x128xbf16>,
    return
  }
  func.func @transform_0(%arg0: i32) -> (i32, i32) {
    %c0_i32 = arith.constant 0 : i32
    %c0_i32_0 = arith.constant 0 : i32
    return %c0_i32, %arg0 : i32, i32
  }
  func.func @transform_1(%arg0: i32) -> (i32, i32) {
    %c0_i32 = arith.constant 0 : i32
    %c0_i32_0 = arith.constant 0 : i32
    %c0_i32_1 = arith.constant 0 : i32
    return %c0_i32, %c0_i32_0 : i32, i32
  }
  func.func @transform_2(%arg0: i32) -> (i32, i32) {
    %c0_i32 = arith.constant 0 : i32
    %c0_i32_0 = arith.constant 0 : i32
    %c0_i32_1 = arith.constant 0 : i32
    return %c0_i32, %c0_i32_0 : i32, i32
  }
  func.func @transform_3(%arg0: i32) -> (i32, i32) {
    %c0_i32 = arith.constant 0 : i32
    %c0_i32_0 = arith.constant 0 : i32
    return %c0_i32, %arg0 : i32, i32
  }
}

</mosaic_0001>

<bundles_post_ra>
// kernel: voxel_encoder64.9
= control target key start
LH: loop header
LB: loop body
LE: loop exit
PB: predicated region body
PF: predicated region fallthrough
CT: control target
= control target key end

     0   :  { %s1319_s12 = smov 0   ;;  %s1743_s0 = inlined_call_operand.vmem [shape: f32[2,65536], index: 0, kind: input, shape index: {}]   ;;  %s1744_s1 = inlined_call_operand.vmem [shape: f32[2,1], index: 1, kind: input, shape index: {}]   ;;  %s1745_s2 = inlined_call_operand.vmem [shape: f32[2,1], index: 2, kind: input, shape index: {}]   ;;  %s1746_s3 = inlined_call_operand.vmem [shape: bf16[2,65536], index: 3, kind: output, shape index: {}]  }
   0x1 LB: > { %s1232_s13 = sadd.s32 4294967295, %s1293_s12   ;;  %p1236_p0 = scmp.ge.s32.totalorder %s1293_s12, 1  ;;  %s1293_s12 = sphi %s1319_s12, %s13_s12  }
   0x2   : > { %p138_p1 = scmp.lt.s32.totalorder %s1293_s12, 9 }
   0x4   : > { %p139_p2 = pnand %p1236_p0, %p138_p1 }
   0x5   : > { %v188_v0 = vld [vmem:[%s1744_s1] sm:$0x3] (!%p139_p2)  ;;  %v1295_v1 = vmov (!%p139_p2), 0   ;;  %s1237_s18 = sshll.u32 (!%p139_p2), %s1232_s13, 6  ;;  %v1296_v3 = vmov (!%p139_p2), 269488144   ;;  %v196_v5 = vlaneseq (!%p139_p2) }
   0x6   : > { %142 = sbr.rel (%p139_p2) target bundleno = 212 (0xd4), region = 32  ;;  %1286 = vset.pattern.permute.xlu0 (!%p139_p2), %v1295_v1  ;;  %v217_v2 = vld [vmem:[%s1745_s2] sm:$0x3] (!%p139_p2)  ;;  %p162_p3 = scmp.lt.s32.totalorder (!%p139_p2), %s1237_s18, 511  ;;  %v194_v4 = vunpack.c.l.s4 (!%p139_p2), %v1296_v3  ;;  %v1297_v9 = vmov (!%p139_p2), 1983009808  }
   0x7   : > { %191 = vperm.xlu0 (!%p139_p2), %1286, %v188_v0   ;;  %v1335_v7 = vshrl.u32 (!%p139_p2), %v196_v5, 7  ;;  %v1342_v10 = vunpack.c.l.s4 (!%p139_p2), %v1297_v9  ;;  %v1298_v11 = vmov (!%p139_p2), 1966171168  }
   0x8   : > { %v195_v6 = vunpack.c.0.s8 (!%p139_p2), %v194_v4  ;;  %v1344_v12 = vunpack.c.l.s4 (!%p139_p2), %v1298_v11 }
   0x9   : > { %v313_v25 = vunpack.c.0.s8 (!%p139_p2), %v1342_v10 }
   0xa   : > { %v198_v8 = vsub.s32 (!%p139_p2), %v195_v6, %v1335_v7  ;;  %v780_v26 = vunpack.c.0.s8 (!%p139_p2), %v1344_v12 }
   0xb   : > { %220 = vperm.xlu0 (!%p139_p2), %1286, %v217_v2   ;;  %v1349_v3 = vsub.s32 (!%p139_p2), %v313_v25, %v1335_v7 }
   0xd   : > { %s1753_s18 = smov (!%p162_p3, %s1237_s18), 511 }
   0xe   : > { %s1238_s19 = sshll.u32 %s1753_s18, 1  ;;  %s1616_s25 = scalar_lea.vmem %s1746_s3, %s1753_s18 }
   0xf   : > { %s165_s22 = scalar_lea.vmem %s1743_s0, %s1238_s19 }
  0x10   : > { %v172_v14 = vld [vmem:[%s165_s22] sm:$0xff]  ;;  %v173_v15 = vld [vmem:[%s165_s22 + $0x8] sm:$0xff]  ;;  %v174_v16 = vld [vmem:[%s165_s22 + $0x10] sm:$0xff] }
  0x11   : > { %v175_v17 = vld [vmem:[%s165_s22 + $0x18] sm:$0xff]  ;;  %v176_v19 = vld [vmem:[%s165_s22 + $0x20] sm:$0xff]  ;;  %v177_v20 = vld [vmem:[%s165_s22 + $0x28] sm:$0xff] }
  0x12   : > { %v178_v21 = vld [vmem:[%s165_s22 + $0x30] sm:$0xff]  ;;  %v179_v22 = vld [vmem:[%s165_s22 + $0x38] sm:$0xff]  ;;  %v180_v23 = vld [vmem:[%s165_s22 + $0x40] sm:$0xff] }
  0x13   : > { %v181_v24 = vld [vmem:[%s165_s22 + $0x48] sm:$0xff]  ;;  %v182_v27 = vld [vmem:[%s165_s22 + $0x50] sm:$0xff]  ;;  %v183_v28 = vld [vmem:[%s165_s22 + $0x58] sm:$0xff] }
  0x14   : > { %v184_v29 = vld [vmem:[%s165_s22 + $0x60] sm:$0xff]  ;;  %v185_v32 = vld [vmem:[%s165_s22 + $0x68] sm:$0xff]  ;;  %v186_v33 = vld [vmem:[%s165_s22 + $0x70] sm:$0xff] }
  0x15   : > { %v187_v34 = vld [vmem:[%s165_s22 + $0x78] sm:$0xff] }
  0x86   : > { %v192_v13 = vpop.permute.xlu0 %191 }
  0x87   : > { %v199_v18 = vrot.slane %v192_v13, %v198_v8 }
  0x89   : > { %v201_v30 = vmul.f32 %v199_v18, %v172_v14  ;;  %v202_v35 = vmul.f32 %v199_v18, %v173_v15  ;;  %v203_v36 = vmul.f32 %v199_v18, %v174_v16  ;;  %v204_v37 = vmul.f32 %v199_v18, %v175_v17 }
  0x8a   : > { %v221_v31 = vpop.permute.xlu0 %220  ;;  %v205_v38 = vmul.f32 %v199_v18, %v176_v19  ;;  %v206_v39 = vmul.f32 %v199_v18, %v177_v20  ;;  %v207_v40 = vmul.f32 %v199_v18, %v178_v21  ;;  %v208_v41 = vmul.f32 %v199_v18, %v179_v22 }
  0x8b   : > { %v209_v42 = vmul.f32 %v199_v18, %v180_v23  ;;  %v210_v43 = vmul.f32 %v199_v18, %v181_v24  ;;  %v211_v44 = vmul.f32 %v199_v18, %v182_v27  ;;  %v212_v45 = vmul.f32 %v199_v18, %v183_v28 }
  0x8c   : > { %v228_v46 = vrot.slane %v221_v31, %v198_v8  ;;  %v213_v47 = vmul.f32 %v199_v18, %v184_v29  ;;  %v214_v48 = vmul.f32 %v199_v18, %v185_v32  ;;  %v215_v49 = vmul.f32 %v199_v18, %v186_v33 }
  0x8d   : > { %v216_v50 = vmul.f32 %v199_v18, %v187_v34  ;;  %v1352_v8 = vsub.s32 %v780_v26, %v1335_v7 }
  0x8e   : > { %v230_v51 = vadd.f32 %v228_v46, %v201_v30  ;;  %v231_v52 = vadd.f32 %v228_v46, %v202_v35  ;;  %v232_v53 = vadd.f32 %v228_v46, %v203_v36  ;;  %v233_v54 = vadd.f32 %v228_v46, %v204_v37 }
  0x8f   : > { %v234_v55 = vadd.f32 %v228_v46, %v205_v38  ;;  %v235_v56 = vadd.f32 %v228_v46, %v206_v39  ;;  %v236_v57 = vadd.f32 %v228_v46, %v207_v40  ;;  %v237_v58 = vadd.f32 %v228_v46, %v208_v41 }
  0x90   : > { %v238_v59 = vadd.f32 %v228_v46, %v209_v42  ;;  %v239_v60 = vadd.f32 %v228_v46, %v210_v43  ;;  %v240_v61 = vadd.f32 %v228_v46, %v211_v44  ;;  %v241_v62 = vadd.f32 %v228_v46, %v212_v45 }
  0x91   : > { %v242_v63 = vadd.f32 %v228_v46, %v213_v47  ;;  %v243_v0 = vadd.f32 %v228_v46, %v214_v48  ;;  %v244_v1 = vadd.f32 %v228_v46, %v215_v49  ;;  %v245_v2 = vadd.f32 %v228_v46, %v216_v50 }
  0x92   : > { %vm246_vm0 = vcmp.ge.f32.partialorder %v230_v51, 0.0  ;;  %vm247_vm1 = vcmp.ge.f32.partialorder %v231_v52, 0.0  ;;  %vm248_vm2 = vcmp.ge.f32.partialorder %v232_v53, 0.0  ;;  %vm249_vm3 = vcmp.ge.f32.partialorder %v233_v54, 0.0 }
  0x93   : > { %vm250_vm4 = vcmp.ge.f32.partialorder %v234_v55, 0.0  ;;  %vm251_vm5 = vcmp.ge.f32.partialorder %v235_v56, 0.0  ;;  %vm252_vm6 = vcmp.ge.f32.partialorder %v236_v57, 0.0  ;;  %vm253_vm7 = vcmp.ge.f32.partialorder %v237_v58, 0.0 }
  0x94   : > { %vm254_vm8 = vcmp.ge.f32.partialorder %v238_v59, 0.0  ;;  %vm255_vm9 = vcmp.ge.f32.partialorder %v239_v60, 0.0  ;;  %vm256_vm10 = vcmp.ge.f32.partialorder %v240_v61, 0.0  ;;  %vm257_vm11 = vcmp.ge.f32.partialorder %v241_v62, 0.0 }
  0x95   : > { %vm258_vm12 = vcmp.ge.f32.partialorder %v242_v63, 0.0  ;;  %vm259_vm13 = vcmp.ge.f32.partialorder %v243_v0, 0.0  ;;  %vm260_vm14 = vcmp.ge.f32.partialorder %v244_v1, 0.0  ;;  %vm261_vm15 = vcmp.ge.f32.partialorder %v245_v2, 0.0 }
  0x96   : > { %v262_v4 = vmul.f32 0.2, %v230_v51  ;;  %v263_v5 = vmul.f32 0.2, %v231_v52  ;;  %v264_v6 = vmul.f32 0.2, %v232_v53 }
  0x97   : > { %v265_v9 = vmul.f32 0.2, %v233_v54  ;;  %v266_v10 = vmul.f32 0.2, %v234_v55  ;;  %v267_v11 = vmul.f32 0.2, %v235_v56 }
  0x98   : > { %v268_v12 = vmul.f32 0.2, %v236_v57  ;;  %v269_v13 = vmul.f32 0.2, %v237_v58  ;;  %v270_v14 = vmul.f32 0.2, %v238_v59  ;;  %v278_v15 = vsel %vm246_vm0, %v230_v51, %v262_v4 }
  0x99   : > { %v271_v16 = vmul.f32 0.2, %v239_v60  ;;  %v272_v17 = vmul.f32 0.2, %v240_v61  ;;  %v273_v18 = vmul.f32 0.2, %v241_v62  ;;  %v279_v19 = vsel %vm247_vm1, %v231_v52, %v263_v5 }
  0x9a   : > { %v274_v20 = vmul.f32 0.2, %v242_v63  ;;  %v275_v21 = vmul.f32 0.2, %v243_v0  ;;  %v276_v22 = vmul.f32 0.2, %v244_v1  ;;  %v280_v23 = vsel %vm248_vm2, %v232_v53, %v264_v6 }
  0x9b   : > { %v277_v7 = vmul.f32 0.2, %v245_v2  ;;  %v281_v24 = vsel %vm249_vm3, %v233_v54, %v265_v9  ;;  %v282_v25 = vsel %vm250_vm4, %v234_v55, %v266_v10  ;;  %v283_v26 = vsel %vm251_vm5, %v235_v56, %v267_v11 }
  0x9c   : > { %v284_v27 = vsel %vm252_vm6, %v236_v57, %v268_v12  ;;  %v285_v28 = vsel %vm253_vm7, %v237_v58, %v269_v13  ;;  %v286_v29 = vsel %vm254_vm8, %v238_v59, %v270_v14  ;;  %v287_v30 = vsel %vm255_vm9, %v239_v60, %v271_v16 }
  0x9d   : > { %v288_v31 = vsel %vm256_vm10, %v240_v61, %v272_v17  ;;  %v289_v32 = vsel %vm257_vm11, %v241_v62, %v273_v18  ;;  %v1367_v33 = vsel %vm258_vm12, %v242_v63, %v274_v20  ;;  %v1370_v34 = vsel %vm259_vm13, %v243_v0, %v275_v21 }
  0x9e   : > { %v1373_v35 = vsel %vm260_vm14, %v244_v1, %v276_v22  ;;  %v1376_v36 = vsel %vm261_vm15, %v245_v2, %v277_v7  ;;  %v310_v37 = vcombine.high %v278_v15, %v278_v15  ;;  %v1379_v38 = vrot.slane %v278_v15, %v1349_v3 }
  0x9f   : > { %v327_v39 = vcombine.high %v279_v19, %v279_v19  ;;  %v1382_v40 = vrot.slane %v279_v19, %v1349_v3  ;;  %v344_v41 = vcombine.high %v280_v23, %v280_v23  ;;  %v1385_v42 = vrot.slane %v280_v23, %v1349_v3 }
  0xa0   : > { %v1388_v43 = vrot.slane %v310_v37, %v1349_v3  ;;  %v325_v44 = vcombine.high %v1379_v38, %v1379_v38  ;;  %v361_v45 = vcombine.high %v281_v24, %v281_v24  ;;  %v1393_v46 = vrot.slane %v281_v24, %v1349_v3 }
  0xa1   : > { %v1396_v47 = vrot.slane %v327_v39, %v1349_v3  ;;  %v342_v48 = vcombine.high %v1382_v40, %v1382_v40  ;;  %v1401_v49 = vrot.slane %v344_v41, %v1349_v3  ;;  %v359_v50 = vcombine.high %v1385_v42, %v1385_v42 }
  0xa2   : > { %v326_v51 = vcombine.high %v1388_v43, %v1388_v43  ;;  %v1408_v52 = vrot.slane %v361_v45, %v1349_v3  ;;  %v376_v53 = vcombine.high %v1393_v46, %v1393_v46  ;;  %v378_v54 = vcombine.high %v282_v25, %v282_v25 }
  0xa3   : > { %v343_v55 = vcombine.high %v1396_v47, %v1396_v47  ;;  %v360_v56 = vcombine.high %v1401_v49, %v1401_v49  ;;  %v1417_v57 = vrot.slane %v282_v25, %v1349_v3  ;;  %v395_v58 = vcombine.high %v283_v26, %v283_v26 }
  0xa4   : > { %v377_v59 = vcombine.high %v1408_v52, %v1408_v52  ;;  %v1422_v60 = vrot.slane %v378_v54, %v1349_v3  ;;  %v1425_v61 = vrot.slane %v283_v26, %v1349_v3  ;;  %v412_v62 = vcombine.high %v284_v27, %v284_v27 }
  0xa5   : > { %v393_v63 = vcombine.high %v1417_v57, %v1417_v57  ;;  %v1430_v0 = vrot.slane %v395_v58, %v1349_v3  ;;  %v1433_v1 = vrot.slane %v284_v27, %v1349_v3  ;;  %v429_v2 = vcombine.high %v285_v28, %v285_v28 }
  0xa6   : > { %v394_v4 = vcombine.high %v1422_v60, %v1422_v60  ;;  %v410_v5 = vcombine.high %v1425_v61, %v1425_v61  ;;  %v1440_v6 = vrot.slane %v412_v62, %v1349_v3  ;;  %v1443_v9 = vrot.slane %v285_v28, %v1349_v3 }
  0xa7   : > { %v411_v10 = vcombine.high %v1430_v0, %v1430_v0  ;;  %v427_v11 = vcombine.high %v1433_v1, %v1433_v1  ;;  %v1450_v12 = vrot.slane %v429_v2, %v1349_v3  ;;  %v446_v13 = vcombine.high %v286_v29, %v286_v29 }
  0xa8   : > { %v428_v14 = vcombine.high %v1440_v6, %v1440_v6  ;;  %v444_v15 = vcombine.high %v1443_v9, %v1443_v9  ;;  %v1457_v16 = vrot.slane %v286_v29, %v1349_v3  ;;  %v463_v17 = vcombine.high %v287_v30, %v287_v30 }
  0xa9   : > { %v445_v18 = vcombine.high %v1450_v12, %v1450_v12  ;;  %v1462_v19 = vrot.slane %v446_v13, %v1349_v3  ;;  %v1465_v20 = vrot.slane %v287_v30, %v1349_v3  ;;  %v480_v21 = vcombine.high %v288_v31, %v288_v31 }
  0xaa   : > { %v461_v22 = vcombine.high %v1457_v16, %v1457_v16  ;;  %v1470_v23 = vrot.slane %v463_v17, %v1349_v3  ;;  %v1473_v7 = vrot.slane %v288_v31, %v1349_v3  ;;  %v497_v24 = vcombine.high %v289_v32, %v289_v32 }
  0xab   : > { %v462_v25 = vcombine.high %v1462_v19, %v1462_v19  ;;  %v478_v26 = vcombine.high %v1465_v20, %v1465_v20  ;;  %v1480_v27 = vrot.slane %v480_v21, %v1349_v3  ;;  %v1483_v28 = vrot.slane %v289_v32, %v1349_v3 }
  0xac   : > { %v479_v29 = vcombine.high %v1470_v23, %v1470_v23  ;;  %v495_v30 = vcombine.high %v1473_v7, %v1473_v7  ;;  %v1490_v31 = vrot.slane %v497_v24, %v1349_v3  ;;  %v514_v37 = vcombine.high %v1367_v33, %v1367_v33 }
  0xad   : > { %v496_v39 = vcombine.high %v1480_v27, %v1480_v27  ;;  %v512_v41 = vcombine.high %v1483_v28, %v1483_v28  ;;  %v1500_v32 = vrot.slane %v1367_v33, %v1349_v3  ;;  %v531_v45 = vcombine.high %v1370_v34, %v1370_v34 }
  0xae   : > { %v1507_v58 = vrot.slane %v514_v37, %v1349_v3  ;;  %v1511_v62 = vrot.slane %v1370_v34, %v1349_v3  ;;  %v548_v2 = vcombine.high %v1373_v35, %v1373_v35  ;;  %v1522_v17 = vrot.slane %v1373_v35, %v1349_v3 }
  0xaf   : > { %v1518_v13 = vrot.slane %v531_v45, %v1349_v3  ;;  %v565_v21 = vcombine.high %v1376_v36, %v1376_v36  ;;  %v1535_v45 = vrot.slane %v1376_v36, %v1349_v3  ;;  %v1240_v24 = vpack.c.bf16 %v325_v44, %v1379_v38 }
  0xb0   : > { %v530_v34 = vcombine.high %v1507_v58, %v1507_v58  ;;  %v1531_v37 = vrot.slane %v548_v2, %v1349_v3  ;;  %v563_v33 = vcombine.high %v1522_v17, %v1522_v17  ;;  %v1241_v35 = vpack.c.bf16 %v326_v51, %v1388_v43 }
  0xb1   : > { %v1542_v54 = vrot.slane %v565_v21, %v1349_v3  ;;  %v1242_v3 = vpack.c.bf16 %v342_v48, %v1382_v40  ;;  %v1243_v38 = vpack.c.bf16 %v343_v55, %v1396_v47  ;;  %v784_v44 = vrot.slane %v1240_v24, %v1352_v8 }
  0xb2   : > { %v564_v2 = vcombine.high %v1531_v37, %v1531_v37  ;;  %v1244_v43 = vpack.c.bf16 %v359_v50, %v1385_v42  ;;  %v791_v51 = vrot.slane %v1241_v35, %v1352_v8  ;;  %v1245_v40 = vpack.c.bf16 %v360_v56, %v1401_v49 }
  0xb3   : > { %v581_v21 = vcombine.high %v1542_v54, %v1542_v54  ;;  %v798_v36 = vrot.slane %v1242_v3, %v1352_v8  ;;  %v1246_v47 = vpack.c.bf16 %v376_v53, %v1393_v46  ;;  %v805_v48 = vrot.slane %v1243_v38, %v1352_v8 }
  0xb4   : > { %v1247_v42 = vpack.c.bf16 %v377_v59, %v1408_v52  ;;  %v833_v50 = vrot.slane %v1244_v43, %v1352_v8  ;;  %v1248_v55 = vpack.c.bf16 %v393_v63, %v1417_v57  ;;  %v806_v49 = vcombine.low %v784_v44, %v791_v51 }
  0xb5   : > { %v840_v56 = vrot.slane %v1245_v40, %v1352_v8  ;;  %v847_v46 = vrot.slane %v1246_v47, %v1352_v8  ;;  %v1249_v53 = vpack.c.bf16 %v394_v4, %v1422_v60  ;;  %v807_v24 = vcombine.low %v798_v36, %v805_v48 }
  0xb6   : > { %v854_v52 = vrot.slane %v1247_v42, %v1352_v8  ;;  %v1250_v59 = vpack.c.bf16 %v410_v5, %v1425_v61  ;;  %v1251_v57 = vpack.c.bf16 %v411_v10, %v1430_v0  ;;  %v814_v63 = vrot.slane %v806_v49, %v1352_v8 }
  0xb7   : > { %v855_v35 = vcombine.low %v833_v50, %v840_v56  ;;  %v882_v3 = vrot.slane %v1248_v55, %v1352_v8  ;;  %v889_v60 = vrot.slane %v1249_v53, %v1352_v8  ;;  %v821_v4 = vrot.slane %v807_v24, %v1352_v8 }
  0xb8   : > { %v856_v36 = vcombine.low %v847_v46, %v854_v52  ;;  %v896_v38 = vrot.slane %v1250_v59, %v1352_v8  ;;  %v903_v44 = vrot.slane %v1251_v57, %v1352_v8  ;;  %v1252_v5 = vpack.c.bf16 %v427_v11, %v1433_v1 }
  0xb9   : > { %v863_v61 = vrot.slane %v855_v35, %v1352_v8  ;;  %v904_v0 = vcombine.low %v882_v3, %v889_v60  ;;  %v1253_v10 = vpack.c.bf16 %v428_v14, %v1440_v6  ;;  %v822_v43 = vcombine.low %v814_v63, %v821_v4 }
  0xba   : > { %v870_v51 = vrot.slane %v856_v36, %v1352_v8  ;;  %v905_v40 = vcombine.low %v896_v38, %v903_v44  ;;  %v1254_v47 = vpack.c.bf16 %v444_v15, %v1443_v9  ;;  %v1255_v1 = vpack.c.bf16 %v445_v18, %v1450_v12 }
  0xbb   : > { %v912_v48 = vrot.slane %v904_v0, %v1352_v8  ;;  %v931_v11 = vrot.slane %v1252_v5, %v1352_v8  ;;  %v938_v6 = vrot.slane %v1253_v10, %v1352_v8  ;;  %v1256_v9 = vpack.c.bf16 %v461_v22, %v1457_v16  ;;  %1174 = vst [vmem:[%s1616_s25] sm:$0xff] %v822_v43 }
  0xbc   : > { %v871_v14 = vcombine.low %v863_v61, %v870_v51  ;;  %v919_v42 = vrot.slane %v905_v40, %v1352_v8  ;;  %v945_v50 = vrot.slane %v1254_v47, %v1352_v8  ;;  %v952_v15 = vrot.slane %v1255_v1, %v1352_v8 }
  0xbd   : > { %v953_v55 = vcombine.low %v931_v11, %v938_v6  ;;  %v1257_v12 = vpack.c.bf16 %v462_v25, %v1462_v19  ;;  %v1258_v18 = vpack.c.bf16 %v478_v26, %v1465_v20  ;;  %v1259_v16 = vpack.c.bf16 %v479_v29, %v1470_v23 }
  0xbe   : > { %v920_v49 = vcombine.low %v912_v48, %v919_v42  ;;  %v980_v22 = vrot.slane %v1256_v9, %v1352_v8  ;;  %v1260_v56 = vpack.c.bf16 %v495_v30, %v1473_v7  ;;  %1175 = vst [vmem:[%s1616_s25 + $0x8] sm:$0xff] %v871_v14  ;;  %v954_v19 = vcombine.low %v945_v50, %v952_v15 }
  0xbf   : > { %v961_v25 = vrot.slane %v953_v55, %v1352_v8  ;;  %v987_v46 = vrot.slane %v1257_v12, %v1352_v8  ;;  %v994_v20 = vrot.slane %v1258_v18, %v1352_v8  ;;  %v1001_v26 = vrot.slane %v1259_v16, %v1352_v8 }
  0xc0   : > { %v1261_v23 = vpack.c.bf16 %v496_v39, %v1480_v27  ;;  %v1262_v7 = vpack.c.bf16 %v512_v41, %v1483_v28  ;;  %v1747_v29 = vcombine.high %v1490_v31, %v1490_v31  ;;  %1176 = vst [vmem:[%s1616_s25 + $0x10] sm:$0xff] %v920_v49  ;;  %v968_v53 = vrot.slane %v954_v19, %v1352_v8 }
  0xc1   : > { %v1002_v24 = vcombine.low %v980_v22, %v987_v46  ;;  %v1029_v52 = vrot.slane %v1260_v56, %v1352_v8  ;;  %v1748_v27 = vcombine.high %v1500_v32, %v1500_v32  ;;  %v1003_v59 = vcombine.low %v994_v20, %v1001_v26 }
  0xc2   : > { %v1263_v30 = vpack.c.bf16 %v1747_v29, %v1490_v31  ;;  %v1036_v28 = vrot.slane %v1261_v23, %v1352_v8  ;;  %v1043_v41 = vrot.slane %v1262_v7, %v1352_v8  ;;  %v969_v31 = vcombine.low %v961_v25, %v968_v53 }
  0xc3   : > { %v1264_v39 = vpack.c.bf16 %v1748_v27, %v1500_v32  ;;  %v1010_v63 = vrot.slane %v1002_v24, %v1352_v8  ;;  %v1265_v35 = vpack.c.bf16 %v530_v34, %v1507_v58  ;;  %v1749_v32 = vcombine.high %v1511_v62, %v1511_v62 }
  0xc4   : > { %v1050_v57 = vrot.slane %v1263_v30, %v1352_v8  ;;  %v1017_v60 = vrot.slane %v1003_v59, %v1352_v8  ;;  %v1051_v4 = vcombine.low %v1029_v52, %v1036_v28  ;;  %v1750_v38 = vcombine.high %v1518_v13, %v1518_v13  ;;  %1177 = vst [vmem:[%s1616_s25 + $0x18] sm:$0xff] %v969_v31 }
  0xc5   : > { %v1266_v3 = vpack.c.bf16 %v1749_v32, %v1511_v62  ;;  %v1078_v61 = vrot.slane %v1264_v39, %v1352_v8  ;;  %v1085_v0 = vrot.slane %v1265_v35, %v1352_v8  ;;  %v1268_v62 = vpack.c.bf16 %v563_v33, %v1522_v17 }
  0xc6   : > { %v1052_v36 = vcombine.low %v1043_v41, %v1050_v57  ;;  %v1267_v44 = vpack.c.bf16 %v1750_v38, %v1518_v13  ;;  %v1018_v34 = vcombine.low %v1010_v63, %v1017_v60  ;;  %v1059_v5 = vrot.slane %v1051_v4, %v1352_v8 }
  0xc7   : > { %v1092_v58 = vrot.slane %v1266_v3, %v1352_v8  ;;  %v1100_v43 = vcombine.low %v1078_v61, %v1085_v0  ;;  %v1269_v51 = vpack.c.bf16 %v564_v2, %v1531_v37  ;;  %v1751_v40 = vcombine.high %v1535_v45, %v1535_v45 }
  0xc8   : > { %v1066_v10 = vrot.slane %v1052_v36, %v1352_v8  ;;  %v1099_v13 = vrot.slane %v1267_v44, %v1352_v8  ;;  %v1271_v17 = vpack.c.bf16 %v581_v21, %v1542_v54  ;;  %v1127_v1 = vrot.slane %v1268_v62, %v1352_v8  ;;  %1178 = vst [vmem:[%s1616_s25 + $0x20] sm:$0xff] %v1018_v34 }
  0xc9   : > { %v1270_v33 = vpack.c.bf16 %v1751_v40, %v1535_v45  ;;  %v1108_v11 = vrot.slane %v1100_v43, %v1352_v8  ;;  %v1134_v37 = vrot.slane %v1269_v51, %v1352_v8 }
  0xca   : > { %v1067_v47 = vcombine.low %v1059_v5, %v1066_v10  ;;  %v1101_v48 = vcombine.low %v1092_v58, %v1099_v13  ;;  %v1148_v45 = vrot.slane %v1271_v17, %v1352_v8 }
  0xcb   : > { %v1141_v2 = vrot.slane %v1270_v33, %v1352_v8  ;;  %v1149_v14 = vcombine.low %v1127_v1, %v1134_v37 }
  0xcc   : > { %v1115_v6 = vrot.slane %v1101_v48, %v1352_v8  ;;  %1179 = vst [vmem:[%s1616_s25 + $0x28] sm:$0xff] %v1067_v47 }
  0xcd   : > { %v1150_v54 = vcombine.low %v1141_v2, %v1148_v45  ;;  %v1157_v42 = vrot.slane %v1149_v14, %v1352_v8 }
  0xce   : > { %v1116_v21 = vcombine.low %v1108_v11, %v1115_v6 }
  0xcf   : > { %v1164_v50 = vrot.slane %v1150_v54, %v1352_v8 }
  0xd0   : > { %1180 = vst [vmem:[%s1616_s25 + $0x30] sm:$0xff] %v1116_v21 }
  0xd1   : > { %v1165_v9 = vcombine.low %v1157_v42, %v1164_v50 }
  0xd3   : > { %1181 = vst [vmem:[%s1616_s25 + $0x38] sm:$0xff] %v1165_v9 }
  0xd4 PF: > { %s13_s12 = sadd.s32 1, %s1293_s12  }
  0xd5   : > { %p10_p4 = scmp.ge.s32.totalorder %s13_s12, 10  }
  0xd7   :  { %12 = sbr.rel (!%p10_p4) target bundleno = 1 (0x1), region = 62 }

// kernel: voxel_encoder64.8
= control target key start
LH: loop header
LB: loop body
LE: loop exit
PB: predicated region body
PF: predicated region fallthrough
CT: control target
= control target key end

     0   :  { %s4978_s18 = smov 0   ;;  %s4980_s19 = smov 0   ;;  %s6614_s0 = inlined_call_operand.vmem [shape: bf16[2,64], index: 0, kind: input, shape index: {}]   ;;  %s6615_s1 = inlined_call_operand.vmem [shape: bf16[64,65536], index: 1, kind: input, shape index: {}]   ;;  %s6616_s2 = inlined_call_operand.vmem [shape: f32[2,1], index: 2, kind: input, shape index: {}]   ;;  %s6617_s3 = inlined_call_operand.vmem [shape: f32[2,65536], index: 3, kind: output, shape index: {0}]   ;;  %s6618_s4 = inlined_call_operand.vmem [shape: f32[2,2,1], index: 4, kind: output, shape index: {1}]   ;;  %s6619_s5 = inlined_call_operand.vmem [shape: f32[2,2,1], index: 5, kind: output, shape index: {2}]  }
   0x1   :  { %s4982_s20 = smov 0   ;;  %s4984_s21 = smov 0  }
   0x2   :  { %s4986_s22 = smov 0   ;;  %s4988_s23 = smov 0  }
   0x3   :  { %s4990_s24 = smov 0  }
   0x4 LB: > { %s25_s25 = sadd.s32 1, %s4935_s22  ;;  %s28_s26 = sadd.s32 1, %s4939_s23  ;;  %s4943_s24 = sphi %s4990_s24, %s16_s24   ;;  %s4939_s23 = sphi %s4988_s23, %s6682_s23   ;;  %s4935_s22 = sphi %s4986_s22, %s6681_s22   ;;  %s4931_s21 = sphi %s4984_s21, %s6680_s21   ;;  %s4927_s20 = sphi %s4982_s20, %s6679_s20   ;;  %s4923_s19 = sphi %s4980_s19, %s6678_s19   ;;  %s4919_s18 = sphi %s4978_s18, %s6677_s18  }
   0x5   : > { %p26_p0 = scmp.ge.s32.totalorder %s25_s25, 4  ;;  %p67_p1 = scmp.ne.s32.totalorder %s4923_s19, %s4919_s18 }
   0x6   : > { %p68_p2 = scmp.eq.s32.totalorder %s4943_s24, 0  ;;  %s4519_s27 = sshll.u32 %s4939_s23, 2 }
   0x7   : > { %s6684_s25 = smov (%p26_p0, %s25_s25), 0  ;;  %s6686_s26 = smov (!%p26_p0, %s28_s26), %s4939_s23 }
   0x8   : > { %p30_p3 = scmp.ge.s32.totalorder %s6686_s26, 2  ;;  %p69_p4 = por %p68_p2, %p67_p1 }
   0x9   : > { %s54_s28 = sadd.s32 %s4935_s22, %s4519_s27  ;;  %s60_s7 = sadd.s32 1, %s4923_s19 }
   0xa   : > { %s6688_s26 = smov (%p30_p3, %s6686_s26), 0  ;;  %p4524_p6 = scmp.ge.s32.totalorder %s4943_s24, 8 }
   0xb   : > { %s4520_s29 = sshll.u32 %s6688_s26, 2 }
   0xc   : > { %s56_s30 = sadd.s32 %s4520_s29, %s6684_s25  ;;  %202 = sbr.rel (%p4524_p6) target bundleno = 151 (0x97), region = 24 }
   0xd   : > { %s57_s6 = ssub.s32 %s54_s28, %s56_s30 }
   0xe   : > { %p58_p5 = scmp.eq.s32.totalorder %s57_s6, 0 }
  0x10   : > { %s5029_s8 = scalar_select %p58_p5, %s4923_s19, %s60_s7  }
  0x13   : > { %205 = sbr.rel (!%p69_p4) target bundleno = 151 (0x97), region = 28  ;;  %s207_s9 = sand.u32 (%p69_p4), 1, %s4923_s19  }
  0x14   : > { %s4827_s10 = sshll.u32 (%p69_p4), %s54_s28, 8  ;;  %s4525_s11 = sshll.u32 (%p69_p4), %s207_s9, 11 }
  0x15   : > { %s5036_s14 = scalar_lea.vmem (%p69_p4), %s6615_s1, %s4827_s10  ;;  %s5041_s15 = scalar_lea.vmem (%p69_p4), [#allocation2], %s4525_s11 }
  0x16   : > { %v227_v0 = vld [vmem:[%s5036_s14] sm:$0xff] (%p69_p4)  ;;  %v229_v1 = vld [vmem:[%s5036_s14 + $0x8] sm:$0xff] (%p69_p4)  ;;  %v231_v2 = vld [vmem:[%s5036_s14 + $0x10] sm:$0xff] (%p69_p4) }
  0x17   : > { %228 = vst [vmem:[%s5041_s15] sm:$0xff] (%p69_p4), %v227_v0  ;;  %230 = vst [vmem:[%s5041_s15 + $0x8] sm:$0xff] (%p69_p4), %v229_v1  ;;  %v233_v3 = vld [vmem:[%s5036_s14 + $0x18] sm:$0xff] (%p69_p4)  ;;  %v235_v4 = vld [vmem:[%s5036_s14 + $0x20] sm:$0xff] (%p69_p4) }
  0x18   : > { %232 = vst [vmem:[%s5041_s15 + $0x10] sm:$0xff] (%p69_p4), %v231_v2  ;;  %v237_v5 = vld [vmem:[%s5036_s14 + $0x28] sm:$0xff] (%p69_p4)  ;;  %234 = vst [vmem:[%s5041_s15 + $0x18] sm:$0xff] (%p69_p4), %v233_v3  ;;  %v239_v6 = vld [vmem:[%s5036_s14 + $0x30] sm:$0xff] (%p69_p4) }
  0x19   : > { %236 = vst [vmem:[%s5041_s15 + $0x20] sm:$0xff] (%p69_p4), %v235_v4  ;;  %238 = vst [vmem:[%s5041_s15 + $0x28] sm:$0xff] (%p69_p4), %v237_v5  ;;  %v241_v7 = vld [vmem:[%s5036_s14 + $0x38] sm:$0xff] (%p69_p4)  ;;  %v243_v8 = vld [vmem:[%s5036_s14 + $0x40] sm:$0xff] (%p69_p4) }
  0x1a   : > { %240 = vst [vmem:[%s5041_s15 + $0x30] sm:$0xff] %v239_v6  ;;  %242 = vst [vmem:[%s5041_s15 + $0x38] sm:$0xff] %v241_v7  ;;  %v245_v9 = vld [vmem:[%s5036_s14 + $0x48] sm:$0xff]  ;;  %v247_v10 = vld [vmem:[%s5036_s14 + $0x50] sm:$0xff] }
  0x1b   : > { %244 = vst [vmem:[%s5041_s15 + $0x40] sm:$0xff] %v243_v8  ;;  %v249_v11 = vld [vmem:[%s5036_s14 + $0x58] sm:$0xff]  ;;  %246 = vst [vmem:[%s5041_s15 + $0x48] sm:$0xff] %v245_v9  ;;  %v251_v12 = vld [vmem:[%s5036_s14 + $0x60] sm:$0xff] }
  0x1c   : > { %248 = vst [vmem:[%s5041_s15 + $0x50] sm:$0xff] %v247_v10  ;;  %250 = vst [vmem:[%s5041_s15 + $0x58] sm:$0xff] %v249_v11  ;;  %v253_v13 = vld [vmem:[%s5036_s14 + $0x68] sm:$0xff]  ;;  %v255_v14 = vld [vmem:[%s5036_s14 + $0x70] sm:$0xff] }
  0x1d   : > { %252 = vst [vmem:[%s5041_s15 + $0x60] sm:$0xff] %v251_v12  ;;  %254 = vst [vmem:[%s5041_s15 + $0x68] sm:$0xff] %v253_v13  ;;  %v257_v15 = vld [vmem:[%s5036_s14 + $0x78] sm:$0xff]  ;;  %v259_v16 = vld [vmem:[%s5036_s14 + $0x80] sm:$0xff] }
  0x1e   : > { %256 = vst [vmem:[%s5041_s15 + $0x70] sm:$0xff] %v255_v14  ;;  %v261_v17 = vld [vmem:[%s5036_s14 + $0x88] sm:$0xff]  ;;  %258 = vst [vmem:[%s5041_s15 + $0x78] sm:$0xff] %v257_v15  ;;  %v263_v18 = vld [vmem:[%s5036_s14 + $0x90] sm:$0xff] }
  0x1f   : > { %260 = vst [vmem:[%s5041_s15 + $0x80] sm:$0xff] %v259_v16  ;;  %262 = vst [vmem:[%s5041_s15 + $0x88] sm:$0xff] %v261_v17  ;;  %v265_v19 = vld [vmem:[%s5036_s14 + $0x98] sm:$0xff]  ;;  %v267_v20 = vld [vmem:[%s5036_s14 + $0xa0] sm:$0xff] }
  0x20   : > { %264 = vst [vmem:[%s5041_s15 + $0x90] sm:$0xff] %v263_v18  ;;  %266 = vst [vmem:[%s5041_s15 + $0x98] sm:$0xff] %v265_v19  ;;  %v269_v21 = vld [vmem:[%s5036_s14 + $0xa8] sm:$0xff]  ;;  %v271_v22 = vld [vmem:[%s5036_s14 + $0xb0] sm:$0xff] }
  0x21   : > { %268 = vst [vmem:[%s5041_s15 + $0xa0] sm:$0xff] %v267_v20  ;;  %v273_v23 = vld [vmem:[%s5036_s14 + $0xb8] sm:$0xff]  ;;  %270 = vst [vmem:[%s5041_s15 + $0xa8] sm:$0xff] %v269_v21  ;;  %v275_v24 = vld [vmem:[%s5036_s14 + $0xc0] sm:$0xff] }
  0x22   : > { %272 = vst [vmem:[%s5041_s15 + $0xb0] sm:$0xff] %v271_v22  ;;  %274 = vst [vmem:[%s5041_s15 + $0xb8] sm:$0xff] %v273_v23  ;;  %v277_v25 = vld [vmem:[%s5036_s14 + $0xc8] sm:$0xff]  ;;  %v279_v26 = vld [vmem:[%s5036_s14 + $0xd0] sm:$0xff] }
  0x23   : > { %276 = vst [vmem:[%s5041_s15 + $0xc0] sm:$0xff] %v275_v24  ;;  %278 = vst [vmem:[%s5041_s15 + $0xc8] sm:$0xff] %v277_v25  ;;  %v281_v27 = vld [vmem:[%s5036_s14 + $0xd8] sm:$0xff]  ;;  %v283_v28 = vld [vmem:[%s5036_s14 + $0xe0] sm:$0xff] }
  0x24   : > { %280 = vst [vmem:[%s5041_s15 + $0xd0] sm:$0xff] %v279_v26  ;;  %v285_v29 = vld [vmem:[%s5036_s14 + $0xe8] sm:$0xff]  ;;  %282 = vst [vmem:[%s5041_s15 + $0xd8] sm:$0xff] %v281_v27  ;;  %v287_v30 = vld [vmem:[%s5036_s14 + $0xf0] sm:$0xff] }
  0x25   : > { %284 = vst [vmem:[%s5041_s15 + $0xe0] sm:$0xff] %v283_v28  ;;  %286 = vst [vmem:[%s5041_s15 + $0xe8] sm:$0xff] %v285_v29  ;;  %v289_v31 = vld [vmem:[%s5036_s14 + $0xf8] sm:$0xff]  ;;  %v291_v32 = vld [vmem:[%s5036_s14 + $0x800] sm:$0xff] }
  0x26   : > { %288 = vst [vmem:[%s5041_s15 + $0xf0] sm:$0xff] %v287_v30  ;;  %290 = vst [vmem:[%s5041_s15 + $0xf8] sm:$0xff] %v289_v31  ;;  %v293_v33 = vld [vmem:[%s5036_s14 + $0x808] sm:$0xff]  ;;  %v295_v34 = vld [vmem:[%s5036_s14 + $0x810] sm:$0xff] }
  0x27   : > { %292 = vst [vmem:[%s5041_s15 + $0x100] sm:$0xff] %v291_v32  ;;  %v297_v35 = vld [vmem:[%s5036_s14 + $0x818] sm:$0xff]  ;;  %294 = vst [vmem:[%s5041_s15 + $0x108] sm:$0xff] %v293_v33  ;;  %v299_v36 = vld [vmem:[%s5036_s14 + $0x820] sm:$0xff] }
  0x28   : > { %296 = vst [vmem:[%s5041_s15 + $0x110] sm:$0xff] %v295_v34  ;;  %298 = vst [vmem:[%s5041_s15 + $0x118] sm:$0xff] %v297_v35  ;;  %v301_v37 = vld [vmem:[%s5036_s14 + $0x828] sm:$0xff]  ;;  %v303_v38 = vld [vmem:[%s5036_s14 + $0x830] sm:$0xff] }
  0x29   : > { %300 = vst [vmem:[%s5041_s15 + $0x120] sm:$0xff] %v299_v36  ;;  %302 = vst [vmem:[%s5041_s15 + $0x128] sm:$0xff] %v301_v37  ;;  %v305_v39 = vld [vmem:[%s5036_s14 + $0x838] sm:$0xff]  ;;  %v307_v40 = vld [vmem:[%s5036_s14 + $0x840] sm:$0xff] }
  0x2a   : > { %304 = vst [vmem:[%s5041_s15 + $0x130] sm:$0xff] %v303_v38  ;;  %v309_v41 = vld [vmem:[%s5036_s14 + $0x848] sm:$0xff]  ;;  %306 = vst [vmem:[%s5041_s15 + $0x138] sm:$0xff] %v305_v39  ;;  %v311_v42 = vld [vmem:[%s5036_s14 + $0x850] sm:$0xff] }
  0x2b   : > { %308 = vst [vmem:[%s5041_s15 + $0x140] sm:$0xff] %v307_v40  ;;  %310 = vst [vmem:[%s5041_s15 + $0x148] sm:$0xff] %v309_v41  ;;  %v313_v43 = vld [vmem:[%s5036_s14 + $0x858] sm:$0xff]  ;;  %v315_v44 = vld [vmem:[%s5036_s14 + $0x860] sm:$0xff] }
  0x2c   : > { %312 = vst [vmem:[%s5041_s15 + $0x150] sm:$0xff] %v311_v42  ;;  %314 = vst [vmem:[%s5041_s15 + $0x158] sm:$0xff] %v313_v43  ;;  %v317_v45 = vld [vmem:[%s5036_s14 + $0x868] sm:$0xff]  ;;  %v319_v46 = vld [vmem:[%s5036_s14 + $0x870] sm:$0xff] }
  0x2d   : > { %316 = vst [vmem:[%s5041_s15 + $0x160] sm:$0xff] %v315_v44  ;;  %v321_v47 = vld [vmem:[%s5036_s14 + $0x878] sm:$0xff]  ;;  %318 = vst [vmem:[%s5041_s15 + $0x168] sm:$0xff] %v317_v45  ;;  %v323_v48 = vld [vmem:[%s5036_s14 + $0x880] sm:$0xff] }
  0x2e   : > { %320 = vst [vmem:[%s5041_s15 + $0x170] sm:$0xff] %v319_v46  ;;  %322 = vst [vmem:[%s5041_s15 + $0x178] sm:$0xff] %v321_v47  ;;  %v325_v49 = vld [vmem:[%s5036_s14 + $0x888] sm:$0xff]  ;;  %v327_v50 = vld [vmem:[%s5036_s14 + $0x890] sm:$0xff] }
  0x2f   : > { %324 = vst [vmem:[%s5041_s15 + $0x180] sm:$0xff] %v323_v48  ;;  %326 = vst [vmem:[%s5041_s15 + $0x188] sm:$0xff] %v325_v49  ;;  %v329_v51 = vld [vmem:[%s5036_s14 + $0x898] sm:$0xff]  ;;  %v331_v52 = vld [vmem:[%s5036_s14 + $0x8a0] sm:$0xff] }
  0x30   : > { %328 = vst [vmem:[%s5041_s15 + $0x190] sm:$0xff] %v327_v50  ;;  %v333_v53 = vld [vmem:[%s5036_s14 + $0x8a8] sm:$0xff]  ;;  %330 = vst [vmem:[%s5041_s15 + $0x198] sm:$0xff] %v329_v51  ;;  %v335_v54 = vld [vmem:[%s5036_s14 + $0x8b0] sm:$0xff] }
  0x31   : > { %332 = vst [vmem:[%s5041_s15 + $0x1a0] sm:$0xff] %v331_v52  ;;  %334 = vst [vmem:[%s5041_s15 + $0x1a8] sm:$0xff] %v333_v53  ;;  %v337_v55 = vld [vmem:[%s5036_s14 + $0x8b8] sm:$0xff]  ;;  %v339_v56 = vld [vmem:[%s5036_s14 + $0x8c0] sm:$0xff] }
  0x32   : > { %336 = vst [vmem:[%s5041_s15 + $0x1b0] sm:$0xff] %v335_v54  ;;  %338 = vst [vmem:[%s5041_s15 + $0x1b8] sm:$0xff] %v337_v55  ;;  %v341_v57 = vld [vmem:[%s5036_s14 + $0x8c8] sm:$0xff]  ;;  %v343_v58 = vld [vmem:[%s5036_s14 + $0x8d0] sm:$0xff] }
  0x33   : > { %340 = vst [vmem:[%s5041_s15 + $0x1c0] sm:$0xff] %v339_v56  ;;  %v345_v59 = vld [vmem:[%s5036_s14 + $0x8d8] sm:$0xff]  ;;  %342 = vst [vmem:[%s5041_s15 + $0x1c8] sm:$0xff] %v341_v57  ;;  %v347_v60 = vld [vmem:[%s5036_s14 + $0x8e0] sm:$0xff] }
  0x34   : > { %344 = vst [vmem:[%s5041_s15 + $0x1d0] sm:$0xff] %v343_v58  ;;  %346 = vst [vmem:[%s5041_s15 + $0x1d8] sm:$0xff] %v345_v59  ;;  %v349_v61 = vld [vmem:[%s5036_s14 + $0x8e8] sm:$0xff]  ;;  %v351_v62 = vld [vmem:[%s5036_s14 + $0x8f0] sm:$0xff] }
  0x35   : > { %348 = vst [vmem:[%s5041_s15 + $0x1e0] sm:$0xff] %v347_v60  ;;  %350 = vst [vmem:[%s5041_s15 + $0x1e8] sm:$0xff] %v349_v61  ;;  %v353_v63 = vld [vmem:[%s5036_s14 + $0x8f8] sm:$0xff]  ;;  %v355_v0 = vld [vmem:[%s5036_s14 + $0x1000] sm:$0xff] }
  0x36   : > { %352 = vst [vmem:[%s5041_s15 + $0x1f0] sm:$0xff] %v351_v62  ;;  %v357_v1 = vld [vmem:[%s5036_s14 + $0x1008] sm:$0xff]  ;;  %354 = vst [vmem:[%s5041_s15 + $0x1f8] sm:$0xff] %v353_v63  ;;  %v359_v2 = vld [vmem:[%s5036_s14 + $0x1010] sm:$0xff] }
  0x37   : > { %356 = vst [vmem:[%s5041_s15 + $0x200] sm:$0xff] %v355_v0  ;;  %358 = vst [vmem:[%s5041_s15 + $0x208] sm:$0xff] %v357_v1  ;;  %v361_v3 = vld [vmem:[%s5036_s14 + $0x1018] sm:$0xff]  ;;  %v363_v4 = vld [vmem:[%s5036_s14 + $0x1020] sm:$0xff] }
  0x38   : > { %360 = vst [vmem:[%s5041_s15 + $0x210] sm:$0xff] %v359_v2  ;;  %362 = vst [vmem:[%s5041_s15 + $0x218] sm:$0xff] %v361_v3  ;;  %v365_v5 = vld [vmem:[%s5036_s14 + $0x1028] sm:$0xff]  ;;  %v367_v6 = vld [vmem:[%s5036_s14 + $0x1030] sm:$0xff] }
  0x39   : > { %364 = vst [vmem:[%s5041_s15 + $0x220] sm:$0xff] %v363_v4  ;;  %v369_v7 = vld [vmem:[%s5036_s14 + $0x1038] sm:$0xff]  ;;  %366 = vst [vmem:[%s5041_s15 + $0x228] sm:$0xff] %v365_v5  ;;  %v371_v8 = vld [vmem:[%s5036_s14 + $0x1040] sm:$0xff] }
  0x3a   : > { %368 = vst [vmem:[%s5041_s15 + $0x230] sm:$0xff] %v367_v6  ;;  %370 = vst [vmem:[%s5041_s15 + $0x238] sm:$0xff] %v369_v7  ;;  %v373_v9 = vld [vmem:[%s5036_s14 + $0x1048] sm:$0xff]  ;;  %v375_v10 = vld [vmem:[%s5036_s14 + $0x1050] sm:$0xff] }
  0x3b   : > { %372 = vst [vmem:[%s5041_s15 + $0x240] sm:$0xff] %v371_v8  ;;  %374 = vst [vmem:[%s5041_s15 + $0x248] sm:$0xff] %v373_v9  ;;  %v377_v11 = vld [vmem:[%s5036_s14 + $0x1058] sm:$0xff]  ;;  %v379_v12 = vld [vmem:[%s5036_s14 + $0x1060] sm:$0xff] }
  0x3c   : > { %376 = vst [vmem:[%s5041_s15 + $0x250] sm:$0xff] %v375_v10  ;;  %v381_v13 = vld [vmem:[%s5036_s14 + $0x1068] sm:$0xff]  ;;  %378 = vst [vmem:[%s5041_s15 + $0x258] sm:$0xff] %v377_v11  ;;  %v383_v14 = vld [vmem:[%s5036_s14 + $0x1070] sm:$0xff] }
  0x3d   : > { %380 = vst [vmem:[%s5041_s15 + $0x260] sm:$0xff] %v379_v12  ;;  %382 = vst [vmem:[%s5041_s15 + $0x268] sm:$0xff] %v381_v13  ;;  %v385_v15 = vld [vmem:[%s5036_s14 + $0x1078] sm:$0xff]  ;;  %v387_v16 = vld [vmem:[%s5036_s14 + $0x1080] sm:$0xff] }
  0x3e   : > { %384 = vst [vmem:[%s5041_s15 + $0x270] sm:$0xff] %v383_v14  ;;  %386 = vst [vmem:[%s5041_s15 + $0x278] sm:$0xff] %v385_v15  ;;  %v389_v17 = vld [vmem:[%s5036_s14 + $0x1088] sm:$0xff]  ;;  %v391_v18 = vld [vmem:[%s5036_s14 + $0x1090] sm:$0xff] }
  0x3f   : > { %388 = vst [vmem:[%s5041_s15 + $0x280] sm:$0xff] %v387_v16  ;;  %v393_v19 = vld [vmem:[%s5036_s14 + $0x1098] sm:$0xff]  ;;  %390 = vst [vmem:[%s5041_s15 + $0x288] sm:$0xff] %v389_v17  ;;  %v395_v20 = vld [vmem:[%s5036_s14 + $0x10a0] sm:$0xff] }
  0x40   : > { %392 = vst [vmem:[%s5041_s15 + $0x290] sm:$0xff] %v391_v18  ;;  %394 = vst [vmem:[%s5041_s15 + $0x298] sm:$0xff] %v393_v19  ;;  %v397_v21 = vld [vmem:[%s5036_s14 + $0x10a8] sm:$0xff]  ;;  %v399_v22 = vld [vmem:[%s5036_s14 + $0x10b0] sm:$0xff] }
  0x41   : > { %396 = vst [vmem:[%s5041_s15 + $0x2a0] sm:$0xff] %v395_v20  ;;  %398 = vst [vmem:[%s5041_s15 + $0x2a8] sm:$0xff] %v397_v21  ;;  %v401_v23 = vld [vmem:[%s5036_s14 + $0x10b8] sm:$0xff]  ;;  %v403_v24 = vld [vmem:[%s5036_s14 + $0x10c0] sm:$0xff] }
  0x42   : > { %400 = vst [vmem:[%s5041_s15 + $0x2b0] sm:$0xff] %v399_v22  ;;  %v405_v25 = vld [vmem:[%s5036_s14 + $0x10c8] sm:$0xff]  ;;  %402 = vst [vmem:[%s5041_s15 + $0x2b8] sm:$0xff] %v401_v23  ;;  %v407_v26 = vld [vmem:[%s5036_s14 + $0x10d0] sm:$0xff] }
  0x43   : > { %404 = vst [vmem:[%s5041_s15 + $0x2c0] sm:$0xff] %v403_v24  ;;  %406 = vst [vmem:[%s5041_s15 + $0x2c8] sm:$0xff] %v405_v25  ;;  %v409_v27 = vld [vmem:[%s5036_s14 + $0x10d8] sm:$0xff]  ;;  %v411_v28 = vld [vmem:[%s5036_s14 + $0x10e0] sm:$0xff] }
  0x44   : > { %408 = vst [vmem:[%s5041_s15 + $0x2d0] sm:$0xff] %v407_v26  ;;  %410 = vst [vmem:[%s5041_s15 + $0x2d8] sm:$0xff] %v409_v27  ;;  %v413_v29 = vld [vmem:[%s5036_s14 + $0x10e8] sm:$0xff]  ;;  %v415_v30 = vld [vmem:[%s5036_s14 + $0x10f0] sm:$0xff] }
  0x45   : > { %412 = vst [vmem:[%s5041_s15 + $0x2e0] sm:$0xff] %v411_v28  ;;  %v417_v31 = vld [vmem:[%s5036_s14 + $0x10f8] sm:$0xff]  ;;  %414 = vst [vmem:[%s5041_s15 + $0x2e8] sm:$0xff] %v413_v29  ;;  %v419_v32 = vld [vmem:[%s5036_s14 + $0x1800] sm:$0xff] }
  0x46   : > { %416 = vst [vmem:[%s5041_s15 + $0x2f0] sm:$0xff] %v415_v30  ;;  %418 = vst [vmem:[%s5041_s15 + $0x2f8] sm:$0xff] %v417_v31  ;;  %v421_v33 = vld [vmem:[%s5036_s14 + $0x1808] sm:$0xff]  ;;  %v423_v34 = vld [vmem:[%s5036_s14 + $0x1810] sm:$0xff] }
  0x47   : > { %420 = vst [vmem:[%s5041_s15 + $0x300] sm:$0xff] %v419_v32  ;;  %422 = vst [vmem:[%s5041_s15 + $0x308] sm:$0xff] %v421_v33  ;;  %v425_v35 = vld [vmem:[%s5036_s14 + $0x1818] sm:$0xff]  ;;  %v427_v36 = vld [vmem:[%s5036_s14 + $0x1820] sm:$0xff] }
  0x48   : > { %424 = vst [vmem:[%s5041_s15 + $0x310] sm:$0xff] %v423_v34  ;;  %v429_v37 = vld [vmem:[%s5036_s14 + $0x1828] sm:$0xff]  ;;  %426 = vst [vmem:[%s5041_s15 + $0x318] sm:$0xff] %v425_v35  ;;  %v431_v38 = vld [vmem:[%s5036_s14 + $0x1830] sm:$0xff] }
  0x49   : > { %428 = vst [vmem:[%s5041_s15 + $0x320] sm:$0xff] %v427_v36  ;;  %430 = vst [vmem:[%s5041_s15 + $0x328] sm:$0xff] %v429_v37  ;;  %v433_v39 = vld [vmem:[%s5036_s14 + $0x1838] sm:$0xff]  ;;  %v435_v40 = vld [vmem:[%s5036_s14 + $0x1840] sm:$0xff] }
  0x4a   : > { %432 = vst [vmem:[%s5041_s15 + $0x330] sm:$0xff] %v431_v38  ;;  %434 = vst [vmem:[%s5041_s15 + $0x338] sm:$0xff] %v433_v39  ;;  %v437_v41 = vld [vmem:[%s5036_s14 + $0x1848] sm:$0xff]  ;;  %v439_v42 = vld [vmem:[%s5036_s14 + $0x1850] sm:$0xff] }
  0x4b   : > { %436 = vst [vmem:[%s5041_s15 + $0x340] sm:$0xff] %v435_v40  ;;  %v441_v43 = vld [vmem:[%s5036_s14 + $0x1858] sm:$0xff]  ;;  %438 = vst [vmem:[%s5041_s15 + $0x348] sm:$0xff] %v437_v41  ;;  %v443_v44 = vld [vmem:[%s5036_s14 + $0x1860] sm:$0xff] }
  0x4c   : > { %440 = vst [vmem:[%s5041_s15 + $0x350] sm:$0xff] %v439_v42  ;;  %442 = vst [vmem:[%s5041_s15 + $0x358] sm:$0xff] %v441_v43  ;;  %v445_v45 = vld [vmem:[%s5036_s14 + $0x1868] sm:$0xff]  ;;  %v447_v46 = vld [vmem:[%s5036_s14 + $0x1870] sm:$0xff] }
  0x4d   : > { %444 = vst [vmem:[%s5041_s15 + $0x360] sm:$0xff] %v443_v44  ;;  %446 = vst [vmem:[%s5041_s15 + $0x368] sm:$0xff] %v445_v45  ;;  %v449_v47 = vld [vmem:[%s5036_s14 + $0x1878] sm:$0xff]  ;;  %v451_v48 = vld [vmem:[%s5036_s14 + $0x1880] sm:$0xff] }
  0x4e   : > { %448 = vst [vmem:[%s5041_s15 + $0x370] sm:$0xff] %v447_v46  ;;  %v453_v49 = vld [vmem:[%s5036_s14 + $0x1888] sm:$0xff]  ;;  %450 = vst [vmem:[%s5041_s15 + $0x378] sm:$0xff] %v449_v47  ;;  %v455_v50 = vld [vmem:[%s5036_s14 + $0x1890] sm:$0xff] }
  0x4f   : > { %452 = vst [vmem:[%s5041_s15 + $0x380] sm:$0xff] %v451_v48  ;;  %454 = vst [vmem:[%s5041_s15 + $0x388] sm:$0xff] %v453_v49  ;;  %v457_v51 = vld [vmem:[%s5036_s14 + $0x1898] sm:$0xff]  ;;  %v459_v52 = vld [vmem:[%s5036_s14 + $0x18a0] sm:$0xff] }
  0x50   : > { %456 = vst [vmem:[%s5041_s15 + $0x390] sm:$0xff] %v455_v50  ;;  %458 = vst [vmem:[%s5041_s15 + $0x398] sm:$0xff] %v457_v51  ;;  %v461_v53 = vld [vmem:[%s5036_s14 + $0x18a8] sm:$0xff]  ;;  %v463_v54 = vld [vmem:[%s5036_s14 + $0x18b0] sm:$0xff] }
  0x51   : > { %460 = vst [vmem:[%s5041_s15 + $0x3a0] sm:$0xff] %v459_v52  ;;  %v465_v55 = vld [vmem:[%s5036_s14 + $0x18b8] sm:$0xff]  ;;  %462 = vst [vmem:[%s5041_s15 + $0x3a8] sm:$0xff] %v461_v53  ;;  %v467_v56 = vld [vmem:[%s5036_s14 + $0x18c0] sm:$0xff] }
  0x52   : > { %464 = vst [vmem:[%s5041_s15 + $0x3b0] sm:$0xff] %v463_v54  ;;  %466 = vst [vmem:[%s5041_s15 + $0x3b8] sm:$0xff] %v465_v55  ;;  %v469_v57 = vld [vmem:[%s5036_s14 + $0x18c8] sm:$0xff]  ;;  %v471_v58 = vld [vmem:[%s5036_s14 + $0x18d0] sm:$0xff] }
  0x53   : > { %468 = vst [vmem:[%s5041_s15 + $0x3c0] sm:$0xff] %v467_v56  ;;  %470 = vst [vmem:[%s5041_s15 + $0x3c8] sm:$0xff] %v469_v57  ;;  %v473_v59 = vld [vmem:[%s5036_s14 + $0x18d8] sm:$0xff]  ;;  %v475_v60 = vld [vmem:[%s5036_s14 + $0x18e0] sm:$0xff] }
  0x54   : > { %472 = vst [vmem:[%s5041_s15 + $0x3d0] sm:$0xff] %v471_v58  ;;  %v477_v61 = vld [vmem:[%s5036_s14 + $0x18e8] sm:$0xff]  ;;  %474 = vst [vmem:[%s5041_s15 + $0x3d8] sm:$0xff] %v473_v59  ;;  %v479_v62 = vld [vmem:[%s5036_s14 + $0x18f0] sm:$0xff] }
  0x55   : > { %476 = vst [vmem:[%s5041_s15 + $0x3e0] sm:$0xff] %v475_v60  ;;  %478 = vst [vmem:[%s5041_s15 + $0x3e8] sm:$0xff] %v477_v61  ;;  %v481_v63 = vld [vmem:[%s5036_s14 + $0x18f8] sm:$0xff]  ;;  %v483_v0 = vld [vmem:[%s5036_s14 + $0x2000] sm:$0xff] }
  0x56   : > { %480 = vst [vmem:[%s5041_s15 + $0x3f0] sm:$0xff] %v479_v62  ;;  %482 = vst [vmem:[%s5041_s15 + $0x3f8] sm:$0xff] %v481_v63  ;;  %v485_v1 = vld [vmem:[%s5036_s14 + $0x2008] sm:$0xff]  ;;  %v487_v2 = vld [vmem:[%s5036_s14 + $0x2010] sm:$0xff] }
  0x57   : > { %484 = vst [vmem:[%s5041_s15 + $0x400] sm:$0xff] %v483_v0  ;;  %v489_v3 = vld [vmem:[%s5036_s14 + $0x2018] sm:$0xff]  ;;  %486 = vst [vmem:[%s5041_s15 + $0x408] sm:$0xff] %v485_v1  ;;  %v491_v4 = vld [vmem:[%s5036_s14 + $0x2020] sm:$0xff] }
  0x58   : > { %488 = vst [vmem:[%s5041_s15 + $0x410] sm:$0xff] %v487_v2  ;;  %490 = vst [vmem:[%s5041_s15 + $0x418] sm:$0xff] %v489_v3  ;;  %v493_v5 = vld [vmem:[%s5036_s14 + $0x2028] sm:$0xff]  ;;  %v495_v6 = vld [vmem:[%s5036_s14 + $0x2030] sm:$0xff] }
  0x59   : > { %492 = vst [vmem:[%s5041_s15 + $0x420] sm:$0xff] %v491_v4  ;;  %494 = vst [vmem:[%s5041_s15 + $0x428] sm:$0xff] %v493_v5  ;;  %v497_v7 = vld [vmem:[%s5036_s14 + $0x2038] sm:$0xff]  ;;  %v499_v8 = vld [vmem:[%s5036_s14 + $0x2040] sm:$0xff] }
  0x5a   : > { %496 = vst [vmem:[%s5041_s15 + $0x430] sm:$0xff] %v495_v6  ;;  %v501_v9 = vld [vmem:[%s5036_s14 + $0x2048] sm:$0xff]  ;;  %498 = vst [vmem:[%s5041_s15 + $0x438] sm:$0xff] %v497_v7  ;;  %v503_v10 = vld [vmem:[%s5036_s14 + $0x2050] sm:$0xff] }
  0x5b   : > { %500 = vst [vmem:[%s5041_s15 + $0x440] sm:$0xff] %v499_v8  ;;  %502 = vst [vmem:[%s5041_s15 + $0x448] sm:$0xff] %v501_v9  ;;  %v505_v11 = vld [vmem:[%s5036_s14 + $0x2058] sm:$0xff]  ;;  %v507_v12 = vld [vmem:[%s5036_s14 + $0x2060] sm:$0xff] }
  0x5c   : > { %504 = vst [vmem:[%s5041_s15 + $0x450] sm:$0xff] %v503_v10  ;;  %506 = vst [vmem:[%s5041_s15 + $0x458] sm:$0xff] %v505_v11  ;;  %v509_v13 = vld [vmem:[%s5036_s14 + $0x2068] sm:$0xff]  ;;  %v511_v14 = vld [vmem:[%s5036_s14 + $0x2070] sm:$0xff] }
  0x5d   : > { %508 = vst [vmem:[%s5041_s15 + $0x460] sm:$0xff] %v507_v12  ;;  %v513_v15 = vld [vmem:[%s5036_s14 + $0x2078] sm:$0xff]  ;;  %510 = vst [vmem:[%s5041_s15 + $0x468] sm:$0xff] %v509_v13  ;;  %v515_v16 = vld [vmem:[%s5036_s14 + $0x2080] sm:$0xff] }
  0x5e   : > { %512 = vst [vmem:[%s5041_s15 + $0x470] sm:$0xff] %v511_v14  ;;  %514 = vst [vmem:[%s5041_s15 + $0x478] sm:$0xff] %v513_v15  ;;  %v517_v17 = vld [vmem:[%s5036_s14 + $0x2088] sm:$0xff]  ;;  %v519_v18 = vld [vmem:[%s5036_s14 + $0x2090] sm:$0xff] }
  0x5f   : > { %516 = vst [vmem:[%s5041_s15 + $0x480] sm:$0xff] %v515_v16  ;;  %518 = vst [vmem:[%s5041_s15 + $0x488] sm:$0xff] %v517_v17  ;;  %v521_v19 = vld [vmem:[%s5036_s14 + $0x2098] sm:$0xff]  ;;  %v523_v20 = vld [vmem:[%s5036_s14 + $0x20a0] sm:$0xff] }
  0x60   : > { %520 = vst [vmem:[%s5041_s15 + $0x490] sm:$0xff] %v519_v18  ;;  %v525_v21 = vld [vmem:[%s5036_s14 + $0x20a8] sm:$0xff]  ;;  %522 = vst [vmem:[%s5041_s15 + $0x498] sm:$0xff] %v521_v19  ;;  %v527_v22 = vld [vmem:[%s5036_s14 + $0x20b0] sm:$0xff] }
  0x61   : > { %524 = vst [vmem:[%s5041_s15 + $0x4a0] sm:$0xff] %v523_v20  ;;  %526 = vst [vmem:[%s5041_s15 + $0x4a8] sm:$0xff] %v525_v21  ;;  %v529_v23 = vld [vmem:[%s5036_s14 + $0x20b8] sm:$0xff]  ;;  %v531_v24 = vld [vmem:[%s5036_s14 + $0x20c0] sm:$0xff] }
  0x62   : > { %528 = vst [vmem:[%s5041_s15 + $0x4b0] sm:$0xff] %v527_v22  ;;  %530 = vst [vmem:[%s5041_s15 + $0x4b8] sm:$0xff] %v529_v23  ;;  %v533_v25 = vld [vmem:[%s5036_s14 + $0x20c8] sm:$0xff]  ;;  %v535_v26 = vld [vmem:[%s5036_s14 + $0x20d0] sm:$0xff] }
  0x63   : > { %532 = vst [vmem:[%s5041_s15 + $0x4c0] sm:$0xff] %v531_v24  ;;  %v537_v27 = vld [vmem:[%s5036_s14 + $0x20d8] sm:$0xff]  ;;  %534 = vst [vmem:[%s5041_s15 + $0x4c8] sm:$0xff] %v533_v25  ;;  %v539_v28 = vld [vmem:[%s5036_s14 + $0x20e0] sm:$0xff] }
  0x64   : > { %536 = vst [vmem:[%s5041_s15 + $0x4d0] sm:$0xff] %v535_v26  ;;  %538 = vst [vmem:[%s5041_s15 + $0x4d8] sm:$0xff] %v537_v27  ;;  %v541_v29 = vld [vmem:[%s5036_s14 + $0x20e8] sm:$0xff]  ;;  %v543_v30 = vld [vmem:[%s5036_s14 + $0x20f0] sm:$0xff] }
  0x65   : > { %540 = vst [vmem:[%s5041_s15 + $0x4e0] sm:$0xff] %v539_v28  ;;  %542 = vst [vmem:[%s5041_s15 + $0x4e8] sm:$0xff] %v541_v29  ;;  %v545_v31 = vld [vmem:[%s5036_s14 + $0x20f8] sm:$0xff]  ;;  %v547_v32 = vld [vmem:[%s5036_s14 + $0x2800] sm:$0xff] }
  0x66   : > { %544 = vst [vmem:[%s5041_s15 + $0x4f0] sm:$0xff] %v543_v30  ;;  %v549_v33 = vld [vmem:[%s5036_s14 + $0x2808] sm:$0xff]  ;;  %546 = vst [vmem:[%s5041_s15 + $0x4f8] sm:$0xff] %v545_v31  ;;  %v551_v34 = vld [vmem:[%s5036_s14 + $0x2810] sm:$0xff] }
  0x67   : > { %548 = vst [vmem:[%s5041_s15 + $0x500] sm:$0xff] %v547_v32  ;;  %550 = vst [vmem:[%s5041_s15 + $0x508] sm:$0xff] %v549_v33  ;;  %v553_v35 = vld [vmem:[%s5036_s14 + $0x2818] sm:$0xff]  ;;  %v555_v36 = vld [vmem:[%s5036_s14 + $0x2820] sm:$0xff] }
  0x68   : > { %552 = vst [vmem:[%s5041_s15 + $0x510] sm:$0xff] %v551_v34  ;;  %554 = vst [vmem:[%s5041_s15 + $0x518] sm:$0xff] %v553_v35  ;;  %v557_v37 = vld [vmem:[%s5036_s14 + $0x2828] sm:$0xff]  ;;  %v559_v38 = vld [vmem:[%s5036_s14 + $0x2830] sm:$0xff] }
  0x69   : > { %556 = vst [vmem:[%s5041_s15 + $0x520] sm:$0xff] %v555_v36  ;;  %v561_v39 = vld [vmem:[%s5036_s14 + $0x2838] sm:$0xff]  ;;  %558 = vst [vmem:[%s5041_s15 + $0x528] sm:$0xff] %v557_v37  ;;  %v563_v40 = vld [vmem:[%s5036_s14 + $0x2840] sm:$0xff] }
  0x6a   : > { %560 = vst [vmem:[%s5041_s15 + $0x530] sm:$0xff] %v559_v38  ;;  %562 = vst [vmem:[%s5041_s15 + $0x538] sm:$0xff] %v561_v39  ;;  %v565_v41 = vld [vmem:[%s5036_s14 + $0x2848] sm:$0xff]  ;;  %v567_v42 = vld [vmem:[%s5036_s14 + $0x2850] sm:$0xff] }
  0x6b   : > { %564 = vst [vmem:[%s5041_s15 + $0x540] sm:$0xff] %v563_v40  ;;  %566 = vst [vmem:[%s5041_s15 + $0x548] sm:$0xff] %v565_v41  ;;  %v569_v43 = vld [vmem:[%s5036_s14 + $0x2858] sm:$0xff]  ;;  %v571_v44 = vld [vmem:[%s5036_s14 + $0x2860] sm:$0xff] }
  0x6c   : > { %568 = vst [vmem:[%s5041_s15 + $0x550] sm:$0xff] %v567_v42  ;;  %v573_v45 = vld [vmem:[%s5036_s14 + $0x2868] sm:$0xff]  ;;  %570 = vst [vmem:[%s5041_s15 + $0x558] sm:$0xff] %v569_v43  ;;  %v575_v46 = vld [vmem:[%s5036_s14 + $0x2870] sm:$0xff] }
  0x6d   : > { %572 = vst [vmem:[%s5041_s15 + $0x560] sm:$0xff] %v571_v44  ;;  %574 = vst [vmem:[%s5041_s15 + $0x568] sm:$0xff] %v573_v45  ;;  %v577_v47 = vld [vmem:[%s5036_s14 + $0x2878] sm:$0xff]  ;;  %v579_v48 = vld [vmem:[%s5036_s14 + $0x2880] sm:$0xff] }
  0x6e   : > { %576 = vst [vmem:[%s5041_s15 + $0x570] sm:$0xff] %v575_v46  ;;  %578 = vst [vmem:[%s5041_s15 + $0x578] sm:$0xff] %v577_v47  ;;  %v581_v49 = vld [vmem:[%s5036_s14 + $0x2888] sm:$0xff]  ;;  %v583_v50 = vld [vmem:[%s5036_s14 + $0x2890] sm:$0xff] }
  0x6f   : > { %580 = vst [vmem:[%s5041_s15 + $0x580] sm:$0xff] %v579_v48  ;;  %v585_v51 = vld [vmem:[%s5036_s14 + $0x2898] sm:$0xff]  ;;  %582 = vst [vmem:[%s5041_s15 + $0x588] sm:$0xff] %v581_v49  ;;  %v587_v52 = vld [vmem:[%s5036_s14 + $0x28a0] sm:$0xff] }
  0x70   : > { %584 = vst [vmem:[%s5041_s15 + $0x590] sm:$0xff] %v583_v50  ;;  %586 = vst [vmem:[%s5041_s15 + $0x598] sm:$0xff] %v585_v51  ;;  %v589_v53 = vld [vmem:[%s5036_s14 + $0x28a8] sm:$0xff]  ;;  %v591_v54 = vld [vmem:[%s5036_s14 + $0x28b0] sm:$0xff] }
  0x71   : > { %588 = vst [vmem:[%s5041_s15 + $0x5a0] sm:$0xff] %v587_v52  ;;  %590 = vst [vmem:[%s5041_s15 + $0x5a8] sm:$0xff] %v589_v53  ;;  %v593_v55 = vld [vmem:[%s5036_s14 + $0x28b8] sm:$0xff]  ;;  %v595_v56 = vld [vmem:[%s5036_s14 + $0x28c0] sm:$0xff] }
  0x72   : > { %592 = vst [vmem:[%s5041_s15 + $0x5b0] sm:$0xff] %v591_v54  ;;  %v597_v57 = vld [vmem:[%s5036_s14 + $0x28c8] sm:$0xff]  ;;  %594 = vst [vmem:[%s5041_s15 + $0x5b8] sm:$0xff] %v593_v55  ;;  %v599_v58 = vld [vmem:[%s5036_s14 + $0x28d0] sm:$0xff] }
  0x73   : > { %596 = vst [vmem:[%s5041_s15 + $0x5c0] sm:$0xff] %v595_v56  ;;  %598 = vst [vmem:[%s5041_s15 + $0x5c8] sm:$0xff] %v597_v57  ;;  %v601_v59 = vld [vmem:[%s5036_s14 + $0x28d8] sm:$0xff]  ;;  %v603_v60 = vld [vmem:[%s5036_s14 + $0x28e0] sm:$0xff] }
  0x74   : > { %600 = vst [vmem:[%s5041_s15 + $0x5d0] sm:$0xff] %v599_v58  ;;  %602 = vst [vmem:[%s5041_s15 + $0x5d8] sm:$0xff] %v601_v59  ;;  %v605_v61 = vld [vmem:[%s5036_s14 + $0x28e8] sm:$0xff]  ;;  %v607_v62 = vld [vmem:[%s5036_s14 + $0x28f0] sm:$0xff] }
  0x75   : > { %604 = vst [vmem:[%s5041_s15 + $0x5e0] sm:$0xff] %v603_v60  ;;  %v609_v63 = vld [vmem:[%s5036_s14 + $0x28f8] sm:$0xff]  ;;  %606 = vst [vmem:[%s5041_s15 + $0x5e8] sm:$0xff] %v605_v61  ;;  %v611_v0 = vld [vmem:[%s5036_s14 + $0x3000] sm:$0xff] }
  0x76   : > { %608 = vst [vmem:[%s5041_s15 + $0x5f0] sm:$0xff] %v607_v62  ;;  %610 = vst [vmem:[%s5041_s15 + $0x5f8] sm:$0xff] %v609_v63  ;;  %v613_v1 = vld [vmem:[%s5036_s14 + $0x3008] sm:$0xff]  ;;  %v615_v2 = vld [vmem:[%s5036_s14 + $0x3010] sm:$0xff] }
  0x77   : > { %612 = vst [vmem:[%s5041_s15 + $0x600] sm:$0xff] %v611_v0  ;;  %614 = vst [vmem:[%s5041_s15 + $0x608] sm:$0xff] %v613_v1  ;;  %v617_v3 = vld [vmem:[%s5036_s14 + $0x3018] sm:$0xff]  ;;  %v619_v4 = vld [vmem:[%s5036_s14 + $0x3020] sm:$0xff] }
  0x78   : > { %616 = vst [vmem:[%s5041_s15 + $0x610] sm:$0xff] %v615_v2  ;;  %v621_v5 = vld [vmem:[%s5036_s14 + $0x3028] sm:$0xff]  ;;  %618 = vst [vmem:[%s5041_s15 + $0x618] sm:$0xff] %v617_v3  ;;  %v623_v6 = vld [vmem:[%s5036_s14 + $0x3030] sm:$0xff] }
  0x79   : > { %620 = vst [vmem:[%s5041_s15 + $0x620] sm:$0xff] %v619_v4  ;;  %622 = vst [vmem:[%s5041_s15 + $0x628] sm:$0xff] %v621_v5  ;;  %v625_v7 = vld [vmem:[%s5036_s14 + $0x3038] sm:$0xff]  ;;  %v627_v8 = vld [vmem:[%s5036_s14 + $0x3040] sm:$0xff] }
  0x7a   : > { %624 = vst [vmem:[%s5041_s15 + $0x630] sm:$0xff] %v623_v6  ;;  %626 = vst [vmem:[%s5041_s15 + $0x638] sm:$0xff] %v625_v7  ;;  %v629_v9 = vld [vmem:[%s5036_s14 + $0x3048] sm:$0xff]  ;;  %v631_v10 = vld [vmem:[%s5036_s14 + $0x3050] sm:$0xff] }
  0x7b   : > { %628 = vst [vmem:[%s5041_s15 + $0x640] sm:$0xff] %v627_v8  ;;  %v633_v11 = vld [vmem:[%s5036_s14 + $0x3058] sm:$0xff]  ;;  %630 = vst [vmem:[%s5041_s15 + $0x648] sm:$0xff] %v629_v9  ;;  %v635_v12 = vld [vmem:[%s5036_s14 + $0x3060] sm:$0xff] }
  0x7c   : > { %632 = vst [vmem:[%s5041_s15 + $0x650] sm:$0xff] %v631_v10  ;;  %634 = vst [vmem:[%s5041_s15 + $0x658] sm:$0xff] %v633_v11  ;;  %v637_v13 = vld [vmem:[%s5036_s14 + $0x3068] sm:$0xff]  ;;  %v639_v14 = vld [vmem:[%s5036_s14 + $0x3070] sm:$0xff] }
  0x7d   : > { %636 = vst [vmem:[%s5041_s15 + $0x660] sm:$0xff] %v635_v12  ;;  %638 = vst [vmem:[%s5041_s15 + $0x668] sm:$0xff] %v637_v13  ;;  %v641_v15 = vld [vmem:[%s5036_s14 + $0x3078] sm:$0xff]  ;;  %v643_v16 = vld [vmem:[%s5036_s14 + $0x3080] sm:$0xff] }
  0x7e   : > { %640 = vst [vmem:[%s5041_s15 + $0x670] sm:$0xff] %v639_v14  ;;  %v645_v17 = vld [vmem:[%s5036_s14 + $0x3088] sm:$0xff]  ;;  %642 = vst [vmem:[%s5041_s15 + $0x678] sm:$0xff] %v641_v15  ;;  %v647_v18 = vld [vmem:[%s5036_s14 + $0x3090] sm:$0xff] }
  0x7f   : > { %644 = vst [vmem:[%s5041_s15 + $0x680] sm:$0xff] %v643_v16  ;;  %646 = vst [vmem:[%s5041_s15 + $0x688] sm:$0xff] %v645_v17  ;;  %v649_v19 = vld [vmem:[%s5036_s14 + $0x3098] sm:$0xff]  ;;  %v651_v20 = vld [vmem:[%s5036_s14 + $0x30a0] sm:$0xff] }
  0x80   : > { %648 = vst [vmem:[%s5041_s15 + $0x690] sm:$0xff] %v647_v18  ;;  %650 = vst [vmem:[%s5041_s15 + $0x698] sm:$0xff] %v649_v19  ;;  %v653_v21 = vld [vmem:[%s5036_s14 + $0x30a8] sm:$0xff]  ;;  %v655_v22 = vld [vmem:[%s5036_s14 + $0x30b0] sm:$0xff] }
  0x81   : > { %652 = vst [vmem:[%s5041_s15 + $0x6a0] sm:$0xff] %v651_v20  ;;  %v657_v23 = vld [vmem:[%s5036_s14 + $0x30b8] sm:$0xff]  ;;  %654 = vst [vmem:[%s5041_s15 + $0x6a8] sm:$0xff] %v653_v21  ;;  %v659_v24 = vld [vmem:[%s5036_s14 + $0x30c0] sm:$0xff] }
  0x82   : > { %656 = vst [vmem:[%s5041_s15 + $0x6b0] sm:$0xff] %v655_v22  ;;  %658 = vst [vmem:[%s5041_s15 + $0x6b8] sm:$0xff] %v657_v23  ;;  %v661_v25 = vld [vmem:[%s5036_s14 + $0x30c8] sm:$0xff]  ;;  %v663_v26 = vld [vmem:[%s5036_s14 + $0x30d0] sm:$0xff] }
  0x83   : > { %660 = vst [vmem:[%s5041_s15 + $0x6c0] sm:$0xff] %v659_v24  ;;  %662 = vst [vmem:[%s5041_s15 + $0x6c8] sm:$0xff] %v661_v25  ;;  %v665_v27 = vld [vmem:[%s5036_s14 + $0x30d8] sm:$0xff]  ;;  %v667_v28 = vld [vmem:[%s5036_s14 + $0x30e0] sm:$0xff] }
  0x84   : > { %664 = vst [vmem:[%s5041_s15 + $0x6d0] sm:$0xff] %v663_v26  ;;  %v669_v29 = vld [vmem:[%s5036_s14 + $0x30e8] sm:$0xff]  ;;  %666 = vst [vmem:[%s5041_s15 + $0x6d8] sm:$0xff] %v665_v27  ;;  %v671_v30 = vld [vmem:[%s5036_s14 + $0x30f0] sm:$0xff] }
  0x85   : > { %668 = vst [vmem:[%s5041_s15 + $0x6e0] sm:$0xff] %v667_v28  ;;  %670 = vst [vmem:[%s5041_s15 + $0x6e8] sm:$0xff] %v669_v29  ;;  %v673_v31 = vld [vmem:[%s5036_s14 + $0x30f8] sm:$0xff]  ;;  %v675_v32 = vld [vmem:[%s5036_s14 + $0x3800] sm:$0xff] }
  0x86   : > { %672 = vst [vmem:[%s5041_s15 + $0x6f0] sm:$0xff] %v671_v30  ;;  %674 = vst [vmem:[%s5041_s15 + $0x6f8] sm:$0xff] %v673_v31  ;;  %v677_v33 = vld [vmem:[%s5036_s14 + $0x3808] sm:$0xff]  ;;  %v679_v34 = vld [vmem:[%s5036_s14 + $0x3810] sm:$0xff] }
  0x87   : > { %676 = vst [vmem:[%s5041_s15 + $0x700] sm:$0xff] %v675_v32  ;;  %v681_v35 = vld [vmem:[%s5036_s14 + $0x3818] sm:$0xff]  ;;  %678 = vst [vmem:[%s5041_s15 + $0x708] sm:$0xff] %v677_v33  ;;  %v683_v36 = vld [vmem:[%s5036_s14 + $0x3820] sm:$0xff] }
  0x88   : > { %680 = vst [vmem:[%s5041_s15 + $0x710] sm:$0xff] %v679_v34  ;;  %682 = vst [vmem:[%s5041_s15 + $0x718] sm:$0xff] %v681_v35  ;;  %v685_v37 = vld [vmem:[%s5036_s14 + $0x3828] sm:$0xff]  ;;  %v687_v38 = vld [vmem:[%s5036_s14 + $0x3830] sm:$0xff] }
  0x89   : > { %684 = vst [vmem:[%s5041_s15 + $0x720] sm:$0xff] %v683_v36  ;;  %686 = vst [vmem:[%s5041_s15 + $0x728] sm:$0xff] %v685_v37  ;;  %v689_v39 = vld [vmem:[%s5036_s14 + $0x3838] sm:$0xff]  ;;  %v691_v40 = vld [vmem:[%s5036_s14 + $0x3840] sm:$0xff] }
  0x8a   : > { %688 = vst [vmem:[%s5041_s15 + $0x730] sm:$0xff] %v687_v38  ;;  %v693_v41 = vld [vmem:[%s5036_s14 + $0x3848] sm:$0xff]  ;;  %690 = vst [vmem:[%s5041_s15 + $0x738] sm:$0xff] %v689_v39  ;;  %v695_v42 = vld [vmem:[%s5036_s14 + $0x3850] sm:$0xff] }
  0x8b   : > { %692 = vst [vmem:[%s5041_s15 + $0x740] sm:$0xff] %v691_v40  ;;  %694 = vst [vmem:[%s5041_s15 + $0x748] sm:$0xff] %v693_v41  ;;  %v697_v43 = vld [vmem:[%s5036_s14 + $0x3858] sm:$0xff]  ;;  %v699_v44 = vld [vmem:[%s5036_s14 + $0x3860] sm:$0xff] }
  0x8c   : > { %696 = vst [vmem:[%s5041_s15 + $0x750] sm:$0xff] %v695_v42  ;;  %698 = vst [vmem:[%s5041_s15 + $0x758] sm:$0xff] %v697_v43  ;;  %v701_v45 = vld [vmem:[%s5036_s14 + $0x3868] sm:$0xff]  ;;  %v703_v46 = vld [vmem:[%s5036_s14 + $0x3870] sm:$0xff] }
  0x8d   : > { %700 = vst [vmem:[%s5041_s15 + $0x760] sm:$0xff] %v699_v44  ;;  %v705_v47 = vld [vmem:[%s5036_s14 + $0x3878] sm:$0xff]  ;;  %702 = vst [vmem:[%s5041_s15 + $0x768] sm:$0xff] %v701_v45  ;;  %v707_v48 = vld [vmem:[%s5036_s14 + $0x3880] sm:$0xff] }
  0x8e   : > { %704 = vst [vmem:[%s5041_s15 + $0x770] sm:$0xff] %v703_v46  ;;  %706 = vst [vmem:[%s5041_s15 + $0x778] sm:$0xff] %v705_v47  ;;  %v709_v49 = vld [vmem:[%s5036_s14 + $0x3888] sm:$0xff]  ;;  %v711_v50 = vld [vmem:[%s5036_s14 + $0x3890] sm:$0xff] }
  0x8f   : > { %708 = vst [vmem:[%s5041_s15 + $0x780] sm:$0xff] %v707_v48  ;;  %710 = vst [vmem:[%s5041_s15 + $0x788] sm:$0xff] %v709_v49  ;;  %v713_v51 = vld [vmem:[%s5036_s14 + $0x3898] sm:$0xff]  ;;  %v715_v52 = vld [vmem:[%s5036_s14 + $0x38a0] sm:$0xff] }
  0x90   : > { %712 = vst [vmem:[%s5041_s15 + $0x790] sm:$0xff] %v711_v50  ;;  %v717_v53 = vld [vmem:[%s5036_s14 + $0x38a8] sm:$0xff]  ;;  %714 = vst [vmem:[%s5041_s15 + $0x798] sm:$0xff] %v713_v51  ;;  %v719_v54 = vld [vmem:[%s5036_s14 + $0x38b0] sm:$0xff] }
  0x91   : > { %716 = vst [vmem:[%s5041_s15 + $0x7a0] sm:$0xff] %v715_v52  ;;  %718 = vst [vmem:[%s5041_s15 + $0x7a8] sm:$0xff] %v717_v53  ;;  %v721_v55 = vld [vmem:[%s5036_s14 + $0x38b8] sm:$0xff]  ;;  %v723_v56 = vld [vmem:[%s5036_s14 + $0x38c0] sm:$0xff] }
  0x92   : > { %720 = vst [vmem:[%s5041_s15 + $0x7b0] sm:$0xff] %v719_v54  ;;  %722 = vst [vmem:[%s5041_s15 + $0x7b8] sm:$0xff] %v721_v55  ;;  %v725_v57 = vld [vmem:[%s5036_s14 + $0x38c8] sm:$0xff]  ;;  %v727_v58 = vld [vmem:[%s5036_s14 + $0x38d0] sm:$0xff] }
  0x93   : > { %724 = vst [vmem:[%s5041_s15 + $0x7c0] sm:$0xff] %v723_v56  ;;  %v729_v59 = vld [vmem:[%s5036_s14 + $0x38d8] sm:$0xff]  ;;  %726 = vst [vmem:[%s5041_s15 + $0x7c8] sm:$0xff] %v725_v57  ;;  %v731_v60 = vld [vmem:[%s5036_s14 + $0x38e0] sm:$0xff] }
  0x94   : > { %728 = vst [vmem:[%s5041_s15 + $0x7d0] sm:$0xff] %v727_v58  ;;  %730 = vst [vmem:[%s5041_s15 + $0x7d8] sm:$0xff] %v729_v59  ;;  %v733_v61 = vld [vmem:[%s5036_s14 + $0x38e8] sm:$0xff]  ;;  %v735_v62 = vld [vmem:[%s5036_s14 + $0x38f0] sm:$0xff] }
  0x95   : > { %732 = vst [vmem:[%s5041_s15 + $0x7e0] sm:$0xff] %v731_v60  ;;  %734 = vst [vmem:[%s5041_s15 + $0x7e8] sm:$0xff] %v733_v61  ;;  %v737_v63 = vld [vmem:[%s5036_s14 + $0x38f8] sm:$0xff] }
  0x96   : > { %736 = vst [vmem:[%s5041_s15 + $0x7f0] sm:$0xff] %v735_v62  ;;  %738 = vst [vmem:[%s5041_s15 + $0x7f8] sm:$0xff] %v737_v63 }
  0x97 PF: > { %p4529_p7 = scmp.ge.s32.totalorder %s4943_s24, 1  ;;  %p743_p8 = scmp.lt.s32.totalorder %s4943_s24, 9 }
  0x99   : > { %p744_p9 = pnand %p4529_p7, %p743_p8 }
  0x9b   : > { %747 = sbr.rel (%p744_p9) target bundleno = 953 (0x3b9), region = 51 }
  0xa2   : > { %s750_s16 = sand.u32 1, %s4919_s18   ;;  %p800_p10 = scmp.lt.s32.totalorder %s4931_s21, 1  ;;  %v4945_v0 = vmov 0   ;;  %v1066_v1 = vld [vmem:[%s6616_s2] sm:$0x3]  ;;  %vm2352_vm0 = vcmask 523264  }
  0xa3   : > { %s4530_s17 = sshll.u32 %s750_s16, 11  ;;  %2388 = vmatprep.mubr.bf16.mxu0 %v4945_v0  ;;  %2429 = vmatprep.mubr.bf16.mxu1 %v4945_v0  ;;  %v5602_v44 = vld [vmem:[%s6614_s0] sm:$0x1]  ;;  %p4824_p12 = scmp.ne.s32.totalorder %s4927_s20, 0 }
  0xa4   : > { %4887 = vset.pattern.permute.xlu0 %v4945_v0  ;;  %s801_s29 = scalar_select %p800_p10, %s4931_s21, 1 }
  0xa5   : > { %s5563_s30 = scalar_lea.vmem [#allocation2], %s4530_s17  ;;  %1069 = vperm.xlu0 %4887, %v1066_v1   ;;  %s4531_s17 = sshll.u32 %s4931_s21, 2  ;;  %vm4040_vm1 = vcmask (!%p4824_p12), 1024  }
  0xa6   : > { %v810_v2 = vld [vmem:[%s5563_s30] sm:$0xff]  ;;  %v811_v4 = vld [vmem:[%s5563_s30 + $0x8] sm:$0xff]  ;;  %s4534_s18 = sshll.u32 %s801_s29, 1  ;;  %v812_v32 = vld [vmem:[%s5563_s30 + $0x10] sm:$0xff]  ;;  %s5893_s27 = sadd.s32 %s4927_s20, %s4531_s17 }
  0xa7   : > { %v842_v3 = vld [vmem:[%s5563_s30 + $0x100] sm:$0xff]  ;;  %v843_v6 = vld [vmem:[%s5563_s30 + $0x108] sm:$0xff]  ;;  %s5577_s9 = scalar_lea.vmem %s6618_s4, %s4534_s18  ;;  %s5582_s12 = scalar_lea.vmem %s6619_s5, %s4534_s18  ;;  %v844_v33 = vld [vmem:[%s5563_s30 + $0x110] sm:$0xff] }
  0xa8   : > { %v4537_v5 = vcombine.high %v810_v2, %v842_v3  ;;  %v4536_v7 = vcombine.low %v810_v2, %v842_v3  ;;  %v874_v8 = vld [vmem:[%s5563_s30 + $0x200] sm:$0xff]  ;;  %v4539_v10 = vcombine.high %v811_v4, %v843_v6  ;;  %v4538_v11 = vcombine.low %v811_v4, %v843_v6  ;;  %v875_v13 = vld [vmem:[%s5563_s30 + $0x208] sm:$0xff]  ;;  %v813_v34 = vld [vmem:[%s5563_s30 + $0x18] sm:$0xff]  ;;  %s4532_s21 = sshll.u32 %s5893_s27, 6 }
  0xa9   : > { %v906_v9 = vld [vmem:[%s5563_s30 + $0x300] sm:$0xff]  ;;  %v907_v14 = vld [vmem:[%s5563_s30 + $0x308] sm:$0xff]  ;;  %v845_v35 = vld [vmem:[%s5563_s30 + $0x118] sm:$0xff]  ;;  %v4541_v38 = vcombine.high %v812_v32, %v844_v33  ;;  %v4540_v45 = vcombine.low %v812_v32, %v844_v33  ;;  %p5906_p11 = scmp.lt.s32.totalorder %s4532_s21, 511 }
  0xaa   : > { %v4601_v12 = vcombine.high %v874_v8, %v906_v9  ;;  %v938_v15 = vld [vmem:[%s5563_s30 + $0x400] sm:$0xff]  ;;  %2356 = vmatprep.subr.bf16.mxu0 %v4537_v5  ;;  %v4603_v16 = vcombine.high %v875_v13, %v907_v14  ;;  %v939_v18 = vld [vmem:[%s5563_s30 + $0x408] sm:$0xff]  ;;  %2397 = vmatprep.subr.bf16.mxu1 %v4539_v10  ;;  %v4600_v20 = vcombine.low %v874_v8, %v906_v9  ;;  %v876_v40 = vld [vmem:[%s5563_s30 + $0x210] sm:$0xff] }
  0xab   : > { %v970_v17 = vld [vmem:[%s5563_s30 + $0x500] sm:$0xff]  ;;  %v971_v19 = vld [vmem:[%s5563_s30 + $0x508] sm:$0xff]  ;;  %2357 = vmatpush1.bf16.msra.mxu0 %v4536_v7  ;;  %2398 = vmatpush1.bf16.msra.mxu1 %v4538_v11  ;;  %v4602_v21 = vcombine.low %v875_v13, %v907_v14  ;;  %v4543_v39 = vcombine.high %v813_v34, %v845_v35  ;;  %v908_v41 = vld [vmem:[%s5563_s30 + $0x310] sm:$0xff]  ;;  %v4542_v46 = vcombine.low %v813_v34, %v845_v35  ;;  %s6690_s21 = smov (!%p5906_p11, %s4532_s21), 511 }
  0xac   : > { %2358 = vmatprep.subr.bf16.mxu0 %v4601_v12  ;;  %v4665_v22 = vcombine.high %v938_v15, %v970_v17  ;;  %2399 = vmatprep.subr.bf16.mxu1 %v4603_v16  ;;  %v4667_v23 = vcombine.high %v939_v18, %v971_v19  ;;  %v1002_v24 = vld [vmem:[%s5563_s30 + $0x600] sm:$0xff]  ;;  %v1003_v26 = vld [vmem:[%s5563_s30 + $0x608] sm:$0xff]  ;;  %v4664_v28 = vcombine.low %v938_v15, %v970_v17  ;;  %v877_v42 = vld [vmem:[%s5563_s30 + $0x218] sm:$0xff]  ;;  %s4533_s29 = sshll.u32 %s6690_s21, 1 }
  0xad   : > { %v1034_v25 = vld [vmem:[%s5563_s30 + $0x700] sm:$0xff]  ;;  %v1035_v27 = vld [vmem:[%s5563_s30 + $0x708] sm:$0xff]  ;;  %v4666_v29 = vcombine.low %v939_v18, %v971_v19  ;;  %v909_v43 = vld [vmem:[%s5563_s30 + $0x318] sm:$0xff]  ;;  %v4605_v47 = vcombine.high %v876_v40, %v908_v41  ;;  %v4604_v53 = vcombine.low %v876_v40, %v908_v41  ;;  %s5956_s7 = scalar_lea.vmem %s6617_s3, %s4533_s29 }
  0xae   : > { %v4729_v30 = vcombine.high %v1002_v24, %v1034_v25  ;;  %v4731_v31 = vcombine.high %v1003_v26, %v1035_v27  ;;  %v4728_v36 = vcombine.low %v1002_v24, %v1034_v25  ;;  %v4730_v37 = vcombine.low %v1003_v26, %v1035_v27  ;;  %v940_v49 = vld [vmem:[%s5563_s30 + $0x410] sm:$0xff]  ;;  %v941_v51 = vld [vmem:[%s5563_s30 + $0x418] sm:$0xff]  ;;  %v814_v2 = vld [vmem:[%s5563_s30 + $0x20] sm:$0xff] }
  0xaf   : > { %2359 = vmatpush1.bf16.msra.mxu0 %v4600_v20  ;;  %2400 = vmatpush1.bf16.msra.mxu1 %v4602_v21  ;;  %v4607_v48 = vcombine.high %v877_v42, %v909_v43  ;;  %v972_v50 = vld [vmem:[%s5563_s30 + $0x510] sm:$0xff]  ;;  %v973_v52 = vld [vmem:[%s5563_s30 + $0x518] sm:$0xff]  ;;  %v4606_v54 = vcombine.low %v877_v42, %v909_v43  ;;  %v846_v3 = vld [vmem:[%s5563_s30 + $0x120] sm:$0xff] }
  0xb0   : > { %2360 = vmatprep.subr.bf16.mxu0 %v4665_v22  ;;  %2401 = vmatprep.subr.bf16.mxu1 %v4667_v23  ;;  %v4669_v55 = vcombine.high %v940_v49, %v972_v50  ;;  %v4671_v56 = vcombine.high %v941_v51, %v973_v52  ;;  %v1004_v57 = vld [vmem:[%s5563_s30 + $0x610] sm:$0xff]  ;;  %v1005_v59 = vld [vmem:[%s5563_s30 + $0x618] sm:$0xff]  ;;  %v4668_v61 = vcombine.low %v940_v49, %v972_v50  ;;  %v815_v4 = vld [vmem:[%s5563_s30 + $0x28] sm:$0xff] }
  0xb1   : > { %v1036_v58 = vld [vmem:[%s5563_s30 + $0x710] sm:$0xff]  ;;  %v1037_v60 = vld [vmem:[%s5563_s30 + $0x718] sm:$0xff]  ;;  %v4670_v62 = vcombine.low %v941_v51, %v973_v52  ;;  %v847_v5 = vld [vmem:[%s5563_s30 + $0x128] sm:$0xff]  ;;  %v4545_v8 = vcombine.high %v814_v2, %v846_v3  ;;  %v4544_v14 = vcombine.low %v814_v2, %v846_v3 }
  0xb2   : > { %v4733_v63 = vcombine.high %v1004_v57, %v1036_v58  ;;  %v4735_v1 = vcombine.high %v1005_v59, %v1037_v60  ;;  %v4732_v6 = vcombine.low %v1004_v57, %v1036_v58  ;;  %v4734_v7 = vcombine.low %v1005_v59, %v1037_v60  ;;  %v878_v10 = vld [vmem:[%s5563_s30 + $0x220] sm:$0xff]  ;;  %v879_v12 = vld [vmem:[%s5563_s30 + $0x228] sm:$0xff]  ;;  %v816_v34 = vld [vmem:[%s5563_s30 + $0x30] sm:$0xff] }
  0xb3   : > { %2361 = vmatpush1.bf16.msra.mxu0 %v4664_v28  ;;  %2402 = vmatpush1.bf16.msra.mxu1 %v4666_v29  ;;  %v4547_v9 = vcombine.high %v815_v4, %v847_v5  ;;  %v910_v11 = vld [vmem:[%s5563_s30 + $0x320] sm:$0xff]  ;;  %v911_v13 = vld [vmem:[%s5563_s30 + $0x328] sm:$0xff]  ;;  %v4546_v15 = vcombine.low %v815_v4, %v847_v5  ;;  %v848_v35 = vld [vmem:[%s5563_s30 + $0x130] sm:$0xff] }
  0xb4   : > { %2362 = vmatprep.subr.bf16.mxu0 %v4729_v30  ;;  %2403 = vmatprep.subr.bf16.mxu1 %v4731_v31  ;;  %v4609_v16 = vcombine.high %v878_v10, %v910_v11  ;;  %v4611_v17 = vcombine.high %v879_v12, %v911_v13  ;;  %v942_v18 = vld [vmem:[%s5563_s30 + $0x420] sm:$0xff]  ;;  %v943_v20 = vld [vmem:[%s5563_s30 + $0x428] sm:$0xff]  ;;  %v4608_v22 = vcombine.low %v878_v10, %v910_v11  ;;  %v880_v42 = vld [vmem:[%s5563_s30 + $0x230] sm:$0xff] }
  0xb5   : > { %v974_v19 = vld [vmem:[%s5563_s30 + $0x520] sm:$0xff]  ;;  %v975_v21 = vld [vmem:[%s5563_s30 + $0x528] sm:$0xff]  ;;  %v4610_v23 = vcombine.low %v879_v12, %v911_v13  ;;  %v4549_v40 = vcombine.high %v816_v34, %v848_v35  ;;  %v912_v43 = vld [vmem:[%s5563_s30 + $0x330] sm:$0xff] }
  0xb6   : > { %v4673_v24 = vcombine.high %v942_v18, %v974_v19  ;;  %v4675_v25 = vcombine.high %v943_v20, %v975_v21  ;;  %v1006_v26 = vld [vmem:[%s5563_s30 + $0x620] sm:$0xff]  ;;  %v1007_v28 = vld [vmem:[%s5563_s30 + $0x628] sm:$0xff]  ;;  %v4672_v30 = vcombine.low %v942_v18, %v974_v19  ;;  %v4674_v31 = vcombine.low %v943_v20, %v975_v21  ;;  %v944_v51 = vld [vmem:[%s5563_s30 + $0x430] sm:$0xff] }
  0xb7   : > { %2363 = vmatpush1.bf16.msra.mxu0 %v4728_v36  ;;  %2404 = vmatpush1.bf16.msra.mxu1 %v4730_v37  ;;  %v1038_v27 = vld [vmem:[%s5563_s30 + $0x720] sm:$0xff]  ;;  %v1039_v29 = vld [vmem:[%s5563_s30 + $0x728] sm:$0xff]  ;;  %v817_v36 = vld [vmem:[%s5563_s30 + $0x38] sm:$0xff]  ;;  %v4613_v49 = vcombine.high %v880_v42, %v912_v43 }
  0xb8   : > { %2438 = vmatprep.subr.bf16.mxu0 %v4541_v38  ;;  %2479 = vmatprep.subr.bf16.mxu1 %v4543_v39  ;;  %v4737_v32 = vcombine.high %v1006_v26, %v1038_v27  ;;  %v4739_v33 = vcombine.high %v1007_v28, %v1039_v29  ;;  %v849_v37 = vld [vmem:[%s5563_s30 + $0x138] sm:$0xff]  ;;  %v4736_v38 = vcombine.low %v1006_v26, %v1038_v27  ;;  %v976_v52 = vld [vmem:[%s5563_s30 + $0x530] sm:$0xff]  ;;  %v818_v4 = vld [vmem:[%s5563_s30 + $0x40] sm:$0xff] }
  0xb9   : > { %v4738_v39 = vcombine.low %v1007_v28, %v1039_v29  ;;  %v4551_v41 = vcombine.high %v817_v36, %v849_v37  ;;  %v4677_v57 = vcombine.high %v944_v51, %v976_v52  ;;  %v1008_v59 = vld [vmem:[%s5563_s30 + $0x630] sm:$0xff]  ;;  %v850_v5 = vld [vmem:[%s5563_s30 + $0x140] sm:$0xff] }
  0xba   : > { %4792 = vmatmul.mubr.msk.bf16.vlgmr.msra.gmra.mrb[0].mxu0 %vm2352_vm0, %v5602_v44  ;;  %4793 = vmatmul.mubr.msk.bf16.vlgmr.msra.gmra.mrb[0].mxu1 %vm2352_vm0, %v5602_v44  ;;  %v1040_v60 = vld [vmem:[%s5563_s30 + $0x730] sm:$0xff]  ;;  %v4553_v10 = vcombine.high %v818_v4, %v850_v5  ;;  %v882_v12 = vld [vmem:[%s5563_s30 + $0x240] sm:$0xff] }
  0xbb   : > { %2439 = vmatpush1.bf16.msra.mxu0 %v4540_v45  ;;  %2480 = vmatpush1.bf16.msra.mxu1 %v4542_v46  ;;  %v881_v45 = vld [vmem:[%s5563_s30 + $0x238] sm:$0xff]  ;;  %v4741_v2 = vcombine.high %v1008_v59, %v1040_v60  ;;  %v914_v13 = vld [vmem:[%s5563_s30 + $0x340] sm:$0xff] }
  0xbc   : > { %2440 = vmatprep.subr.bf16.mxu0 %v4605_v47  ;;  %2481 = vmatprep.subr.bf16.mxu1 %v4607_v48  ;;  %v913_v46 = vld [vmem:[%s5563_s30 + $0x338] sm:$0xff]  ;;  %v4548_v47 = vcombine.low %v816_v34, %v848_v35  ;;  %v4550_v48 = vcombine.low %v817_v36, %v849_v37  ;;  %v4617_v18 = vcombine.high %v882_v12, %v914_v13  ;;  %v946_v20 = vld [vmem:[%s5563_s30 + $0x440] sm:$0xff]  ;;  %v820_v36 = vld [vmem:[%s5563_s30 + $0x50] sm:$0xff] }
  0xbd   : > { %2470 = vmatprep.mubr.bf16.mxu0 %v4945_v0  ;;  %2511 = vmatprep.mubr.bf16.mxu1 %v4945_v0  ;;  %v4615_v50 = vcombine.high %v881_v45, %v913_v46  ;;  %v978_v21 = vld [vmem:[%s5563_s30 + $0x540] sm:$0xff]  ;;  %v852_v37 = vld [vmem:[%s5563_s30 + $0x150] sm:$0xff] }
  0xbe   : > { %v4681_v26 = vcombine.high %v946_v20, %v978_v21  ;;  %v1010_v28 = vld [vmem:[%s5563_s30 + $0x640] sm:$0xff] }
  0xbf   : > { %2441 = vmatpush1.bf16.msra.mxu0 %v4604_v53  ;;  %2482 = vmatpush1.bf16.msra.mxu1 %v4606_v54  ;;  %v945_v53 = vld [vmem:[%s5563_s30 + $0x438] sm:$0xff]  ;;  %v1042_v29 = vld [vmem:[%s5563_s30 + $0x740] sm:$0xff] }
  0xc0   : > { %2442 = vmatprep.subr.bf16.mxu0 %v4669_v55  ;;  %2483 = vmatprep.subr.bf16.mxu1 %v4671_v56  ;;  %v977_v54 = vld [vmem:[%s5563_s30 + $0x538] sm:$0xff]  ;;  %v4612_v55 = vcombine.low %v880_v42, %v912_v43  ;;  %v4614_v56 = vcombine.low %v881_v45, %v913_v46  ;;  %v4745_v34 = vcombine.high %v1010_v28, %v1042_v29  ;;  %v884_v45 = vld [vmem:[%s5563_s30 + $0x250] sm:$0xff] }
  0xc1   : > { %v4679_v58 = vcombine.high %v945_v53, %v977_v54  ;;  %v4557_v42 = vcombine.high %v820_v36, %v852_v37  ;;  %v916_v46 = vld [vmem:[%s5563_s30 + $0x350] sm:$0xff] }
  0xc3   : > { %2443 = vmatpush1.bf16.msra.mxu0 %v4668_v61  ;;  %2484 = vmatpush1.bf16.msra.mxu1 %v4670_v62  ;;  %v1009_v61 = vld [vmem:[%s5563_s30 + $0x638] sm:$0xff] }
  0xc4   : > { %2444 = vmatprep.subr.bf16.mxu0 %v4733_v63  ;;  %2485 = vmatprep.subr.bf16.mxu1 %v4735_v1  ;;  %v1041_v62 = vld [vmem:[%s5563_s30 + $0x738] sm:$0xff]  ;;  %v4676_v63 = vcombine.low %v944_v51, %v976_v52  ;;  %v4678_v1 = vcombine.low %v945_v53, %v977_v54  ;;  %v4621_v51 = vcombine.high %v884_v45, %v916_v46  ;;  %v948_v53 = vld [vmem:[%s5563_s30 + $0x450] sm:$0xff] }
  0xc5   : > { %v4743_v3 = vcombine.high %v1009_v61, %v1041_v62  ;;  %v980_v54 = vld [vmem:[%s5563_s30 + $0x550] sm:$0xff] }
  0xc7   : > { %2445 = vmatpush1.bf16.msra.mxu0 %v4732_v6  ;;  %2486 = vmatpush1.bf16.msra.mxu1 %v4734_v7  ;;  %v819_v6 = vld [vmem:[%s5563_s30 + $0x48] sm:$0xff] }
  0xc8   : > { %2520 = vmatprep.subr.bf16.mxu0 %v4545_v8  ;;  %2561 = vmatprep.subr.bf16.mxu1 %v4547_v9  ;;  %v851_v7 = vld [vmem:[%s5563_s30 + $0x148] sm:$0xff]  ;;  %v4740_v8 = vcombine.low %v1008_v59, %v1040_v60  ;;  %v4742_v9 = vcombine.low %v1009_v61, %v1041_v62  ;;  %v4685_v59 = vcombine.high %v948_v53, %v980_v54  ;;  %v1012_v61 = vld [vmem:[%s5563_s30 + $0x650] sm:$0xff] }
  0xc9   : > { %v4555_v11 = vcombine.high %v819_v6, %v851_v7  ;;  %v1044_v62 = vld [vmem:[%s5563_s30 + $0x750] sm:$0xff] }
  0xca   : > { %4794 = vmatmul.mubr.msk.bf16.vlgmr.msra.gmra.mrb[4].mxu0 %vm2352_vm0, %v5602_v44  ;;  %4795 = vmatmul.mubr.msk.bf16.vlgmr.msra.gmra.mrb[4].mxu1 %vm2352_vm0, %v5602_v44 }
  0xcb   : > { %2521 = vmatpush1.bf16.msra.mxu0 %v4544_v14  ;;  %2562 = vmatpush1.bf16.msra.mxu1 %v4546_v15  ;;  %v883_v14 = vld [vmem:[%s5563_s30 + $0x248] sm:$0xff] }
  0xcc   : > { %2522 = vmatprep.subr.bf16.mxu0 %v4609_v16  ;;  %2563 = vmatprep.subr.bf16.mxu1 %v4611_v17  ;;  %v915_v15 = vld [vmem:[%s5563_s30 + $0x348] sm:$0xff]  ;;  %v4552_v16 = vcombine.low %v818_v4, %v850_v5  ;;  %v4554_v17 = vcombine.low %v819_v6, %v851_v7  ;;  %v4749_v4 = vcombine.high %v1012_v61, %v1044_v62  ;;  %v822_v6 = vld [vmem:[%s5563_s30 + $0x60] sm:$0xff] }
  0xcd   : > { %2552 = vmatprep.mubr.bf16.mxu0 %v4945_v0  ;;  %2593 = vmatprep.mubr.bf16.mxu1 %v4945_v0  ;;  %v4619_v19 = vcombine.high %v883_v14, %v915_v15  ;;  %v854_v7 = vld [vmem:[%s5563_s30 + $0x160] sm:$0xff] }
  0xcf   : > { %2523 = vmatpush1.bf16.msra.mxu0 %v4608_v22  ;;  %2564 = vmatpush1.bf16.msra.mxu1 %v4610_v23  ;;  %v947_v22 = vld [vmem:[%s5563_s30 + $0x448] sm:$0xff] }
  0xd0   : > { %2524 = vmatprep.subr.bf16.mxu0 %v4673_v24  ;;  %2565 = vmatprep.subr.bf16.mxu1 %v4675_v25  ;;  %v979_v23 = vld [vmem:[%s5563_s30 + $0x548] sm:$0xff]  ;;  %v4616_v24 = vcombine.low %v882_v12, %v914_v13  ;;  %v4618_v25 = vcombine.low %v883_v14, %v915_v15  ;;  %v4561_v12 = vcombine.high %v822_v6, %v854_v7  ;;  %v886_v14 = vld [vmem:[%s5563_s30 + $0x260] sm:$0xff] }
  0xd1   : > { %v4683_v27 = vcombine.high %v947_v22, %v979_v23  ;;  %v918_v15 = vld [vmem:[%s5563_s30 + $0x360] sm:$0xff] }
  0xd3   : > { %2525 = vmatpush1.bf16.msra.mxu0 %v4672_v30  ;;  %2566 = vmatpush1.bf16.msra.mxu1 %v4674_v31  ;;  %v1011_v30 = vld [vmem:[%s5563_s30 + $0x648] sm:$0xff] }
  0xd4   : > { %2526 = vmatprep.subr.bf16.mxu0 %v4737_v32  ;;  %2567 = vmatprep.subr.bf16.mxu1 %v4739_v33  ;;  %v1043_v31 = vld [vmem:[%s5563_s30 + $0x748] sm:$0xff]  ;;  %v4680_v32 = vcombine.low %v946_v20, %v978_v21  ;;  %v4682_v33 = vcombine.low %v947_v22, %v979_v23  ;;  %v4625_v20 = vcombine.high %v886_v14, %v918_v15  ;;  %v950_v22 = vld [vmem:[%s5563_s30 + $0x460] sm:$0xff] }
  0xd5   : > { %v4747_v35 = vcombine.high %v1011_v30, %v1043_v31  ;;  %v982_v23 = vld [vmem:[%s5563_s30 + $0x560] sm:$0xff] }
  0xd7   : > { %2527 = vmatpush1.bf16.msra.mxu0 %v4736_v38  ;;  %2568 = vmatpush1.bf16.msra.mxu1 %v4738_v39  ;;  %v821_v38 = vld [vmem:[%s5563_s30 + $0x58] sm:$0xff] }
  0xd8   : > { %2602 = vmatprep.subr.bf16.mxu0 %v4549_v40  ;;  %2643 = vmatprep.subr.bf16.mxu1 %v4551_v41  ;;  %v853_v39 = vld [vmem:[%s5563_s30 + $0x158] sm:$0xff]  ;;  %v4744_v40 = vcombine.low %v1010_v28, %v1042_v29  ;;  %v4746_v41 = vcombine.low %v1011_v30, %v1043_v31  ;;  %v4689_v28 = vcombine.high %v950_v22, %v982_v23  ;;  %v1014_v30 = vld [vmem:[%s5563_s30 + $0x660] sm:$0xff] }
  0xd9   : > { %v4559_v43 = vcombine.high %v821_v38, %v853_v39  ;;  %v1046_v31 = vld [vmem:[%s5563_s30 + $0x760] sm:$0xff] }
  0xda   : > { %4796 = vmatmul.mubr.msk.bf16.vlgmr.msra.gmra.mrb[8].mxu0 %vm2352_vm0, %v5602_v44  ;;  %4797 = vmatmul.mubr.msk.bf16.vlgmr.msra.gmra.mrb[8].mxu1 %vm2352_vm0, %v5602_v44 }
  0xdb   : > { %2603 = vmatpush1.bf16.msra.mxu0 %v4548_v47  ;;  %2644 = vmatpush1.bf16.msra.mxu1 %v4550_v48  ;;  %v885_v47 = vld [vmem:[%s5563_s30 + $0x258] sm:$0xff] }
  0xdc   : > { %2604 = vmatprep.subr.bf16.mxu0 %v4613_v49  ;;  %2645 = vmatprep.subr.bf16.mxu1 %v4615_v50  ;;  %v917_v48 = vld [vmem:[%s5563_s30 + $0x358] sm:$0xff]  ;;  %v4556_v49 = vcombine.low %v820_v36, %v852_v37  ;;  %v4558_v50 = vcombine.low %v821_v38, %v853_v39  ;;  %v4753_v36 = vcombine.high %v1014_v30, %v1046_v31  ;;  %v824_v38 = vld [vmem:[%s5563_s30 + $0x70] sm:$0xff] }
  0xdd   : > { %2634 = vmatprep.mubr.bf16.mxu0 %v4945_v0  ;;  %2675 = vmatprep.mubr.bf16.mxu1 %v4945_v0  ;;  %v4623_v52 = vcombine.high %v885_v47, %v917_v48  ;;  %v856_v39 = vld [vmem:[%s5563_s30 + $0x170] sm:$0xff] }
  0xdf   : > { %2605 = vmatpush1.bf16.msra.mxu0 %v4612_v55  ;;  %2646 = vmatpush1.bf16.msra.mxu1 %v4614_v56  ;;  %v949_v55 = vld [vmem:[%s5563_s30 + $0x458] sm:$0xff] }
  0xe0   : > { %2606 = vmatprep.subr.bf16.mxu0 %v4677_v57  ;;  %2647 = vmatprep.subr.bf16.mxu1 %v4679_v58  ;;  %v981_v56 = vld [vmem:[%s5563_s30 + $0x558] sm:$0xff]  ;;  %v4620_v57 = vcombine.low %v884_v45, %v916_v46  ;;  %v4622_v58 = vcombine.low %v885_v47, %v917_v48  ;;  %v4565_v45 = vcombine.high %v824_v38, %v856_v39  ;;  %v888_v47 = vld [vmem:[%s5563_s30 + $0x270] sm:$0xff] }
  0xe1   : > { %v4687_v60 = vcombine.high %v949_v55, %v981_v56  ;;  %v920_v48 = vld [vmem:[%s5563_s30 + $0x370] sm:$0xff] }
  0xe3   : > { %2607 = vmatpush1.bf16.msra.mxu0 %v4676_v63  ;;  %2648 = vmatpush1.bf16.msra.mxu1 %v4678_v1  ;;  %v1013_v63 = vld [vmem:[%s5563_s30 + $0x658] sm:$0xff] }
  0xe4   : > { %2608 = vmatprep.subr.bf16.mxu0 %v4741_v2  ;;  %2649 = vmatprep.subr.bf16.mxu1 %v4743_v3  ;;  %v1045_v1 = vld [vmem:[%s5563_s30 + $0x758] sm:$0xff]  ;;  %v4684_v2 = vcombine.low %v948_v53, %v980_v54  ;;  %v4686_v3 = vcombine.low %v949_v55, %v981_v56  ;;  %v4629_v53 = vcombine.high %v888_v47, %v920_v48  ;;  %v952_v55 = vld [vmem:[%s5563_s30 + $0x470] sm:$0xff] }
  0xe5   : > { %v4751_v5 = vcombine.high %v1013_v63, %v1045_v1  ;;  %v984_v56 = vld [vmem:[%s5563_s30 + $0x570] sm:$0xff] }
  0xe7   : > { %2609 = vmatpush1.bf16.msra.mxu0 %v4740_v8  ;;  %2650 = vmatpush1.bf16.msra.mxu1 %v4742_v9  ;;  %v823_v8 = vld [vmem:[%s5563_s30 + $0x68] sm:$0xff] }
  0xe8   : > { %2684 = vmatprep.subr.bf16.mxu0 %v4553_v10  ;;  %2725 = vmatprep.subr.bf16.mxu1 %v4555_v11  ;;  %v855_v9 = vld [vmem:[%s5563_s30 + $0x168] sm:$0xff]  ;;  %v4748_v10 = vcombine.low %v1012_v61, %v1044_v62  ;;  %v4750_v11 = vcombine.low %v1013_v63, %v1045_v1  ;;  %v4693_v61 = vcombine.high %v952_v55, %v984_v56  ;;  %v1016_v63 = vld [vmem:[%s5563_s30 + $0x670] sm:$0xff] }
  0xe9   : > { %v4563_v13 = vcombine.high %v823_v8, %v855_v9  ;;  %v1048_v1 = vld [vmem:[%s5563_s30 + $0x770] sm:$0xff] }
  0xea   : > { %4798 = vmatmul.mubr.msk.bf16.vlgmr.msra.gmra.mrb[12].mxu0 %vm2352_vm0, %v5602_v44  ;;  %4799 = vmatmul.mubr.msk.bf16.vlgmr.msra.gmra.mrb[12].mxu1 %vm2352_vm0, %v5602_v44 }
  0xeb   : > { %2685 = vmatpush1.bf16.msra.mxu0 %v4552_v16  ;;  %2726 = vmatpush1.bf16.msra.mxu1 %v4554_v17  ;;  %v887_v16 = vld [vmem:[%s5563_s30 + $0x268] sm:$0xff] }
  0xec   : > { %2686 = vmatprep.subr.bf16.mxu0 %v4617_v18  ;;  %2727 = vmatprep.subr.bf16.mxu1 %v4619_v19  ;;  %v919_v17 = vld [vmem:[%s5563_s30 + $0x368] sm:$0xff]  ;;  %v4560_v18 = vcombine.low %v822_v6, %v854_v7  ;;  %v4562_v19 = vcombine.low %v823_v8, %v855_v9  ;;  %v4757_v6 = vcombine.high %v1016_v63, %v1048_v1  ;;  %v826_v8 = vld [vmem:[%s5563_s30 + $0x80] sm:$0xff] }
  0xed   : > { %2716 = vmatprep.mubr.bf16.mxu0 %v4945_v0  ;;  %2757 = vmatprep.mubr.bf16.mxu1 %v4945_v0  ;;  %v4627_v21 = vcombine.high %v887_v16, %v919_v17  ;;  %v858_v9 = vld [vmem:[%s5563_s30 + $0x180] sm:$0xff] }
  0xef   : > { %2687 = vmatpush1.bf16.msra.mxu0 %v4616_v24  ;;  %2728 = vmatpush1.bf16.msra.mxu1 %v4618_v25  ;;  %v951_v24 = vld [vmem:[%s5563_s30 + $0x468] sm:$0xff] }
  0xf0   : > { %2688 = vmatprep.subr.bf16.mxu0 %v4681_v26  ;;  %2729 = vmatprep.subr.bf16.mxu1 %v4683_v27  ;;  %v983_v25 = vld [vmem:[%s5563_s30 + $0x568] sm:$0xff]  ;;  %v4624_v26 = vcombine.low %v886_v14, %v918_v15  ;;  %v4626_v27 = vcombine.low %v887_v16, %v919_v17  ;;  %v4569_v14 = vcombine.high %v826_v8, %v858_v9  ;;  %v890_v16 = vld [vmem:[%s5563_s30 + $0x280] sm:$0xff] }
  0xf1   : > { %v4691_v29 = vcombine.high %v951_v24, %v983_v25  ;;  %v922_v17 = vld [vmem:[%s5563_s30 + $0x380] sm:$0xff] }
  0xf3   : > { %2689 = vmatpush1.bf16.msra.mxu0 %v4680_v32  ;;  %2730 = vmatpush1.bf16.msra.mxu1 %v4682_v33  ;;  %v1015_v32 = vld [vmem:[%s5563_s30 + $0x668] sm:$0xff] }
  0xf4   : > { %2690 = vmatprep.subr.bf16.mxu0 %v4745_v34  ;;  %2731 = vmatprep.subr.bf16.mxu1 %v4747_v35  ;;  %v1047_v33 = vld [vmem:[%s5563_s30 + $0x768] sm:$0xff]  ;;  %v4688_v34 = vcombine.low %v950_v22, %v982_v23  ;;  %v4690_v35 = vcombine.low %v951_v24, %v983_v25  ;;  %v4633_v22 = vcombine.high %v890_v16, %v922_v17  ;;  %v954_v24 = vld [vmem:[%s5563_s30 + $0x480] sm:$0xff] }
  0xf5   : > { %v4755_v37 = vcombine.high %v1015_v32, %v1047_v33  ;;  %v986_v25 = vld [vmem:[%s5563_s30 + $0x580] sm:$0xff] }
  0xf7   : > { %2691 = vmatpush1.bf16.msra.mxu0 %v4744_v40  ;;  %2732 = vmatpush1.bf16.msra.mxu1 %v4746_v41  ;;  %v825_v40 = vld [vmem:[%s5563_s30 + $0x78] sm:$0xff] }
  0xf8   : > { %2766 = vmatprep.subr.bf16.mxu0 %v4557_v42  ;;  %2807 = vmatprep.subr.bf16.mxu1 %v4559_v43  ;;  %v857_v41 = vld [vmem:[%s5563_s30 + $0x178] sm:$0xff]  ;;  %v4752_v42 = vcombine.low %v1014_v30, %v1046_v31  ;;  %v4754_v43 = vcombine.low %v1015_v32, %v1047_v33  ;;  %v4697_v30 = vcombine.high %v954_v24, %v986_v25  ;;  %v1018_v32 = vld [vmem:[%s5563_s30 + $0x680] sm:$0xff] }
  0xf9   : > { %v4567_v46 = vcombine.high %v825_v40, %v857_v41  ;;  %v1050_v33 = vld [vmem:[%s5563_s30 + $0x780] sm:$0xff] }
  0xfa   : > { %4800 = vmatmul.mubr.msk.bf16.vlgmr.msra.gmra.mrb[16].mxu0 %vm2352_vm0, %v5602_v44  ;;  %4801 = vmatmul.mubr.msk.bf16.vlgmr.msra.gmra.mrb[16].mxu1 %vm2352_vm0, %v5602_v44 }
  0xfb   : > { %2767 = vmatpush1.bf16.msra.mxu0 %v4556_v49  ;;  %2808 = vmatpush1.bf16.msra.mxu1 %v4558_v50  ;;  %v889_v49 = vld [vmem:[%s5563_s30 + $0x278] sm:$0xff] }
  0xfc   : > { %2768 = vmatprep.subr.bf16.mxu0 %v4621_v51  ;;  %2809 = vmatprep.subr.bf16.mxu1 %v4623_v52  ;;  %v921_v50 = vld [vmem:[%s5563_s30 + $0x378] sm:$0xff]  ;;  %v4564_v51 = vcombine.low %v824_v38, %v856_v39  ;;  %v4566_v52 = vcombine.low %v825_v40, %v857_v41  ;;  %v4761_v38 = vcombine.high %v1018_v32, %v1050_v33  ;;  %v828_v40 = vld [vmem:[%s5563_s30 + $0x90] sm:$0xff] }
  0xfd   : > { %2798 = vmatprep.mubr.bf16.mxu0 %v4945_v0  ;;  %2839 = vmatprep.mubr.bf16.mxu1 %v4945_v0  ;;  %v4631_v54 = vcombine.high %v889_v49, %v921_v50  ;;  %v860_v41 = vld [vmem:[%s5563_s30 + $0x190] sm:$0xff] }
  0xff   : > { %2769 = vmatpush1.bf16.msra.mxu0 %v4620_v57  ;;  %2810 = vmatpush1.bf16.msra.mxu1 %v4622_v58  ;;  %v953_v57 = vld [vmem:[%s5563_s30 + $0x478] sm:$0xff] }
 0x100   : > { %2770 = vmatprep.subr.bf16.mxu0 %v4685_v59  ;;  %2811 = vmatprep.subr.bf16.mxu1 %v4687_v60  ;;  %v985_v58 = vld [vmem:[%s5563_s30 + $0x578] sm:$0xff]  ;;  %v4628_v59 = vcombine.low %v888_v47, %v920_v48  ;;  %v4630_v60 = vcombine.low %v889_v49, %v921_v50  ;;  %v4573_v47 = vcombine.high %v828_v40, %v860_v41  ;;  %v892_v49 = vld [vmem:[%s5563_s30 + $0x290] sm:$0xff] }
 0x101   : > { %v4695_v62 = vcombine.high %v953_v57, %v985_v58  ;;  %v924_v50 = vld [vmem:[%s5563_s30 + $0x390] sm:$0xff] }
 0x103   : > { %2771 = vmatpush1.bf16.msra.mxu0 %v4684_v2  ;;  %2812 = vmatpush1.bf16.msra.mxu1 %v4686_v3  ;;  %v1017_v2 = vld [vmem:[%s5563_s30 + $0x678] sm:$0xff] }
 0x104   : > { %2772 = vmatprep.subr.bf16.mxu0 %v4749_v4  ;;  %2813 = vmatprep.subr.bf16.mxu1 %v4751_v5  ;;  %v1049_v3 = vld [vmem:[%s5563_s30 + $0x778] sm:$0xff]  ;;  %v4692_v4 = vcombine.low %v952_v55, %v984_v56  ;;  %v4694_v5 = vcombine.low %v953_v57, %v985_v58  ;;  %v4637_v55 = vcombine.high %v892_v49, %v924_v50  ;;  %v956_v57 = vld [vmem:[%s5563_s30 + $0x490] sm:$0xff] }
 0x105   : > { %v4759_v7 = vcombine.high %v1017_v2, %v1049_v3  ;;  %v988_v58 = vld [vmem:[%s5563_s30 + $0x590] sm:$0xff] }
 0x107   : > { %2773 = vmatpush1.bf16.msra.mxu0 %v4748_v10  ;;  %2814 = vmatpush1.bf16.msra.mxu1 %v4750_v11  ;;  %v827_v10 = vld [vmem:[%s5563_s30 + $0x88] sm:$0xff] }
 0x108   : > { %2848 = vmatprep.subr.bf16.mxu0 %v4561_v12  ;;  %2889 = vmatprep.subr.bf16.mxu1 %v4563_v13  ;;  %v859_v11 = vld [vmem:[%s5563_s30 + $0x188] sm:$0xff]  ;;  %v4756_v12 = vcombine.low %v1016_v63, %v1048_v1  ;;  %v4758_v13 = vcombine.low %v1017_v2, %v1049_v3  ;;  %v4701_v63 = vcombine.high %v956_v57, %v988_v58  ;;  %v1020_v2 = vld [vmem:[%s5563_s30 + $0x690] sm:$0xff] }
 0x109   : > { %v4571_v15 = vcombine.high %v827_v10, %v859_v11  ;;  %v1052_v3 = vld [vmem:[%s5563_s30 + $0x790] sm:$0xff] }
 0x10a   : > { %4802 = vmatmul.mubr.msk.bf16.vlgmr.msra.gmra.mrb[20].mxu0 %vm2352_vm0, %v5602_v44  ;;  %4803 = vmatmul.mubr.msk.bf16.vlgmr.msra.gmra.mrb[20].mxu1 %vm2352_vm0, %v5602_v44 }
 0x10b   : > { %2849 = vmatpush1.bf16.msra.mxu0 %v4560_v18  ;;  %2890 = vmatpush1.bf16.msra.mxu1 %v4562_v19  ;;  %v891_v18 = vld [vmem:[%s5563_s30 + $0x288] sm:$0xff] }
 0x10c   : > { %2850 = vmatprep.subr.bf16.mxu0 %v4625_v20  ;;  %2891 = vmatprep.subr.bf16.mxu1 %v4627_v21  ;;  %v923_v19 = vld [vmem:[%s5563_s30 + $0x388] sm:$0xff]  ;;  %v4568_v20 = vcombine.low %v826_v8, %v858_v9  ;;  %v4570_v21 = vcombine.low %v827_v10, %v859_v11  ;;  %v4765_v8 = vcombine.high %v1020_v2, %v1052_v3  ;;  %v830_v10 = vld [vmem:[%s5563_s30 + $0xa0] sm:$0xff] }
 0x10d   : > { %2880 = vmatprep.mubr.bf16.mxu0 %v4945_v0  ;;  %2921 = vmatprep.mubr.bf16.mxu1 %v4945_v0  ;;  %v4635_v23 = vcombine.high %v891_v18, %v923_v19  ;;  %v862_v11 = vld [vmem:[%s5563_s30 + $0x1a0] sm:$0xff] }
 0x10f   : > { %2851 = vmatpush1.bf16.msra.mxu0 %v4624_v26  ;;  %2892 = vmatpush1.bf16.msra.mxu1 %v4626_v27  ;;  %v955_v26 = vld [vmem:[%s5563_s30 + $0x488] sm:$0xff] }
 0x110   : > { %2852 = vmatprep.subr.bf16.mxu0 %v4689_v28  ;;  %2893 = vmatprep.subr.bf16.mxu1 %v4691_v29  ;;  %v987_v27 = vld [vmem:[%s5563_s30 + $0x588] sm:$0xff]  ;;  %v4632_v28 = vcombine.low %v890_v16, %v922_v17  ;;  %v4634_v29 = vcombine.low %v891_v18, %v923_v19  ;;  %v4577_v16 = vcombine.high %v830_v10, %v862_v11  ;;  %v894_v18 = vld [vmem:[%s5563_s30 + $0x2a0] sm:$0xff] }
 0x111   : > { %v4699_v31 = vcombine.high %v955_v26, %v987_v27  ;;  %v926_v19 = vld [vmem:[%s5563_s30 + $0x3a0] sm:$0xff] }
 0x113   : > { %2853 = vmatpush1.bf16.msra.mxu0 %v4688_v34  ;;  %2894 = vmatpush1.bf16.msra.mxu1 %v4690_v35  ;;  %v1019_v34 = vld [vmem:[%s5563_s30 + $0x688] sm:$0xff] }
 0x114   : > { %2854 = vmatprep.subr.bf16.mxu0 %v4753_v36  ;;  %2895 = vmatprep.subr.bf16.mxu1 %v4755_v37  ;;  %v1051_v35 = vld [vmem:[%s5563_s30 + $0x788] sm:$0xff]  ;;  %v4696_v36 = vcombine.low %v954_v24, %v986_v25  ;;  %v4698_v37 = vcombine.low %v955_v26, %v987_v27  ;;  %v4641_v24 = vcombine.high %v894_v18, %v926_v19  ;;  %v958_v26 = vld [vmem:[%s5563_s30 + $0x4a0] sm:$0xff] }
 0x115   : > { %v4763_v39 = vcombine.high %v1019_v34, %v1051_v35  ;;  %v990_v27 = vld [vmem:[%s5563_s30 + $0x5a0] sm:$0xff] }
 0x117   : > { %2855 = vmatpush1.bf16.msra.mxu0 %v4752_v42  ;;  %2896 = vmatpush1.bf16.msra.mxu1 %v4754_v43  ;;  %v829_v42 = vld [vmem:[%s5563_s30 + $0x98] sm:$0xff] }
 0x118   : > { %2930 = vmatprep.subr.bf16.mxu0 %v4565_v45  ;;  %2971 = vmatprep.subr.bf16.mxu1 %v4567_v46  ;;  %v861_v43 = vld [vmem:[%s5563_s30 + $0x198] sm:$0xff]  ;;  %v4760_v45 = vcombine.low %v1018_v32, %v1050_v33  ;;  %v4762_v46 = vcombine.low %v1019_v34, %v1051_v35  ;;  %v4705_v32 = vcombine.high %v958_v26, %v990_v27  ;;  %v1022_v34 = vld [vmem:[%s5563_s30 + $0x6a0] sm:$0xff] }
 0x119   : > { %v4575_v48 = vcombine.high %v829_v42, %v861_v43  ;;  %v1054_v35 = vld [vmem:[%s5563_s30 + $0x7a0] sm:$0xff] }
 0x11a   : > { %4804 = vmatmul.mubr.msk.bf16.vlgmr.msra.gmra.mrb[24].mxu0 %vm2352_vm0, %v5602_v44  ;;  %4805 = vmatmul.mubr.msk.bf16.vlgmr.msra.gmra.mrb[24].mxu1 %vm2352_vm0, %v5602_v44 }
 0x11b   : > { %2931 = vmatpush1.bf16.msra.mxu0 %v4564_v51  ;;  %2972 = vmatpush1.bf16.msra.mxu1 %v4566_v52  ;;  %v893_v51 = vld [vmem:[%s5563_s30 + $0x298] sm:$0xff] }
 0x11c   : > { %2932 = vmatprep.subr.bf16.mxu0 %v4629_v53  ;;  %2973 = vmatprep.subr.bf16.mxu1 %v4631_v54  ;;  %v925_v52 = vld [vmem:[%s5563_s30 + $0x398] sm:$0xff]  ;;  %v4572_v53 = vcombine.low %v828_v40, %v860_v41  ;;  %v4574_v54 = vcombine.low %v829_v42, %v861_v43  ;;  %v832_v41 = vld [vmem:[%s5563_s30 + $0xb0] sm:$0xff] }
 0x11d   : > { %2962 = vmatprep.mubr.bf16.mxu0 %v4945_v0  ;;  %3003 = vmatprep.mubr.bf16.mxu1 %v4945_v0  ;;  %v4639_v56 = vcombine.high %v893_v51, %v925_v52  ;;  %v864_v42 = vld [vmem:[%s5563_s30 + $0x1b0] sm:$0xff]  ;;  %v833_v43 = vld [vmem:[%s5563_s30 + $0xb8] sm:$0xff] }
 0x11f   : > { %2933 = vmatpush1.bf16.msra.mxu0 %v4628_v59  ;;  %2974 = vmatpush1.bf16.msra.mxu1 %v4630_v60  ;;  %v957_v59 = vld [vmem:[%s5563_s30 + $0x498] sm:$0xff] }
 0x120   : > { %2934 = vmatprep.subr.bf16.mxu0 %v4693_v61  ;;  %2975 = vmatprep.subr.bf16.mxu1 %v4695_v62  ;;  %v989_v60 = vld [vmem:[%s5563_s30 + $0x598] sm:$0xff]  ;;  %v4636_v61 = vcombine.low %v892_v49, %v924_v50  ;;  %v4638_v62 = vcombine.low %v893_v51, %v925_v52  ;;  %v896_v50 = vld [vmem:[%s5563_s30 + $0x2b0] sm:$0xff] }
 0x121   : > { %v4703_v1 = vcombine.high %v957_v59, %v989_v60  ;;  %v928_v51 = vld [vmem:[%s5563_s30 + $0x3b0] sm:$0xff]  ;;  %v897_v52 = vld [vmem:[%s5563_s30 + $0x2b8] sm:$0xff] }
 0x123   : > { %2935 = vmatpush1.bf16.msra.mxu0 %v4692_v4  ;;  %2976 = vmatpush1.bf16.msra.mxu1 %v4694_v5  ;;  %v1021_v4 = vld [vmem:[%s5563_s30 + $0x698] sm:$0xff] }
 0x124   : > { %2936 = vmatprep.subr.bf16.mxu0 %v4757_v6  ;;  %2977 = vmatprep.subr.bf16.mxu1 %v4759_v7  ;;  %v1053_v5 = vld [vmem:[%s5563_s30 + $0x798] sm:$0xff]  ;;  %v4700_v6 = vcombine.low %v956_v57, %v988_v58  ;;  %v4702_v7 = vcombine.low %v957_v59, %v989_v60  ;;  %v960_v58 = vld [vmem:[%s5563_s30 + $0x4b0] sm:$0xff]  ;;  %v5829_v60 = vld [vmem:[%s6614_s0] sm:$0x1] }
 0x125   : > { %v4767_v9 = vcombine.high %v1021_v4, %v1053_v5  ;;  %v992_v59 = vld [vmem:[%s5563_s30 + $0x5b0] sm:$0xff] }
 0x127   : > { %2937 = vmatpush1.bf16.msra.mxu0 %v4756_v12  ;;  %2978 = vmatpush1.bf16.msra.mxu1 %v4758_v13  ;;  %v831_v12 = vld [vmem:[%s5563_s30 + $0xa8] sm:$0xff] }
 0x128   : > { %3012 = vmatprep.subr.bf16.mxu0 %v4569_v14  ;;  %3053 = vmatprep.subr.bf16.mxu1 %v4571_v15  ;;  %v863_v13 = vld [vmem:[%s5563_s30 + $0x1a8] sm:$0xff]  ;;  %v4764_v14 = vcombine.low %v1020_v2, %v1052_v3  ;;  %v4766_v15 = vcombine.low %v1021_v4, %v1053_v5  ;;  %v4709_v2 = vcombine.high %v960_v58, %v992_v59  ;;  %v1024_v4 = vld [vmem:[%s5563_s30 + $0x6b0] sm:$0xff] }
 0x129   : > { %v4579_v17 = vcombine.high %v831_v12, %v863_v13  ;;  %v1056_v5 = vld [vmem:[%s5563_s30 + $0x7b0] sm:$0xff] }
 0x12a   : > { %4806 = vmatmul.mubr.msk.bf16.vlgmr.msra.gmra.mrb[28].mxu0 %vm2352_vm0, %v5602_v44  ;;  %4807 = vmatmul.mubr.msk.bf16.vlgmr.msra.gmra.mrb[28].mxu1 %vm2352_vm0, %v5602_v44 }
 0x12b   : > { %3013 = vmatpush1.bf16.msra.mxu0 %v4568_v20  ;;  %3054 = vmatpush1.bf16.msra.mxu1 %v4570_v21  ;;  %v895_v20 = vld [vmem:[%s5563_s30 + $0x2a8] sm:$0xff] }
 0x12c   : > { %3014 = vmatprep.subr.bf16.mxu0 %v4633_v22  ;;  %3055 = vmatprep.subr.bf16.mxu1 %v4635_v23  ;;  %v927_v21 = vld [vmem:[%s5563_s30 + $0x3a8] sm:$0xff]  ;;  %v4576_v22 = vcombine.low %v830_v10, %v862_v11  ;;  %v4578_v23 = vcombine.low %v831_v12, %v863_v13  ;;  %v4773_v10 = vcombine.high %v1024_v4, %v1056_v5  ;;  %v834_v12 = vld [vmem:[%s5563_s30 + $0xc0] sm:$0xff] }
 0x12d   : > { %3044 = vmatprep.mubr.bf16.mxu0 %v4945_v0  ;;  %3085 = vmatprep.mubr.bf16.mxu1 %v4945_v0  ;;  %v4643_v25 = vcombine.high %v895_v20, %v927_v21  ;;  %v866_v13 = vld [vmem:[%s5563_s30 + $0x1c0] sm:$0xff] }
 0x12f   : > { %3015 = vmatpush1.bf16.msra.mxu0 %v4632_v28  ;;  %3056 = vmatpush1.bf16.msra.mxu1 %v4634_v29  ;;  %v959_v28 = vld [vmem:[%s5563_s30 + $0x4a8] sm:$0xff] }
 0x130   : > { %3016 = vmatprep.subr.bf16.mxu0 %v4697_v30  ;;  %3057 = vmatprep.subr.bf16.mxu1 %v4699_v31  ;;  %v991_v29 = vld [vmem:[%s5563_s30 + $0x5a8] sm:$0xff]  ;;  %v4640_v30 = vcombine.low %v894_v18, %v926_v19  ;;  %v4642_v31 = vcombine.low %v895_v20, %v927_v21  ;;  %v4585_v18 = vcombine.high %v834_v12, %v866_v13  ;;  %v898_v20 = vld [vmem:[%s5563_s30 + $0x2c0] sm:$0xff] }
 0x131   : > { %v4707_v33 = vcombine.high %v959_v28, %v991_v29  ;;  %v930_v21 = vld [vmem:[%s5563_s30 + $0x3c0] sm:$0xff] }
 0x133   : > { %3017 = vmatpush1.bf16.msra.mxu0 %v4696_v36  ;;  %3058 = vmatpush1.bf16.msra.mxu1 %v4698_v37  ;;  %v1023_v36 = vld [vmem:[%s5563_s30 + $0x6a8] sm:$0xff] }
 0x134   : > { %3018 = vmatprep.subr.bf16.mxu0 %v4761_v38  ;;  %3059 = vmatprep.subr.bf16.mxu1 %v4763_v39  ;;  %v1055_v37 = vld [vmem:[%s5563_s30 + $0x7a8] sm:$0xff]  ;;  %v4706_v38 = vcombine.low %v959_v28, %v991_v29  ;;  %v4769_v39 = vcombine.high %v1022_v34, %v1054_v35  ;;  %v962_v28 = vld [vmem:[%s5563_s30 + $0x4c0] sm:$0xff] }
 0x135   : > { %v4771_v40 = vcombine.high %v1023_v36, %v1055_v37  ;;  %v994_v29 = vld [vmem:[%s5563_s30 + $0x5c0] sm:$0xff] }
 0x137   : > { %3019 = vmatpush1.bf16.msra.mxu0 %v4760_v45  ;;  %3060 = vmatpush1.bf16.msra.mxu1 %v4762_v46  ;;  %v865_v45 = vld [vmem:[%s5563_s30 + $0x1b8] sm:$0xff]  ;;  %v4768_v46 = vcombine.low %v1022_v34, %v1054_v35  ;;  %v4713_v34 = vcombine.high %v962_v28, %v994_v29 }
 0x138   : > { %3094 = vmatprep.subr.bf16.mxu0 %v4573_v47  ;;  %3135 = vmatprep.subr.bf16.mxu1 %v4575_v48  ;;  %v4770_v47 = vcombine.low %v1023_v36, %v1055_v37  ;;  %v4581_v48 = vcombine.high %v832_v41, %v864_v42  ;;  %v4583_v49 = vcombine.high %v833_v43, %v865_v45  ;;  %v1026_v36 = vld [vmem:[%s5563_s30 + $0x6c0] sm:$0xff] }
 0x139   : > { %v1058_v37 = vld [vmem:[%s5563_s30 + $0x7c0] sm:$0xff] }
 0x13a   : > { %4808 = vmatmul.mubr.msk.bf16.vlgmr.msra.gmra.mrb[32].mxu0 %vm2352_vm0, %v5602_v44  ;;  %4809 = vmatmul.mubr.msk.bf16.vlgmr.msra.gmra.mrb[32].mxu1 %vm2352_vm0, %v5602_v44 }
 0x13b   : > { %3095 = vmatpush1.bf16.msra.mxu0 %v4572_v53  ;;  %3136 = vmatpush1.bf16.msra.mxu1 %v4574_v54  ;;  %v929_v53 = vld [vmem:[%s5563_s30 + $0x3b8] sm:$0xff]  ;;  %v4580_v54 = vcombine.low %v832_v41, %v864_v42  ;;  %v4777_v41 = vcombine.high %v1026_v36, %v1058_v37 }
 0x13c   : > { %3096 = vmatprep.subr.bf16.mxu0 %v4637_v55  ;;  %3137 = vmatprep.subr.bf16.mxu1 %v4639_v56  ;;  %v4582_v55 = vcombine.low %v833_v43, %v865_v45  ;;  %v4645_v56 = vcombine.high %v896_v50, %v928_v51  ;;  %v4647_v57 = vcombine.high %v897_v52, %v929_v53  ;;  %v836_v43 = vld [vmem:[%s5563_s30 + $0xd0] sm:$0xff] }
 0x13d   : > { %3126 = vmatprep.mubr.bf16.mxu0 %v4945_v0  ;;  %3167 = vmatprep.mubr.bf16.mxu1 %v4945_v0  ;;  %v868_v45 = vld [vmem:[%s5563_s30 + $0x1d0] sm:$0xff] }
 0x13f   : > { %3097 = vmatpush1.bf16.msra.mxu0 %v4636_v61  ;;  %3138 = vmatpush1.bf16.msra.mxu1 %v4638_v62  ;;  %v961_v61 = vld [vmem:[%s5563_s30 + $0x4b8] sm:$0xff] }
 0x140   : > { %3098 = vmatprep.subr.bf16.mxu0 %v4701_v63  ;;  %3139 = vmatprep.subr.bf16.mxu1 %v4703_v1  ;;  %v993_v62 = vld [vmem:[%s5563_s30 + $0x5b8] sm:$0xff]  ;;  %v4644_v63 = vcombine.low %v896_v50, %v928_v51  ;;  %v4646_v1 = vcombine.low %v897_v52, %v929_v53  ;;  %v4589_v50 = vcombine.high %v836_v43, %v868_v45  ;;  %v900_v52 = vld [vmem:[%s5563_s30 + $0x2d0] sm:$0xff] }
 0x141   : > { %v4711_v3 = vcombine.high %v961_v61, %v993_v62  ;;  %v932_v53 = vld [vmem:[%s5563_s30 + $0x3d0] sm:$0xff] }
 0x143   : > { %3099 = vmatpush1.bf16.msra.mxu0 %v4700_v6  ;;  %3140 = vmatpush1.bf16.msra.mxu1 %v4702_v7  ;;  %v1025_v6 = vld [vmem:[%s5563_s30 + $0x6b8] sm:$0xff] }
 0x144   : > { %3100 = vmatprep.subr.bf16.mxu0 %v4765_v8  ;;  %3141 = vmatprep.subr.bf16.mxu1 %v4767_v9  ;;  %v1057_v7 = vld [vmem:[%s5563_s30 + $0x7b8] sm:$0xff]  ;;  %v4708_v8 = vcombine.low %v960_v58, %v992_v59  ;;  %v4710_v9 = vcombine.low %v961_v61, %v993_v62  ;;  %v4653_v58 = vcombine.high %v900_v52, %v932_v53  ;;  %v964_v61 = vld [vmem:[%s5563_s30 + $0x4d0] sm:$0xff] }
 0x145   : > { %v4775_v11 = vcombine.high %v1025_v6, %v1057_v7  ;;  %v996_v62 = vld [vmem:[%s5563_s30 + $0x5d0] sm:$0xff] }
 0x147   : > { %3101 = vmatpush1.bf16.msra.mxu0 %v4764_v14  ;;  %3142 = vmatpush1.bf16.msra.mxu1 %v4766_v15  ;;  %v835_v14 = vld [vmem:[%s5563_s30 + $0xc8] sm:$0xff] }
 0x148   : > { %3176 = vmatprep.subr.bf16.mxu0 %v4577_v16  ;;  %3217 = vmatprep.subr.bf16.mxu1 %v4579_v17  ;;  %v867_v15 = vld [vmem:[%s5563_s30 + $0x1c8] sm:$0xff]  ;;  %v4772_v16 = vcombine.low %v1024_v4, %v1056_v5  ;;  %v4774_v17 = vcombine.low %v1025_v6, %v1057_v7  ;;  %v4717_v4 = vcombine.high %v964_v61, %v996_v62  ;;  %v1028_v6 = vld [vmem:[%s5563_s30 + $0x6d0] sm:$0xff] }
 0x149   : > { %v4587_v19 = vcombine.high %v835_v14, %v867_v15  ;;  %v1060_v7 = vld [vmem:[%s5563_s30 + $0x7d0] sm:$0xff] }
 0x14a   : > { %4810 = vmatmul.mubr.msk.bf16.vlgmr.msra.gmra.mrb[36].mxu0 %vm2352_vm0, %v5602_v44  ;;  %4811 = vmatmul.mubr.msk.bf16.vlgmr.msra.gmra.mrb[36].mxu1 %vm2352_vm0, %v5602_v44  ;;  %v4704_v44 = vcombine.low %v958_v26, %v990_v27  ;;  %v4649_v26 = vcombine.high %v898_v20, %v930_v21 }
 0x14b   : > { %3177 = vmatpush1.bf16.msra.mxu0 %v4576_v22  ;;  %3218 = vmatpush1.bf16.msra.mxu1 %v4578_v23  ;;  %v899_v22 = vld [vmem:[%s5563_s30 + $0x2c8] sm:$0xff] }
 0x14c   : > { %3178 = vmatprep.subr.bf16.mxu0 %v4641_v24  ;;  %3219 = vmatprep.subr.bf16.mxu1 %v4643_v25  ;;  %v931_v23 = vld [vmem:[%s5563_s30 + $0x3c8] sm:$0xff]  ;;  %v4584_v24 = vcombine.low %v834_v12, %v866_v13  ;;  %v4586_v25 = vcombine.low %v835_v14, %v867_v15  ;;  %v4781_v12 = vcombine.high %v1028_v6, %v1060_v7  ;;  %v838_v14 = vld [vmem:[%s5563_s30 + $0xe0] sm:$0xff] }
 0x14d   : > { %3208 = vmatprep.mubr.bf16.mxu0 %v4945_v0  ;;  %3249 = vmatprep.mubr.bf16.mxu1 %v4945_v0  ;;  %v4651_v27 = vcombine.high %v899_v22, %v931_v23  ;;  %v870_v15 = vld [vmem:[%s5563_s30 + $0x1e0] sm:$0xff] }
 0x14f   : > { %3179 = vmatpush1.bf16.msra.mxu0 %v4640_v30  ;;  %3220 = vmatpush1.bf16.msra.mxu1 %v4642_v31  ;;  %v963_v30 = vld [vmem:[%s5563_s30 + $0x4c8] sm:$0xff] }
 0x150   : > { %3180 = vmatprep.subr.bf16.mxu0 %v4705_v32  ;;  %3221 = vmatprep.subr.bf16.mxu1 %v4707_v33  ;;  %v995_v31 = vld [vmem:[%s5563_s30 + $0x5c8] sm:$0xff]  ;;  %v4648_v32 = vcombine.low %v898_v20, %v930_v21  ;;  %v4650_v33 = vcombine.low %v899_v22, %v931_v23  ;;  %v4593_v20 = vcombine.high %v838_v14, %v870_v15  ;;  %v902_v22 = vld [vmem:[%s5563_s30 + $0x2e0] sm:$0xff] }
 0x151   : > { %v4715_v35 = vcombine.high %v963_v30, %v995_v31  ;;  %v934_v23 = vld [vmem:[%s5563_s30 + $0x3e0] sm:$0xff] }
 0x153   : > { %3181 = vmatpush1.bf16.msra.mxu0 %v4704_v44  ;;  %3222 = vmatpush1.bf16.msra.mxu1 %v4706_v38  ;;  %v1027_v44 = vld [vmem:[%s5563_s30 + $0x6c8] sm:$0xff] }
 0x154   : > { %3182 = vmatprep.subr.bf16.mxu0 %v4769_v39  ;;  %3223 = vmatprep.subr.bf16.mxu1 %v4771_v40  ;;  %v1059_v38 = vld [vmem:[%s5563_s30 + $0x7c8] sm:$0xff]  ;;  %v4712_v39 = vcombine.low %v962_v28, %v994_v29  ;;  %v4714_v40 = vcombine.low %v963_v30, %v995_v31  ;;  %v3737_v29 = vlaneseq  ;;  %v4657_v31 = vcombine.high %v902_v22, %v934_v23 }
 0x155   : > { %v4779_v42 = vcombine.high %v1027_v44, %v1059_v38 }
 0x157   : > { %3183 = vmatpush1.bf16.msra.mxu0 %v4768_v46  ;;  %3224 = vmatpush1.bf16.msra.mxu1 %v4770_v47  ;;  %v837_v46 = vld [vmem:[%s5563_s30 + $0xd8] sm:$0xff] }
 0x158   : > { %3258 = vmatprep.subr.bf16.mxu0 %v4581_v48  ;;  %3299 = vmatprep.subr.bf16.mxu1 %v4583_v49  ;;  %v869_v47 = vld [vmem:[%s5563_s30 + $0x1d8] sm:$0xff]  ;;  %v4776_v48 = vcombine.low %v1026_v36, %v1058_v37  ;;  %v4778_v49 = vcombine.low %v1027_v44, %v1059_v38  ;;  %v999_v36 = vld [vmem:[%s5563_s30 + $0x5e8] sm:$0xff]  ;;  %v5914_v37 = vpop.permute.xlu0 %1069  ;;  %v3738_v38 = vshrl.u32 %v3737_v29, 7 }
 0x159   : > { %v4591_v51 = vcombine.high %v837_v46, %v869_v47 }
 0x15a   : > { %4812 = vmatmul.mubr.msk.bf16.vlgmr.msra.gmra.mrb[40].mxu0 %vm2352_vm0, %v5829_v60  ;;  %4813 = vmatmul.mubr.msk.bf16.vlgmr.msra.gmra.mrb[40].mxu1 %vm2352_vm0, %v5829_v60 }
 0x15b   : > { %3259 = vmatpush1.bf16.msra.mxu0 %v4580_v54  ;;  %3300 = vmatpush1.bf16.msra.mxu1 %v4582_v55  ;;  %v901_v54 = vld [vmem:[%s5563_s30 + $0x2d8] sm:$0xff] }
 0x15c   : > { %3260 = vmatprep.subr.bf16.mxu0 %v4645_v56  ;;  %3301 = vmatprep.subr.bf16.mxu1 %v4647_v57  ;;  %v933_v55 = vld [vmem:[%s5563_s30 + $0x3d8] sm:$0xff]  ;;  %v4588_v56 = vcombine.low %v836_v43, %v868_v45  ;;  %v4590_v57 = vcombine.low %v837_v46, %v869_v47  ;;  %v1030_v45 = vld [vmem:[%s5563_s30 + $0x6e0] sm:$0xff] }
 0x15d   : > { %3290 = vmatprep.mubr.bf16.mxu0 %v4945_v0  ;;  %3331 = vmatprep.mubr.bf16.mxu1 %v4945_v0  ;;  %v4655_v59 = vcombine.high %v901_v54, %v933_v55  ;;  %v1062_v46 = vld [vmem:[%s5563_s30 + $0x7e0] sm:$0xff] }
 0x15f   : > { %3261 = vmatpush1.bf16.msra.mxu0 %v4644_v63  ;;  %3302 = vmatpush1.bf16.msra.mxu1 %v4646_v1  ;;  %v965_v63 = vld [vmem:[%s5563_s30 + $0x4d8] sm:$0xff] }
 0x160   : > { %3262 = vmatprep.subr.bf16.mxu0 %v4709_v2  ;;  %3303 = vmatprep.subr.bf16.mxu1 %v4711_v3  ;;  %v997_v1 = vld [vmem:[%s5563_s30 + $0x5d8] sm:$0xff]  ;;  %v4652_v2 = vcombine.low %v900_v52, %v932_v53  ;;  %v4654_v3 = vcombine.low %v901_v54, %v933_v55 }
 0x161   : > { %v4719_v5 = vcombine.high %v965_v63, %v997_v1 }
 0x163   : > { %3263 = vmatpush1.bf16.msra.mxu0 %v4708_v8  ;;  %3304 = vmatpush1.bf16.msra.mxu1 %v4710_v9  ;;  %v1029_v8 = vld [vmem:[%s5563_s30 + $0x6d8] sm:$0xff] }
 0x164   : > { %3264 = vmatprep.subr.bf16.mxu0 %v4773_v10  ;;  %3305 = vmatprep.subr.bf16.mxu1 %v4775_v11  ;;  %v1061_v9 = vld [vmem:[%s5563_s30 + $0x7d8] sm:$0xff]  ;;  %v4716_v10 = vcombine.low %v964_v61, %v996_v62  ;;  %v4718_v11 = vcombine.low %v965_v63, %v997_v1  ;;  %v4785_v63 = vcombine.high %v1030_v45, %v1062_v46 }
 0x165   : > { %v4783_v13 = vcombine.high %v1029_v8, %v1061_v9 }
 0x167   : > { %3265 = vmatpush1.bf16.msra.mxu0 %v4772_v16  ;;  %3306 = vmatpush1.bf16.msra.mxu1 %v4774_v17  ;;  %v839_v16 = vld [vmem:[%s5563_s30 + $0xe8] sm:$0xff] }
 0x168   : > { %3340 = vmatprep.subr.bf16.mxu0 %v4585_v18  ;;  %3381 = vmatprep.subr.bf16.mxu1 %v4587_v19  ;;  %v871_v17 = vld [vmem:[%s5563_s30 + $0x1e8] sm:$0xff]  ;;  %v4780_v18 = vcombine.low %v1028_v6, %v1060_v7  ;;  %v4782_v19 = vcombine.low %v1029_v8, %v1061_v9  ;;  %v841_v7 = vld [vmem:[%s5563_s30 + $0xf8] sm:$0xff] }
 0x169   : > { %v4595_v21 = vcombine.high %v839_v16, %v871_v17  ;;  %v4594_v30 = vcombine.low %v839_v16, %v871_v17  ;;  %v873_v8 = vld [vmem:[%s5563_s30 + $0x1f8] sm:$0xff]  ;;  %v936_v16 = vld [vmem:[%s5563_s30 + $0x3f0] sm:$0xff] }
 0x16a   : > { %4814 = vmatmul.mubr.msk.bf16.vlgmr.msra.gmra.mrb[44].mxu0 %vm2352_vm0, %v5829_v60  ;;  %4815 = vmatmul.mubr.msk.bf16.vlgmr.msra.gmra.mrb[44].mxu1 %vm2352_vm0, %v5829_v60 }
 0x16b   : > { %3341 = vmatpush1.bf16.msra.mxu0 %v4584_v24  ;;  %3382 = vmatpush1.bf16.msra.mxu1 %v4586_v25  ;;  %v903_v24 = vld [vmem:[%s5563_s30 + $0x2e8] sm:$0xff] }
 0x16c   : > { %3342 = vmatprep.subr.bf16.mxu0 %v4649_v26  ;;  %3383 = vmatprep.subr.bf16.mxu1 %v4651_v27  ;;  %v935_v25 = vld [vmem:[%s5563_s30 + $0x3e8] sm:$0xff]  ;;  %v4592_v26 = vcombine.low %v838_v14, %v870_v15  ;;  %v4946_v27 = vmov 1983009808   ;;  %v4599_v14 = vcombine.high %v841_v7, %v873_v8  ;;  %v904_v15 = vld [vmem:[%s5563_s30 + $0x2f0] sm:$0xff] }
 0x16d   : > { %3372 = vmatprep.mubr.bf16.mxu0 %v4945_v0  ;;  %3413 = vmatprep.mubr.bf16.mxu1 %v4945_v0  ;;  %v3735_v28 = vunpack.c.l.s4 %v4946_v27  ;;  %v1001_v27 = vld [vmem:[%s5563_s30 + $0x5f8] sm:$0xff] }
 0x16f   : > { %3343 = vmatpush1.bf16.msra.mxu0 %v4648_v32  ;;  %3384 = vmatpush1.bf16.msra.mxu1 %v4650_v33  ;;  %v4659_v32 = vcombine.high %v903_v24, %v935_v25  ;;  %v966_v33 = vld [vmem:[%s5563_s30 + $0x4e0] sm:$0xff]  ;;  %v3736_v44 = vunpack.c.0.s8 %v3735_v28  ;;  %v4660_v28 = vcombine.low %v904_v15, %v936_v16 }
 0x170   : > { %3344 = vmatprep.subr.bf16.mxu0 %v4713_v34  ;;  %3385 = vmatprep.subr.bf16.mxu1 %v4715_v35  ;;  %v998_v34 = vld [vmem:[%s5563_s30 + $0x5e0] sm:$0xff]  ;;  %v967_v35 = vld [vmem:[%s5563_s30 + $0x4e8] sm:$0xff] }
 0x171   : > { %v4723_v43 = vcombine.high %v967_v35, %v999_v36  ;;  %v5934_v53 = vsub.s32 %v3736_v44, %v3738_v38  ;;  %v4722_v62 = vcombine.low %v967_v35, %v999_v36  ;;  %v1033_v38 = vld [vmem:[%s5563_s30 + $0x6f8] sm:$0xff] }
 0x173   : > { %3345 = vmatpush1.bf16.msra.mxu0 %v4712_v39  ;;  %3386 = vmatpush1.bf16.msra.mxu1 %v4714_v40  ;;  %v4656_v39 = vcombine.low %v902_v22, %v934_v23  ;;  %v4658_v40 = vcombine.low %v903_v24, %v935_v25  ;;  %v4661_v22 = vcombine.high %v904_v15, %v936_v16  ;;  %v968_v24 = vld [vmem:[%s5563_s30 + $0x4f0] sm:$0xff] }
 0x174   : > { %3346 = vmatprep.subr.bf16.mxu0 %v4777_v41  ;;  %3387 = vmatprep.subr.bf16.mxu1 %v4779_v42  ;;  %v4721_v41 = vcombine.high %v966_v33, %v998_v34  ;;  %v1000_v25 = vld [vmem:[%s5563_s30 + $0x5f0] sm:$0xff] }
 0x177   : > { %3347 = vmatpush1.bf16.msra.mxu0 %v4776_v48  ;;  %3388 = vmatpush1.bf16.msra.mxu1 %v4778_v49 }
 0x178   : > { %3422 = vmatprep.subr.bf16.mxu0 %v4589_v50  ;;  %3463 = vmatprep.subr.bf16.mxu1 %v4591_v51  ;;  %v1031_v50 = vld [vmem:[%s5563_s30 + $0x6e8] sm:$0xff] }
 0x179   : > { %v1063_v51 = vld [vmem:[%s5563_s30 + $0x7e8] sm:$0xff] }
 0x17a   : > { %4816 = vmatmul.mubr.msk.bf16.vlgmr.msra.gmra.mrb[48].mxu0 %vm2352_vm0, %v5829_v60  ;;  %4817 = vmatmul.mubr.msk.bf16.vlgmr.msra.gmra.mrb[48].mxu1 %vm2352_vm0, %v5829_v60 }
 0x17b   : > { %3423 = vmatpush1.bf16.msra.mxu0 %v4588_v56  ;;  %3464 = vmatpush1.bf16.msra.mxu1 %v4590_v57  ;;  %v4720_v57 = vcombine.low %v966_v33, %v998_v34  ;;  %v1032_v33 = vld [vmem:[%s5563_s30 + $0x6f0] sm:$0xff] }
 0x17c   : > { %3424 = vmatprep.subr.bf16.mxu0 %v4653_v58  ;;  %3465 = vmatprep.subr.bf16.mxu1 %v4655_v59  ;;  %v1064_v34 = vld [vmem:[%s5563_s30 + $0x7f0] sm:$0xff] }
 0x17d   : > { %3454 = vmatprep.mubr.bf16.mxu0 %v4945_v0  ;;  %3495 = vmatprep.mubr.bf16.mxu1 %v4945_v0 }
 0x17f   : > { %3425 = vmatpush1.bf16.msra.mxu0 %v4652_v2  ;;  %3466 = vmatpush1.bf16.msra.mxu1 %v4654_v3  ;;  %v4787_v3 = vcombine.high %v1031_v50, %v1063_v51 }
 0x180   : > { %3426 = vmatprep.subr.bf16.mxu0 %v4717_v4  ;;  %3467 = vmatprep.subr.bf16.mxu1 %v4719_v5  ;;  %v840_v4 = vld [vmem:[%s5563_s30 + $0xf0] sm:$0xff] }
 0x181   : > { %v872_v5 = vld [vmem:[%s5563_s30 + $0x1f0] sm:$0xff] }
 0x183   : > { %3427 = vmatpush1.bf16.msra.mxu0 %v4716_v10  ;;  %3468 = vmatpush1.bf16.msra.mxu1 %v4718_v11  ;;  %v4784_v10 = vcombine.low %v1030_v45, %v1062_v46  ;;  %v4724_v45 = vcombine.low %v968_v24, %v1000_v25 }
 0x184   : > { %3428 = vmatprep.subr.bf16.mxu0 %v4781_v12  ;;  %3469 = vmatprep.subr.bf16.mxu1 %v4783_v13  ;;  %v4786_v12 = vcombine.low %v1031_v50, %v1063_v51  ;;  %v4597_v13 = vcombine.high %v840_v4, %v872_v5  ;;  %v4789_v51 = vcombine.high %v1032_v33, %v1064_v34 }
 0x187   : > { %3429 = vmatpush1.bf16.msra.mxu0 %v4780_v18  ;;  %3470 = vmatpush1.bf16.msra.mxu1 %v4782_v19  ;;  %v905_v18 = vld [vmem:[%s5563_s30 + $0x2f8] sm:$0xff] }
 0x188   : > { %3504 = vmatprep.subr.bf16.mxu0 %v4593_v20  ;;  %3545 = vmatprep.subr.bf16.mxu1 %v4595_v21  ;;  %v937_v19 = vld [vmem:[%s5563_s30 + $0x3f8] sm:$0xff]  ;;  %v4596_v20 = vcombine.low %v840_v4, %v872_v5  ;;  %v4598_v21 = vcombine.low %v841_v7, %v873_v8 }
 0x189   : > { %v4663_v23 = vcombine.high %v905_v18, %v937_v19  ;;  %v4662_v29 = vcombine.low %v905_v18, %v937_v19 }
 0x18a   : > { %4818 = vmatmul.mubr.msk.bf16.vlgmr.msra.gmra.mrb[52].mxu0 %vm2352_vm0, %v5829_v60  ;;  %4819 = vmatmul.mubr.msk.bf16.vlgmr.msra.gmra.mrb[52].mxu1 %vm2352_vm0, %v5829_v60 }
 0x18b   : > { %3505 = vmatpush1.bf16.msra.mxu0 %v4592_v26  ;;  %3546 = vmatpush1.bf16.msra.mxu1 %v4594_v30  ;;  %v969_v26 = vld [vmem:[%s5563_s30 + $0x4f8] sm:$0xff]  ;;  %v4725_v30 = vcombine.high %v968_v24, %v1000_v25 }
 0x18c   : > { %3506 = vmatprep.subr.bf16.mxu0 %v4657_v31  ;;  %3547 = vmatprep.subr.bf16.mxu1 %v4659_v32  ;;  %v4727_v32 = vcombine.high %v969_v26, %v1001_v27  ;;  %v4726_v50 = vcombine.low %v969_v26, %v1001_v27 }
 0x18d   : > { %v2390_v42 = vpop.f32.mrb[0].mxu0  ;;  %3536 = vmatprep.mubr.bf16.mxu0 %v4945_v0  ;;  %v2431_v47 = vpop.f32.mrb[0].mxu1  ;;  %3577 = vmatprep.mubr.bf16.mxu1 %v4945_v0 }
 0x18e   : > { %v5920_v48 = vadd.f32 %v2390_v42, %v5914_v37  ;;  %v2392_v49 = vpop.f32.mrb[1].mxu0  ;;  %v5937_v54 = vadd.f32 %v2431_v47, %v5914_v37  ;;  %v2433_v55 = vpop.f32.mrb[1].mxu1 }
 0x18f   : > { %v5932_v52 = vadd.f32 %v2392_v49, %v5914_v37  ;;  %v2394_v56 = vpop.f32.mrb[2].mxu0  ;;  %3507 = vmatpush1.bf16.msra.mxu0 %v4656_v39  ;;  %v5940_v58 = vadd.f32 %v2433_v55, %v5914_v37  ;;  %v2435_v59 = vpop.f32.mrb[2].mxu1  ;;  %3548 = vmatpush1.bf16.msra.mxu1 %v4658_v40  ;;  %v1065_v39 = vld [vmem:[%s5563_s30 + $0x7f8] sm:$0xff] }
 0x190   : > { %v2395_v61 = vpop.f32.mrb[3].mxu0  ;;  %3508 = vmatprep.subr.bf16.mxu0 %v4721_v41  ;;  %v2436_v2 = vpop.f32.mrb[3].mxu1  ;;  %3549 = vmatprep.subr.bf16.mxu1 %v4723_v43  ;;  %v4791_v56 = vcombine.high %v1033_v38, %v1065_v39 }
 0x191   : > { %v3732_v1 = vcombine.low %v5920_v48, %v5932_v52  ;;  %v3733_v6 = vcombine.low %v5937_v54, %v5940_v58  ;;  %v4788_v61 = vcombine.low %v1032_v33, %v1064_v34 }
 0x193   : > { %v3740_v9 = vrot.slane %v3732_v1, %v5934_v53  ;;  %3509 = vmatpush1.bf16.msra.mxu0 %v4720_v57  ;;  %v3747_v11 = vrot.slane %v3733_v6, %v5934_v53  ;;  %3550 = vmatpush1.bf16.msra.mxu1 %v4722_v62 }
 0x194   : > { %3510 = vmatprep.subr.bf16.mxu0 %v4785_v63  ;;  %3551 = vmatprep.subr.bf16.mxu1 %v4787_v3  ;;  %v4790_v63 = vcombine.low %v1033_v38, %v1065_v39 }
 0x195   : > { %v3748_v17 = vcombine.low %v3740_v9, %v3747_v11 }
 0x197   : > { %3511 = vmatpush1.bf16.msra.mxu0 %v4784_v10  ;;  %4020 = vst [vmem:[%s5956_s7] sm:$0xff] %v3748_v17  ;;  %3552 = vmatpush1.bf16.msra.mxu1 %v4786_v12 }
 0x198   : > { %3586 = vmatprep.subr.bf16.mxu0 %v4597_v13  ;;  %3627 = vmatprep.subr.bf16.mxu1 %v4599_v14 }
 0x19a   : > { %4820 = vmatmul.mubr.msk.bf16.vlgmr.msra.gmra.mrb[56].mxu0 %vm2352_vm0, %v5829_v60  ;;  %4821 = vmatmul.mubr.msk.bf16.vlgmr.msra.gmra.mrb[56].mxu1 %vm2352_vm0, %v5829_v60 }
 0x19b   : > { %3587 = vmatpush1.bf16.msra.mxu0 %v4596_v20  ;;  %3628 = vmatpush1.bf16.msra.mxu1 %v4598_v21 }
 0x19c   : > { %3588 = vmatprep.subr.bf16.mxu0 %v4661_v22  ;;  %3629 = vmatprep.subr.bf16.mxu1 %v4663_v23 }
 0x19d   : > { %v2472_v31 = vpop.f32.mrb[4].mxu0  ;;  %3618 = vmatprep.mubr.bf16.mxu0 %v4945_v0  ;;  %v2513_v36 = vpop.f32.mrb[4].mxu1  ;;  %3659 = vmatprep.mubr.bf16.mxu1 %v4945_v0 }
 0x19e   : > { %v5975_v35 = vadd.f32 %v2472_v31, %v5914_v37  ;;  %v2474_v44 = vpop.f32.mrb[5].mxu0  ;;  %v5981_v40 = vadd.f32 %v2513_v36, %v5914_v37  ;;  %v2515_v42 = vpop.f32.mrb[5].mxu1 }
 0x19f   : > { %v5984_v41 = vadd.f32 %v2474_v44, %v5914_v37  ;;  %v2476_v43 = vpop.f32.mrb[6].mxu0  ;;  %3589 = vmatpush1.bf16.msra.mxu0 %v4660_v28  ;;  %v5987_v46 = vadd.f32 %v2515_v42, %v5914_v37  ;;  %v2517_v47 = vpop.f32.mrb[6].mxu1  ;;  %3630 = vmatpush1.bf16.msra.mxu1 %v4662_v29 }
 0x1a0   : > { %v2477_v49 = vpop.f32.mrb[7].mxu0  ;;  %3590 = vmatprep.subr.bf16.mxu0 %v4725_v30  ;;  %v2518_v55 = vpop.f32.mrb[7].mxu1  ;;  %3631 = vmatprep.subr.bf16.mxu1 %v4727_v32 }
 0x1a1   : > { %v3749_v0 = vcombine.low %v5975_v35, %v5984_v41  ;;  %v3750_v57 = vcombine.low %v5981_v40, %v5987_v46 }
 0x1a3   : > { %v3757_v59 = vrot.slane %v3749_v0, %v5934_v53  ;;  %3591 = vmatpush1.bf16.msra.mxu0 %v4724_v45  ;;  %v3764_v62 = vrot.slane %v3750_v57, %v5934_v53  ;;  %3632 = vmatpush1.bf16.msra.mxu1 %v4726_v50 }
 0x1a4   : > { %3592 = vmatprep.subr.bf16.mxu0 %v4789_v51  ;;  %3633 = vmatprep.subr.bf16.mxu1 %v4791_v56 }
 0x1a5   : > { %v3765_v1 = vcombine.low %v3757_v59, %v3764_v62 }
 0x1a7   : > { %3593 = vmatpush1.bf16.msra.mxu0 %v4788_v61  ;;  %4021 = vst [vmem:[%s5956_s7 + $0x8] sm:$0xff] %v3765_v1  ;;  %3634 = vmatpush1.bf16.msra.mxu1 %v4790_v63 }
 0x1aa   : > { %4822 = vmatmul.mubr.msk.bf16.vlgmr.msra.gmra.mrb[60].mxu0 %vm2352_vm0, %v5829_v60  ;;  %4823 = vmatmul.mubr.msk.bf16.vlgmr.msra.gmra.mrb[60].mxu1 %vm2352_vm0, %v5829_v60 }
 0x1ad   : > { %v2554_v2 = vpop.f32.mrb[8].mxu0  ;;  %v2595_v4 = vpop.f32.mrb[8].mxu1 }
 0x1ae   : > { %v6001_v3 = vadd.f32 %v2554_v2, %v5914_v37  ;;  %v2556_v5 = vpop.f32.mrb[9].mxu0  ;;  %v6004_v6 = vadd.f32 %v2595_v4, %v5914_v37  ;;  %v2597_v8 = vpop.f32.mrb[9].mxu1 }
 0x1af   : > { %v6007_v7 = vadd.f32 %v2556_v5, %v5914_v37  ;;  %v2558_v9 = vpop.f32.mrb[10].mxu0  ;;  %v6010_v10 = vadd.f32 %v2597_v8, %v5914_v37  ;;  %v2599_v11 = vpop.f32.mrb[10].mxu1 }
 0x1b0   : > { %v2559_v60 = vpop.f32.mrb[11].mxu0  ;;  %v2600_v13 = vpop.f32.mrb[11].mxu1 }
 0x1b1   : > { %v3766_v12 = vcombine.low %v6001_v3, %v6007_v7  ;;  %v3767_v14 = vcombine.low %v6004_v6, %v6010_v10 }
 0x1b3   : > { %v3774_v15 = vrot.slane %v3766_v12, %v5934_v53  ;;  %v3781_v16 = vrot.slane %v3767_v14, %v5934_v53 }
 0x1b5   : > { %v3782_v17 = vcombine.low %v3774_v15, %v3781_v16 }
 0x1b7   : > { %4022 = vst [vmem:[%s5956_s7 + $0x10] sm:$0xff] %v3782_v17 }
 0x1bd   : > { %v2636_v18 = vpop.f32.mrb[12].mxu0  ;;  %v2677_v20 = vpop.f32.mrb[12].mxu1 }
 0x1be   : > { %v6020_v19 = vadd.f32 %v2636_v18, %v5914_v37  ;;  %v2638_v21 = vpop.f32.mrb[13].mxu0  ;;  %v6023_v22 = vadd.f32 %v2677_v20, %v5914_v37  ;;  %v2679_v24 = vpop.f32.mrb[13].mxu1 }
 0x1bf   : > { %v6026_v23 = vadd.f32 %v2638_v21, %v5914_v37  ;;  %v2640_v25 = vpop.f32.mrb[14].mxu0  ;;  %v6029_v26 = vadd.f32 %v2679_v24, %v5914_v37  ;;  %v2681_v27 = vpop.f32.mrb[14].mxu1 }
 0x1c0   : > { %v2641_v28 = vpop.f32.mrb[15].mxu0  ;;  %v2682_v30 = vpop.f32.mrb[15].mxu1 }
 0x1c1   : > { %v3783_v29 = vcombine.low %v6020_v19, %v6026_v23  ;;  %v3784_v31 = vcombine.low %v6023_v22, %v6029_v26 }
 0x1c3   : > { %v3791_v32 = vrot.slane %v3783_v29, %v5934_v53  ;;  %v3798_v33 = vrot.slane %v3784_v31, %v5934_v53 }
 0x1c5   : > { %v3799_v34 = vcombine.low %v3791_v32, %v3798_v33 }
 0x1c7   : > { %4023 = vst [vmem:[%s5956_s7 + $0x18] sm:$0xff] %v3799_v34 }
 0x1cd   : > { %v2718_v36 = vpop.f32.mrb[16].mxu0  ;;  %v2759_v38 = vpop.f32.mrb[16].mxu1 }
 0x1ce   : > { %v6039_v44 = vadd.f32 %v2718_v36, %v5914_v37  ;;  %v2720_v39 = vpop.f32.mrb[17].mxu0  ;;  %v6042_v42 = vadd.f32 %v2759_v38, %v5914_v37  ;;  %v2761_v45 = vpop.f32.mrb[17].mxu1 }
 0x1cf   : > { %v6045_v43 = vadd.f32 %v2720_v39, %v5914_v37  ;;  %v2722_v47 = vpop.f32.mrb[18].mxu0  ;;  %v6048_v49 = vadd.f32 %v2761_v45, %v5914_v37  ;;  %v2763_v50 = vpop.f32.mrb[18].mxu1 }
 0x1d0   : > { %v2723_v51 = vpop.f32.mrb[19].mxu0  ;;  %v2764_v55 = vpop.f32.mrb[19].mxu1 }
 0x1d1   : > { %v3800_v0 = vcombine.low %v6039_v44, %v6045_v43  ;;  %v3801_v56 = vcombine.low %v6042_v42, %v6048_v49 }
 0x1d3   : > { %v3808_v57 = vrot.slane %v3800_v0, %v5934_v53  ;;  %v3815_v59 = vrot.slane %v3801_v56, %v5934_v53 }
 0x1d5   : > { %v3816_v61 = vcombine.low %v3808_v57, %v3815_v59 }
 0x1d7   : > { %4024 = vst [vmem:[%s5956_s7 + $0x20] sm:$0xff] %v3816_v61 }
 0x1dd   : > { %v2800_v62 = vpop.f32.mrb[20].mxu0  ;;  %v2841_v1 = vpop.f32.mrb[20].mxu1 }
 0x1de   : > { %v6058_v63 = vadd.f32 %v2800_v62, %v5914_v37  ;;  %v2802_v2 = vpop.f32.mrb[21].mxu0  ;;  %v6061_v4 = vadd.f32 %v2841_v1, %v5914_v37  ;;  %v2843_v8 = vpop.f32.mrb[21].mxu1 }
 0x1df   : > { %v6064_v5 = vadd.f32 %v2802_v2, %v5914_v37  ;;  %v2804_v9 = vpop.f32.mrb[22].mxu0  ;;  %v6067_v11 = vadd.f32 %v2843_v8, %v5914_v37  ;;  %v2845_v60 = vpop.f32.mrb[22].mxu1 }
 0x1e0   : > { %v2805_v12 = vpop.f32.mrb[23].mxu0  ;;  %v2846_v14 = vpop.f32.mrb[23].mxu1 }
 0x1e1   : > { %v3817_v13 = vcombine.low %v6058_v63, %v6064_v5  ;;  %v3818_v15 = vcombine.low %v6061_v4, %v6067_v11 }
 0x1e3   : > { %v3825_v16 = vrot.slane %v3817_v13, %v5934_v53  ;;  %v3832_v17 = vrot.slane %v3818_v15, %v5934_v53 }
 0x1e5   : > { %v3833_v18 = vcombine.low %v3825_v16, %v3832_v17 }
 0x1e7   : > { %4025 = vst [vmem:[%s5956_s7 + $0x28] sm:$0xff] %v3833_v18 }
 0x1ed   : > { %v2882_v20 = vpop.f32.mrb[24].mxu0  ;;  %v2923_v24 = vpop.f32.mrb[24].mxu1 }
 0x1ee   : > { %v6077_v21 = vadd.f32 %v2882_v20, %v5914_v37  ;;  %v2884_v25 = vpop.f32.mrb[25].mxu0  ;;  %v6080_v27 = vadd.f32 %v2923_v24, %v5914_v37  ;;  %v2925_v29 = vpop.f32.mrb[25].mxu1 }
 0x1ef   : > { %v6083_v28 = vadd.f32 %v2884_v25, %v5914_v37  ;;  %v2886_v30 = vpop.f32.mrb[26].mxu0  ;;  %v6086_v31 = vadd.f32 %v2925_v29, %v5914_v37  ;;  %v2927_v32 = vpop.f32.mrb[26].mxu1 }
 0x1f0   : > { %v2887_v33 = vpop.f32.mrb[27].mxu0  ;;  %v2928_v36 = vpop.f32.mrb[27].mxu1 }
 0x1f1   : > { %v3834_v34 = vcombine.low %v6077_v21, %v6083_v28  ;;  %v3835_v38 = vcombine.low %v6080_v27, %v6086_v31 }
 0x1f3   : > { %v3842_v39 = vrot.slane %v3834_v34, %v5934_v53  ;;  %v3849_v45 = vrot.slane %v3835_v38, %v5934_v53 }
 0x1f5   : > { %v3850_v47 = vcombine.low %v3842_v39, %v3849_v45 }
 0x1f7   : > { %4026 = vst [vmem:[%s5956_s7 + $0x30] sm:$0xff] %v3850_v47 }
 0x1fd   : > { %v2964_v50 = vpop.f32.mrb[28].mxu0  ;;  %v3005_v0 = vpop.f32.mrb[28].mxu1 }
 0x1fe   : > { %v6096_v51 = vadd.f32 %v2964_v50, %v5914_v37  ;;  %v2966_v55 = vpop.f32.mrb[29].mxu0  ;;  %v6099_v56 = vadd.f32 %v3005_v0, %v5914_v37  ;;  %v3007_v59 = vpop.f32.mrb[29].mxu1 }
 0x1ff   : > { %v6102_v57 = vadd.f32 %v2966_v55, %v5914_v37  ;;  %v2968_v61 = vpop.f32.mrb[30].mxu0  ;;  %v6105_v62 = vadd.f32 %v3007_v59, %v5914_v37  ;;  %v3009_v1 = vpop.f32.mrb[30].mxu1 }
 0x200   : > { %v2969_v2 = vpop.f32.mrb[31].mxu0  ;;  %v3010_v9 = vpop.f32.mrb[31].mxu1 }
 0x201   : > { %v3851_v8 = vcombine.low %v6096_v51, %v6102_v57  ;;  %v3852_v60 = vcombine.low %v6099_v56, %v6105_v62 }
 0x203   : > { %v3859_v12 = vrot.slane %v3851_v8, %v5934_v53  ;;  %v3866_v13 = vrot.slane %v3852_v60, %v5934_v53 }
 0x205   : > { %v3867_v14 = vcombine.low %v3859_v12, %v3866_v13 }
 0x207   : > { %4027 = vst [vmem:[%s5956_s7 + $0x38] sm:$0xff] %v3867_v14 }
 0x20d   : > { %v3046_v15 = vpop.f32.mrb[32].mxu0  ;;  %v3087_v17 = vpop.f32.mrb[32].mxu1 }
 0x20e   : > { %v6115_v16 = vadd.f32 %v3046_v15, %v5914_v37  ;;  %v3048_v18 = vpop.f32.mrb[33].mxu0  ;;  %v6118_v20 = vadd.f32 %v3087_v17, %v5914_v37  ;;  %v3089_v25 = vpop.f32.mrb[33].mxu1 }
 0x20f   : > { %v6121_v24 = vadd.f32 %v3048_v18, %v5914_v37  ;;  %v3050_v29 = vpop.f32.mrb[34].mxu0  ;;  %v6124_v30 = vadd.f32 %v3089_v25, %v5914_v37  ;;  %v3091_v32 = vpop.f32.mrb[34].mxu1 }
 0x210   : > { %v3051_v33 = vpop.f32.mrb[35].mxu0  ;;  %v3092_v36 = vpop.f32.mrb[35].mxu1 }
 0x211   : > { %v3868_v34 = vcombine.low %v6115_v16, %v6121_v24  ;;  %v3869_v38 = vcombine.low %v6118_v20, %v6124_v30 }
 0x213   : > { %v3876_v39 = vrot.slane %v3868_v34, %v5934_v53  ;;  %v3883_v45 = vrot.slane %v3869_v38, %v5934_v53 }
 0x215   : > { %v3884_v47 = vcombine.low %v3876_v39, %v3883_v45 }
 0x217   : > { %4028 = vst [vmem:[%s5956_s7 + $0x40] sm:$0xff] %v3884_v47 }
 0x21d   : > { %v3128_v50 = vpop.f32.mrb[36].mxu0  ;;  %v3169_v55 = vpop.f32.mrb[36].mxu1 }
 0x21e   : > { %v6134_v0 = vadd.f32 %v3128_v50, %v5914_v37  ;;  %v3130_v59 = vpop.f32.mrb[37].mxu0  ;;  %v6137_v61 = vadd.f32 %v3169_v55, %v5914_v37  ;;  %v3171_v2 = vpop.f32.mrb[37].mxu1 }
 0x21f   : > { %v6140_v1 = vadd.f32 %v3130_v59, %v5914_v37  ;;  %v3132_v8 = vpop.f32.mrb[38].mxu0  ;;  %v6143_v9 = vadd.f32 %v3171_v2, %v5914_v37  ;;  %v3173_v60 = vpop.f32.mrb[38].mxu1 }
 0x220   : > { %v3133_v12 = vpop.f32.mrb[39].mxu0  ;;  %v3174_v14 = vpop.f32.mrb[39].mxu1 }
 0x221   : > { %v3885_v13 = vcombine.low %v6134_v0, %v6140_v1  ;;  %v3886_v15 = vcombine.low %v6137_v61, %v6143_v9 }
 0x223   : > { %v3893_v17 = vrot.slane %v3885_v13, %v5934_v53  ;;  %v3900_v18 = vrot.slane %v3886_v15, %v5934_v53 }
 0x225   : > { %v3901_v25 = vcombine.low %v3893_v17, %v3900_v18 }
 0x227   : > { %4029 = vst [vmem:[%s5956_s7 + $0x48] sm:$0xff] %v3901_v25 }
 0x22d   : > { %v3210_v29 = vpop.f32.mrb[40].mxu0  ;;  %v3251_v33 = vpop.f32.mrb[40].mxu1 }
 0x22e   : > { %v6153_v32 = vadd.f32 %v3210_v29, %v5914_v37  ;;  %v3212_v34 = vpop.f32.mrb[41].mxu0  ;;  %v6156_v36 = vadd.f32 %v3251_v33, %v5914_v37  ;;  %v3253_v39 = vpop.f32.mrb[41].mxu1 }
 0x22f   : > { %v6159_v38 = vadd.f32 %v3212_v34, %v5914_v37  ;;  %v3214_v45 = vpop.f32.mrb[42].mxu0  ;;  %v6162_v47 = vadd.f32 %v3253_v39, %v5914_v37  ;;  %v3255_v50 = vpop.f32.mrb[42].mxu1 }
 0x230   : > { %v3215_v55 = vpop.f32.mrb[43].mxu0  ;;  %v3256_v2 = vpop.f32.mrb[43].mxu1 }
 0x231   : > { %v3902_v59 = vcombine.low %v6153_v32, %v6159_v38  ;;  %v3903_v8 = vcombine.low %v6156_v36, %v6162_v47 }
 0x233   : > { %v3910_v60 = vrot.slane %v3902_v59, %v5934_v53  ;;  %v3917_v12 = vrot.slane %v3903_v8, %v5934_v53 }
 0x235   : > { %v3918_v13 = vcombine.low %v3910_v60, %v3917_v12 }
 0x237   : > { %4030 = vst [vmem:[%s5956_s7 + $0x50] sm:$0xff] %v3918_v13 }
 0x23d   : > { %v3292_v14 = vpop.f32.mrb[44].mxu0  ;;  %v3333_v17 = vpop.f32.mrb[44].mxu1 }
 0x23e   : > { %v6172_v15 = vadd.f32 %v3292_v14, %v5914_v37  ;;  %v3294_v18 = vpop.f32.mrb[45].mxu0  ;;  %v6175_v25 = vadd.f32 %v3333_v17, %v5914_v37  ;;  %v3335_v33 = vpop.f32.mrb[45].mxu1 }
 0x23f   : > { %v6178_v29 = vadd.f32 %v3294_v18, %v5914_v37  ;;  %v3296_v34 = vpop.f32.mrb[46].mxu0  ;;  %v6181_v39 = vadd.f32 %v3335_v33, %v5914_v37  ;;  %v3337_v45 = vpop.f32.mrb[46].mxu1 }
 0x240   : > { %v3297_v50 = vpop.f32.mrb[47].mxu0  ;;  %v3338_v59 = vpop.f32.mrb[47].mxu1 }
 0x241   : > { %6649 = vst [vmem:[#allocation3_spill] sm:$0xff] %v6181_v39  ;;  %v3919_v55 = vcombine.low %v6172_v15, %v6178_v29  ;;  %v3920_v2 = vcombine.low %v6175_v25, %v6181_v39 }
 0x243   : > { %v3927_v8 = vrot.slane %v3919_v55, %v5934_v53  ;;  %v3934_v60 = vrot.slane %v3920_v2, %v5934_v53 }
 0x245   : > { %v3935_v12 = vcombine.low %v3927_v8, %v3934_v60 }
 0x247   : > { %4031 = vst [vmem:[%s5956_s7 + $0x58] sm:$0xff] %v3935_v12 }
 0x24d   : > { %v3374_v13 = vpop.f32.mrb[48].mxu0  ;;  %v3415_v17 = vpop.f32.mrb[48].mxu1 }
 0x24e   : > { %v6191_v14 = vadd.f32 %v3374_v13, %v5914_v37  ;;  %v3376_v18 = vpop.f32.mrb[49].mxu0  ;;  %v6194_v33 = vadd.f32 %v3415_v17, %v5914_v37  ;;  %v3417_v45 = vpop.f32.mrb[49].mxu1 }
 0x24f   : > { %v6197_v34 = vadd.f32 %v3376_v18, %v5914_v37  ;;  %v3378_v50 = vpop.f32.mrb[50].mxu0  ;;  %v6200_v55 = vadd.f32 %v3417_v45, %v5914_v37  ;;  %v3419_v59 = vpop.f32.mrb[50].mxu1 }
 0x250   : > { %6650 = vst [vmem:[#allocation4_spill] sm:$0xff] %v6191_v14  ;;  %6651 = vst [vmem:[#allocation5_spill] sm:$0xff] %v6194_v33  ;;  %v3379_v2 = vpop.f32.mrb[51].mxu0  ;;  %v3420_v60 = vpop.f32.mrb[51].mxu1 }
 0x251   : > { %6652 = vst [vmem:[#allocation6_spill] sm:$0xff] %v6197_v34  ;;  %6653 = vst [vmem:[#allocation7_spill] sm:$0xff] %v6200_v55  ;;  %v3936_v8 = vcombine.low %v6191_v14, %v6197_v34  ;;  %v3937_v12 = vcombine.low %v6194_v33, %v6200_v55 }
 0x253   : > { %v3944_v13 = vrot.slane %v3936_v8, %v5934_v53  ;;  %v3951_v17 = vrot.slane %v3937_v12, %v5934_v53 }
 0x255   : > { %v3952_v18 = vcombine.low %v3944_v13, %v3951_v17 }
 0x257   : > { %4032 = vst [vmem:[%s5956_s7 + $0x60] sm:$0xff] %v3952_v18 }
 0x25d   : > { %v3456_v39 = vpop.f32.mrb[52].mxu0  ;;  %v3497_v45 = vpop.f32.mrb[52].mxu1 }
 0x25e   : > { %v6210_v50 = vadd.f32 %v3456_v39, %v5914_v37  ;;  %v3458_v59 = vpop.f32.mrb[53].mxu0  ;;  %v6213_v2 = vadd.f32 %v3497_v45, %v5914_v37  ;;  %v3499_v55 = vpop.f32.mrb[53].mxu1 }
 0x25f   : > { %v6216_v60 = vadd.f32 %v3458_v59, %v5914_v37  ;;  %v3460_v33 = vpop.f32.mrb[54].mxu0  ;;  %v6219_v8 = vadd.f32 %v3499_v55, %v5914_v37  ;;  %v3501_v12 = vpop.f32.mrb[54].mxu1 }
 0x260   : > { %6654 = vst [vmem:[#allocation8_spill] sm:$0xff] %v6210_v50  ;;  %6655 = vst [vmem:[#allocation9_spill] sm:$0xff] %v6213_v2  ;;  %v3461_v13 = vpop.f32.mrb[55].mxu0  ;;  %v3502_v17 = vpop.f32.mrb[55].mxu1 }
 0x261   : > { %6656 = vst [vmem:[#allocation10_spill] sm:$0xff] %v6216_v60  ;;  %6657 = vst [vmem:[#allocation11_spill] sm:$0xff] %v6219_v8  ;;  %v3953_v39 = vcombine.low %v6210_v50, %v6216_v60  ;;  %v3954_v18 = vcombine.low %v6213_v2, %v6219_v8 }
 0x263   : > { %v3961_v45 = vrot.slane %v3953_v39, %v5934_v53  ;;  %v3968_v34 = vrot.slane %v3954_v18, %v5934_v53 }
 0x265   : > { %v3969_v59 = vcombine.low %v3961_v45, %v3968_v34 }
 0x267   : > { %4033 = vst [vmem:[%s5956_s7 + $0x68] sm:$0xff] %v3969_v59 }
 0x26d   : > { %v3538_v14 = vpop.f32.mrb[56].mxu0  ;;  %v3579_v55 = vpop.f32.mrb[56].mxu1 }
 0x26e   : > { %v6229_v33 = vadd.f32 %v3538_v14, %v5914_v37  ;;  %v3540_v12 = vpop.f32.mrb[57].mxu0  ;;  %v6232_v13 = vadd.f32 %v3579_v55, %v5914_v37  ;;  %v3581_v8 = vpop.f32.mrb[57].mxu1 }
 0x26f   : > { %v6235_v17 = vadd.f32 %v3540_v12, %v5914_v37  ;;  %v3542_v2 = vpop.f32.mrb[58].mxu0  ;;  %v6238_v39 = vadd.f32 %v3581_v8, %v5914_v37  ;;  %v3583_v34 = vpop.f32.mrb[58].mxu1 }
 0x270   : > { %6658 = vst [vmem:[#allocation12_spill] sm:$0xff] %v6232_v13  ;;  %v3543_v18 = vpop.f32.mrb[59].mxu0  ;;  %v3584_v45 = vpop.f32.mrb[59].mxu1 }
 0x271   : > { %6659 = vst [vmem:[#allocation13_spill] sm:$0xff] %v6235_v17  ;;  %6660 = vst [vmem:[#allocation14_spill] sm:$0xff] %v6238_v39  ;;  %v3970_v14 = vcombine.low %v6229_v33, %v6235_v17  ;;  %v3971_v59 = vcombine.low %v6232_v13, %v6238_v39 }
 0x273   : > { %v3978_v55 = vrot.slane %v3970_v14, %v5934_v53  ;;  %v3985_v60 = vrot.slane %v3971_v59, %v5934_v53 }
 0x275   : > { %v3986_v12 = vcombine.low %v3978_v55, %v3985_v60 }
 0x277   : > { %4034 = vst [vmem:[%s5956_s7 + $0x70] sm:$0xff] %v3986_v12 }
 0x27d   : > { %v3620_v50 = vpop.f32.mrb[60].mxu0  ;;  %v3661_v8 = vpop.f32.mrb[60].mxu1 }
 0x27e   : > { %v6248_v2 = vadd.f32 %v3620_v50, %v5914_v37  ;;  %v3622_v34 = vpop.f32.mrb[61].mxu0  ;;  %v6251_v18 = vadd.f32 %v3661_v8, %v5914_v37  ;;  %v3663_v39 = vpop.f32.mrb[61].mxu1 }
 0x27f   : > { %v6254_v45 = vadd.f32 %v3622_v34, %v5914_v37  ;;  %v3624_v13 = vpop.f32.mrb[62].mxu0  ;;  %v6257_v14 = vadd.f32 %v3663_v39, %v5914_v37  ;;  %v3665_v60 = vpop.f32.mrb[62].mxu1  ;;  %v4947_v37 = vmov (!%p4824_p12), 0.0  }
 0x280   : > { %6661 = vst [vmem:[#allocation15_spill] sm:$0xff] %v6251_v18  ;;  %v3625_v59 = vpop.f32.mrb[63].mxu0  ;;  %v3666_v55 = vpop.f32.mrb[63].mxu1  ;;  %4041 = vst.msk [vmem:[%s5577_s9] sm:$0x3] (!%p4824_p12), %vm4040_vm1, %v4947_v37 }
 0x281   : > { %6662 = vst [vmem:[#allocation16_spill] sm:$0xff] %v6257_v14  ;;  %v3987_v50 = vcombine.low %v6248_v2, %v6254_v45  ;;  %v3988_v12 = vcombine.low %v6251_v18, %v6257_v14  ;;  %4039 = sbr.rel (%p4824_p12) target bundleno = 648 (0x288), region = 59  ;;  %4042 = vst.msk [vmem:[%s5582_s12] sm:$0x3] (!%p4824_p12), %vm4040_vm1, %v4947_v37 }
 0x283   : > { %v3995_v8 = vrot.slane %v3987_v50, %v5934_v53  ;;  %v4002_v17 = vrot.slane %v3988_v12, %v5934_v53 }
 0x285   : > { %v4003_v34 = vcombine.low %v3995_v8, %v4002_v17 }
 0x287   : > { %4035 = vst [vmem:[%s5956_s7 + $0x78] sm:$0xff] %v4003_v34 }
 0x288 PF: > { %vm4044_vm2 = vcmask 1041408   ;;  %vm4175_vm3 = vcmask 1024  }
 0x289   : > { %v4045_v13 = vsel %vm4044_vm2, %v5920_v48, 0.0  ;;  %v4046_v39 = vsel %vm4044_vm2, %v5932_v52, 0.0  ;;  %v4048_v53 = vsel %vm4044_vm2, %v5937_v54, 0.0  ;;  %v4050_v60 = vsel %vm4044_vm2, %v5940_v58, 0.0 }
 0x28a   : > { %v4047_v17 = vadd.f32 %v4046_v39, %v4045_v13  ;;  %v4052_v50 = vsel %vm4044_vm2, %v5975_v35, 0.0  ;;  %v4054_v12 = vsel %vm4044_vm2, %v5984_v41, 0.0  ;;  %v4056_v34 = vsel %vm4044_vm2, %v5981_v40, 0.0 }
 0x28b   : > { %v4058_v14 = vsel %vm4044_vm2, %v5987_v46, 0.0  ;;  %v4060_v39 = vsel %vm4044_vm2, %v6001_v3, 0.0  ;;  %v4088_v18 = vsel %vm4044_vm2, %v6061_v4, 0.0 }
 0x28c   : > { %v4049_v59 = vadd.f32 %v4048_v53, %v4047_v17  ;;  %v4062_v17 = vsel %vm4044_vm2, %v6007_v7, 0.0 }
 0x28e   : > { %v4051_v55 = vadd.f32 %v4050_v60, %v4049_v59  ;;  %v4064_v59 = vsel %vm4044_vm2, %v6004_v6, 0.0 }
 0x290   : > { %v4053_v8 = vadd.f32 %v4052_v50, %v4051_v55  ;;  %v4066_v55 = vsel %vm4044_vm2, %v6010_v10, 0.0 }
 0x292   : > { %v4055_v37 = vadd.f32 %v4054_v12, %v4053_v8  ;;  %v4068_v8 = vsel %vm4044_vm2, %v6020_v19, 0.0 }
 0x294   : > { %v4057_v13 = vadd.f32 %v4056_v34, %v4055_v37  ;;  %v4070_v37 = vsel %vm4044_vm2, %v6026_v23, 0.0 }
 0x296   : > { %v4059_v53 = vadd.f32 %v4058_v14, %v4057_v13  ;;  %v4072_v13 = vsel %vm4044_vm2, %v6023_v22, 0.0 }
 0x298   : > { %v4061_v60 = vadd.f32 %v4060_v39, %v4059_v53  ;;  %v4074_v53 = vsel %vm4044_vm2, %v6029_v26, 0.0 }
 0x29a   : > { %v4063_v50 = vadd.f32 %v4062_v17, %v4061_v60  ;;  %v4076_v60 = vsel %vm4044_vm2, %v6039_v44, 0.0 }
 0x29c   : > { %v4065_v12 = vadd.f32 %v4064_v59, %v4063_v50  ;;  %v4078_v50 = vsel %vm4044_vm2, %v6045_v43, 0.0 }
 0x29e   : > { %v4067_v34 = vadd.f32 %v4066_v55, %v4065_v12  ;;  %v4178_v12 = vmul.f32 %v5920_v48, %v5920_v48  ;;  %v4084_v48 = vsel %vm4044_vm2, %v6058_v63, 0.0 }
 0x2a0   : > { %v4069_v14 = vadd.f32 %v4068_v8, %v4067_v34  ;;  %v4080_v8 = vsel %vm4044_vm2, %v6042_v42, 0.0  ;;  %v4179_v34 = vmul.f32 %v5932_v52, %v5932_v52 }
 0x2a2   : > { %v4071_v39 = vadd.f32 %v4070_v37, %v4069_v14  ;;  %v4180_v37 = vmul.f32 %v5937_v54, %v5937_v54  ;;  %v4243_v52 = vsel %vm4044_vm2, %v4179_v34, 0.0 }
 0x2a4   : > { %v4073_v17 = vadd.f32 %v4072_v13, %v4071_v39  ;;  %v4082_v13 = vsel %vm4044_vm2, %v6048_v49, 0.0  ;;  %v4181_v39 = vmul.f32 %v5940_v58, %v5940_v58  ;;  %v4245_v54 = vsel %vm4044_vm2, %v4180_v37, 0.0 }
 0x2a5   : > { %v4183_v58 = vmul.f32 %v5984_v41, %v5984_v41  ;;  %v4185_v41 = vmul.f32 %v5987_v46, %v5987_v46  ;;  %v4187_v46 = vmul.f32 %v6007_v7, %v6007_v7  ;;  %v4189_v7 = vmul.f32 %v6010_v10, %v6010_v10 }
 0x2a6   : > { %v4075_v59 = vadd.f32 %v4074_v53, %v4073_v17  ;;  %v4242_v17 = vsel %vm4044_vm2, %v4178_v12, 0.0  ;;  %v4247_v12 = vsel %vm4044_vm2, %v4181_v39, 0.0  ;;  %v4191_v10 = vmul.f32 %v6026_v23, %v6026_v23 }
 0x2a7   : > { %v4251_v39 = vsel %vm4044_vm2, %v4183_v58, 0.0  ;;  %v4193_v23 = vmul.f32 %v6029_v26, %v6029_v26  ;;  %v4195_v26 = vmul.f32 %v6045_v43, %v6045_v43  ;;  %v4197_v43 = vmul.f32 %v6048_v49, %v6048_v49 }
 0x2a8   : > { %v4077_v55 = vadd.f32 %v4076_v60, %v4075_v59  ;;  %v4182_v60 = vmul.f32 %v5975_v35, %v5975_v35  ;;  %v4184_v35 = vmul.f32 %v5981_v40, %v5981_v40  ;;  %v4186_v40 = vmul.f32 %v6001_v3, %v6001_v3 }
 0x2a9   : > { %v4188_v3 = vmul.f32 %v6004_v6, %v6004_v6  ;;  %v4190_v6 = vmul.f32 %v6020_v19, %v6020_v19  ;;  %v4192_v19 = vmul.f32 %v6023_v22, %v6023_v22  ;;  %v4194_v22 = vmul.f32 %v6039_v44, %v6039_v44 }
 0x2aa   : > { %v4079_v14 = vadd.f32 %v4078_v50, %v4077_v55  ;;  %v4244_v50 = vadd.f32 %v4243_v52, %v4242_v17  ;;  %v4086_v55 = vsel %vm4044_vm2, %v6064_v5, 0.0  ;;  %v4249_v34 = vsel %vm4044_vm2, %v4182_v60, 0.0 }
 0x2ab   : > { %v4092_v52 = vsel %vm4044_vm2, %v6077_v21, 0.0  ;;  %v4253_v60 = vsel %vm4044_vm2, %v4184_v35, 0.0  ;;  %v4196_v44 = vmul.f32 %v6042_v42, %v6042_v42  ;;  %v4198_v42 = vmul.f32 %v6058_v63, %v6058_v63 }
 0x2ac   : > { %v4081_v53 = vadd.f32 %v4080_v8, %v4079_v14  ;;  %v4246_v14 = vadd.f32 %v4245_v54, %v4244_v50  ;;  %v4094_v50 = vsel %vm4044_vm2, %v6083_v28, 0.0  ;;  %v4199_v49 = vmul.f32 %v6064_v5, %v6064_v5 }
 0x2ad   : > { %v4200_v63 = vmul.f32 %v6061_v4, %v6061_v4  ;;  %v4201_v5 = vmul.f32 %v6067_v11, %v6067_v11  ;;  %v4202_v4 = vmul.f32 %v6077_v21, %v6077_v21  ;;  %v4204_v21 = vmul.f32 %v6080_v27, %v6080_v27 }
 0x2ae   : > { %v4083_v59 = vadd.f32 %v4082_v13, %v4081_v53  ;;  %v4248_v13 = vadd.f32 %v4247_v12, %v4246_v14  ;;  %v4090_v53 = vsel %vm4044_vm2, %v6067_v11, 0.0  ;;  %v4096_v12 = vsel %vm4044_vm2, %v6080_v27, 0.0 }
 0x2af   : > { %v4203_v11 = vmul.f32 %v6083_v28, %v6083_v28  ;;  %v4205_v28 = vmul.f32 %v6086_v31, %v6086_v31  ;;  %v4206_v27 = vmul.f32 %v6096_v51, %v6096_v51 }
 0x2b0   : > { %v4085_v8 = vadd.f32 %v4084_v48, %v4083_v59  ;;  %v4250_v48 = vadd.f32 %v4249_v34, %v4248_v13  ;;  %v4098_v34 = vsel %vm4044_vm2, %v6086_v31, 0.0  ;;  %v4207_v31 = vmul.f32 %v6102_v57, %v6102_v57 }
 0x2b2   : > { %v4087_v37 = vadd.f32 %v4086_v55, %v4085_v8  ;;  %v4252_v59 = vadd.f32 %v4251_v39, %v4250_v48  ;;  %v4255_v55 = vsel %vm4044_vm2, %v4185_v41, 0.0  ;;  %v4257_v8 = vsel %vm4044_vm2, %v4186_v40, 0.0 }
 0x2b3   : > { %v4100_v41 = vsel %vm4044_vm2, %v6096_v51, 0.0  ;;  %v4261_v39 = vsel %vm4044_vm2, %v4188_v3, 0.0  ;;  %v4263_v40 = vsel %vm4044_vm2, %v4189_v7, 0.0  ;;  %v4110_v7 = vsel %vm4044_vm2, %v6121_v24, 0.0 }
 0x2b4   : > { %v4089_v17 = vadd.f32 %v4088_v18, %v4087_v37  ;;  %v4254_v58 = vadd.f32 %v4253_v60, %v4252_v59  ;;  %v4259_v37 = vsel %vm4044_vm2, %v4187_v46, 0.0  ;;  %v4104_v59 = vsel %vm4044_vm2, %v6099_v56, 0.0 }
 0x2b5   : > { %v4208_v51 = vmul.f32 %v6099_v56, %v6099_v56  ;;  %v4210_v56 = vmul.f32 %v6115_v16, %v6115_v16 }
 0x2b6   : > { %v4091_v54 = vadd.f32 %v4090_v53, %v4089_v17  ;;  %v4256_v35 = vadd.f32 %v4255_v55, %v4254_v58  ;;  %v4267_v58 = vsel %vm4044_vm2, %v4191_v10, 0.0 }
 0x2b8   : > { %v4093_v18 = vadd.f32 %v4092_v52, %v4091_v54  ;;  %v4258_v53 = vadd.f32 %v4257_v8, %v4256_v35  ;;  %v4102_v52 = vsel %vm4044_vm2, %v6102_v57, 0.0  ;;  %v4108_v8 = vsel %vm4044_vm2, %v6115_v16, 0.0 }
 0x2b9   : > { %v4209_v57 = vmul.f32 %v6105_v62, %v6105_v62  ;;  %v4212_v16 = vmul.f32 %v6118_v20, %v6118_v20 }
 0x2ba   : > { %v4095_v14 = vadd.f32 %v4094_v50, %v4093_v18  ;;  %v4260_v48 = vadd.f32 %v4259_v37, %v4258_v53  ;;  %v4265_v50 = vsel %vm4044_vm2, %v4190_v6, 0.0  ;;  %v4106_v18 = vsel %vm4044_vm2, %v6105_v62, 0.0 }
 0x2bb   : > { %v4271_v37 = vsel %vm4044_vm2, %v4193_v23, 0.0  ;;  %v4273_v6 = vsel %vm4044_vm2, %v4194_v22, 0.0  ;;  %v4120_v23 = vsel %vm4044_vm2, %v6137_v61, 0.0  ;;  %v4283_v22 = vsel %vm4044_vm2, %v4199_v49, 0.0 }
 0x2bc   : > { %v4097_v13 = vadd.f32 %v4096_v12, %v4095_v14  ;;  %v4262_v54 = vadd.f32 %v4261_v39, %v4260_v48  ;;  %v4269_v14 = vsel %vm4044_vm2, %v4192_v19, 0.0  ;;  %v4114_v48 = vsel %vm4044_vm2, %v6124_v30, 0.0 }
 0x2bd   : > { %v4211_v62 = vmul.f32 %v6121_v24, %v6121_v24  ;;  %v4213_v24 = vmul.f32 %v6124_v30, %v6124_v30  ;;  %v4215_v30 = vmul.f32 %v6140_v1, %v6140_v1 }
 0x2be   : > { %v4099_v17 = vadd.f32 %v4098_v34, %v4097_v13  ;;  %v4264_v55 = vadd.f32 %v4263_v40, %v4262_v54  ;;  %v4277_v54 = vsel %vm4044_vm2, %v4196_v44, 0.0 }
 0x2c0   : > { %v4101_v60 = vadd.f32 %v4100_v41, %v4099_v17  ;;  %v4266_v3 = vadd.f32 %v4265_v50, %v4264_v55  ;;  %v4112_v41 = vsel %vm4044_vm2, %v6118_v20, 0.0  ;;  %v4118_v50 = vsel %vm4044_vm2, %v6140_v1, 0.0 }
 0x2c1   : > { %v4214_v20 = vmul.f32 %v6134_v0, %v6134_v0  ;;  %v4217_v1 = vmul.f32 %v6143_v9, %v6143_v9 }
 0x2c2   : > { %v4103_v46 = vadd.f32 %v4102_v52, %v4101_v60  ;;  %v4268_v34 = vadd.f32 %v4267_v58, %v4266_v3  ;;  %v4275_v52 = vsel %vm4044_vm2, %v4195_v26, 0.0  ;;  %v4116_v60 = vsel %vm4044_vm2, %v6134_v0, 0.0 }
 0x2c3   : > { %v4281_v58 = vsel %vm4044_vm2, %v4198_v42, 0.0  ;;  %v4293_v42 = vsel %vm4044_vm2, %v4204_v21, 0.0  ;;  %v4216_v0 = vmul.f32 %v6137_v61, %v6137_v61  ;;  %v4218_v61 = vmul.f32 %v6153_v32, %v6153_v32 }
 0x2c4   : > { %v4105_v12 = vadd.f32 %v4104_v59, %v4103_v46  ;;  %v4270_v53 = vadd.f32 %v4269_v14, %v4268_v34  ;;  %v4279_v46 = vsel %vm4044_vm2, %v4197_v43, 0.0  ;;  %v4124_v34 = vsel %vm4044_vm2, %v6153_v32, 0.0 }
 0x2c5   : > { %v4130_v43 = vsel %vm4044_vm2, %v6162_v47, 0.0  ;;  %v4220_v32 = vmul.f32 %v6156_v36, %v6156_v36 }
 0x2c6   : > { %v4107_v35 = vadd.f32 %v4106_v18, %v4105_v12  ;;  %v4272_v17 = vadd.f32 %v4271_v37, %v4270_v53  ;;  %v4287_v53 = vsel %vm4044_vm2, %v4201_v5, 0.0 }
 0x2c8   : > { %v4109_v13 = vadd.f32 %v4108_v8, %v4107_v35  ;;  %v4274_v40 = vadd.f32 %v4273_v6, %v4272_v17  ;;  %v4122_v8 = vsel %vm4044_vm2, %v6143_v9, 0.0  ;;  %v4128_v6 = vsel %vm4044_vm2, %v6156_v36, 0.0 }
 0x2c9   : > { %v4219_v9 = vmul.f32 %v6159_v38, %v6159_v38  ;;  %v4222_v36 = vmul.f32 %v6172_v15, %v6172_v15 }
 0x2ca   : > { %v4111_v39 = vadd.f32 %v4110_v7, %v4109_v13  ;;  %v4276_v19 = vadd.f32 %v4275_v52, %v4274_v40  ;;  %v4285_v7 = vsel %vm4044_vm2, %v4200_v63, 0.0  ;;  %v4126_v13 = vsel %vm4044_vm2, %v6159_v38, 0.0 }
 0x2cb   : > { %v4291_v52 = vsel %vm4044_vm2, %v4203_v11, 0.0  ;;  %v4221_v38 = vmul.f32 %v6162_v47, %v6162_v47  ;;  %v4223_v47 = vmul.f32 %v6178_v29, %v6178_v29 }
 0x2cc   : > { %v4113_v10 = vadd.f32 %v4112_v41, %v4111_v39  ;;  %v4278_v18 = vadd.f32 %v4277_v54, %v4276_v19  ;;  %v4289_v39 = vsel %vm4044_vm2, %v4202_v4, 0.0  ;;  %v4134_v19 = vsel %vm4044_vm2, %v6178_v29, 0.0 }
 0x2ce   : > { %v4115_v59 = vadd.f32 %v4114_v48, %v4113_v10  ;;  %v4280_v3 = vadd.f32 %v4279_v46, %v4278_v18  ;;  %v4297_v18 = vsel %vm4044_vm2, %v4206_v27, 0.0 }
 0x2d0   : > { %v4117_v55 = vadd.f32 %v4116_v60, %v4115_v59  ;;  %v4282_v35 = vadd.f32 %v4281_v58, %v4280_v3  ;;  %v4132_v60 = vsel %vm4044_vm2, %v6172_v15, 0.0  ;;  %v6663_v58 = vld [vmem:[#allocation3_spill] sm:$0xff]  ;;  %v4299_v3 = vsel %vm4044_vm2, %v4207_v31, 0.0 }
 0x2d1   : > { %v4224_v15 = vmul.f32 %v6175_v25, %v6175_v25  ;;  %v4225_v29 = vmul.f32 %v6663_v58, %v6663_v58 }
 0x2d2   : > { %v4119_v12 = vadd.f32 %v4118_v50, %v4117_v55  ;;  %v4284_v37 = vadd.f32 %v4283_v22, %v4282_v35  ;;  %v4295_v50 = vsel %vm4044_vm2, %v4205_v28, 0.0  ;;  %v4136_v55 = vsel %vm4044_vm2, %v6175_v25, 0.0  ;;  %v6664_v22 = vld [vmem:[#allocation4_spill] sm:$0xff] }
 0x2d3   : > { %v4301_v35 = vsel %vm4044_vm2, %v4208_v51, 0.0 }
 0x2d4   : > { %v4121_v14 = vadd.f32 %v4120_v23, %v4119_v12  ;;  %v4286_v44 = vadd.f32 %v4285_v7, %v4284_v37  ;;  %v4138_v12 = vsel %vm4044_vm2, %v6663_v58, 0.0  ;;  %v6665_v7 = vld [vmem:[#allocation6_spill] sm:$0xff]  ;;  %v4303_v37 = vsel %vm4044_vm2, %v4209_v57, 0.0 }
 0x2d6   : > { %v4123_v26 = vadd.f32 %v4122_v8, %v4121_v14  ;;  %v4288_v48 = vadd.f32 %v4287_v53, %v4286_v44  ;;  %v4140_v14 = vsel %vm4044_vm2, %v6664_v22, 0.0  ;;  %v6666_v53 = vld [vmem:[#allocation5_spill] sm:$0xff]  ;;  %v4305_v44 = vsel %vm4044_vm2, %v4210_v56, 0.0 }
 0x2d7   : > { %v6672_v56 = vld [vmem:[#allocation13_spill] sm:$0xff]  ;;  %v4228_v58 = vmul.f32 %v6666_v53, %v6666_v53 }
 0x2d8   : > { %v4125_v41 = vadd.f32 %v4124_v34, %v4123_v26  ;;  %v4290_v40 = vadd.f32 %v4289_v39, %v4288_v48  ;;  %v4142_v26 = vsel %vm4044_vm2, %v6665_v7, 0.0  ;;  %v6667_v39 = vld [vmem:[#allocation7_spill] sm:$0xff]  ;;  %v4307_v48 = vsel %vm4044_vm2, %v4211_v62, 0.0  ;;  %v6673_v62 = vld [vmem:[#allocation12_spill] sm:$0xff] }
 0x2da   : > { %v4127_v17 = vadd.f32 %v4126_v13, %v4125_v41  ;;  %v4292_v59 = vadd.f32 %v4291_v52, %v4290_v40  ;;  %v4144_v41 = vsel %vm4044_vm2, %v6666_v53, 0.0  ;;  %v6668_v52 = vld [vmem:[#allocation8_spill] sm:$0xff]  ;;  %v4309_v40 = vsel %vm4044_vm2, %v4212_v16, 0.0  ;;  %v6674_v16 = vld [vmem:[#allocation14_spill] sm:$0xff] }
 0x2dc   : > { %v4129_v10 = vadd.f32 %v4128_v6, %v4127_v17  ;;  %v4294_v46 = vadd.f32 %v4293_v42, %v4292_v59  ;;  %v4146_v17 = vsel %vm4044_vm2, %v6667_v39, 0.0  ;;  %v6669_v42 = vld [vmem:[#allocation10_spill] sm:$0xff]  ;;  %v4311_v59 = vsel %vm4044_vm2, %v4213_v24, 0.0 }
 0x2dd   : > { %v4164_v24 = vsel %vm4044_vm2, %v6248_v2, 0.0 }
 0x2de   : > { %v4131_v54 = vadd.f32 %v4130_v43, %v4129_v10  ;;  %v4296_v63 = vadd.f32 %v4295_v50, %v4294_v46  ;;  %v4148_v10 = vsel %vm4044_vm2, %v6668_v52, 0.0  ;;  %v6670_v50 = vld [vmem:[#allocation9_spill] sm:$0xff]  ;;  %v4313_v46 = vsel %vm4044_vm2, %v4214_v20, 0.0 }
 0x2df   : > { %v4327_v20 = vsel %vm4044_vm2, %v4221_v38, 0.0  ;;  %v4236_v38 = vmul.f32 %v6673_v62, %v6673_v62 }
 0x2e0   : > { %v4133_v49 = vadd.f32 %v4132_v60, %v4131_v54  ;;  %v4298_v5 = vadd.f32 %v4297_v18, %v4296_v63  ;;  %v4150_v54 = vsel %vm4044_vm2, %v6669_v42, 0.0  ;;  %v6671_v18 = vld [vmem:[#allocation11_spill] sm:$0xff]  ;;  %v4315_v63 = vsel %vm4044_vm2, %v4215_v30, 0.0 }
 0x2e1   : > { %v4329_v30 = vsel %vm4044_vm2, %v4222_v36, 0.0 }
 0x2e2   : > { %v4135_v23 = vadd.f32 %v4134_v19, %v4133_v49  ;;  %v4300_v4 = vadd.f32 %v4299_v3, %v4298_v5  ;;  %v4152_v49 = vsel %vm4044_vm2, %v6670_v50, 0.0  ;;  %v4156_v3 = vsel %vm4044_vm2, %v6229_v33, 0.0 }
 0x2e4   : > { %v4137_v8 = vadd.f32 %v4136_v55, %v4135_v23  ;;  %v4302_v11 = vadd.f32 %v4301_v35, %v4300_v4  ;;  %v4154_v23 = vsel %vm4044_vm2, %v6671_v18, 0.0  ;;  %v4158_v35 = vsel %vm4044_vm2, %v6672_v56, 0.0 }
 0x2e6   : > { %v4139_v34 = vadd.f32 %v4138_v12, %v4137_v8  ;;  %v4304_v21 = vadd.f32 %v4303_v37, %v4302_v11  ;;  %v4317_v8 = vsel %vm4044_vm2, %v4216_v0, 0.0  ;;  %v4160_v37 = vsel %vm4044_vm2, %v6673_v62, 0.0 }
 0x2e7   : > { %v4331_v0 = vsel %vm4044_vm2, %v4223_v47, 0.0 }
 0x2e8   : > { %v4141_v13 = vadd.f32 %v4140_v14, %v4139_v34  ;;  %v4306_v28 = vadd.f32 %v4305_v44, %v4304_v21  ;;  %v4319_v34 = vsel %vm4044_vm2, %v4217_v1, 0.0  ;;  %v4162_v44 = vsel %vm4044_vm2, %v6674_v16, 0.0 }
 0x2ea   : > { %v4143_v6 = vadd.f32 %v4142_v26, %v4141_v13  ;;  %v4308_v27 = vadd.f32 %v4307_v48, %v4306_v28  ;;  %v4321_v13 = vsel %vm4044_vm2, %v4218_v61, 0.0  ;;  %v4325_v48 = vsel %vm4044_vm2, %v4220_v32, 0.0 }
 0x2ec   : > { %v4145_v43 = vadd.f32 %v4144_v41, %v4143_v6  ;;  %v4310_v31 = vadd.f32 %v4309_v40, %v4308_v27  ;;  %v4323_v6 = vsel %vm4044_vm2, %v4219_v9, 0.0  ;;  %v6675_v27 = vld [vmem:[#allocation15_spill] sm:$0xff]  ;;  %v4231_v9 = vmul.f32 %v6669_v42, %v6669_v42 }
 0x2ee   : > { %v4147_v60 = vadd.f32 %v4146_v17, %v4145_v43  ;;  %v4312_v51 = vadd.f32 %v4311_v59, %v4310_v31  ;;  %v6676_v31 = vld [vmem:[#allocation16_spill] sm:$0xff] }
 0x2f0   : > { %v4149_v19 = vadd.f32 %v4148_v10, %v4147_v60  ;;  %v4314_v57 = vadd.f32 %v4313_v46, %v4312_v51  ;;  %v4166_v10 = vsel %vm4044_vm2, %v6254_v45, 0.0  ;;  %v4226_v51 = vmul.f32 %v6664_v22, %v6664_v22 }
 0x2f1   : > { %v4229_v22 = vmul.f32 %v6667_v39, %v6667_v39 }
 0x2f2   : > { %v4151_v55 = vadd.f32 %v4150_v54, %v4149_v19  ;;  %v4316_v14 = vadd.f32 %v4315_v63, %v4314_v57  ;;  %v4168_v54 = vsel %vm4044_vm2, %v6675_v27, 0.0  ;;  %v4227_v63 = vmul.f32 %v6665_v7, %v6665_v7 }
 0x2f3   : > { %v4341_v7 = vsel %vm4044_vm2, %v4228_v58, 0.0  ;;  %v4343_v53 = vsel %vm4044_vm2, %v4229_v22, 0.0 }
 0x2f4   : > { %v4153_v12 = vadd.f32 %v4152_v49, %v4151_v55  ;;  %v4318_v26 = vadd.f32 %v4317_v8, %v4316_v14  ;;  %v4170_v49 = vsel %vm4044_vm2, %v6676_v31, 0.0  ;;  %v4339_v8 = vsel %vm4044_vm2, %v4227_v63, 0.0 }
 0x2f5   : > { %v4230_v14 = vmul.f32 %v6668_v52, %v6668_v52  ;;  %v4347_v52 = vsel %vm4044_vm2, %v4231_v9, 0.0 }
 0x2f6   : > { %v4155_v5 = vadd.f32 %v4154_v23, %v4153_v12  ;;  %v4320_v41 = vadd.f32 %v4319_v34, %v4318_v26  ;;  %v4333_v23 = vsel %vm4044_vm2, %v4224_v15, 0.0  ;;  %v4335_v12 = vsel %vm4044_vm2, %v4225_v29, 0.0 }
 0x2f7   : > { %v4345_v39 = vsel %vm4044_vm2, %v4230_v14, 0.0 }
 0x2f8   : > { %v4157_v4 = vadd.f32 %v4156_v3, %v4155_v5  ;;  %v4322_v17 = vadd.f32 %v4321_v13, %v4320_v41  ;;  %v4337_v3 = vsel %vm4044_vm2, %v4226_v51, 0.0  ;;  %v4234_v13 = vmul.f32 %v6229_v33, %v6229_v33 }
 0x2f9   : > { %v4235_v41 = vmul.f32 %v6672_v56, %v6672_v56  ;;  %v4357_v56 = vsel %vm4044_vm2, %v4236_v38, 0.0 }
 0x2fa   : > { %v4159_v11 = vadd.f32 %v4158_v35, %v4157_v4  ;;  %v4324_v28 = vadd.f32 %v4323_v6, %v4322_v17  ;;  %v4232_v4 = vmul.f32 %v6670_v50, %v6670_v50 }
 0x2fb   : > { %v4355_v33 = vsel %vm4044_vm2, %v4235_v41, 0.0 }
 0x2fc   : > { %v4161_v21 = vadd.f32 %v4160_v37, %v4159_v11  ;;  %v4326_v60 = vadd.f32 %v4325_v48, %v4324_v28  ;;  %v4233_v37 = vmul.f32 %v6671_v18, %v6671_v18  ;;  %v4349_v42 = vsel %vm4044_vm2, %v4232_v4, 0.0 }
 0x2fd   : > { %v4353_v18 = vsel %vm4044_vm2, %v4234_v13, 0.0  ;;  %v4239_v48 = vmul.f32 %v6254_v45, %v6254_v45  ;;  %v4240_v28 = vmul.f32 %v6675_v27, %v6675_v27  ;;  %v4043_v27 = vld [vmem:[%s5577_s9] sm:$0x3] }
 0x2fe   : > { %v4163_v43 = vadd.f32 %v4162_v44, %v4161_v21  ;;  %v4328_v19 = vadd.f32 %v4327_v20, %v4326_v60  ;;  %v4351_v50 = vsel %vm4044_vm2, %v4233_v37, 0.0  ;;  %v4237_v21 = vmul.f32 %v6674_v16, %v6674_v16 }
 0x2ff   : > { %v4363_v47 = vsel %vm4044_vm2, %v4239_v48, 0.0  ;;  %v4365_v45 = vsel %vm4044_vm2, %v4240_v28, 0.0 }
 0x300   : > { %v4165_v40 = vadd.f32 %v4164_v24, %v4163_v43  ;;  %v4330_v55 = vadd.f32 %v4329_v30, %v4328_v19  ;;  %v4238_v24 = vmul.f32 %v6248_v2, %v6248_v2  ;;  %v4359_v62 = vsel %vm4044_vm2, %v4237_v21, 0.0  ;;  %v4177_v19 = vld [vmem:[%s5582_s12] sm:$0x3] }
 0x301   : > { %v4241_v2 = vmul.f32 %v6676_v31, %v6676_v31 }
 0x302   : > { %v4167_v59 = vadd.f32 %v4166_v10, %v4165_v40  ;;  %v4332_v1 = vadd.f32 %v4331_v0, %v4330_v55  ;;  %v4361_v16 = vsel %vm4044_vm2, %v4238_v24, 0.0 }
 0x303   : > { %v4367_v60 = vsel %vm4044_vm2, %v4241_v2, 0.0 }
 0x304   : > { %v4169_v46 = vadd.f32 %v4168_v54, %v4167_v59  ;;  %v4334_v57 = vadd.f32 %v4333_v23, %v4332_v1 }
 0x306   : > { %v4171_v25 = vadd.f32 %v4170_v49, %v4169_v46  ;;  %v4336_v61 = vadd.f32 %v4335_v12, %v4334_v57 }
 0x308   : > { %4172 = vadd.xlane.f32.xlu0 %v4171_v25  ;;  %v4338_v5 = vadd.f32 %v4337_v3, %v4336_v61 }
 0x30a   : > { %v4340_v35 = vadd.f32 %v4339_v8, %v4338_v5 }
 0x30c   : > { %v4342_v34 = vadd.f32 %v4341_v7, %v4340_v35 }
 0x30e   : > { %v4344_v26 = vadd.f32 %v4343_v53, %v4342_v34 }
 0x310   : > { %v4346_v32 = vadd.f32 %v4345_v39, %v4344_v26 }
 0x312   : > { %v4348_v11 = vadd.f32 %v4347_v52, %v4346_v32 }
 0x314   : > { %v4350_v44 = vadd.f32 %v4349_v42, %v4348_v11 }
 0x316   : > { %v4352_v6 = vadd.f32 %v4351_v50, %v4350_v44 }
 0x318   : > { %v4354_v17 = vadd.f32 %v4353_v18, %v4352_v6 }
 0x31a   : > { %v4356_v36 = vadd.f32 %v4355_v33, %v4354_v17 }
 0x31c   : > { %v4358_v43 = vadd.f32 %v4357_v56, %v4356_v36 }
 0x31e   : > { %v4360_v10 = vadd.f32 %v4359_v62, %v4358_v43 }
 0x320   : > { %v4362_v20 = vadd.f32 %v4361_v16, %v4360_v10 }
 0x322   : > { %v4364_v40 = vadd.f32 %v4363_v47, %v4362_v20 }
 0x324   : > { %v4366_v54 = vadd.f32 %v4365_v45, %v4364_v40 }
 0x326   : > { %v4368_v15 = vadd.f32 %v4367_v60, %v4366_v54 }
 0x328   : > { %4369 = vadd.xlane.f32.xlu0 %v4368_v15 }
 0x395   : > { %v4173_v30 = vpop.xlane.xlu0 %4172 }
 0x396   : > { %v4174_v59 = vadd.f32 %v4173_v30, %v4043_v27 }
 0x398   : > { %4176 = vst.msk [vmem:[%s5577_s9] sm:$0x3] %vm4175_vm3, %v4174_v59 }
 0x3b5   : > { %v4370_v49 = vpop.xlane.xlu0 %4369 }
 0x3b6   : > { %v4371_v31 = vadd.f32 %v4370_v49, %v4177_v19 }
 0x3b8   : > { %4372 = vst.msk [vmem:[%s5582_s12] sm:$0x3] %vm4175_vm3, %v4371_v31 }
 0x3b9 PF: > { %s16_s24 = sadd.s32 1, %s4943_s24   ;;  %s6677_s18 = smov %s4923_s19 }
 0x3ba   : > { %p13_p13 = scmp.ge.s32.totalorder %s16_s24, 10   ;;  %s6678_s19 = smov %s5029_s8 }
 0x3bb   : > { %s6679_s20 = smov %s4935_s22  ;;  %s6680_s21 = smov %s4939_s23 }
 0x3bc   : > { %s6681_s22 = smov %s6684_s25  ;;  %s6682_s23 = smov %s6688_s26 }
 0x3bd   :  { %15 = sbr.rel (!%p13_p13) target bundleno = 4 (0x4), region = 118 }

// kernel: voxel_encoder64.11
= control target key start
LH: loop header
LB: loop body
LE: loop exit
PB: predicated region body
PF: predicated region fallthrough
CT: control target
= control target key end

     0   :  { %s686_s12 = smov 0   ;;  %s764_s0 = inlined_call_operand.vmem [shape: f32[4,8192], index: 0, kind: input, shape index: {}]   ;;  %s765_s1 = inlined_call_operand.vmem [shape: f32[4,1], index: 1, kind: input, shape index: {}]   ;;  %s766_s2 = inlined_call_operand.vmem [shape: f32[4,1], index: 2, kind: input, shape index: {}]   ;;  %s767_s3 = inlined_call_operand.vmem [shape: bf16[4,8192], index: 3, kind: output, shape index: {}]  }
   0x1 LB: > { %s616_s13 = sadd.s32 4294967295, %s661_s12   ;;  %p620_p0 = scmp.ge.s32.totalorder %s661_s12, 1  ;;  %s661_s12 = sphi %s686_s12, %s13_s12  }
   0x2   : > { %p138_p1 = scmp.lt.s32.totalorder %s661_s12, 3 }
   0x4   : > { %p139_p2 = pnand %p620_p0, %p138_p1 }
   0x5   : > { %v190_v0 = vld [vmem:[%s765_s1] sm:$0xf] (!%p139_p2)  ;;  %v663_v1 = vmov (!%p139_p2), 0   ;;  %s621_s18 = sshll.u32 (!%p139_p2), %s616_s13, 5  ;;  %v664_v3 = vmov (!%p139_p2), 839922192   ;;  %v198_v5 = vlaneseq (!%p139_p2) }
   0x6   : > { %142 = sbr.rel (%p139_p2) target bundleno = 177 (0xb1), region = 32  ;;  %654 = vset.pattern.permute.xlu0 (!%p139_p2), %v663_v1  ;;  %v219_v2 = vld [vmem:[%s766_s2] sm:$0xf] (!%p139_p2)  ;;  %p163_p3 = scmp.lt.s32.totalorder (!%p139_p2), %s621_s18, 63  ;;  %v196_v4 = vunpack.c.l.s4 (!%p139_p2), %v664_v3  ;;  %v665_v9 = vmov (!%p139_p2), 1983009808  }
   0x7   : > { %193 = vperm.xlu0 (!%p139_p2), %654, %v190_v0   ;;  %v702_v7 = vshrl.u32 (!%p139_p2), %v198_v5, 7  ;;  %v709_v10 = vunpack.c.l.s4 (!%p139_p2), %v665_v9 }
   0x8   : > { %v197_v6 = vunpack.c.0.s8 (!%p139_p2), %v196_v4 }
   0x9   : > { %v412_v23 = vunpack.c.0.s8 (!%p139_p2), %v709_v10 }
   0xa   : > { %v200_v8 = vsub.s32 (!%p139_p2), %v197_v6, %v702_v7 }
   0xb   : > { %222 = vperm.xlu0 (!%p139_p2), %654, %v219_v2   ;;  %v713_v3 = vsub.s32 (!%p139_p2), %v412_v23, %v702_v7 }
   0xd   : > { %s769_s18 = smov (!%p163_p3, %s621_s18), 63 }
   0xe   : > { %s622_s19 = sshll.u32 %s769_s18, 2  ;;  %s624_s23 = sshll.u32 %s769_s18, 1 }
   0xf   : > { %s166_s22 = scalar_lea.vmem %s764_s0, %s622_s19  ;;  %s737_s26 = scalar_lea.vmem %s767_s3, %s624_s23 }
  0x10   : > { %v174_v12 = vld [vmem:[%s166_s22] sm:$0xff]  ;;  %v175_v13 = vld [vmem:[%s166_s22 + $0x8] sm:$0xff]  ;;  %v176_v14 = vld [vmem:[%s166_s22 + $0x10] sm:$0xff] }
  0x11   : > { %v177_v15 = vld [vmem:[%s166_s22 + $0x18] sm:$0xff]  ;;  %v178_v17 = vld [vmem:[%s166_s22 + $0x20] sm:$0xff]  ;;  %v179_v18 = vld [vmem:[%s166_s22 + $0x28] sm:$0xff] }
  0x12   : > { %v180_v19 = vld [vmem:[%s166_s22 + $0x30] sm:$0xff]  ;;  %v181_v20 = vld [vmem:[%s166_s22 + $0x38] sm:$0xff]  ;;  %v182_v21 = vld [vmem:[%s166_s22 + $0x40] sm:$0xff] }
  0x13   : > { %v183_v22 = vld [vmem:[%s166_s22 + $0x48] sm:$0xff]  ;;  %v184_v24 = vld [vmem:[%s166_s22 + $0x50] sm:$0xff]  ;;  %v185_v25 = vld [vmem:[%s166_s22 + $0x58] sm:$0xff] }
  0x14   : > { %v186_v26 = vld [vmem:[%s166_s22 + $0x60] sm:$0xff]  ;;  %v187_v29 = vld [vmem:[%s166_s22 + $0x68] sm:$0xff]  ;;  %v188_v30 = vld [vmem:[%s166_s22 + $0x70] sm:$0xff] }
  0x15   : > { %v189_v31 = vld [vmem:[%s166_s22 + $0x78] sm:$0xff] }
  0x86   : > { %v194_v11 = vpop.permute.xlu0 %193 }
  0x87   : > { %v201_v16 = vrot.slane %v194_v11, %v200_v8 }
  0x89   : > { %v203_v27 = vmul.f32 %v201_v16, %v174_v12  ;;  %v204_v32 = vmul.f32 %v201_v16, %v175_v13  ;;  %v205_v33 = vmul.f32 %v201_v16, %v176_v14  ;;  %v206_v34 = vmul.f32 %v201_v16, %v177_v15 }
  0x8a   : > { %v223_v28 = vpop.permute.xlu0 %222  ;;  %v207_v35 = vmul.f32 %v201_v16, %v178_v17  ;;  %v208_v36 = vmul.f32 %v201_v16, %v179_v18  ;;  %v209_v37 = vmul.f32 %v201_v16, %v180_v19  ;;  %v210_v38 = vmul.f32 %v201_v16, %v181_v20 }
  0x8b   : > { %v211_v39 = vmul.f32 %v201_v16, %v182_v21  ;;  %v212_v40 = vmul.f32 %v201_v16, %v183_v22  ;;  %v213_v41 = vmul.f32 %v201_v16, %v184_v24  ;;  %v214_v42 = vmul.f32 %v201_v16, %v185_v25 }
  0x8c   : > { %v230_v43 = vrot.slane %v223_v28, %v200_v8  ;;  %v215_v44 = vmul.f32 %v201_v16, %v186_v26  ;;  %v216_v45 = vmul.f32 %v201_v16, %v187_v29  ;;  %v217_v46 = vmul.f32 %v201_v16, %v188_v30 }
  0x8d   : > { %v218_v47 = vmul.f32 %v201_v16, %v189_v31 }
  0x8e   : > { %v232_v48 = vadd.f32 %v230_v43, %v203_v27  ;;  %v233_v49 = vadd.f32 %v230_v43, %v204_v32  ;;  %v234_v50 = vadd.f32 %v230_v43, %v205_v33  ;;  %v235_v51 = vadd.f32 %v230_v43, %v206_v34 }
  0x8f   : > { %v236_v52 = vadd.f32 %v230_v43, %v207_v35  ;;  %v237_v53 = vadd.f32 %v230_v43, %v208_v36  ;;  %v238_v54 = vadd.f32 %v230_v43, %v209_v37  ;;  %v239_v55 = vadd.f32 %v230_v43, %v210_v38 }
  0x90   : > { %v240_v56 = vadd.f32 %v230_v43, %v211_v39  ;;  %v241_v57 = vadd.f32 %v230_v43, %v212_v40  ;;  %v242_v58 = vadd.f32 %v230_v43, %v213_v41  ;;  %v243_v59 = vadd.f32 %v230_v43, %v214_v42 }
  0x91   : > { %v244_v60 = vadd.f32 %v230_v43, %v215_v44  ;;  %v245_v61 = vadd.f32 %v230_v43, %v216_v45  ;;  %v246_v62 = vadd.f32 %v230_v43, %v217_v46  ;;  %v247_v63 = vadd.f32 %v230_v43, %v218_v47 }
  0x92   : > { %vm248_vm0 = vcmp.ge.f32.partialorder %v232_v48, 0.0  ;;  %vm249_vm1 = vcmp.ge.f32.partialorder %v233_v49, 0.0  ;;  %vm250_vm2 = vcmp.ge.f32.partialorder %v234_v50, 0.0  ;;  %vm251_vm3 = vcmp.ge.f32.partialorder %v235_v51, 0.0 }
  0x93   : > { %vm252_vm4 = vcmp.ge.f32.partialorder %v236_v52, 0.0  ;;  %vm253_vm5 = vcmp.ge.f32.partialorder %v237_v53, 0.0  ;;  %vm254_vm6 = vcmp.ge.f32.partialorder %v238_v54, 0.0  ;;  %vm255_vm7 = vcmp.ge.f32.partialorder %v239_v55, 0.0 }
  0x94   : > { %vm256_vm8 = vcmp.ge.f32.partialorder %v240_v56, 0.0  ;;  %vm257_vm9 = vcmp.ge.f32.partialorder %v241_v57, 0.0  ;;  %vm258_vm10 = vcmp.ge.f32.partialorder %v242_v58, 0.0  ;;  %vm259_vm11 = vcmp.ge.f32.partialorder %v243_v59, 0.0 }
  0x95   : > { %vm260_vm12 = vcmp.ge.f32.partialorder %v244_v60, 0.0  ;;  %vm261_vm13 = vcmp.ge.f32.partialorder %v245_v61, 0.0  ;;  %vm262_vm14 = vcmp.ge.f32.partialorder %v246_v62, 0.0  ;;  %vm263_vm15 = vcmp.ge.f32.partialorder %v247_v63, 0.0 }
  0x96   : > { %v264_v0 = vmul.f32 0.2, %v232_v48  ;;  %v265_v1 = vmul.f32 0.2, %v233_v49  ;;  %v266_v2 = vmul.f32 0.2, %v234_v50 }
  0x97   : > { %v267_v4 = vmul.f32 0.2, %v235_v51  ;;  %v268_v5 = vmul.f32 0.2, %v236_v52  ;;  %v269_v6 = vmul.f32 0.2, %v237_v53 }
  0x98   : > { %v270_v8 = vmul.f32 0.2, %v238_v54  ;;  %v271_v9 = vmul.f32 0.2, %v239_v55  ;;  %v272_v10 = vmul.f32 0.2, %v240_v56  ;;  %v280_v11 = vsel %vm248_vm0, %v232_v48, %v264_v0 }
  0x99   : > { %v273_v12 = vmul.f32 0.2, %v241_v57  ;;  %v274_v13 = vmul.f32 0.2, %v242_v58  ;;  %v275_v14 = vmul.f32 0.2, %v243_v59  ;;  %v281_v15 = vsel %vm249_vm1, %v233_v49, %v265_v1 }
  0x9a   : > { %v276_v16 = vmul.f32 0.2, %v244_v60  ;;  %v277_v17 = vmul.f32 0.2, %v245_v61  ;;  %v278_v18 = vmul.f32 0.2, %v246_v62  ;;  %v282_v19 = vsel %vm250_vm2, %v234_v50, %v266_v2 }
  0x9b   : > { %v279_v7 = vmul.f32 0.2, %v247_v63  ;;  %v283_v20 = vsel %vm251_vm3, %v235_v51, %v267_v4  ;;  %v284_v21 = vsel %vm252_vm4, %v236_v52, %v268_v5  ;;  %v285_v22 = vsel %vm253_vm5, %v237_v53, %v269_v6 }
  0x9c   : > { %v286_v23 = vsel %vm254_vm6, %v238_v54, %v270_v8  ;;  %v287_v24 = vsel %vm255_vm7, %v239_v55, %v271_v9  ;;  %v288_v25 = vsel %vm256_vm8, %v240_v56, %v272_v10  ;;  %v289_v26 = vsel %vm257_vm9, %v241_v57, %v273_v12 }
  0x9d   : > { %v290_v27 = vsel %vm258_vm10, %v242_v58, %v274_v13  ;;  %v291_v28 = vsel %vm259_vm11, %v243_v59, %v275_v14  ;;  %v292_v29 = vsel %vm260_vm12, %v244_v60, %v276_v16  ;;  %v293_v30 = vsel %vm261_vm13, %v245_v61, %v277_v17 }
  0x9e   : > { %v294_v31 = vsel %vm262_vm14, %v246_v62, %v278_v18  ;;  %v295_v32 = vsel %vm263_vm15, %v247_v63, %v279_v7  ;;  %v312_v33 = vcombine.high %v280_v11, %v280_v11  ;;  %v313_v34 = vcombine.high %v281_v15, %v281_v15 }
  0x9f   : > { %v314_v35 = vcombine.high %v282_v19, %v282_v19  ;;  %v315_v36 = vcombine.high %v283_v20, %v283_v20  ;;  %v316_v37 = vcombine.high %v284_v21, %v284_v21  ;;  %v317_v38 = vcombine.high %v285_v22, %v285_v22 }
  0xa0   : > { %v318_v39 = vcombine.high %v286_v23, %v286_v23  ;;  %v319_v40 = vcombine.high %v287_v24, %v287_v24  ;;  %v320_v41 = vcombine.high %v288_v25, %v288_v25  ;;  %v321_v42 = vcombine.high %v289_v26, %v289_v26 }
  0xa1   : > { %v322_v43 = vcombine.high %v290_v27, %v290_v27  ;;  %v323_v44 = vcombine.high %v291_v28, %v291_v28  ;;  %v324_v45 = vcombine.high %v292_v29, %v292_v29  ;;  %v325_v46 = vcombine.high %v293_v30, %v293_v30 }
  0xa2   : > { %v326_v47 = vcombine.high %v294_v31, %v294_v31  ;;  %v327_v48 = vcombine.high %v295_v32, %v295_v32  ;;  %v625_v49 = vpack.c.bf16 %v312_v33, %v280_v11  ;;  %v626_v50 = vpack.c.bf16 %v313_v34, %v281_v15 }
  0xa3   : > { %v627_v51 = vpack.c.bf16 %v314_v35, %v282_v19  ;;  %v628_v52 = vpack.c.bf16 %v315_v36, %v283_v20  ;;  %v629_v53 = vpack.c.bf16 %v316_v37, %v284_v21  ;;  %v630_v54 = vpack.c.bf16 %v317_v38, %v285_v22 }
  0xa4   : > { %v416_v55 = vrot.slane %v625_v49, %v713_v3  ;;  %v423_v56 = vrot.slane %v626_v50, %v713_v3  ;;  %v631_v57 = vpack.c.bf16 %v318_v39, %v286_v23  ;;  %v632_v58 = vpack.c.bf16 %v319_v40, %v287_v24 }
  0xa5   : > { %v433_v59 = vrot.slane %v627_v51, %v713_v3  ;;  %v440_v60 = vrot.slane %v628_v52, %v713_v3  ;;  %v450_v61 = vrot.slane %v629_v53, %v713_v3  ;;  %v457_v62 = vrot.slane %v630_v54, %v713_v3 }
  0xa6   : > { %v424_v63 = vcombine.low %v416_v55, %v423_v56  ;;  %v467_v0 = vrot.slane %v631_v57, %v713_v3  ;;  %v474_v1 = vrot.slane %v632_v58, %v713_v3  ;;  %v633_v2 = vpack.c.bf16 %v320_v41, %v288_v25 }
  0xa7   : > { %v441_v4 = vcombine.low %v433_v59, %v440_v60  ;;  %v458_v5 = vcombine.low %v450_v61, %v457_v62  ;;  %v634_v6 = vpack.c.bf16 %v321_v42, %v289_v26  ;;  %v635_v8 = vpack.c.bf16 %v322_v43, %v290_v27 }
  0xa8   : > { %v475_v9 = vcombine.low %v467_v0, %v474_v1  ;;  %v484_v10 = vrot.slane %v633_v2, %v713_v3  ;;  %v636_v11 = vpack.c.bf16 %v323_v44, %v291_v28  ;;  %v637_v12 = vpack.c.bf16 %v324_v45, %v292_v29  ;;  %552 = vst [vmem:[%s737_s26] sm:$0xff] %v424_v63 }
  0xa9   : > { %v491_v13 = vrot.slane %v634_v6, %v713_v3  ;;  %v501_v14 = vrot.slane %v635_v8, %v713_v3  ;;  %v638_v15 = vpack.c.bf16 %v325_v46, %v293_v30  ;;  %v639_v16 = vpack.c.bf16 %v326_v47, %v294_v31  ;;  %553 = vst [vmem:[%s737_s26 + $0x8] sm:$0xff] %v441_v4 }
  0xaa   : > { %554 = vst [vmem:[%s737_s26 + $0x10] sm:$0xff] %v458_v5  ;;  %v508_v17 = vrot.slane %v636_v11, %v713_v3  ;;  %v518_v18 = vrot.slane %v637_v12, %v713_v3  ;;  %v640_v19 = vpack.c.bf16 %v327_v48, %v295_v32  ;;  %555 = vst [vmem:[%s737_s26 + $0x18] sm:$0xff] %v475_v9 }
  0xab   : > { %v492_v7 = vcombine.low %v484_v10, %v491_v13  ;;  %v525_v20 = vrot.slane %v638_v15, %v713_v3  ;;  %v535_v21 = vrot.slane %v639_v16, %v713_v3 }
  0xac   : > { %v509_v22 = vcombine.low %v501_v14, %v508_v17  ;;  %v542_v23 = vrot.slane %v640_v19, %v713_v3 }
  0xad   : > { %v526_v24 = vcombine.low %v518_v18, %v525_v20  ;;  %556 = vst [vmem:[%s737_s26 + $0x20] sm:$0xff] %v492_v7 }
  0xae   : > { %v543_v25 = vcombine.low %v535_v21, %v542_v23  ;;  %557 = vst [vmem:[%s737_s26 + $0x28] sm:$0xff] %v509_v22 }
  0xaf   : > { %558 = vst [vmem:[%s737_s26 + $0x30] sm:$0xff] %v526_v24 }
  0xb0   : > { %559 = vst [vmem:[%s737_s26 + $0x38] sm:$0xff] %v543_v25 }
  0xb1 PF: > { %s13_s12 = sadd.s32 1, %s661_s12  }
  0xb2   : > { %p10_p4 = scmp.ge.s32.totalorder %s13_s12, 4  }
  0xb4   :  { %12 = sbr.rel (!%p10_p4) target bundleno = 1 (0x1), region = 62 }

// kernel: voxel_encoder64.10
= control target key start
LH: loop header
LB: loop body
LE: loop exit
PB: predicated region body
PF: predicated region fallthrough
CT: control target
= control target key end

     0   :  { %s3781_s18 = smov 0   ;;  %s3783_s19 = smov 0   ;;  %s4811_s0 = inlined_call_operand.vmem [shape: bf16[4,128], index: 0, kind: input, shape index: {}]   ;;  %s4812_s1 = inlined_call_operand.vmem [shape: bf16[128,8192], index: 1, kind: input, shape index: {}]   ;;  %s4813_s2 = inlined_call_operand.vmem [shape: f32[4,1], index: 2, kind: input, shape index: {}]   ;;  %s4814_s3 = inlined_call_operand.vmem [shape: f32[4,8192], index: 3, kind: output, shape index: {0}]   ;;  %s4815_s4 = inlined_call_operand.vmem [shape: f32[2,4,1], index: 4, kind: output, shape index: {1}]   ;;  %s4816_s5 = inlined_call_operand.vmem [shape: f32[2,4,1], index: 5, kind: output, shape index: {2}]  }
   0x1   :  { %s3785_s20 = smov 0   ;;  %s3787_s21 = smov 0  }
   0x2   :  { %s3789_s22 = smov 0  }
   0x3 LB: > { %s28_s23 = sadd.s32 1, %s3743_s21  ;;  %p65_p1 = scmp.ne.s32.totalorder %s3735_s19, %s3731_s18  ;;  %s3747_s22 = sphi %s3789_s22, %s16_s22   ;;  %s3743_s21 = sphi %s3787_s21, %s4820_s21   ;;  %s3739_s20 = sphi %s3785_s20, %s4819_s20   ;;  %s3735_s19 = sphi %s3783_s19, %s4818_s19   ;;  %s3731_s18 = sphi %s3781_s18, %s4817_s18  }
   0x4   : > { %p30_p0 = scmp.ge.s32.totalorder %s28_s23, 2  ;;  %p66_p2 = scmp.eq.s32.totalorder %s3747_s22, 0 }
   0x5   : > { %s58_s25 = sadd.s32 1, %s3735_s19  ;;  %p3396_p5 = scmp.ge.s32.totalorder %s3747_s22, 2 }
   0x6   : > { %s4822_s23 = smov (%p30_p0, %s28_s23), 0  ;;  %p67_p3 = por %p66_p2, %p65_p1 }
   0x7   : > { %s55_s24 = ssub.s32 %s3743_s21, %s4822_s23  ;;  %198 = sbr.rel (%p3396_p5) target bundleno = 146 (0x92), region = 24 }
   0x8   : > { %p56_p4 = scmp.eq.s32.totalorder %s55_s24, 0 }
   0xa   : > { %s3816_s26 = scalar_select %p56_p4, %s3735_s19, %s58_s25  }
   0xe   : > { %201 = sbr.rel (!%p67_p3) target bundleno = 146 (0x92), region = 28  ;;  %s203_s27 = sand.u32 (%p67_p3), 1, %s3735_s19  }
   0xf   : > { %s3664_s28 = sshll.u32 (%p67_p3), %s3743_s21, 7  ;;  %s3397_s29 = sshll.u32 (%p67_p3), %s203_s27, 11 }
  0x10   : > { %s3824_s7 = scalar_lea.vmem (%p67_p3), %s4812_s1, %s3664_s28  ;;  %s3829_s8 = scalar_lea.vmem (%p67_p3), [#allocation2], %s3397_s29 }
  0x11   : > { %v222_v0 = vld [vmem:[%s3824_s7] sm:$0xff] (%p67_p3)  ;;  %v224_v1 = vld [vmem:[%s3824_s7 + $0x8] sm:$0xff] (%p67_p3)  ;;  %v226_v2 = vld [vmem:[%s3824_s7 + $0x10] sm:$0xff] (%p67_p3) }
  0x12   : > { %223 = vst [vmem:[%s3829_s8] sm:$0xff] (%p67_p3), %v222_v0  ;;  %225 = vst [vmem:[%s3829_s8 + $0x8] sm:$0xff] (%p67_p3), %v224_v1  ;;  %v228_v3 = vld [vmem:[%s3824_s7 + $0x18] sm:$0xff] (%p67_p3)  ;;  %v230_v4 = vld [vmem:[%s3824_s7 + $0x20] sm:$0xff] (%p67_p3) }
  0x13   : > { %227 = vst [vmem:[%s3829_s8 + $0x10] sm:$0xff] (%p67_p3), %v226_v2  ;;  %v232_v5 = vld [vmem:[%s3824_s7 + $0x28] sm:$0xff] (%p67_p3)  ;;  %229 = vst [vmem:[%s3829_s8 + $0x18] sm:$0xff] (%p67_p3), %v228_v3  ;;  %v234_v6 = vld [vmem:[%s3824_s7 + $0x30] sm:$0xff] (%p67_p3) }
  0x14   : > { %231 = vst [vmem:[%s3829_s8 + $0x20] sm:$0xff] (%p67_p3), %v230_v4  ;;  %233 = vst [vmem:[%s3829_s8 + $0x28] sm:$0xff] (%p67_p3), %v232_v5  ;;  %v236_v7 = vld [vmem:[%s3824_s7 + $0x38] sm:$0xff] (%p67_p3)  ;;  %v238_v8 = vld [vmem:[%s3824_s7 + $0x40] sm:$0xff] (%p67_p3) }
  0x15   : > { %235 = vst [vmem:[%s3829_s8 + $0x30] sm:$0xff] %v234_v6  ;;  %237 = vst [vmem:[%s3829_s8 + $0x38] sm:$0xff] %v236_v7  ;;  %v240_v9 = vld [vmem:[%s3824_s7 + $0x48] sm:$0xff]  ;;  %v242_v10 = vld [vmem:[%s3824_s7 + $0x50] sm:$0xff] }
  0x16   : > { %239 = vst [vmem:[%s3829_s8 + $0x40] sm:$0xff] %v238_v8  ;;  %v244_v11 = vld [vmem:[%s3824_s7 + $0x58] sm:$0xff]  ;;  %241 = vst [vmem:[%s3829_s8 + $0x48] sm:$0xff] %v240_v9  ;;  %v246_v12 = vld [vmem:[%s3824_s7 + $0x60] sm:$0xff] }
  0x17   : > { %243 = vst [vmem:[%s3829_s8 + $0x50] sm:$0xff] %v242_v10  ;;  %245 = vst [vmem:[%s3829_s8 + $0x58] sm:$0xff] %v244_v11  ;;  %v248_v13 = vld [vmem:[%s3824_s7 + $0x68] sm:$0xff]  ;;  %v250_v14 = vld [vmem:[%s3824_s7 + $0x70] sm:$0xff] }
  0x18   : > { %247 = vst [vmem:[%s3829_s8 + $0x60] sm:$0xff] %v246_v12  ;;  %249 = vst [vmem:[%s3829_s8 + $0x68] sm:$0xff] %v248_v13  ;;  %v252_v15 = vld [vmem:[%s3824_s7 + $0x78] sm:$0xff]  ;;  %v254_v16 = vld [vmem:[%s3824_s7 + $0x100] sm:$0xff] }
  0x19   : > { %251 = vst [vmem:[%s3829_s8 + $0x70] sm:$0xff] %v250_v14  ;;  %v256_v17 = vld [vmem:[%s3824_s7 + $0x108] sm:$0xff]  ;;  %253 = vst [vmem:[%s3829_s8 + $0x78] sm:$0xff] %v252_v15  ;;  %v258_v18 = vld [vmem:[%s3824_s7 + $0x110] sm:$0xff] }
  0x1a   : > { %255 = vst [vmem:[%s3829_s8 + $0x80] sm:$0xff] %v254_v16  ;;  %257 = vst [vmem:[%s3829_s8 + $0x88] sm:$0xff] %v256_v17  ;;  %v260_v19 = vld [vmem:[%s3824_s7 + $0x118] sm:$0xff]  ;;  %v262_v20 = vld [vmem:[%s3824_s7 + $0x120] sm:$0xff] }
  0x1b   : > { %259 = vst [vmem:[%s3829_s8 + $0x90] sm:$0xff] %v258_v18  ;;  %261 = vst [vmem:[%s3829_s8 + $0x98] sm:$0xff] %v260_v19  ;;  %v264_v21 = vld [vmem:[%s3824_s7 + $0x128] sm:$0xff]  ;;  %v266_v22 = vld [vmem:[%s3824_s7 + $0x130] sm:$0xff] }
  0x1c   : > { %263 = vst [vmem:[%s3829_s8 + $0xa0] sm:$0xff] %v262_v20  ;;  %v268_v23 = vld [vmem:[%s3824_s7 + $0x138] sm:$0xff]  ;;  %265 = vst [vmem:[%s3829_s8 + $0xa8] sm:$0xff] %v264_v21  ;;  %v270_v24 = vld [vmem:[%s3824_s7 + $0x140] sm:$0xff] }
  0x1d   : > { %267 = vst [vmem:[%s3829_s8 + $0xb0] sm:$0xff] %v266_v22  ;;  %269 = vst [vmem:[%s3829_s8 + $0xb8] sm:$0xff] %v268_v23  ;;  %v272_v25 = vld [vmem:[%s3824_s7 + $0x148] sm:$0xff]  ;;  %v274_v26 = vld [vmem:[%s3824_s7 + $0x150] sm:$0xff] }
  0x1e   : > { %271 = vst [vmem:[%s3829_s8 + $0xc0] sm:$0xff] %v270_v24  ;;  %273 = vst [vmem:[%s3829_s8 + $0xc8] sm:$0xff] %v272_v25  ;;  %v276_v27 = vld [vmem:[%s3824_s7 + $0x158] sm:$0xff]  ;;  %v278_v28 = vld [vmem:[%s3824_s7 + $0x160] sm:$0xff] }
  0x1f   : > { %275 = vst [vmem:[%s3829_s8 + $0xd0] sm:$0xff] %v274_v26  ;;  %v280_v29 = vld [vmem:[%s3824_s7 + $0x168] sm:$0xff]  ;;  %277 = vst [vmem:[%s3829_s8 + $0xd8] sm:$0xff] %v276_v27  ;;  %v282_v30 = vld [vmem:[%s3824_s7 + $0x170] sm:$0xff] }
  0x20   : > { %279 = vst [vmem:[%s3829_s8 + $0xe0] sm:$0xff] %v278_v28  ;;  %281 = vst [vmem:[%s3829_s8 + $0xe8] sm:$0xff] %v280_v29  ;;  %v284_v31 = vld [vmem:[%s3824_s7 + $0x178] sm:$0xff]  ;;  %v286_v32 = vld [vmem:[%s3824_s7 + $0x200] sm:$0xff] }
  0x21   : > { %283 = vst [vmem:[%s3829_s8 + $0xf0] sm:$0xff] %v282_v30  ;;  %285 = vst [vmem:[%s3829_s8 + $0xf8] sm:$0xff] %v284_v31  ;;  %v288_v33 = vld [vmem:[%s3824_s7 + $0x208] sm:$0xff]  ;;  %v290_v34 = vld [vmem:[%s3824_s7 + $0x210] sm:$0xff] }
  0x22   : > { %287 = vst [vmem:[%s3829_s8 + $0x100] sm:$0xff] %v286_v32  ;;  %v292_v35 = vld [vmem:[%s3824_s7 + $0x218] sm:$0xff]  ;;  %289 = vst [vmem:[%s3829_s8 + $0x108] sm:$0xff] %v288_v33  ;;  %v294_v36 = vld [vmem:[%s3824_s7 + $0x220] sm:$0xff] }
  0x23   : > { %291 = vst [vmem:[%s3829_s8 + $0x110] sm:$0xff] %v290_v34  ;;  %293 = vst [vmem:[%s3829_s8 + $0x118] sm:$0xff] %v292_v35  ;;  %v296_v37 = vld [vmem:[%s3824_s7 + $0x228] sm:$0xff]  ;;  %v298_v38 = vld [vmem:[%s3824_s7 + $0x230] sm:$0xff] }
  0x24   : > { %295 = vst [vmem:[%s3829_s8 + $0x120] sm:$0xff] %v294_v36  ;;  %297 = vst [vmem:[%s3829_s8 + $0x128] sm:$0xff] %v296_v37  ;;  %v300_v39 = vld [vmem:[%s3824_s7 + $0x238] sm:$0xff]  ;;  %v302_v40 = vld [vmem:[%s3824_s7 + $0x240] sm:$0xff] }
  0x25   : > { %299 = vst [vmem:[%s3829_s8 + $0x130] sm:$0xff] %v298_v38  ;;  %v304_v41 = vld [vmem:[%s3824_s7 + $0x248] sm:$0xff]  ;;  %301 = vst [vmem:[%s3829_s8 + $0x138] sm:$0xff] %v300_v39  ;;  %v306_v42 = vld [vmem:[%s3824_s7 + $0x250] sm:$0xff] }
  0x26   : > { %303 = vst [vmem:[%s3829_s8 + $0x140] sm:$0xff] %v302_v40  ;;  %305 = vst [vmem:[%s3829_s8 + $0x148] sm:$0xff] %v304_v41  ;;  %v308_v43 = vld [vmem:[%s3824_s7 + $0x258] sm:$0xff]  ;;  %v310_v44 = vld [vmem:[%s3824_s7 + $0x260] sm:$0xff] }
  0x27   : > { %307 = vst [vmem:[%s3829_s8 + $0x150] sm:$0xff] %v306_v42  ;;  %309 = vst [vmem:[%s3829_s8 + $0x158] sm:$0xff] %v308_v43  ;;  %v312_v45 = vld [vmem:[%s3824_s7 + $0x268] sm:$0xff]  ;;  %v314_v46 = vld [vmem:[%s3824_s7 + $0x270] sm:$0xff] }
  0x28   : > { %311 = vst [vmem:[%s3829_s8 + $0x160] sm:$0xff] %v310_v44  ;;  %v316_v47 = vld [vmem:[%s3824_s7 + $0x278] sm:$0xff]  ;;  %313 = vst [vmem:[%s3829_s8 + $0x168] sm:$0xff] %v312_v45  ;;  %v318_v48 = vld [vmem:[%s3824_s7 + $0x300] sm:$0xff] }
  0x29   : > { %315 = vst [vmem:[%s3829_s8 + $0x170] sm:$0xff] %v314_v46  ;;  %317 = vst [vmem:[%s3829_s8 + $0x178] sm:$0xff] %v316_v47  ;;  %v320_v49 = vld [vmem:[%s3824_s7 + $0x308] sm:$0xff]  ;;  %v322_v50 = vld [vmem:[%s3824_s7 + $0x310] sm:$0xff] }
  0x2a   : > { %319 = vst [vmem:[%s3829_s8 + $0x180] sm:$0xff] %v318_v48  ;;  %321 = vst [vmem:[%s3829_s8 + $0x188] sm:$0xff] %v320_v49  ;;  %v324_v51 = vld [vmem:[%s3824_s7 + $0x318] sm:$0xff]  ;;  %v326_v52 = vld [vmem:[%s3824_s7 + $0x320] sm:$0xff] }
  0x2b   : > { %323 = vst [vmem:[%s3829_s8 + $0x190] sm:$0xff] %v322_v50  ;;  %v328_v53 = vld [vmem:[%s3824_s7 + $0x328] sm:$0xff]  ;;  %325 = vst [vmem:[%s3829_s8 + $0x198] sm:$0xff] %v324_v51  ;;  %v330_v54 = vld [vmem:[%s3824_s7 + $0x330] sm:$0xff] }
  0x2c   : > { %327 = vst [vmem:[%s3829_s8 + $0x1a0] sm:$0xff] %v326_v52  ;;  %329 = vst [vmem:[%s3829_s8 + $0x1a8] sm:$0xff] %v328_v53  ;;  %v332_v55 = vld [vmem:[%s3824_s7 + $0x338] sm:$0xff]  ;;  %v334_v56 = vld [vmem:[%s3824_s7 + $0x340] sm:$0xff] }
  0x2d   : > { %331 = vst [vmem:[%s3829_s8 + $0x1b0] sm:$0xff] %v330_v54  ;;  %333 = vst [vmem:[%s3829_s8 + $0x1b8] sm:$0xff] %v332_v55  ;;  %v336_v57 = vld [vmem:[%s3824_s7 + $0x348] sm:$0xff]  ;;  %v338_v58 = vld [vmem:[%s3824_s7 + $0x350] sm:$0xff] }
  0x2e   : > { %335 = vst [vmem:[%s3829_s8 + $0x1c0] sm:$0xff] %v334_v56  ;;  %v340_v59 = vld [vmem:[%s3824_s7 + $0x358] sm:$0xff]  ;;  %337 = vst [vmem:[%s3829_s8 + $0x1c8] sm:$0xff] %v336_v57  ;;  %v342_v60 = vld [vmem:[%s3824_s7 + $0x360] sm:$0xff] }
  0x2f   : > { %339 = vst [vmem:[%s3829_s8 + $0x1d0] sm:$0xff] %v338_v58  ;;  %341 = vst [vmem:[%s3829_s8 + $0x1d8] sm:$0xff] %v340_v59  ;;  %v344_v61 = vld [vmem:[%s3824_s7 + $0x368] sm:$0xff]  ;;  %v346_v62 = vld [vmem:[%s3824_s7 + $0x370] sm:$0xff] }
  0x30   : > { %343 = vst [vmem:[%s3829_s8 + $0x1e0] sm:$0xff] %v342_v60  ;;  %345 = vst [vmem:[%s3829_s8 + $0x1e8] sm:$0xff] %v344_v61  ;;  %v348_v63 = vld [vmem:[%s3824_s7 + $0x378] sm:$0xff]  ;;  %v350_v0 = vld [vmem:[%s3824_s7 + $0x400] sm:$0xff] }
  0x31   : > { %347 = vst [vmem:[%s3829_s8 + $0x1f0] sm:$0xff] %v346_v62  ;;  %v352_v1 = vld [vmem:[%s3824_s7 + $0x408] sm:$0xff]  ;;  %349 = vst [vmem:[%s3829_s8 + $0x1f8] sm:$0xff] %v348_v63  ;;  %v354_v2 = vld [vmem:[%s3824_s7 + $0x410] sm:$0xff] }
  0x32   : > { %351 = vst [vmem:[%s3829_s8 + $0x200] sm:$0xff] %v350_v0  ;;  %353 = vst [vmem:[%s3829_s8 + $0x208] sm:$0xff] %v352_v1  ;;  %v356_v3 = vld [vmem:[%s3824_s7 + $0x418] sm:$0xff]  ;;  %v358_v4 = vld [vmem:[%s3824_s7 + $0x420] sm:$0xff] }
  0x33   : > { %355 = vst [vmem:[%s3829_s8 + $0x210] sm:$0xff] %v354_v2  ;;  %357 = vst [vmem:[%s3829_s8 + $0x218] sm:$0xff] %v356_v3  ;;  %v360_v5 = vld [vmem:[%s3824_s7 + $0x428] sm:$0xff]  ;;  %v362_v6 = vld [vmem:[%s3824_s7 + $0x430] sm:$0xff] }
  0x34   : > { %359 = vst [vmem:[%s3829_s8 + $0x220] sm:$0xff] %v358_v4  ;;  %v364_v7 = vld [vmem:[%s3824_s7 + $0x438] sm:$0xff]  ;;  %361 = vst [vmem:[%s3829_s8 + $0x228] sm:$0xff] %v360_v5  ;;  %v366_v8 = vld [vmem:[%s3824_s7 + $0x440] sm:$0xff] }
  0x35   : > { %363 = vst [vmem:[%s3829_s8 + $0x230] sm:$0xff] %v362_v6  ;;  %365 = vst [vmem:[%s3829_s8 + $0x238] sm:$0xff] %v364_v7  ;;  %v368_v9 = vld [vmem:[%s3824_s7 + $0x448] sm:$0xff]  ;;  %v370_v10 = vld [vmem:[%s3824_s7 + $0x450] sm:$0xff] }
  0x36   : > { %367 = vst [vmem:[%s3829_s8 + $0x240] sm:$0xff] %v366_v8  ;;  %369 = vst [vmem:[%s3829_s8 + $0x248] sm:$0xff] %v368_v9  ;;  %v372_v11 = vld [vmem:[%s3824_s7 + $0x458] sm:$0xff]  ;;  %v374_v12 = vld [vmem:[%s3824_s7 + $0x460] sm:$0xff] }
  0x37   : > { %371 = vst [vmem:[%s3829_s8 + $0x250] sm:$0xff] %v370_v10  ;;  %v376_v13 = vld [vmem:[%s3824_s7 + $0x468] sm:$0xff]  ;;  %373 = vst [vmem:[%s3829_s8 + $0x258] sm:$0xff] %v372_v11  ;;  %v378_v14 = vld [vmem:[%s3824_s7 + $0x470] sm:$0xff] }
  0x38   : > { %375 = vst [vmem:[%s3829_s8 + $0x260] sm:$0xff] %v374_v12  ;;  %377 = vst [vmem:[%s3829_s8 + $0x268] sm:$0xff] %v376_v13  ;;  %v380_v15 = vld [vmem:[%s3824_s7 + $0x478] sm:$0xff]  ;;  %v382_v16 = vld [vmem:[%s3824_s7 + $0x500] sm:$0xff] }
  0x39   : > { %379 = vst [vmem:[%s3829_s8 + $0x270] sm:$0xff] %v378_v14  ;;  %381 = vst [vmem:[%s3829_s8 + $0x278] sm:$0xff] %v380_v15  ;;  %v384_v17 = vld [vmem:[%s3824_s7 + $0x508] sm:$0xff]  ;;  %v386_v18 = vld [vmem:[%s3824_s7 + $0x510] sm:$0xff] }
  0x3a   : > { %383 = vst [vmem:[%s3829_s8 + $0x280] sm:$0xff] %v382_v16  ;;  %v388_v19 = vld [vmem:[%s3824_s7 + $0x518] sm:$0xff]  ;;  %385 = vst [vmem:[%s3829_s8 + $0x288] sm:$0xff] %v384_v17  ;;  %v390_v20 = vld [vmem:[%s3824_s7 + $0x520] sm:$0xff] }
  0x3b   : > { %387 = vst [vmem:[%s3829_s8 + $0x290] sm:$0xff] %v386_v18  ;;  %389 = vst [vmem:[%s3829_s8 + $0x298] sm:$0xff] %v388_v19  ;;  %v392_v21 = vld [vmem:[%s3824_s7 + $0x528] sm:$0xff]  ;;  %v394_v22 = vld [vmem:[%s3824_s7 + $0x530] sm:$0xff] }
  0x3c   : > { %391 = vst [vmem:[%s3829_s8 + $0x2a0] sm:$0xff] %v390_v20  ;;  %393 = vst [vmem:[%s3829_s8 + $0x2a8] sm:$0xff] %v392_v21  ;;  %v396_v23 = vld [vmem:[%s3824_s7 + $0x538] sm:$0xff]  ;;  %v398_v24 = vld [vmem:[%s3824_s7 + $0x540] sm:$0xff] }
  0x3d   : > { %395 = vst [vmem:[%s3829_s8 + $0x2b0] sm:$0xff] %v394_v22  ;;  %v400_v25 = vld [vmem:[%s3824_s7 + $0x548] sm:$0xff]  ;;  %397 = vst [vmem:[%s3829_s8 + $0x2b8] sm:$0xff] %v396_v23  ;;  %v402_v26 = vld [vmem:[%s3824_s7 + $0x550] sm:$0xff] }
  0x3e   : > { %399 = vst [vmem:[%s3829_s8 + $0x2c0] sm:$0xff] %v398_v24  ;;  %401 = vst [vmem:[%s3829_s8 + $0x2c8] sm:$0xff] %v400_v25  ;;  %v404_v27 = vld [vmem:[%s3824_s7 + $0x558] sm:$0xff]  ;;  %v406_v28 = vld [vmem:[%s3824_s7 + $0x560] sm:$0xff] }
  0x3f   : > { %403 = vst [vmem:[%s3829_s8 + $0x2d0] sm:$0xff] %v402_v26  ;;  %405 = vst [vmem:[%s3829_s8 + $0x2d8] sm:$0xff] %v404_v27  ;;  %v408_v29 = vld [vmem:[%s3824_s7 + $0x568] sm:$0xff]  ;;  %v410_v30 = vld [vmem:[%s3824_s7 + $0x570] sm:$0xff] }
  0x40   : > { %407 = vst [vmem:[%s3829_s8 + $0x2e0] sm:$0xff] %v406_v28  ;;  %v412_v31 = vld [vmem:[%s3824_s7 + $0x578] sm:$0xff]  ;;  %409 = vst [vmem:[%s3829_s8 + $0x2e8] sm:$0xff] %v408_v29  ;;  %v414_v32 = vld [vmem:[%s3824_s7 + $0x600] sm:$0xff] }
  0x41   : > { %411 = vst [vmem:[%s3829_s8 + $0x2f0] sm:$0xff] %v410_v30  ;;  %413 = vst [vmem:[%s3829_s8 + $0x2f8] sm:$0xff] %v412_v31  ;;  %v416_v33 = vld [vmem:[%s3824_s7 + $0x608] sm:$0xff]  ;;  %v418_v34 = vld [vmem:[%s3824_s7 + $0x610] sm:$0xff] }
  0x42   : > { %415 = vst [vmem:[%s3829_s8 + $0x300] sm:$0xff] %v414_v32  ;;  %417 = vst [vmem:[%s3829_s8 + $0x308] sm:$0xff] %v416_v33  ;;  %v420_v35 = vld [vmem:[%s3824_s7 + $0x618] sm:$0xff]  ;;  %v422_v36 = vld [vmem:[%s3824_s7 + $0x620] sm:$0xff] }
  0x43   : > { %419 = vst [vmem:[%s3829_s8 + $0x310] sm:$0xff] %v418_v34  ;;  %v424_v37 = vld [vmem:[%s3824_s7 + $0x628] sm:$0xff]  ;;  %421 = vst [vmem:[%s3829_s8 + $0x318] sm:$0xff] %v420_v35  ;;  %v426_v38 = vld [vmem:[%s3824_s7 + $0x630] sm:$0xff] }
  0x44   : > { %423 = vst [vmem:[%s3829_s8 + $0x320] sm:$0xff] %v422_v36  ;;  %425 = vst [vmem:[%s3829_s8 + $0x328] sm:$0xff] %v424_v37  ;;  %v428_v39 = vld [vmem:[%s3824_s7 + $0x638] sm:$0xff]  ;;  %v430_v40 = vld [vmem:[%s3824_s7 + $0x640] sm:$0xff] }
  0x45   : > { %427 = vst [vmem:[%s3829_s8 + $0x330] sm:$0xff] %v426_v38  ;;  %429 = vst [vmem:[%s3829_s8 + $0x338] sm:$0xff] %v428_v39  ;;  %v432_v41 = vld [vmem:[%s3824_s7 + $0x648] sm:$0xff]  ;;  %v434_v42 = vld [vmem:[%s3824_s7 + $0x650] sm:$0xff] }
  0x46   : > { %431 = vst [vmem:[%s3829_s8 + $0x340] sm:$0xff] %v430_v40  ;;  %v436_v43 = vld [vmem:[%s3824_s7 + $0x658] sm:$0xff]  ;;  %433 = vst [vmem:[%s3829_s8 + $0x348] sm:$0xff] %v432_v41  ;;  %v438_v44 = vld [vmem:[%s3824_s7 + $0x660] sm:$0xff] }
  0x47   : > { %435 = vst [vmem:[%s3829_s8 + $0x350] sm:$0xff] %v434_v42  ;;  %437 = vst [vmem:[%s3829_s8 + $0x358] sm:$0xff] %v436_v43  ;;  %v440_v45 = vld [vmem:[%s3824_s7 + $0x668] sm:$0xff]  ;;  %v442_v46 = vld [vmem:[%s3824_s7 + $0x670] sm:$0xff] }
  0x48   : > { %439 = vst [vmem:[%s3829_s8 + $0x360] sm:$0xff] %v438_v44  ;;  %441 = vst [vmem:[%s3829_s8 + $0x368] sm:$0xff] %v440_v45  ;;  %v444_v47 = vld [vmem:[%s3824_s7 + $0x678] sm:$0xff]  ;;  %v446_v48 = vld [vmem:[%s3824_s7 + $0x700] sm:$0xff] }
  0x49   : > { %443 = vst [vmem:[%s3829_s8 + $0x370] sm:$0xff] %v442_v46  ;;  %v448_v49 = vld [vmem:[%s3824_s7 + $0x708] sm:$0xff]  ;;  %445 = vst [vmem:[%s3829_s8 + $0x378] sm:$0xff] %v444_v47  ;;  %v450_v50 = vld [vmem:[%s3824_s7 + $0x710] sm:$0xff] }
  0x4a   : > { %447 = vst [vmem:[%s3829_s8 + $0x380] sm:$0xff] %v446_v48  ;;  %449 = vst [vmem:[%s3829_s8 + $0x388] sm:$0xff] %v448_v49  ;;  %v452_v51 = vld [vmem:[%s3824_s7 + $0x718] sm:$0xff]  ;;  %v454_v52 = vld [vmem:[%s3824_s7 + $0x720] sm:$0xff] }
  0x4b   : > { %451 = vst [vmem:[%s3829_s8 + $0x390] sm:$0xff] %v450_v50  ;;  %453 = vst [vmem:[%s3829_s8 + $0x398] sm:$0xff] %v452_v51  ;;  %v456_v53 = vld [vmem:[%s3824_s7 + $0x728] sm:$0xff]  ;;  %v458_v54 = vld [vmem:[%s3824_s7 + $0x730] sm:$0xff] }
  0x4c   : > { %455 = vst [vmem:[%s3829_s8 + $0x3a0] sm:$0xff] %v454_v52  ;;  %v460_v55 = vld [vmem:[%s3824_s7 + $0x738] sm:$0xff]  ;;  %457 = vst [vmem:[%s3829_s8 + $0x3a8] sm:$0xff] %v456_v53  ;;  %v462_v56 = vld [vmem:[%s3824_s7 + $0x740] sm:$0xff] }
  0x4d   : > { %459 = vst [vmem:[%s3829_s8 + $0x3b0] sm:$0xff] %v458_v54  ;;  %461 = vst [vmem:[%s3829_s8 + $0x3b8] sm:$0xff] %v460_v55  ;;  %v464_v57 = vld [vmem:[%s3824_s7 + $0x748] sm:$0xff]  ;;  %v466_v58 = vld [vmem:[%s3824_s7 + $0x750] sm:$0xff] }
  0x4e   : > { %463 = vst [vmem:[%s3829_s8 + $0x3c0] sm:$0xff] %v462_v56  ;;  %465 = vst [vmem:[%s3829_s8 + $0x3c8] sm:$0xff] %v464_v57  ;;  %v468_v59 = vld [vmem:[%s3824_s7 + $0x758] sm:$0xff]  ;;  %v470_v60 = vld [vmem:[%s3824_s7 + $0x760] sm:$0xff] }
  0x4f   : > { %467 = vst [vmem:[%s3829_s8 + $0x3d0] sm:$0xff] %v466_v58  ;;  %v472_v61 = vld [vmem:[%s3824_s7 + $0x768] sm:$0xff]  ;;  %469 = vst [vmem:[%s3829_s8 + $0x3d8] sm:$0xff] %v468_v59  ;;  %v474_v62 = vld [vmem:[%s3824_s7 + $0x770] sm:$0xff] }
  0x50   : > { %471 = vst [vmem:[%s3829_s8 + $0x3e0] sm:$0xff] %v470_v60  ;;  %473 = vst [vmem:[%s3829_s8 + $0x3e8] sm:$0xff] %v472_v61  ;;  %v476_v63 = vld [vmem:[%s3824_s7 + $0x778] sm:$0xff]  ;;  %v478_v0 = vld [vmem:[%s3824_s7 + $0x800] sm:$0xff] }
  0x51   : > { %475 = vst [vmem:[%s3829_s8 + $0x3f0] sm:$0xff] %v474_v62  ;;  %477 = vst [vmem:[%s3829_s8 + $0x3f8] sm:$0xff] %v476_v63  ;;  %v480_v1 = vld [vmem:[%s3824_s7 + $0x808] sm:$0xff]  ;;  %v482_v2 = vld [vmem:[%s3824_s7 + $0x810] sm:$0xff] }
  0x52   : > { %479 = vst [vmem:[%s3829_s8 + $0x400] sm:$0xff] %v478_v0  ;;  %v484_v3 = vld [vmem:[%s3824_s7 + $0x818] sm:$0xff]  ;;  %481 = vst [vmem:[%s3829_s8 + $0x408] sm:$0xff] %v480_v1  ;;  %v486_v4 = vld [vmem:[%s3824_s7 + $0x820] sm:$0xff] }
  0x53   : > { %483 = vst [vmem:[%s3829_s8 + $0x410] sm:$0xff] %v482_v2  ;;  %485 = vst [vmem:[%s3829_s8 + $0x418] sm:$0xff] %v484_v3  ;;  %v488_v5 = vld [vmem:[%s3824_s7 + $0x828] sm:$0xff]  ;;  %v490_v6 = vld [vmem:[%s3824_s7 + $0x830] sm:$0xff] }
  0x54   : > { %487 = vst [vmem:[%s3829_s8 + $0x420] sm:$0xff] %v486_v4  ;;  %489 = vst [vmem:[%s3829_s8 + $0x428] sm:$0xff] %v488_v5  ;;  %v492_v7 = vld [vmem:[%s3824_s7 + $0x838] sm:$0xff]  ;;  %v494_v8 = vld [vmem:[%s3824_s7 + $0x840] sm:$0xff] }
  0x55   : > { %491 = vst [vmem:[%s3829_s8 + $0x430] sm:$0xff] %v490_v6  ;;  %v496_v9 = vld [vmem:[%s3824_s7 + $0x848] sm:$0xff]  ;;  %493 = vst [vmem:[%s3829_s8 + $0x438] sm:$0xff] %v492_v7  ;;  %v498_v10 = vld [vmem:[%s3824_s7 + $0x850] sm:$0xff] }
  0x56   : > { %495 = vst [vmem:[%s3829_s8 + $0x440] sm:$0xff] %v494_v8  ;;  %497 = vst [vmem:[%s3829_s8 + $0x448] sm:$0xff] %v496_v9  ;;  %v500_v11 = vld [vmem:[%s3824_s7 + $0x858] sm:$0xff]  ;;  %v502_v12 = vld [vmem:[%s3824_s7 + $0x860] sm:$0xff] }
  0x57   : > { %499 = vst [vmem:[%s3829_s8 + $0x450] sm:$0xff] %v498_v10  ;;  %501 = vst [vmem:[%s3829_s8 + $0x458] sm:$0xff] %v500_v11  ;;  %v504_v13 = vld [vmem:[%s3824_s7 + $0x868] sm:$0xff]  ;;  %v506_v14 = vld [vmem:[%s3824_s7 + $0x870] sm:$0xff] }
  0x58   : > { %503 = vst [vmem:[%s3829_s8 + $0x460] sm:$0xff] %v502_v12  ;;  %v508_v15 = vld [vmem:[%s3824_s7 + $0x878] sm:$0xff]  ;;  %505 = vst [vmem:[%s3829_s8 + $0x468] sm:$0xff] %v504_v13  ;;  %v510_v16 = vld [vmem:[%s3824_s7 + $0x900] sm:$0xff] }
  0x59   : > { %507 = vst [vmem:[%s3829_s8 + $0x470] sm:$0xff] %v506_v14  ;;  %509 = vst [vmem:[%s3829_s8 + $0x478] sm:$0xff] %v508_v15  ;;  %v512_v17 = vld [vmem:[%s3824_s7 + $0x908] sm:$0xff]  ;;  %v514_v18 = vld [vmem:[%s3824_s7 + $0x910] sm:$0xff] }
  0x5a   : > { %511 = vst [vmem:[%s3829_s8 + $0x480] sm:$0xff] %v510_v16  ;;  %513 = vst [vmem:[%s3829_s8 + $0x488] sm:$0xff] %v512_v17  ;;  %v516_v19 = vld [vmem:[%s3824_s7 + $0x918] sm:$0xff]  ;;  %v518_v20 = vld [vmem:[%s3824_s7 + $0x920] sm:$0xff] }
  0x5b   : > { %515 = vst [vmem:[%s3829_s8 + $0x490] sm:$0xff] %v514_v18  ;;  %v520_v21 = vld [vmem:[%s3824_s7 + $0x928] sm:$0xff]  ;;  %517 = vst [vmem:[%s3829_s8 + $0x498] sm:$0xff] %v516_v19  ;;  %v522_v22 = vld [vmem:[%s3824_s7 + $0x930] sm:$0xff] }
  0x5c   : > { %519 = vst [vmem:[%s3829_s8 + $0x4a0] sm:$0xff] %v518_v20  ;;  %521 = vst [vmem:[%s3829_s8 + $0x4a8] sm:$0xff] %v520_v21  ;;  %v524_v23 = vld [vmem:[%s3824_s7 + $0x938] sm:$0xff]  ;;  %v526_v24 = vld [vmem:[%s3824_s7 + $0x940] sm:$0xff] }
  0x5d   : > { %523 = vst [vmem:[%s3829_s8 + $0x4b0] sm:$0xff] %v522_v22  ;;  %525 = vst [vmem:[%s3829_s8 + $0x4b8] sm:$0xff] %v524_v23  ;;  %v528_v25 = vld [vmem:[%s3824_s7 + $0x948] sm:$0xff]  ;;  %v530_v26 = vld [vmem:[%s3824_s7 + $0x950] sm:$0xff] }
  0x5e   : > { %527 = vst [vmem:[%s3829_s8 + $0x4c0] sm:$0xff] %v526_v24  ;;  %v532_v27 = vld [vmem:[%s3824_s7 + $0x958] sm:$0xff]  ;;  %529 = vst [vmem:[%s3829_s8 + $0x4c8] sm:$0xff] %v528_v25  ;;  %v534_v28 = vld [vmem:[%s3824_s7 + $0x960] sm:$0xff] }
  0x5f   : > { %531 = vst [vmem:[%s3829_s8 + $0x4d0] sm:$0xff] %v530_v26  ;;  %533 = vst [vmem:[%s3829_s8 + $0x4d8] sm:$0xff] %v532_v27  ;;  %v536_v29 = vld [vmem:[%s3824_s7 + $0x968] sm:$0xff]  ;;  %v538_v30 = vld [vmem:[%s3824_s7 + $0x970] sm:$0xff] }
  0x60   : > { %535 = vst [vmem:[%s3829_s8 + $0x4e0] sm:$0xff] %v534_v28  ;;  %537 = vst [vmem:[%s3829_s8 + $0x4e8] sm:$0xff] %v536_v29  ;;  %v540_v31 = vld [vmem:[%s3824_s7 + $0x978] sm:$0xff]  ;;  %v542_v32 = vld [vmem:[%s3824_s7 + $0xa00] sm:$0xff] }
  0x61   : > { %539 = vst [vmem:[%s3829_s8 + $0x4f0] sm:$0xff] %v538_v30  ;;  %v544_v33 = vld [vmem:[%s3824_s7 + $0xa08] sm:$0xff]  ;;  %541 = vst [vmem:[%s3829_s8 + $0x4f8] sm:$0xff] %v540_v31  ;;  %v546_v34 = vld [vmem:[%s3824_s7 + $0xa10] sm:$0xff] }
  0x62   : > { %543 = vst [vmem:[%s3829_s8 + $0x500] sm:$0xff] %v542_v32  ;;  %545 = vst [vmem:[%s3829_s8 + $0x508] sm:$0xff] %v544_v33  ;;  %v548_v35 = vld [vmem:[%s3824_s7 + $0xa18] sm:$0xff]  ;;  %v550_v36 = vld [vmem:[%s3824_s7 + $0xa20] sm:$0xff] }
  0x63   : > { %547 = vst [vmem:[%s3829_s8 + $0x510] sm:$0xff] %v546_v34  ;;  %549 = vst [vmem:[%s3829_s8 + $0x518] sm:$0xff] %v548_v35  ;;  %v552_v37 = vld [vmem:[%s3824_s7 + $0xa28] sm:$0xff]  ;;  %v554_v38 = vld [vmem:[%s3824_s7 + $0xa30] sm:$0xff] }
  0x64   : > { %551 = vst [vmem:[%s3829_s8 + $0x520] sm:$0xff] %v550_v36  ;;  %v556_v39 = vld [vmem:[%s3824_s7 + $0xa38] sm:$0xff]  ;;  %553 = vst [vmem:[%s3829_s8 + $0x528] sm:$0xff] %v552_v37  ;;  %v558_v40 = vld [vmem:[%s3824_s7 + $0xa40] sm:$0xff] }
  0x65   : > { %555 = vst [vmem:[%s3829_s8 + $0x530] sm:$0xff] %v554_v38  ;;  %557 = vst [vmem:[%s3829_s8 + $0x538] sm:$0xff] %v556_v39  ;;  %v560_v41 = vld [vmem:[%s3824_s7 + $0xa48] sm:$0xff]  ;;  %v562_v42 = vld [vmem:[%s3824_s7 + $0xa50] sm:$0xff] }
  0x66   : > { %559 = vst [vmem:[%s3829_s8 + $0x540] sm:$0xff] %v558_v40  ;;  %561 = vst [vmem:[%s3829_s8 + $0x548] sm:$0xff] %v560_v41  ;;  %v564_v43 = vld [vmem:[%s3824_s7 + $0xa58] sm:$0xff]  ;;  %v566_v44 = vld [vmem:[%s3824_s7 + $0xa60] sm:$0xff] }
  0x67   : > { %563 = vst [vmem:[%s3829_s8 + $0x550] sm:$0xff] %v562_v42  ;;  %v568_v45 = vld [vmem:[%s3824_s7 + $0xa68] sm:$0xff]  ;;  %565 = vst [vmem:[%s3829_s8 + $0x558] sm:$0xff] %v564_v43  ;;  %v570_v46 = vld [vmem:[%s3824_s7 + $0xa70] sm:$0xff] }
  0x68   : > { %567 = vst [vmem:[%s3829_s8 + $0x560] sm:$0xff] %v566_v44  ;;  %569 = vst [vmem:[%s3829_s8 + $0x568] sm:$0xff] %v568_v45  ;;  %v572_v47 = vld [vmem:[%s3824_s7 + $0xa78] sm:$0xff]  ;;  %v574_v48 = vld [vmem:[%s3824_s7 + $0xb00] sm:$0xff] }
  0x69   : > { %571 = vst [vmem:[%s3829_s8 + $0x570] sm:$0xff] %v570_v46  ;;  %573 = vst [vmem:[%s3829_s8 + $0x578] sm:$0xff] %v572_v47  ;;  %v576_v49 = vld [vmem:[%s3824_s7 + $0xb08] sm:$0xff]  ;;  %v578_v50 = vld [vmem:[%s3824_s7 + $0xb10] sm:$0xff] }
  0x6a   : > { %575 = vst [vmem:[%s3829_s8 + $0x580] sm:$0xff] %v574_v48  ;;  %v580_v51 = vld [vmem:[%s3824_s7 + $0xb18] sm:$0xff]  ;;  %577 = vst [vmem:[%s3829_s8 + $0x588] sm:$0xff] %v576_v49  ;;  %v582_v52 = vld [vmem:[%s3824_s7 + $0xb20] sm:$0xff] }
  0x6b   : > { %579 = vst [vmem:[%s3829_s8 + $0x590] sm:$0xff] %v578_v50  ;;  %581 = vst [vmem:[%s3829_s8 + $0x598] sm:$0xff] %v580_v51  ;;  %v584_v53 = vld [vmem:[%s3824_s7 + $0xb28] sm:$0xff]  ;;  %v586_v54 = vld [vmem:[%s3824_s7 + $0xb30] sm:$0xff] }
  0x6c   : > { %583 = vst [vmem:[%s3829_s8 + $0x5a0] sm:$0xff] %v582_v52  ;;  %585 = vst [vmem:[%s3829_s8 + $0x5a8] sm:$0xff] %v584_v53  ;;  %v588_v55 = vld [vmem:[%s3824_s7 + $0xb38] sm:$0xff]  ;;  %v590_v56 = vld [vmem:[%s3824_s7 + $0xb40] sm:$0xff] }
  0x6d   : > { %587 = vst [vmem:[%s3829_s8 + $0x5b0] sm:$0xff] %v586_v54  ;;  %v592_v57 = vld [vmem:[%s3824_s7 + $0xb48] sm:$0xff]  ;;  %589 = vst [vmem:[%s3829_s8 + $0x5b8] sm:$0xff] %v588_v55  ;;  %v594_v58 = vld [vmem:[%s3824_s7 + $0xb50] sm:$0xff] }
  0x6e   : > { %591 = vst [vmem:[%s3829_s8 + $0x5c0] sm:$0xff] %v590_v56  ;;  %593 = vst [vmem:[%s3829_s8 + $0x5c8] sm:$0xff] %v592_v57  ;;  %v596_v59 = vld [vmem:[%s3824_s7 + $0xb58] sm:$0xff]  ;;  %v598_v60 = vld [vmem:[%s3824_s7 + $0xb60] sm:$0xff] }
  0x6f   : > { %595 = vst [vmem:[%s3829_s8 + $0x5d0] sm:$0xff] %v594_v58  ;;  %597 = vst [vmem:[%s3829_s8 + $0x5d8] sm:$0xff] %v596_v59  ;;  %v600_v61 = vld [vmem:[%s3824_s7 + $0xb68] sm:$0xff]  ;;  %v602_v62 = vld [vmem:[%s3824_s7 + $0xb70] sm:$0xff] }
  0x70   : > { %599 = vst [vmem:[%s3829_s8 + $0x5e0] sm:$0xff] %v598_v60  ;;  %v604_v63 = vld [vmem:[%s3824_s7 + $0xb78] sm:$0xff]  ;;  %601 = vst [vmem:[%s3829_s8 + $0x5e8] sm:$0xff] %v600_v61  ;;  %v606_v0 = vld [vmem:[%s3824_s7 + $0xc00] sm:$0xff] }
  0x71   : > { %603 = vst [vmem:[%s3829_s8 + $0x5f0] sm:$0xff] %v602_v62  ;;  %605 = vst [vmem:[%s3829_s8 + $0x5f8] sm:$0xff] %v604_v63  ;;  %v608_v1 = vld [vmem:[%s3824_s7 + $0xc08] sm:$0xff]  ;;  %v610_v2 = vld [vmem:[%s3824_s7 + $0xc10] sm:$0xff] }
  0x72   : > { %607 = vst [vmem:[%s3829_s8 + $0x600] sm:$0xff] %v606_v0  ;;  %609 = vst [vmem:[%s3829_s8 + $0x608] sm:$0xff] %v608_v1  ;;  %v612_v3 = vld [vmem:[%s3824_s7 + $0xc18] sm:$0xff]  ;;  %v614_v4 = vld [vmem:[%s3824_s7 + $0xc20] sm:$0xff] }
  0x73   : > { %611 = vst [vmem:[%s3829_s8 + $0x610] sm:$0xff] %v610_v2  ;;  %v616_v5 = vld [vmem:[%s3824_s7 + $0xc28] sm:$0xff]  ;;  %613 = vst [vmem:[%s3829_s8 + $0x618] sm:$0xff] %v612_v3  ;;  %v618_v6 = vld [vmem:[%s3824_s7 + $0xc30] sm:$0xff] }
  0x74   : > { %615 = vst [vmem:[%s3829_s8 + $0x620] sm:$0xff] %v614_v4  ;;  %617 = vst [vmem:[%s3829_s8 + $0x628] sm:$0xff] %v616_v5  ;;  %v620_v7 = vld [vmem:[%s3824_s7 + $0xc38] sm:$0xff]  ;;  %v622_v8 = vld [vmem:[%s3824_s7 + $0xc40] sm:$0xff] }
  0x75   : > { %619 = vst [vmem:[%s3829_s8 + $0x630] sm:$0xff] %v618_v6  ;;  %621 = vst [vmem:[%s3829_s8 + $0x638] sm:$0xff] %v620_v7  ;;  %v624_v9 = vld [vmem:[%s3824_s7 + $0xc48] sm:$0xff]  ;;  %v626_v10 = vld [vmem:[%s3824_s7 + $0xc50] sm:$0xff] }
  0x76   : > { %623 = vst [vmem:[%s3829_s8 + $0x640] sm:$0xff] %v622_v8  ;;  %v628_v11 = vld [vmem:[%s3824_s7 + $0xc58] sm:$0xff]  ;;  %625 = vst [vmem:[%s3829_s8 + $0x648] sm:$0xff] %v624_v9  ;;  %v630_v12 = vld [vmem:[%s3824_s7 + $0xc60] sm:$0xff] }
  0x77   : > { %627 = vst [vmem:[%s3829_s8 + $0x650] sm:$0xff] %v626_v10  ;;  %629 = vst [vmem:[%s3829_s8 + $0x658] sm:$0xff] %v628_v11  ;;  %v632_v13 = vld [vmem:[%s3824_s7 + $0xc68] sm:$0xff]  ;;  %v634_v14 = vld [vmem:[%s3824_s7 + $0xc70] sm:$0xff] }
  0x78   : > { %631 = vst [vmem:[%s3829_s8 + $0x660] sm:$0xff] %v630_v12  ;;  %633 = vst [vmem:[%s3829_s8 + $0x668] sm:$0xff] %v632_v13  ;;  %v636_v15 = vld [vmem:[%s3824_s7 + $0xc78] sm:$0xff]  ;;  %v638_v16 = vld [vmem:[%s3824_s7 + $0xd00] sm:$0xff] }
  0x79   : > { %635 = vst [vmem:[%s3829_s8 + $0x670] sm:$0xff] %v634_v14  ;;  %v640_v17 = vld [vmem:[%s3824_s7 + $0xd08] sm:$0xff]  ;;  %637 = vst [vmem:[%s3829_s8 + $0x678] sm:$0xff] %v636_v15  ;;  %v642_v18 = vld [vmem:[%s3824_s7 + $0xd10] sm:$0xff] }
  0x7a   : > { %639 = vst [vmem:[%s3829_s8 + $0x680] sm:$0xff] %v638_v16  ;;  %641 = vst [vmem:[%s3829_s8 + $0x688] sm:$0xff] %v640_v17  ;;  %v644_v19 = vld [vmem:[%s3824_s7 + $0xd18] sm:$0xff]  ;;  %v646_v20 = vld [vmem:[%s3824_s7 + $0xd20] sm:$0xff] }
  0x7b   : > { %643 = vst [vmem:[%s3829_s8 + $0x690] sm:$0xff] %v642_v18  ;;  %645 = vst [vmem:[%s3829_s8 + $0x698] sm:$0xff] %v644_v19  ;;  %v648_v21 = vld [vmem:[%s3824_s7 + $0xd28] sm:$0xff]  ;;  %v650_v22 = vld [vmem:[%s3824_s7 + $0xd30] sm:$0xff] }
  0x7c   : > { %647 = vst [vmem:[%s3829_s8 + $0x6a0] sm:$0xff] %v646_v20  ;;  %v652_v23 = vld [vmem:[%s3824_s7 + $0xd38] sm:$0xff]  ;;  %649 = vst [vmem:[%s3829_s8 + $0x6a8] sm:$0xff] %v648_v21  ;;  %v654_v24 = vld [vmem:[%s3824_s7 + $0xd40] sm:$0xff] }
  0x7d   : > { %651 = vst [vmem:[%s3829_s8 + $0x6b0] sm:$0xff] %v650_v22  ;;  %653 = vst [vmem:[%s3829_s8 + $0x6b8] sm:$0xff] %v652_v23  ;;  %v656_v25 = vld [vmem:[%s3824_s7 + $0xd48] sm:$0xff]  ;;  %v658_v26 = vld [vmem:[%s3824_s7 + $0xd50] sm:$0xff] }
  0x7e   : > { %655 = vst [vmem:[%s3829_s8 + $0x6c0] sm:$0xff] %v654_v24  ;;  %657 = vst [vmem:[%s3829_s8 + $0x6c8] sm:$0xff] %v656_v25  ;;  %v660_v27 = vld [vmem:[%s3824_s7 + $0xd58] sm:$0xff]  ;;  %v662_v28 = vld [vmem:[%s3824_s7 + $0xd60] sm:$0xff] }
  0x7f   : > { %659 = vst [vmem:[%s3829_s8 + $0x6d0] sm:$0xff] %v658_v26  ;;  %v664_v29 = vld [vmem:[%s3824_s7 + $0xd68] sm:$0xff]  ;;  %661 = vst [vmem:[%s3829_s8 + $0x6d8] sm:$0xff] %v660_v27  ;;  %v666_v30 = vld [vmem:[%s3824_s7 + $0xd70] sm:$0xff] }
  0x80   : > { %663 = vst [vmem:[%s3829_s8 + $0x6e0] sm:$0xff] %v662_v28  ;;  %665 = vst [vmem:[%s3829_s8 + $0x6e8] sm:$0xff] %v664_v29  ;;  %v668_v31 = vld [vmem:[%s3824_s7 + $0xd78] sm:$0xff]  ;;  %v670_v32 = vld [vmem:[%s3824_s7 + $0xe00] sm:$0xff] }
  0x81   : > { %667 = vst [vmem:[%s3829_s8 + $0x6f0] sm:$0xff] %v666_v30  ;;  %669 = vst [vmem:[%s3829_s8 + $0x6f8] sm:$0xff] %v668_v31  ;;  %v672_v33 = vld [vmem:[%s3824_s7 + $0xe08] sm:$0xff]  ;;  %v674_v34 = vld [vmem:[%s3824_s7 + $0xe10] sm:$0xff] }
  0x82   : > { %671 = vst [vmem:[%s3829_s8 + $0x700] sm:$0xff] %v670_v32  ;;  %v676_v35 = vld [vmem:[%s3824_s7 + $0xe18] sm:$0xff]  ;;  %673 = vst [vmem:[%s3829_s8 + $0x708] sm:$0xff] %v672_v33  ;;  %v678_v36 = vld [vmem:[%s3824_s7 + $0xe20] sm:$0xff] }
  0x83   : > { %675 = vst [vmem:[%s3829_s8 + $0x710] sm:$0xff] %v674_v34  ;;  %677 = vst [vmem:[%s3829_s8 + $0x718] sm:$0xff] %v676_v35  ;;  %v680_v37 = vld [vmem:[%s3824_s7 + $0xe28] sm:$0xff]  ;;  %v682_v38 = vld [vmem:[%s3824_s7 + $0xe30] sm:$0xff] }
  0x84   : > { %679 = vst [vmem:[%s3829_s8 + $0x720] sm:$0xff] %v678_v36  ;;  %681 = vst [vmem:[%s3829_s8 + $0x728] sm:$0xff] %v680_v37  ;;  %v684_v39 = vld [vmem:[%s3824_s7 + $0xe38] sm:$0xff]  ;;  %v686_v40 = vld [vmem:[%s3824_s7 + $0xe40] sm:$0xff] }
  0x85   : > { %683 = vst [vmem:[%s3829_s8 + $0x730] sm:$0xff] %v682_v38  ;;  %v688_v41 = vld [vmem:[%s3824_s7 + $0xe48] sm:$0xff]  ;;  %685 = vst [vmem:[%s3829_s8 + $0x738] sm:$0xff] %v684_v39  ;;  %v690_v42 = vld [vmem:[%s3824_s7 + $0xe50] sm:$0xff] }
  0x86   : > { %687 = vst [vmem:[%s3829_s8 + $0x740] sm:$0xff] %v686_v40  ;;  %689 = vst [vmem:[%s3829_s8 + $0x748] sm:$0xff] %v688_v41  ;;  %v692_v43 = vld [vmem:[%s3824_s7 + $0xe58] sm:$0xff]  ;;  %v694_v44 = vld [vmem:[%s3824_s7 + $0xe60] sm:$0xff] }
  0x87   : > { %691 = vst [vmem:[%s3829_s8 + $0x750] sm:$0xff] %v690_v42  ;;  %693 = vst [vmem:[%s3829_s8 + $0x758] sm:$0xff] %v692_v43  ;;  %v696_v45 = vld [vmem:[%s3824_s7 + $0xe68] sm:$0xff]  ;;  %v698_v46 = vld [vmem:[%s3824_s7 + $0xe70] sm:$0xff] }
  0x88   : > { %695 = vst [vmem:[%s3829_s8 + $0x760] sm:$0xff] %v694_v44  ;;  %v700_v47 = vld [vmem:[%s3824_s7 + $0xe78] sm:$0xff]  ;;  %697 = vst [vmem:[%s3829_s8 + $0x768] sm:$0xff] %v696_v45  ;;  %v702_v48 = vld [vmem:[%s3824_s7 + $0xf00] sm:$0xff] }
  0x89   : > { %699 = vst [vmem:[%s3829_s8 + $0x770] sm:$0xff] %v698_v46  ;;  %701 = vst [vmem:[%s3829_s8 + $0x778] sm:$0xff] %v700_v47  ;;  %v704_v49 = vld [vmem:[%s3824_s7 + $0xf08] sm:$0xff]  ;;  %v706_v50 = vld [vmem:[%s3824_s7 + $0xf10] sm:$0xff] }
  0x8a   : > { %703 = vst [vmem:[%s3829_s8 + $0x780] sm:$0xff] %v702_v48  ;;  %705 = vst [vmem:[%s3829_s8 + $0x788] sm:$0xff] %v704_v49  ;;  %v708_v51 = vld [vmem:[%s3824_s7 + $0xf18] sm:$0xff]  ;;  %v710_v52 = vld [vmem:[%s3824_s7 + $0xf20] sm:$0xff] }
  0x8b   : > { %707 = vst [vmem:[%s3829_s8 + $0x790] sm:$0xff] %v706_v50  ;;  %v712_v53 = vld [vmem:[%s3824_s7 + $0xf28] sm:$0xff]  ;;  %709 = vst [vmem:[%s3829_s8 + $0x798] sm:$0xff] %v708_v51  ;;  %v714_v54 = vld [vmem:[%s3824_s7 + $0xf30] sm:$0xff] }
  0x8c   : > { %711 = vst [vmem:[%s3829_s8 + $0x7a0] sm:$0xff] %v710_v52  ;;  %713 = vst [vmem:[%s3829_s8 + $0x7a8] sm:$0xff] %v712_v53  ;;  %v716_v55 = vld [vmem:[%s3824_s7 + $0xf38] sm:$0xff]  ;;  %v718_v56 = vld [vmem:[%s3824_s7 + $0xf40] sm:$0xff] }
  0x8d   : > { %715 = vst [vmem:[%s3829_s8 + $0x7b0] sm:$0xff] %v714_v54  ;;  %717 = vst [vmem:[%s3829_s8 + $0x7b8] sm:$0xff] %v716_v55  ;;  %v720_v57 = vld [vmem:[%s3824_s7 + $0xf48] sm:$0xff]  ;;  %v722_v58 = vld [vmem:[%s3824_s7 + $0xf50] sm:$0xff] }
  0x8e   : > { %719 = vst [vmem:[%s3829_s8 + $0x7c0] sm:$0xff] %v718_v56  ;;  %v724_v59 = vld [vmem:[%s3824_s7 + $0xf58] sm:$0xff]  ;;  %721 = vst [vmem:[%s3829_s8 + $0x7c8] sm:$0xff] %v720_v57  ;;  %v726_v60 = vld [vmem:[%s3824_s7 + $0xf60] sm:$0xff] }
  0x8f   : > { %723 = vst [vmem:[%s3829_s8 + $0x7d0] sm:$0xff] %v722_v58  ;;  %725 = vst [vmem:[%s3829_s8 + $0x7d8] sm:$0xff] %v724_v59  ;;  %v728_v61 = vld [vmem:[%s3824_s7 + $0xf68] sm:$0xff]  ;;  %v730_v62 = vld [vmem:[%s3824_s7 + $0xf70] sm:$0xff] }
  0x90   : > { %727 = vst [vmem:[%s3829_s8 + $0x7e0] sm:$0xff] %v726_v60  ;;  %729 = vst [vmem:[%s3829_s8 + $0x7e8] sm:$0xff] %v728_v61  ;;  %v732_v63 = vld [vmem:[%s3824_s7 + $0xf78] sm:$0xff] }
  0x91   : > { %731 = vst [vmem:[%s3829_s8 + $0x7f0] sm:$0xff] %v730_v62  ;;  %733 = vst [vmem:[%s3829_s8 + $0x7f8] sm:$0xff] %v732_v63 }
  0x92 PF: > { %p3400_p6 = scmp.ge.s32.totalorder %s3747_s22, 1  ;;  %p738_p7 = scmp.lt.s32.totalorder %s3747_s22, 3 }
  0x94   : > { %p739_p8 = pnand %p3400_p6, %p738_p7 }
  0x95   : > { %s745_s9 = sand.u32 (!%p739_p8), 1, %s3731_s18   ;;  %v1057_v0 = vld [vmem:[%s4813_s2] sm:$0xf] (!%p739_p8)  ;;  %v3749_v1 = vmov (!%p739_p8), 0   ;;  %s3402_s18 = sshll.u32 (!%p739_p8), %s3739_s20, 5  ;;  %vm3087_vm0 = vcmask (!%p739_p8), 1043456  }
  0x96   : > { %742 = sbr.rel (%p739_p8) target bundleno = 782 (0x30e), region = 51  ;;  %s3401_s12 = sshll.u32 (!%p739_p8), %s745_s9, 11  ;;  %2375 = vmatprep.mubr.bf16.mxu0 (!%p739_p8), %v3749_v1  ;;  %2416 = vmatprep.mubr.bf16.mxu1 (!%p739_p8), %v3749_v1  ;;  %vm3083_vm1 = vcmask (!%p739_p8), 3072  }
  0x97   : > { %3707 = vset.pattern.permute.xlu0 (!%p739_p8), %v3749_v1  ;;  %s4349_s13 = scalar_lea.vmem (!%p739_p8), [#allocation2], %s3401_s12  ;;  %p785_p9 = scmp.lt.s32.totalorder (!%p739_p8), %s3402_s18, 63 }
  0x98   : > { %v801_v2 = vld [vmem:[%s4349_s13] sm:$0xff] (!%p739_p8)  ;;  %v802_v4 = vld [vmem:[%s4349_s13 + $0x8] sm:$0xff] (!%p739_p8)  ;;  %1060 = vperm.xlu0 (!%p739_p8), %3707, %v1057_v0   ;;  %v803_v0 = vld [vmem:[%s4349_s13 + $0x10] sm:$0xff] (!%p739_p8)  ;;  %p791_p10 = scmp.lt.s32.totalorder (!%p739_p8), %s3739_s20, 1 }
  0x99   : > { %v817_v3 = vld [vmem:[%s4349_s13 + $0x80] sm:$0xff] (!%p739_p8)  ;;  %v818_v6 = vld [vmem:[%s4349_s13 + $0x88] sm:$0xff] (!%p739_p8) }
  0x9a   : > { %v3407_v5 = vcombine.high (!%p739_p8), %v801_v2, %v817_v3  ;;  %v3406_v7 = vcombine.low (!%p739_p8), %v801_v2, %v817_v3  ;;  %v833_v8 = vld [vmem:[%s4349_s13 + $0x100] sm:$0xff] (!%p739_p8)  ;;  %v3409_v10 = vcombine.high (!%p739_p8), %v802_v4, %v818_v6  ;;  %v3408_v11 = vcombine.low (!%p739_p8), %v802_v4, %v818_v6  ;;  %v834_v13 = vld [vmem:[%s4349_s13 + $0x108] sm:$0xff] (!%p739_p8)  ;;  %v819_v2 = vld [vmem:[%s4349_s13 + $0x90] sm:$0xff] (!%p739_p8) }
  0x9b   : > { %v849_v9 = vld [vmem:[%s4349_s13 + $0x180] sm:$0xff] (!%p739_p8)  ;;  %v850_v14 = vld [vmem:[%s4349_s13 + $0x188] sm:$0xff] (!%p739_p8)  ;;  %v804_v3 = vld [vmem:[%s4349_s13 + $0x18] sm:$0xff] (!%p739_p8) }
  0x9c   : > { %v3439_v12 = vcombine.high (!%p739_p8), %v833_v8, %v849_v9  ;;  %v865_v15 = vld [vmem:[%s4349_s13 + $0x200] sm:$0xff] (!%p739_p8)  ;;  %2343 = vmatprep.subr.bf16.mxu0 (!%p739_p8), %v3407_v5  ;;  %v3441_v16 = vcombine.high (!%p739_p8), %v834_v13, %v850_v14  ;;  %v866_v18 = vld [vmem:[%s4349_s13 + $0x208] sm:$0xff] (!%p739_p8)  ;;  %2384 = vmatprep.subr.bf16.mxu1 (!%p739_p8), %v3409_v10  ;;  %v3438_v20 = vcombine.low (!%p739_p8), %v833_v8, %v849_v9  ;;  %v820_v4 = vld [vmem:[%s4349_s13 + $0x98] sm:$0xff] (!%p739_p8) }
  0x9d   : > { %v881_v17 = vld [vmem:[%s4349_s13 + $0x280] sm:$0xff]  ;;  %v882_v19 = vld [vmem:[%s4349_s13 + $0x288] sm:$0xff]  ;;  %2344 = vmatpush1.bf16.msra.mxu0 %v3406_v7  ;;  %2385 = vmatpush1.bf16.msra.mxu1 %v3408_v11  ;;  %v3440_v21 = vcombine.low %v834_v13, %v850_v14  ;;  %v3411_v7 = vcombine.high %v803_v0, %v819_v2  ;;  %v3413_v8 = vcombine.high %v804_v3, %v820_v4  ;;  %v835_v9 = vld [vmem:[%s4349_s13 + $0x110] sm:$0xff]  ;;  %s4824_s18 = smov (!%p785_p9, %s3402_s18), 63  ;;  %s4826_s20 = smov (!%p791_p10, %s3739_s20), 1 }
  0x9e   : > { %2345 = vmatprep.subr.bf16.mxu0 %v3439_v12  ;;  %v3471_v22 = vcombine.high %v865_v15, %v881_v17  ;;  %2386 = vmatprep.subr.bf16.mxu1 %v3441_v16  ;;  %v3473_v23 = vcombine.high %v866_v18, %v882_v19  ;;  %v897_v24 = vld [vmem:[%s4349_s13 + $0x300] sm:$0xff]  ;;  %v898_v26 = vld [vmem:[%s4349_s13 + $0x308] sm:$0xff]  ;;  %v3470_v28 = vcombine.low %v865_v15, %v881_v17  ;;  %v851_v10 = vld [vmem:[%s4349_s13 + $0x190] sm:$0xff]  ;;  %s3403_s24 = sshll.u32 %s4824_s18, 2  ;;  %s3404_s29 = sshll.u32 %s4826_s20, 2 }
  0x9f   : > { %v913_v25 = vld [vmem:[%s4349_s13 + $0x380] sm:$0xff]  ;;  %v914_v27 = vld [vmem:[%s4349_s13 + $0x388] sm:$0xff]  ;;  %v3472_v29 = vcombine.low %v866_v18, %v882_v19  ;;  %v836_v11 = vld [vmem:[%s4349_s13 + $0x118] sm:$0xff]  ;;  %v3410_v14 = vcombine.low %v803_v0, %v819_v2  ;;  %v3412_v15 = vcombine.low %v804_v3, %v820_v4  ;;  %v3443_v16 = vcombine.high %v835_v9, %v851_v10  ;;  %s4657_s28 = scalar_lea.vmem %s4814_s3, %s3403_s24  ;;  %s4724_s7 = scalar_lea.vmem %s4815_s4, %s3404_s29 }
  0xa0   : > { %v3503_v30 = vcombine.high %v897_v24, %v913_v25  ;;  %v3505_v31 = vcombine.high %v898_v26, %v914_v27  ;;  %v929_v32 = vld [vmem:[%s4349_s13 + $0x400] sm:$0xff]  ;;  %v930_v34 = vld [vmem:[%s4349_s13 + $0x408] sm:$0xff]  ;;  %v3502_v36 = vcombine.low %v897_v24, %v913_v25  ;;  %v3504_v37 = vcombine.low %v898_v26, %v914_v27  ;;  %v852_v12 = vld [vmem:[%s4349_s13 + $0x198] sm:$0xff]  ;;  %s798_s10 = scalar_lea.vmem %s4816_s5, %s3404_s29 }
  0xa1   : > { %2346 = vmatpush1.bf16.msra.mxu0 %v3438_v20  ;;  %2387 = vmatpush1.bf16.msra.mxu1 %v3440_v21  ;;  %v945_v33 = vld [vmem:[%s4349_s13 + $0x480] sm:$0xff]  ;;  %v946_v35 = vld [vmem:[%s4349_s13 + $0x488] sm:$0xff]  ;;  %v3445_v17 = vcombine.high %v836_v11, %v852_v12  ;;  %v867_v18 = vld [vmem:[%s4349_s13 + $0x210] sm:$0xff] }
  0xa2   : > { %2347 = vmatprep.subr.bf16.mxu0 %v3471_v22  ;;  %2388 = vmatprep.subr.bf16.mxu1 %v3473_v23  ;;  %v3535_v38 = vcombine.high %v929_v32, %v945_v33  ;;  %v3537_v39 = vcombine.high %v930_v34, %v946_v35  ;;  %v961_v40 = vld [vmem:[%s4349_s13 + $0x500] sm:$0xff]  ;;  %v962_v42 = vld [vmem:[%s4349_s13 + $0x508] sm:$0xff]  ;;  %v3534_v44 = vcombine.low %v929_v32, %v945_v33  ;;  %v883_v19 = vld [vmem:[%s4349_s13 + $0x290] sm:$0xff] }
  0xa3   : > { %v977_v41 = vld [vmem:[%s4349_s13 + $0x580] sm:$0xff]  ;;  %v978_v43 = vld [vmem:[%s4349_s13 + $0x588] sm:$0xff]  ;;  %v3536_v45 = vcombine.low %v930_v34, %v946_v35  ;;  %v868_v20 = vld [vmem:[%s4349_s13 + $0x218] sm:$0xff]  ;;  %v3442_v22 = vcombine.low %v835_v9, %v851_v10  ;;  %v3444_v23 = vcombine.low %v836_v11, %v852_v12  ;;  %v3475_v24 = vcombine.high %v867_v18, %v883_v19 }
  0xa4   : > { %v3567_v46 = vcombine.high %v961_v40, %v977_v41  ;;  %v3569_v47 = vcombine.high %v962_v42, %v978_v43  ;;  %v993_v48 = vld [vmem:[%s4349_s13 + $0x600] sm:$0xff]  ;;  %v994_v50 = vld [vmem:[%s4349_s13 + $0x608] sm:$0xff]  ;;  %v3566_v52 = vcombine.low %v961_v40, %v977_v41  ;;  %v3568_v53 = vcombine.low %v962_v42, %v978_v43  ;;  %v884_v21 = vld [vmem:[%s4349_s13 + $0x298] sm:$0xff] }
  0xa5   : > { %2348 = vmatpush1.bf16.msra.mxu0 %v3470_v28  ;;  %2389 = vmatpush1.bf16.msra.mxu1 %v3472_v29  ;;  %v1009_v49 = vld [vmem:[%s4349_s13 + $0x680] sm:$0xff]  ;;  %v1010_v51 = vld [vmem:[%s4349_s13 + $0x688] sm:$0xff]  ;;  %v3477_v25 = vcombine.high %v868_v20, %v884_v21  ;;  %v899_v26 = vld [vmem:[%s4349_s13 + $0x310] sm:$0xff] }
  0xa6   : > { %2349 = vmatprep.subr.bf16.mxu0 %v3503_v30  ;;  %2390 = vmatprep.subr.bf16.mxu1 %v3505_v31  ;;  %v3599_v54 = vcombine.high %v993_v48, %v1009_v49  ;;  %v3601_v55 = vcombine.high %v994_v50, %v1010_v51  ;;  %v1025_v56 = vld [vmem:[%s4349_s13 + $0x700] sm:$0xff]  ;;  %v1026_v58 = vld [vmem:[%s4349_s13 + $0x708] sm:$0xff]  ;;  %v3598_v60 = vcombine.low %v993_v48, %v1009_v49  ;;  %v915_v27 = vld [vmem:[%s4349_s13 + $0x390] sm:$0xff] }
  0xa7   : > { %v1041_v57 = vld [vmem:[%s4349_s13 + $0x780] sm:$0xff]  ;;  %v1042_v59 = vld [vmem:[%s4349_s13 + $0x788] sm:$0xff]  ;;  %v3600_v61 = vcombine.low %v994_v50, %v1010_v51  ;;  %v900_v28 = vld [vmem:[%s4349_s13 + $0x318] sm:$0xff]  ;;  %v3474_v30 = vcombine.low %v867_v18, %v883_v19  ;;  %v3476_v31 = vcombine.low %v868_v20, %v884_v21  ;;  %v3507_v32 = vcombine.high %v899_v26, %v915_v27 }
  0xa8   : > { %v3631_v62 = vcombine.high %v1025_v56, %v1041_v57  ;;  %v3633_v63 = vcombine.high %v1026_v58, %v1042_v59  ;;  %v3630_v5 = vcombine.low %v1025_v56, %v1041_v57  ;;  %v3632_v6 = vcombine.low %v1026_v58, %v1042_v59  ;;  %v4394_v13 = vld [vmem:[%s4811_s0] sm:$0x3]  ;;  %v916_v29 = vld [vmem:[%s4349_s13 + $0x398] sm:$0xff]  ;;  %v931_v34 = vld [vmem:[%s4349_s13 + $0x410] sm:$0xff] }
  0xa9   : > { %2350 = vmatpush1.bf16.msra.mxu0 %v3502_v36  ;;  %2391 = vmatpush1.bf16.msra.mxu1 %v3504_v37  ;;  %v3509_v33 = vcombine.high %v900_v28, %v916_v29  ;;  %v947_v35 = vld [vmem:[%s4349_s13 + $0x490] sm:$0xff]  ;;  %v932_v36 = vld [vmem:[%s4349_s13 + $0x418] sm:$0xff]  ;;  %v805_v3 = vld [vmem:[%s4349_s13 + $0x20] sm:$0xff] }
  0xaa   : > { %2351 = vmatprep.subr.bf16.mxu0 %v3535_v38  ;;  %2392 = vmatprep.subr.bf16.mxu1 %v3537_v39  ;;  %v948_v37 = vld [vmem:[%s4349_s13 + $0x498] sm:$0xff]  ;;  %v3506_v38 = vcombine.low %v899_v26, %v915_v27  ;;  %v3508_v39 = vcombine.low %v900_v28, %v916_v29  ;;  %v3539_v40 = vcombine.high %v931_v34, %v947_v35  ;;  %v963_v42 = vld [vmem:[%s4349_s13 + $0x510] sm:$0xff]  ;;  %v821_v4 = vld [vmem:[%s4349_s13 + $0xa0] sm:$0xff] }
  0xab   : > { %v3541_v41 = vcombine.high %v932_v36, %v948_v37  ;;  %v979_v43 = vld [vmem:[%s4349_s13 + $0x590] sm:$0xff]  ;;  %v3415_v9 = vcombine.high %v805_v3, %v821_v4  ;;  %v837_v11 = vld [vmem:[%s4349_s13 + $0x120] sm:$0xff] }
  0xac   : > { %v3571_v48 = vcombine.high %v963_v42, %v979_v43  ;;  %v995_v50 = vld [vmem:[%s4349_s13 + $0x610] sm:$0xff]  ;;  %v853_v12 = vld [vmem:[%s4349_s13 + $0x1a0] sm:$0xff] }
  0xad   : > { %2352 = vmatpush1.bf16.msra.mxu0 %v3534_v44  ;;  %2393 = vmatpush1.bf16.msra.mxu1 %v3536_v45  ;;  %v964_v44 = vld [vmem:[%s4349_s13 + $0x518] sm:$0xff]  ;;  %v1011_v51 = vld [vmem:[%s4349_s13 + $0x690] sm:$0xff]  ;;  %v3447_v18 = vcombine.high %v837_v11, %v853_v12  ;;  %v869_v20 = vld [vmem:[%s4349_s13 + $0x220] sm:$0xff] }
  0xae   : > { %2353 = vmatprep.subr.bf16.mxu0 %v3567_v46  ;;  %2394 = vmatprep.subr.bf16.mxu1 %v3569_v47  ;;  %v980_v45 = vld [vmem:[%s4349_s13 + $0x598] sm:$0xff]  ;;  %v3538_v46 = vcombine.low %v931_v34, %v947_v35  ;;  %v3540_v47 = vcombine.low %v932_v36, %v948_v37  ;;  %v3603_v56 = vcombine.high %v995_v50, %v1011_v51  ;;  %v1027_v58 = vld [vmem:[%s4349_s13 + $0x710] sm:$0xff]  ;;  %v885_v21 = vld [vmem:[%s4349_s13 + $0x2a0] sm:$0xff] }
  0xaf   : > { %v3573_v49 = vcombine.high %v964_v44, %v980_v45  ;;  %v1043_v59 = vld [vmem:[%s4349_s13 + $0x790] sm:$0xff]  ;;  %v3479_v26 = vcombine.high %v869_v20, %v885_v21  ;;  %v901_v28 = vld [vmem:[%s4349_s13 + $0x320] sm:$0xff] }
  0xb0   : > { %v3635_v0 = vcombine.high %v1027_v58, %v1043_v59  ;;  %v917_v29 = vld [vmem:[%s4349_s13 + $0x3a0] sm:$0xff] }
  0xb1   : > { %2354 = vmatpush1.bf16.msra.mxu0 %v3566_v52  ;;  %2395 = vmatpush1.bf16.msra.mxu1 %v3568_v53  ;;  %v996_v52 = vld [vmem:[%s4349_s13 + $0x618] sm:$0xff]  ;;  %v3511_v34 = vcombine.high %v901_v28, %v917_v29  ;;  %v933_v36 = vld [vmem:[%s4349_s13 + $0x420] sm:$0xff] }
  0xb2   : > { %2355 = vmatprep.subr.bf16.mxu0 %v3599_v54  ;;  %2396 = vmatprep.subr.bf16.mxu1 %v3601_v55  ;;  %v1012_v53 = vld [vmem:[%s4349_s13 + $0x698] sm:$0xff]  ;;  %v3570_v54 = vcombine.low %v963_v42, %v979_v43  ;;  %v3572_v55 = vcombine.low %v964_v44, %v980_v45  ;;  %v949_v37 = vld [vmem:[%s4349_s13 + $0x4a0] sm:$0xff] }
  0xb3   : > { %v3605_v57 = vcombine.high %v996_v52, %v1012_v53  ;;  %v3543_v42 = vcombine.high %v933_v36, %v949_v37  ;;  %v965_v44 = vld [vmem:[%s4349_s13 + $0x520] sm:$0xff] }
  0xb4   : > { %v981_v45 = vld [vmem:[%s4349_s13 + $0x5a0] sm:$0xff] }
  0xb5   : > { %2356 = vmatpush1.bf16.msra.mxu0 %v3598_v60  ;;  %2397 = vmatpush1.bf16.msra.mxu1 %v3600_v61  ;;  %v1028_v60 = vld [vmem:[%s4349_s13 + $0x718] sm:$0xff] }
  0xb6   : > { %2357 = vmatprep.subr.bf16.mxu0 %v3631_v62  ;;  %2398 = vmatprep.subr.bf16.mxu1 %v3633_v63  ;;  %v1044_v61 = vld [vmem:[%s4349_s13 + $0x798] sm:$0xff]  ;;  %v3602_v62 = vcombine.low %v995_v50, %v1011_v51  ;;  %v3604_v63 = vcombine.low %v996_v52, %v1012_v53  ;;  %v3575_v50 = vcombine.high %v965_v44, %v981_v45  ;;  %v997_v52 = vld [vmem:[%s4349_s13 + $0x620] sm:$0xff] }
  0xb7   : > { %v3637_v2 = vcombine.high %v1028_v60, %v1044_v61  ;;  %v1013_v53 = vld [vmem:[%s4349_s13 + $0x6a0] sm:$0xff] }
  0xb9   : > { %2358 = vmatpush1.bf16.msra.mxu0 %v3630_v5  ;;  %2399 = vmatpush1.bf16.msra.mxu1 %v3632_v6  ;;  %v806_v5 = vld [vmem:[%s4349_s13 + $0x28] sm:$0xff] }
  0xba   : > { %2425 = vmatprep.subr.bf16.mxu0 %v3411_v7  ;;  %2466 = vmatprep.subr.bf16.mxu1 %v3413_v8  ;;  %v822_v6 = vld [vmem:[%s4349_s13 + $0xa8] sm:$0xff]  ;;  %v3634_v7 = vcombine.low %v1027_v58, %v1043_v59  ;;  %v3636_v8 = vcombine.low %v1028_v60, %v1044_v61  ;;  %v3607_v58 = vcombine.high %v997_v52, %v1013_v53  ;;  %v1029_v60 = vld [vmem:[%s4349_s13 + $0x720] sm:$0xff] }
  0xbb   : > { %v3417_v10 = vcombine.high %v806_v5, %v822_v6  ;;  %v1045_v61 = vld [vmem:[%s4349_s13 + $0x7a0] sm:$0xff] }
  0xbc   : > { %2376 = vmatmul.mubr.bf16.vlgmr.msra.gmra.mrb[0].mxu0 %v4394_v13  ;;  %2417 = vmatmul.mubr.bf16.vlgmr.msra.gmra.mrb[0].mxu1 %v4394_v13 }
  0xbd   : > { %2426 = vmatpush1.bf16.msra.mxu0 %v3410_v14  ;;  %2467 = vmatpush1.bf16.msra.mxu1 %v3412_v15  ;;  %v838_v14 = vld [vmem:[%s4349_s13 + $0x128] sm:$0xff] }
  0xbe   : > { %2427 = vmatprep.subr.bf16.mxu0 %v3443_v16  ;;  %2468 = vmatprep.subr.bf16.mxu1 %v3445_v17  ;;  %v854_v15 = vld [vmem:[%s4349_s13 + $0x1a8] sm:$0xff]  ;;  %v3414_v16 = vcombine.low %v805_v3, %v821_v4  ;;  %v3416_v17 = vcombine.low %v806_v5, %v822_v6  ;;  %v3639_v3 = vcombine.high %v1029_v60, %v1045_v61  ;;  %v807_v5 = vld [vmem:[%s4349_s13 + $0x30] sm:$0xff] }
  0xbf   : > { %2457 = vmatprep.mubr.bf16.mxu0 %v3749_v1  ;;  %2498 = vmatprep.mubr.bf16.mxu1 %v3749_v1  ;;  %v3449_v19 = vcombine.high %v838_v14, %v854_v15  ;;  %v823_v6 = vld [vmem:[%s4349_s13 + $0xb0] sm:$0xff] }
  0xc1   : > { %2428 = vmatpush1.bf16.msra.mxu0 %v3442_v22  ;;  %2469 = vmatpush1.bf16.msra.mxu1 %v3444_v23  ;;  %v870_v22 = vld [vmem:[%s4349_s13 + $0x228] sm:$0xff] }
  0xc2   : > { %2429 = vmatprep.subr.bf16.mxu0 %v3475_v24  ;;  %2470 = vmatprep.subr.bf16.mxu1 %v3477_v25  ;;  %v886_v23 = vld [vmem:[%s4349_s13 + $0x2a8] sm:$0xff]  ;;  %v3446_v24 = vcombine.low %v837_v11, %v853_v12  ;;  %v3448_v25 = vcombine.low %v838_v14, %v854_v15  ;;  %v3419_v11 = vcombine.high %v807_v5, %v823_v6  ;;  %v839_v14 = vld [vmem:[%s4349_s13 + $0x130] sm:$0xff] }
  0xc3   : > { %v3481_v27 = vcombine.high %v870_v22, %v886_v23  ;;  %v855_v15 = vld [vmem:[%s4349_s13 + $0x1b0] sm:$0xff] }
  0xc5   : > { %2430 = vmatpush1.bf16.msra.mxu0 %v3474_v30  ;;  %2471 = vmatpush1.bf16.msra.mxu1 %v3476_v31  ;;  %v902_v30 = vld [vmem:[%s4349_s13 + $0x328] sm:$0xff] }
  0xc6   : > { %2431 = vmatprep.subr.bf16.mxu0 %v3507_v32  ;;  %2472 = vmatprep.subr.bf16.mxu1 %v3509_v33  ;;  %v918_v31 = vld [vmem:[%s4349_s13 + $0x3a8] sm:$0xff]  ;;  %v3478_v32 = vcombine.low %v869_v20, %v885_v21  ;;  %v3480_v33 = vcombine.low %v870_v22, %v886_v23  ;;  %v3451_v20 = vcombine.high %v839_v14, %v855_v15  ;;  %v871_v22 = vld [vmem:[%s4349_s13 + $0x230] sm:$0xff] }
  0xc7   : > { %v3513_v35 = vcombine.high %v902_v30, %v918_v31  ;;  %v887_v23 = vld [vmem:[%s4349_s13 + $0x2b0] sm:$0xff] }
  0xc9   : > { %2432 = vmatpush1.bf16.msra.mxu0 %v3506_v38  ;;  %2473 = vmatpush1.bf16.msra.mxu1 %v3508_v39  ;;  %v934_v38 = vld [vmem:[%s4349_s13 + $0x428] sm:$0xff] }
  0xca   : > { %2433 = vmatprep.subr.bf16.mxu0 %v3539_v40  ;;  %2474 = vmatprep.subr.bf16.mxu1 %v3541_v41  ;;  %v950_v39 = vld [vmem:[%s4349_s13 + $0x4a8] sm:$0xff]  ;;  %v3510_v40 = vcombine.low %v901_v28, %v917_v29  ;;  %v3512_v41 = vcombine.low %v902_v30, %v918_v31  ;;  %v3483_v28 = vcombine.high %v871_v22, %v887_v23  ;;  %v903_v30 = vld [vmem:[%s4349_s13 + $0x330] sm:$0xff] }
  0xcb   : > { %v3545_v43 = vcombine.high %v934_v38, %v950_v39  ;;  %v919_v31 = vld [vmem:[%s4349_s13 + $0x3b0] sm:$0xff] }
  0xcd   : > { %2434 = vmatpush1.bf16.msra.mxu0 %v3538_v46  ;;  %2475 = vmatpush1.bf16.msra.mxu1 %v3540_v47  ;;  %v966_v46 = vld [vmem:[%s4349_s13 + $0x528] sm:$0xff] }
  0xce   : > { %2435 = vmatprep.subr.bf16.mxu0 %v3571_v48  ;;  %2476 = vmatprep.subr.bf16.mxu1 %v3573_v49  ;;  %v982_v47 = vld [vmem:[%s4349_s13 + $0x5a8] sm:$0xff]  ;;  %v3542_v48 = vcombine.low %v933_v36, %v949_v37  ;;  %v3544_v49 = vcombine.low %v934_v38, %v950_v39  ;;  %v3515_v36 = vcombine.high %v903_v30, %v919_v31  ;;  %v935_v38 = vld [vmem:[%s4349_s13 + $0x430] sm:$0xff] }
  0xcf   : > { %v3577_v51 = vcombine.high %v966_v46, %v982_v47  ;;  %v951_v39 = vld [vmem:[%s4349_s13 + $0x4b0] sm:$0xff] }
  0xd1   : > { %2436 = vmatpush1.bf16.msra.mxu0 %v3570_v54  ;;  %2477 = vmatpush1.bf16.msra.mxu1 %v3572_v55  ;;  %v998_v54 = vld [vmem:[%s4349_s13 + $0x628] sm:$0xff] }
  0xd2   : > { %2437 = vmatprep.subr.bf16.mxu0 %v3603_v56  ;;  %2478 = vmatprep.subr.bf16.mxu1 %v3605_v57  ;;  %v1014_v55 = vld [vmem:[%s4349_s13 + $0x6a8] sm:$0xff]  ;;  %v3574_v56 = vcombine.low %v965_v44, %v981_v45  ;;  %v3576_v57 = vcombine.low %v966_v46, %v982_v47  ;;  %v3547_v44 = vcombine.high %v935_v38, %v951_v39  ;;  %v967_v46 = vld [vmem:[%s4349_s13 + $0x530] sm:$0xff] }
  0xd3   : > { %v3609_v59 = vcombine.high %v998_v54, %v1014_v55  ;;  %v983_v47 = vld [vmem:[%s4349_s13 + $0x5b0] sm:$0xff] }
  0xd5   : > { %2438 = vmatpush1.bf16.msra.mxu0 %v3602_v62  ;;  %2479 = vmatpush1.bf16.msra.mxu1 %v3604_v63  ;;  %v1030_v62 = vld [vmem:[%s4349_s13 + $0x728] sm:$0xff] }
  0xd6   : > { %2439 = vmatprep.subr.bf16.mxu0 %v3635_v0  ;;  %2480 = vmatprep.subr.bf16.mxu1 %v3637_v2  ;;  %v1046_v63 = vld [vmem:[%s4349_s13 + $0x7a8] sm:$0xff]  ;;  %v3606_v0 = vcombine.low %v997_v52, %v1013_v53  ;;  %v3608_v2 = vcombine.low %v998_v54, %v1014_v55  ;;  %v3579_v52 = vcombine.high %v967_v46, %v983_v47  ;;  %v999_v54 = vld [vmem:[%s4349_s13 + $0x630] sm:$0xff] }
  0xd7   : > { %v3641_v4 = vcombine.high %v1030_v62, %v1046_v63  ;;  %v1015_v55 = vld [vmem:[%s4349_s13 + $0x6b0] sm:$0xff] }
  0xd9   : > { %2440 = vmatpush1.bf16.msra.mxu0 %v3634_v7  ;;  %2481 = vmatpush1.bf16.msra.mxu1 %v3636_v8  ;;  %v808_v7 = vld [vmem:[%s4349_s13 + $0x38] sm:$0xff] }
  0xda   : > { %2507 = vmatprep.subr.bf16.mxu0 %v3415_v9  ;;  %2548 = vmatprep.subr.bf16.mxu1 %v3417_v10  ;;  %v824_v8 = vld [vmem:[%s4349_s13 + $0xb8] sm:$0xff]  ;;  %v3638_v9 = vcombine.low %v1029_v60, %v1045_v61  ;;  %v3640_v10 = vcombine.low %v1030_v62, %v1046_v63  ;;  %v3611_v60 = vcombine.high %v999_v54, %v1015_v55  ;;  %v1031_v62 = vld [vmem:[%s4349_s13 + $0x730] sm:$0xff] }
  0xdb   : > { %v3421_v12 = vcombine.high %v808_v7, %v824_v8  ;;  %v1047_v63 = vld [vmem:[%s4349_s13 + $0x7b0] sm:$0xff] }
  0xdc   : > { %2458 = vmatmul.mubr.bf16.vlgmr.msra.gmra.mrb[4].mxu0 %v4394_v13  ;;  %2499 = vmatmul.mubr.bf16.vlgmr.msra.gmra.mrb[4].mxu1 %v4394_v13 }
  0xdd   : > { %2508 = vmatpush1.bf16.msra.mxu0 %v3414_v16  ;;  %2549 = vmatpush1.bf16.msra.mxu1 %v3416_v17  ;;  %v840_v16 = vld [vmem:[%s4349_s13 + $0x138] sm:$0xff] }
  0xde   : > { %2509 = vmatprep.subr.bf16.mxu0 %v3447_v18  ;;  %2550 = vmatprep.subr.bf16.mxu1 %v3449_v19  ;;  %v856_v17 = vld [vmem:[%s4349_s13 + $0x1b8] sm:$0xff]  ;;  %v3418_v18 = vcombine.low %v807_v5, %v823_v6  ;;  %v3420_v19 = vcombine.low %v808_v7, %v824_v8  ;;  %v3643_v5 = vcombine.high %v1031_v62, %v1047_v63  ;;  %v809_v7 = vld [vmem:[%s4349_s13 + $0x40] sm:$0xff] }
  0xdf   : > { %2539 = vmatprep.mubr.bf16.mxu0 %v3749_v1  ;;  %2580 = vmatprep.mubr.bf16.mxu1 %v3749_v1  ;;  %v3453_v21 = vcombine.high %v840_v16, %v856_v17  ;;  %v825_v8 = vld [vmem:[%s4349_s13 + $0xc0] sm:$0xff] }
  0xe1   : > { %2510 = vmatpush1.bf16.msra.mxu0 %v3446_v24  ;;  %2551 = vmatpush1.bf16.msra.mxu1 %v3448_v25  ;;  %v872_v24 = vld [vmem:[%s4349_s13 + $0x238] sm:$0xff] }
  0xe2   : > { %2511 = vmatprep.subr.bf16.mxu0 %v3479_v26  ;;  %2552 = vmatprep.subr.bf16.mxu1 %v3481_v27  ;;  %v888_v25 = vld [vmem:[%s4349_s13 + $0x2b8] sm:$0xff]  ;;  %v3450_v26 = vcombine.low %v839_v14, %v855_v15  ;;  %v3452_v27 = vcombine.low %v840_v16, %v856_v17  ;;  %v3423_v14 = vcombine.high %v809_v7, %v825_v8  ;;  %v841_v16 = vld [vmem:[%s4349_s13 + $0x140] sm:$0xff] }
  0xe3   : > { %v3485_v29 = vcombine.high %v872_v24, %v888_v25  ;;  %v857_v17 = vld [vmem:[%s4349_s13 + $0x1c0] sm:$0xff] }
  0xe5   : > { %2512 = vmatpush1.bf16.msra.mxu0 %v3478_v32  ;;  %2553 = vmatpush1.bf16.msra.mxu1 %v3480_v33  ;;  %v904_v32 = vld [vmem:[%s4349_s13 + $0x338] sm:$0xff] }
  0xe6   : > { %2513 = vmatprep.subr.bf16.mxu0 %v3511_v34  ;;  %2554 = vmatprep.subr.bf16.mxu1 %v3513_v35  ;;  %v920_v33 = vld [vmem:[%s4349_s13 + $0x3b8] sm:$0xff]  ;;  %v3482_v34 = vcombine.low %v871_v22, %v887_v23  ;;  %v3484_v35 = vcombine.low %v872_v24, %v888_v25  ;;  %v3455_v22 = vcombine.high %v841_v16, %v857_v17  ;;  %v873_v24 = vld [vmem:[%s4349_s13 + $0x240] sm:$0xff] }
  0xe7   : > { %v3517_v37 = vcombine.high %v904_v32, %v920_v33  ;;  %v889_v25 = vld [vmem:[%s4349_s13 + $0x2c0] sm:$0xff] }
  0xe9   : > { %2514 = vmatpush1.bf16.msra.mxu0 %v3510_v40  ;;  %2555 = vmatpush1.bf16.msra.mxu1 %v3512_v41  ;;  %v936_v40 = vld [vmem:[%s4349_s13 + $0x438] sm:$0xff] }
  0xea   : > { %2515 = vmatprep.subr.bf16.mxu0 %v3543_v42  ;;  %2556 = vmatprep.subr.bf16.mxu1 %v3545_v43  ;;  %v952_v41 = vld [vmem:[%s4349_s13 + $0x4b8] sm:$0xff]  ;;  %v3514_v42 = vcombine.low %v903_v30, %v919_v31  ;;  %v3516_v43 = vcombine.low %v904_v32, %v920_v33  ;;  %v3487_v30 = vcombine.high %v873_v24, %v889_v25  ;;  %v905_v32 = vld [vmem:[%s4349_s13 + $0x340] sm:$0xff] }
  0xeb   : > { %v3549_v45 = vcombine.high %v936_v40, %v952_v41  ;;  %v921_v33 = vld [vmem:[%s4349_s13 + $0x3c0] sm:$0xff] }
  0xed   : > { %2516 = vmatpush1.bf16.msra.mxu0 %v3542_v48  ;;  %2557 = vmatpush1.bf16.msra.mxu1 %v3544_v49  ;;  %v968_v48 = vld [vmem:[%s4349_s13 + $0x538] sm:$0xff] }
  0xee   : > { %2517 = vmatprep.subr.bf16.mxu0 %v3575_v50  ;;  %2558 = vmatprep.subr.bf16.mxu1 %v3577_v51  ;;  %v984_v49 = vld [vmem:[%s4349_s13 + $0x5b8] sm:$0xff]  ;;  %v3546_v50 = vcombine.low %v935_v38, %v951_v39  ;;  %v3548_v51 = vcombine.low %v936_v40, %v952_v41  ;;  %v3519_v38 = vcombine.high %v905_v32, %v921_v33  ;;  %v937_v40 = vld [vmem:[%s4349_s13 + $0x440] sm:$0xff] }
  0xef   : > { %v3581_v53 = vcombine.high %v968_v48, %v984_v49  ;;  %v953_v41 = vld [vmem:[%s4349_s13 + $0x4c0] sm:$0xff] }
  0xf1   : > { %2518 = vmatpush1.bf16.msra.mxu0 %v3574_v56  ;;  %2559 = vmatpush1.bf16.msra.mxu1 %v3576_v57  ;;  %v1000_v56 = vld [vmem:[%s4349_s13 + $0x638] sm:$0xff] }
  0xf2   : > { %2519 = vmatprep.subr.bf16.mxu0 %v3607_v58  ;;  %2560 = vmatprep.subr.bf16.mxu1 %v3609_v59  ;;  %v1016_v57 = vld [vmem:[%s4349_s13 + $0x6b8] sm:$0xff]  ;;  %v3578_v58 = vcombine.low %v967_v46, %v983_v47  ;;  %v3580_v59 = vcombine.low %v968_v48, %v984_v49  ;;  %v3551_v46 = vcombine.high %v937_v40, %v953_v41  ;;  %v969_v48 = vld [vmem:[%s4349_s13 + $0x540] sm:$0xff] }
  0xf3   : > { %v3613_v61 = vcombine.high %v1000_v56, %v1016_v57  ;;  %v985_v49 = vld [vmem:[%s4349_s13 + $0x5c0] sm:$0xff] }
  0xf5   : > { %2520 = vmatpush1.bf16.msra.mxu0 %v3606_v0  ;;  %2561 = vmatpush1.bf16.msra.mxu1 %v3608_v2  ;;  %v1032_v0 = vld [vmem:[%s4349_s13 + $0x738] sm:$0xff] }
  0xf6   : > { %2521 = vmatprep.subr.bf16.mxu0 %v3639_v3  ;;  %2562 = vmatprep.subr.bf16.mxu1 %v3641_v4  ;;  %v1048_v2 = vld [vmem:[%s4349_s13 + $0x7b8] sm:$0xff]  ;;  %v3610_v3 = vcombine.low %v999_v54, %v1015_v55  ;;  %v3612_v4 = vcombine.low %v1000_v56, %v1016_v57  ;;  %v3583_v54 = vcombine.high %v969_v48, %v985_v49  ;;  %v1001_v56 = vld [vmem:[%s4349_s13 + $0x640] sm:$0xff] }
  0xf7   : > { %v3645_v6 = vcombine.high %v1032_v0, %v1048_v2  ;;  %v1017_v57 = vld [vmem:[%s4349_s13 + $0x6c0] sm:$0xff] }
  0xf9   : > { %2522 = vmatpush1.bf16.msra.mxu0 %v3638_v9  ;;  %2563 = vmatpush1.bf16.msra.mxu1 %v3640_v10  ;;  %v810_v9 = vld [vmem:[%s4349_s13 + $0x48] sm:$0xff] }
  0xfa   : > { %2589 = vmatprep.subr.bf16.mxu0 %v3419_v11  ;;  %2630 = vmatprep.subr.bf16.mxu1 %v3421_v12  ;;  %v826_v10 = vld [vmem:[%s4349_s13 + $0xc8] sm:$0xff]  ;;  %v3642_v11 = vcombine.low %v1031_v62, %v1047_v63  ;;  %v3644_v12 = vcombine.low %v1032_v0, %v1048_v2  ;;  %v3615_v62 = vcombine.high %v1001_v56, %v1017_v57  ;;  %v1033_v0 = vld [vmem:[%s4349_s13 + $0x740] sm:$0xff] }
  0xfb   : > { %v3425_v15 = vcombine.high %v810_v9, %v826_v10  ;;  %v1049_v2 = vld [vmem:[%s4349_s13 + $0x7c0] sm:$0xff] }
  0xfc   : > { %2540 = vmatmul.mubr.bf16.vlgmr.msra.gmra.mrb[8].mxu0 %v4394_v13  ;;  %2581 = vmatmul.mubr.bf16.vlgmr.msra.gmra.mrb[8].mxu1 %v4394_v13 }
  0xfd   : > { %2590 = vmatpush1.bf16.msra.mxu0 %v3418_v18  ;;  %2631 = vmatpush1.bf16.msra.mxu1 %v3420_v19  ;;  %v842_v18 = vld [vmem:[%s4349_s13 + $0x148] sm:$0xff] }
  0xfe   : > { %2591 = vmatprep.subr.bf16.mxu0 %v3451_v20  ;;  %2632 = vmatprep.subr.bf16.mxu1 %v3453_v21  ;;  %v858_v19 = vld [vmem:[%s4349_s13 + $0x1c8] sm:$0xff]  ;;  %v3422_v20 = vcombine.low %v809_v7, %v825_v8  ;;  %v3424_v21 = vcombine.low %v810_v9, %v826_v10  ;;  %v3647_v7 = vcombine.high %v1033_v0, %v1049_v2  ;;  %v811_v9 = vld [vmem:[%s4349_s13 + $0x50] sm:$0xff] }
  0xff   : > { %2621 = vmatprep.mubr.bf16.mxu0 %v3749_v1  ;;  %2662 = vmatprep.mubr.bf16.mxu1 %v3749_v1  ;;  %v3457_v23 = vcombine.high %v842_v18, %v858_v19  ;;  %v827_v10 = vld [vmem:[%s4349_s13 + $0xd0] sm:$0xff] }
 0x101   : > { %2592 = vmatpush1.bf16.msra.mxu0 %v3450_v26  ;;  %2633 = vmatpush1.bf16.msra.mxu1 %v3452_v27  ;;  %v874_v26 = vld [vmem:[%s4349_s13 + $0x248] sm:$0xff] }
 0x102   : > { %2593 = vmatprep.subr.bf16.mxu0 %v3483_v28  ;;  %2634 = vmatprep.subr.bf16.mxu1 %v3485_v29  ;;  %v890_v27 = vld [vmem:[%s4349_s13 + $0x2c8] sm:$0xff]  ;;  %v3454_v28 = vcombine.low %v841_v16, %v857_v17  ;;  %v3456_v29 = vcombine.low %v842_v18, %v858_v19  ;;  %v3427_v16 = vcombine.high %v811_v9, %v827_v10  ;;  %v843_v18 = vld [vmem:[%s4349_s13 + $0x150] sm:$0xff] }
 0x103   : > { %v3489_v31 = vcombine.high %v874_v26, %v890_v27  ;;  %v859_v19 = vld [vmem:[%s4349_s13 + $0x1d0] sm:$0xff] }
 0x105   : > { %2594 = vmatpush1.bf16.msra.mxu0 %v3482_v34  ;;  %2635 = vmatpush1.bf16.msra.mxu1 %v3484_v35  ;;  %v906_v34 = vld [vmem:[%s4349_s13 + $0x348] sm:$0xff] }
 0x106   : > { %2595 = vmatprep.subr.bf16.mxu0 %v3515_v36  ;;  %2636 = vmatprep.subr.bf16.mxu1 %v3517_v37  ;;  %v922_v35 = vld [vmem:[%s4349_s13 + $0x3c8] sm:$0xff]  ;;  %v3486_v36 = vcombine.low %v873_v24, %v889_v25  ;;  %v3488_v37 = vcombine.low %v874_v26, %v890_v27  ;;  %v3459_v24 = vcombine.high %v843_v18, %v859_v19  ;;  %v875_v26 = vld [vmem:[%s4349_s13 + $0x250] sm:$0xff] }
 0x107   : > { %v3521_v39 = vcombine.high %v906_v34, %v922_v35  ;;  %v891_v27 = vld [vmem:[%s4349_s13 + $0x2d0] sm:$0xff] }
 0x109   : > { %2596 = vmatpush1.bf16.msra.mxu0 %v3514_v42  ;;  %2637 = vmatpush1.bf16.msra.mxu1 %v3516_v43  ;;  %v938_v42 = vld [vmem:[%s4349_s13 + $0x448] sm:$0xff] }
 0x10a   : > { %2597 = vmatprep.subr.bf16.mxu0 %v3547_v44  ;;  %2638 = vmatprep.subr.bf16.mxu1 %v3549_v45  ;;  %v954_v43 = vld [vmem:[%s4349_s13 + $0x4c8] sm:$0xff]  ;;  %v3518_v44 = vcombine.low %v905_v32, %v921_v33  ;;  %v3520_v45 = vcombine.low %v906_v34, %v922_v35  ;;  %v3491_v32 = vcombine.high %v875_v26, %v891_v27  ;;  %v907_v34 = vld [vmem:[%s4349_s13 + $0x350] sm:$0xff] }
 0x10b   : > { %v3553_v47 = vcombine.high %v938_v42, %v954_v43  ;;  %v923_v35 = vld [vmem:[%s4349_s13 + $0x3d0] sm:$0xff] }
 0x10d   : > { %2598 = vmatpush1.bf16.msra.mxu0 %v3546_v50  ;;  %2639 = vmatpush1.bf16.msra.mxu1 %v3548_v51  ;;  %v970_v50 = vld [vmem:[%s4349_s13 + $0x548] sm:$0xff] }
 0x10e   : > { %2599 = vmatprep.subr.bf16.mxu0 %v3579_v52  ;;  %2640 = vmatprep.subr.bf16.mxu1 %v3581_v53  ;;  %v986_v51 = vld [vmem:[%s4349_s13 + $0x5c8] sm:$0xff]  ;;  %v3550_v52 = vcombine.low %v937_v40, %v953_v41  ;;  %v3552_v53 = vcombine.low %v938_v42, %v954_v43  ;;  %v3523_v40 = vcombine.high %v907_v34, %v923_v35  ;;  %v939_v42 = vld [vmem:[%s4349_s13 + $0x450] sm:$0xff] }
 0x10f   : > { %v3585_v55 = vcombine.high %v970_v50, %v986_v51  ;;  %v955_v43 = vld [vmem:[%s4349_s13 + $0x4d0] sm:$0xff] }
 0x111   : > { %2600 = vmatpush1.bf16.msra.mxu0 %v3578_v58  ;;  %2641 = vmatpush1.bf16.msra.mxu1 %v3580_v59  ;;  %v1002_v58 = vld [vmem:[%s4349_s13 + $0x648] sm:$0xff] }
 0x112   : > { %2601 = vmatprep.subr.bf16.mxu0 %v3611_v60  ;;  %2642 = vmatprep.subr.bf16.mxu1 %v3613_v61  ;;  %v1018_v59 = vld [vmem:[%s4349_s13 + $0x6c8] sm:$0xff]  ;;  %v3582_v60 = vcombine.low %v969_v48, %v985_v49  ;;  %v3584_v61 = vcombine.low %v970_v50, %v986_v51  ;;  %v3555_v48 = vcombine.high %v939_v42, %v955_v43  ;;  %v971_v50 = vld [vmem:[%s4349_s13 + $0x550] sm:$0xff] }
 0x113   : > { %v3617_v63 = vcombine.high %v1002_v58, %v1018_v59  ;;  %v987_v51 = vld [vmem:[%s4349_s13 + $0x5d0] sm:$0xff] }
 0x115   : > { %2602 = vmatpush1.bf16.msra.mxu0 %v3610_v3  ;;  %2643 = vmatpush1.bf16.msra.mxu1 %v3612_v4  ;;  %v1034_v3 = vld [vmem:[%s4349_s13 + $0x748] sm:$0xff] }
 0x116   : > { %2603 = vmatprep.subr.bf16.mxu0 %v3643_v5  ;;  %2644 = vmatprep.subr.bf16.mxu1 %v3645_v6  ;;  %v1050_v4 = vld [vmem:[%s4349_s13 + $0x7c8] sm:$0xff]  ;;  %v3614_v5 = vcombine.low %v1001_v56, %v1017_v57  ;;  %v3616_v6 = vcombine.low %v1002_v58, %v1018_v59  ;;  %v3587_v56 = vcombine.high %v971_v50, %v987_v51  ;;  %v1003_v58 = vld [vmem:[%s4349_s13 + $0x650] sm:$0xff] }
 0x117   : > { %v3649_v8 = vcombine.high %v1034_v3, %v1050_v4  ;;  %v1019_v59 = vld [vmem:[%s4349_s13 + $0x6d0] sm:$0xff] }
 0x119   : > { %2604 = vmatpush1.bf16.msra.mxu0 %v3642_v11  ;;  %2645 = vmatpush1.bf16.msra.mxu1 %v3644_v12  ;;  %v812_v11 = vld [vmem:[%s4349_s13 + $0x58] sm:$0xff] }
 0x11a   : > { %2671 = vmatprep.subr.bf16.mxu0 %v3423_v14  ;;  %2712 = vmatprep.subr.bf16.mxu1 %v3425_v15  ;;  %v828_v12 = vld [vmem:[%s4349_s13 + $0xd8] sm:$0xff]  ;;  %v3646_v14 = vcombine.low %v1033_v0, %v1049_v2  ;;  %v3648_v15 = vcombine.low %v1034_v3, %v1050_v4  ;;  %v3619_v0 = vcombine.high %v1003_v58, %v1019_v59  ;;  %v1035_v3 = vld [vmem:[%s4349_s13 + $0x750] sm:$0xff] }
 0x11b   : > { %v3429_v17 = vcombine.high %v812_v11, %v828_v12  ;;  %v1051_v4 = vld [vmem:[%s4349_s13 + $0x7d0] sm:$0xff] }
 0x11c   : > { %2622 = vmatmul.mubr.bf16.vlgmr.msra.gmra.mrb[12].mxu0 %v4394_v13  ;;  %2663 = vmatmul.mubr.bf16.vlgmr.msra.gmra.mrb[12].mxu1 %v4394_v13 }
 0x11d   : > { %2672 = vmatpush1.bf16.msra.mxu0 %v3422_v20  ;;  %2713 = vmatpush1.bf16.msra.mxu1 %v3424_v21  ;;  %v844_v20 = vld [vmem:[%s4349_s13 + $0x158] sm:$0xff] }
 0x11e   : > { %2673 = vmatprep.subr.bf16.mxu0 %v3455_v22  ;;  %2714 = vmatprep.subr.bf16.mxu1 %v3457_v23  ;;  %v860_v21 = vld [vmem:[%s4349_s13 + $0x1d8] sm:$0xff]  ;;  %v3426_v22 = vcombine.low %v811_v9, %v827_v10  ;;  %v3428_v23 = vcombine.low %v812_v11, %v828_v12  ;;  %v3651_v9 = vcombine.high %v1035_v3, %v1051_v4  ;;  %v813_v11 = vld [vmem:[%s4349_s13 + $0x60] sm:$0xff] }
 0x11f   : > { %2703 = vmatprep.mubr.bf16.mxu0 %v3749_v1  ;;  %2744 = vmatprep.mubr.bf16.mxu1 %v3749_v1  ;;  %v3461_v25 = vcombine.high %v844_v20, %v860_v21  ;;  %v829_v12 = vld [vmem:[%s4349_s13 + $0xe0] sm:$0xff] }
 0x121   : > { %2674 = vmatpush1.bf16.msra.mxu0 %v3454_v28  ;;  %2715 = vmatpush1.bf16.msra.mxu1 %v3456_v29  ;;  %v876_v28 = vld [vmem:[%s4349_s13 + $0x258] sm:$0xff] }
 0x122   : > { %2675 = vmatprep.subr.bf16.mxu0 %v3487_v30  ;;  %2716 = vmatprep.subr.bf16.mxu1 %v3489_v31  ;;  %v892_v29 = vld [vmem:[%s4349_s13 + $0x2d8] sm:$0xff]  ;;  %v3458_v30 = vcombine.low %v843_v18, %v859_v19  ;;  %v3460_v31 = vcombine.low %v844_v20, %v860_v21  ;;  %v3431_v18 = vcombine.high %v813_v11, %v829_v12  ;;  %v845_v20 = vld [vmem:[%s4349_s13 + $0x160] sm:$0xff] }
 0x123   : > { %v3493_v33 = vcombine.high %v876_v28, %v892_v29  ;;  %v861_v21 = vld [vmem:[%s4349_s13 + $0x1e0] sm:$0xff] }
 0x125   : > { %2676 = vmatpush1.bf16.msra.mxu0 %v3486_v36  ;;  %2717 = vmatpush1.bf16.msra.mxu1 %v3488_v37  ;;  %v908_v36 = vld [vmem:[%s4349_s13 + $0x358] sm:$0xff] }
 0x126   : > { %2677 = vmatprep.subr.bf16.mxu0 %v3519_v38  ;;  %2718 = vmatprep.subr.bf16.mxu1 %v3521_v39  ;;  %v924_v37 = vld [vmem:[%s4349_s13 + $0x3d8] sm:$0xff]  ;;  %v3490_v38 = vcombine.low %v875_v26, %v891_v27  ;;  %v3492_v39 = vcombine.low %v876_v28, %v892_v29  ;;  %v3463_v26 = vcombine.high %v845_v20, %v861_v21  ;;  %v877_v28 = vld [vmem:[%s4349_s13 + $0x260] sm:$0xff] }
 0x127   : > { %v3525_v41 = vcombine.high %v908_v36, %v924_v37  ;;  %v893_v29 = vld [vmem:[%s4349_s13 + $0x2e0] sm:$0xff] }
 0x129   : > { %2678 = vmatpush1.bf16.msra.mxu0 %v3518_v44  ;;  %2719 = vmatpush1.bf16.msra.mxu1 %v3520_v45  ;;  %v940_v44 = vld [vmem:[%s4349_s13 + $0x458] sm:$0xff] }
 0x12a   : > { %2679 = vmatprep.subr.bf16.mxu0 %v3551_v46  ;;  %2720 = vmatprep.subr.bf16.mxu1 %v3553_v47  ;;  %v956_v45 = vld [vmem:[%s4349_s13 + $0x4d8] sm:$0xff]  ;;  %v3522_v46 = vcombine.low %v907_v34, %v923_v35  ;;  %v3524_v47 = vcombine.low %v908_v36, %v924_v37  ;;  %v3495_v35 = vcombine.high %v877_v28, %v893_v29  ;;  %v909_v36 = vld [vmem:[%s4349_s13 + $0x360] sm:$0xff] }
 0x12b   : > { %v3557_v49 = vcombine.high %v940_v44, %v956_v45  ;;  %v925_v37 = vld [vmem:[%s4349_s13 + $0x3e0] sm:$0xff] }
 0x12d   : > { %2680 = vmatpush1.bf16.msra.mxu0 %v3550_v52  ;;  %2721 = vmatpush1.bf16.msra.mxu1 %v3552_v53  ;;  %v972_v52 = vld [vmem:[%s4349_s13 + $0x558] sm:$0xff] }
 0x12e   : > { %2681 = vmatprep.subr.bf16.mxu0 %v3583_v54  ;;  %2722 = vmatprep.subr.bf16.mxu1 %v3585_v55  ;;  %v988_v53 = vld [vmem:[%s4349_s13 + $0x5d8] sm:$0xff]  ;;  %v3554_v54 = vcombine.low %v939_v42, %v955_v43  ;;  %v3556_v55 = vcombine.low %v940_v44, %v956_v45  ;;  %v3527_v42 = vcombine.high %v909_v36, %v925_v37  ;;  %v941_v44 = vld [vmem:[%s4349_s13 + $0x460] sm:$0xff] }
 0x12f   : > { %v3589_v57 = vcombine.high %v972_v52, %v988_v53  ;;  %v957_v45 = vld [vmem:[%s4349_s13 + $0x4e0] sm:$0xff] }
 0x131   : > { %2682 = vmatpush1.bf16.msra.mxu0 %v3582_v60  ;;  %2723 = vmatpush1.bf16.msra.mxu1 %v3584_v61  ;;  %v1004_v60 = vld [vmem:[%s4349_s13 + $0x658] sm:$0xff] }
 0x132   : > { %2683 = vmatprep.subr.bf16.mxu0 %v3615_v62  ;;  %2724 = vmatprep.subr.bf16.mxu1 %v3617_v63  ;;  %v1020_v61 = vld [vmem:[%s4349_s13 + $0x6d8] sm:$0xff]  ;;  %v3586_v62 = vcombine.low %v971_v50, %v987_v51  ;;  %v3588_v63 = vcombine.low %v972_v52, %v988_v53  ;;  %v3559_v50 = vcombine.high %v941_v44, %v957_v45  ;;  %v973_v52 = vld [vmem:[%s4349_s13 + $0x560] sm:$0xff] }
 0x133   : > { %v3621_v2 = vcombine.high %v1004_v60, %v1020_v61  ;;  %v989_v53 = vld [vmem:[%s4349_s13 + $0x5e0] sm:$0xff] }
 0x135   : > { %2684 = vmatpush1.bf16.msra.mxu0 %v3614_v5  ;;  %2725 = vmatpush1.bf16.msra.mxu1 %v3616_v6  ;;  %v1036_v5 = vld [vmem:[%s4349_s13 + $0x758] sm:$0xff] }
 0x136   : > { %2685 = vmatprep.subr.bf16.mxu0 %v3647_v7  ;;  %2726 = vmatprep.subr.bf16.mxu1 %v3649_v8  ;;  %v1052_v6 = vld [vmem:[%s4349_s13 + $0x7d8] sm:$0xff]  ;;  %v3618_v7 = vcombine.low %v1003_v58, %v1019_v59  ;;  %v3620_v8 = vcombine.low %v1004_v60, %v1020_v61  ;;  %v3591_v58 = vcombine.high %v973_v52, %v989_v53  ;;  %v1005_v60 = vld [vmem:[%s4349_s13 + $0x660] sm:$0xff] }
 0x137   : > { %v3653_v10 = vcombine.high %v1036_v5, %v1052_v6  ;;  %v1021_v61 = vld [vmem:[%s4349_s13 + $0x6e0] sm:$0xff] }
 0x139   : > { %2686 = vmatpush1.bf16.msra.mxu0 %v3646_v14  ;;  %2727 = vmatpush1.bf16.msra.mxu1 %v3648_v15  ;;  %v814_v14 = vld [vmem:[%s4349_s13 + $0x68] sm:$0xff] }
 0x13a   : > { %2753 = vmatprep.subr.bf16.mxu0 %v3427_v16  ;;  %2794 = vmatprep.subr.bf16.mxu1 %v3429_v17  ;;  %v830_v15 = vld [vmem:[%s4349_s13 + $0xe8] sm:$0xff]  ;;  %v3650_v16 = vcombine.low %v1035_v3, %v1051_v4  ;;  %v3652_v17 = vcombine.low %v1036_v5, %v1052_v6  ;;  %v3623_v3 = vcombine.high %v1005_v60, %v1021_v61  ;;  %v1037_v5 = vld [vmem:[%s4349_s13 + $0x760] sm:$0xff] }
 0x13b   : > { %v3433_v19 = vcombine.high %v814_v14, %v830_v15  ;;  %v1053_v6 = vld [vmem:[%s4349_s13 + $0x7e0] sm:$0xff] }
 0x13c   : > { %2704 = vmatmul.mubr.bf16.vlgmr.msra.gmra.mrb[16].mxu0 %v4394_v13  ;;  %2745 = vmatmul.mubr.bf16.vlgmr.msra.gmra.mrb[16].mxu1 %v4394_v13 }
 0x13d   : > { %2754 = vmatpush1.bf16.msra.mxu0 %v3426_v22  ;;  %2795 = vmatpush1.bf16.msra.mxu1 %v3428_v23  ;;  %v846_v22 = vld [vmem:[%s4349_s13 + $0x168] sm:$0xff] }
 0x13e   : > { %2755 = vmatprep.subr.bf16.mxu0 %v3459_v24  ;;  %2796 = vmatprep.subr.bf16.mxu1 %v3461_v25  ;;  %v862_v23 = vld [vmem:[%s4349_s13 + $0x1e8] sm:$0xff]  ;;  %v3430_v24 = vcombine.low %v813_v11, %v829_v12  ;;  %v3432_v25 = vcombine.low %v814_v14, %v830_v15  ;;  %v3655_v11 = vcombine.high %v1037_v5, %v1053_v6  ;;  %v815_v14 = vld [vmem:[%s4349_s13 + $0x70] sm:$0xff] }
 0x13f   : > { %2785 = vmatprep.mubr.bf16.mxu0 %v3749_v1  ;;  %2826 = vmatprep.mubr.bf16.mxu1 %v3749_v1  ;;  %v3465_v27 = vcombine.high %v846_v22, %v862_v23  ;;  %v3464_v34 = vcombine.low %v846_v22, %v862_v23  ;;  %v831_v15 = vld [vmem:[%s4349_s13 + $0xf0] sm:$0xff] }
 0x140   : > { %v847_v22 = vld [vmem:[%s4349_s13 + $0x170] sm:$0xff] }
 0x141   : > { %2756 = vmatpush1.bf16.msra.mxu0 %v3458_v30  ;;  %2797 = vmatpush1.bf16.msra.mxu1 %v3460_v31  ;;  %v878_v30 = vld [vmem:[%s4349_s13 + $0x268] sm:$0xff]  ;;  %v863_v23 = vld [vmem:[%s4349_s13 + $0x1f0] sm:$0xff] }
 0x142   : > { %2757 = vmatprep.subr.bf16.mxu0 %v3491_v32  ;;  %2798 = vmatprep.subr.bf16.mxu1 %v3493_v33  ;;  %v894_v31 = vld [vmem:[%s4349_s13 + $0x2e8] sm:$0xff]  ;;  %v4584_v32 = vld [vmem:[%s4811_s0] sm:$0x3]  ;;  %v3462_v33 = vcombine.low %v845_v20, %v861_v21  ;;  %v3435_v20 = vcombine.high %v815_v14, %v831_v15 }
 0x145   : > { %2758 = vmatpush1.bf16.msra.mxu0 %v3490_v38  ;;  %2799 = vmatpush1.bf16.msra.mxu1 %v3492_v39  ;;  %v910_v38 = vld [vmem:[%s4349_s13 + $0x368] sm:$0xff] }
 0x146   : > { %2759 = vmatprep.subr.bf16.mxu0 %v3523_v40  ;;  %2800 = vmatprep.subr.bf16.mxu1 %v3525_v41  ;;  %v926_v39 = vld [vmem:[%s4349_s13 + $0x3e8] sm:$0xff]  ;;  %v3494_v40 = vcombine.low %v877_v28, %v893_v29  ;;  %v3496_v41 = vcombine.low %v878_v30, %v894_v31  ;;  %v3467_v28 = vcombine.high %v847_v22, %v863_v23 }
 0x147   : > { %v3529_v43 = vcombine.high %v910_v38, %v926_v39 }
 0x149   : > { %2760 = vmatpush1.bf16.msra.mxu0 %v3522_v46  ;;  %2801 = vmatpush1.bf16.msra.mxu1 %v3524_v47  ;;  %v942_v46 = vld [vmem:[%s4349_s13 + $0x468] sm:$0xff] }
 0x14a   : > { %2761 = vmatprep.subr.bf16.mxu0 %v3555_v48  ;;  %2802 = vmatprep.subr.bf16.mxu1 %v3557_v49  ;;  %v958_v47 = vld [vmem:[%s4349_s13 + $0x4e8] sm:$0xff]  ;;  %v3526_v48 = vcombine.low %v909_v36, %v925_v37  ;;  %v3528_v49 = vcombine.low %v910_v38, %v926_v39  ;;  %v911_v38 = vld [vmem:[%s4349_s13 + $0x370] sm:$0xff] }
 0x14b   : > { %v3561_v51 = vcombine.high %v942_v46, %v958_v47  ;;  %v927_v39 = vld [vmem:[%s4349_s13 + $0x3f0] sm:$0xff] }
 0x14d   : > { %2762 = vmatpush1.bf16.msra.mxu0 %v3554_v54  ;;  %2803 = vmatpush1.bf16.msra.mxu1 %v3556_v55  ;;  %v974_v54 = vld [vmem:[%s4349_s13 + $0x568] sm:$0xff] }
 0x14e   : > { %2763 = vmatprep.subr.bf16.mxu0 %v3587_v56  ;;  %2804 = vmatprep.subr.bf16.mxu1 %v3589_v57  ;;  %v990_v55 = vld [vmem:[%s4349_s13 + $0x5e8] sm:$0xff]  ;;  %v3558_v56 = vcombine.low %v941_v44, %v957_v45  ;;  %v3560_v57 = vcombine.low %v942_v46, %v958_v47  ;;  %v3531_v44 = vcombine.high %v911_v38, %v927_v39  ;;  %v943_v46 = vld [vmem:[%s4349_s13 + $0x470] sm:$0xff] }
 0x14f   : > { %v3593_v59 = vcombine.high %v974_v54, %v990_v55  ;;  %v959_v47 = vld [vmem:[%s4349_s13 + $0x4f0] sm:$0xff] }
 0x151   : > { %2764 = vmatpush1.bf16.msra.mxu0 %v3586_v62  ;;  %2805 = vmatpush1.bf16.msra.mxu1 %v3588_v63  ;;  %v1006_v62 = vld [vmem:[%s4349_s13 + $0x668] sm:$0xff] }
 0x152   : > { %2765 = vmatprep.subr.bf16.mxu0 %v3619_v0  ;;  %2806 = vmatprep.subr.bf16.mxu1 %v3621_v2  ;;  %v1022_v63 = vld [vmem:[%s4349_s13 + $0x6e8] sm:$0xff]  ;;  %v3590_v0 = vcombine.low %v973_v52, %v989_v53  ;;  %v3592_v2 = vcombine.low %v974_v54, %v990_v55  ;;  %v975_v53 = vld [vmem:[%s4349_s13 + $0x570] sm:$0xff]  ;;  %v976_v55 = vld [vmem:[%s4349_s13 + $0x578] sm:$0xff] }
 0x153   : > { %v3625_v4 = vcombine.high %v1006_v62, %v1022_v63  ;;  %v991_v54 = vld [vmem:[%s4349_s13 + $0x5f0] sm:$0xff] }
 0x155   : > { %2766 = vmatpush1.bf16.msra.mxu0 %v3618_v7  ;;  %2807 = vmatpush1.bf16.msra.mxu1 %v3620_v8  ;;  %v1038_v7 = vld [vmem:[%s4349_s13 + $0x768] sm:$0xff] }
 0x156   : > { %2767 = vmatprep.subr.bf16.mxu0 %v3651_v9  ;;  %2808 = vmatprep.subr.bf16.mxu1 %v3653_v10  ;;  %v1054_v8 = vld [vmem:[%s4349_s13 + $0x7e8] sm:$0xff]  ;;  %v3622_v9 = vcombine.low %v1005_v60, %v1021_v61  ;;  %v3624_v10 = vcombine.low %v1006_v62, %v1022_v63  ;;  %v1007_v61 = vld [vmem:[%s4349_s13 + $0x670] sm:$0xff]  ;;  %v1008_v63 = vld [vmem:[%s4349_s13 + $0x678] sm:$0xff] }
 0x157   : > { %v3657_v12 = vcombine.high %v1038_v7, %v1054_v8  ;;  %v1023_v62 = vld [vmem:[%s4349_s13 + $0x6f0] sm:$0xff] }
 0x159   : > { %2768 = vmatpush1.bf16.msra.mxu0 %v3650_v16  ;;  %2809 = vmatpush1.bf16.msra.mxu1 %v3652_v17  ;;  %v816_v16 = vld [vmem:[%s4349_s13 + $0x78] sm:$0xff] }
 0x15a   : > { %2835 = vmatprep.subr.bf16.mxu0 %v3431_v18  ;;  %2876 = vmatprep.subr.bf16.mxu1 %v3433_v19  ;;  %v832_v17 = vld [vmem:[%s4349_s13 + $0xf8] sm:$0xff]  ;;  %v3654_v18 = vcombine.low %v1037_v5, %v1053_v6  ;;  %v3656_v19 = vcombine.low %v1038_v7, %v1054_v8  ;;  %v3627_v5 = vcombine.high %v1007_v61, %v1023_v62  ;;  %v1039_v6 = vld [vmem:[%s4349_s13 + $0x770] sm:$0xff] }
 0x15b   : > { %v3437_v21 = vcombine.high %v816_v16, %v832_v17  ;;  %v1055_v7 = vld [vmem:[%s4349_s13 + $0x7f0] sm:$0xff] }
 0x15c   : > { %2786 = vmatmul.mubr.bf16.vlgmr.msra.gmra.mrb[20].mxu0 %v4394_v13  ;;  %2827 = vmatmul.mubr.bf16.vlgmr.msra.gmra.mrb[20].mxu1 %v4584_v32  ;;  %v3497_v13 = vcombine.high %v878_v30, %v894_v31  ;;  %v879_v30 = vld [vmem:[%s4349_s13 + $0x270] sm:$0xff] }
 0x15d   : > { %2836 = vmatpush1.bf16.msra.mxu0 %v3430_v24  ;;  %2877 = vmatpush1.bf16.msra.mxu1 %v3432_v25  ;;  %v848_v24 = vld [vmem:[%s4349_s13 + $0x178] sm:$0xff]  ;;  %v895_v31 = vld [vmem:[%s4349_s13 + $0x2f0] sm:$0xff] }
 0x15e   : > { %2837 = vmatprep.subr.bf16.mxu0 %v3463_v26  ;;  %2878 = vmatprep.subr.bf16.mxu1 %v3465_v27  ;;  %v864_v25 = vld [vmem:[%s4349_s13 + $0x1f8] sm:$0xff]  ;;  %v3434_v26 = vcombine.low %v815_v14, %v831_v15  ;;  %v3436_v27 = vcombine.low %v816_v16, %v832_v17  ;;  %v3499_v36 = vcombine.high %v879_v30, %v895_v31 }
 0x15f   : > { %2867 = vmatprep.mubr.bf16.mxu0 %v3749_v1  ;;  %2908 = vmatprep.mubr.bf16.mxu1 %v3749_v1  ;;  %v3469_v29 = vcombine.high %v848_v24, %v864_v25  ;;  %v3626_v16 = vcombine.low %v1007_v61, %v1023_v62 }
 0x161   : > { %2838 = vmatpush1.bf16.msra.mxu0 %v3462_v33  ;;  %2879 = vmatpush1.bf16.msra.mxu1 %v3464_v34  ;;  %v880_v33 = vld [vmem:[%s4349_s13 + $0x278] sm:$0xff] }
 0x162   : > { %2839 = vmatprep.subr.bf16.mxu0 %v3495_v35  ;;  %2880 = vmatprep.subr.bf16.mxu1 %v3497_v13  ;;  %v896_v34 = vld [vmem:[%s4349_s13 + $0x2f8] sm:$0xff]  ;;  %v3466_v35 = vcombine.low %v847_v22, %v863_v23  ;;  %v3468_v13 = vcombine.low %v848_v24, %v864_v25  ;;  %v3659_v22 = vcombine.high %v1039_v6, %v1055_v7 }
 0x163   : > { %v3501_v37 = vcombine.high %v880_v33, %v896_v34 }
 0x165   : > { %2840 = vmatpush1.bf16.msra.mxu0 %v3494_v40  ;;  %2881 = vmatpush1.bf16.msra.mxu1 %v3496_v41  ;;  %v912_v40 = vld [vmem:[%s4349_s13 + $0x378] sm:$0xff] }
 0x166   : > { %2841 = vmatprep.subr.bf16.mxu0 %v3527_v42  ;;  %2882 = vmatprep.subr.bf16.mxu1 %v3529_v43  ;;  %v928_v41 = vld [vmem:[%s4349_s13 + $0x3f8] sm:$0xff]  ;;  %v3498_v42 = vcombine.low %v879_v30, %v895_v31  ;;  %v3500_v43 = vcombine.low %v880_v33, %v896_v34 }
 0x167   : > { %v3533_v45 = vcombine.high %v912_v40, %v928_v41 }
 0x169   : > { %2842 = vmatpush1.bf16.msra.mxu0 %v3526_v48  ;;  %2883 = vmatpush1.bf16.msra.mxu1 %v3528_v49  ;;  %v944_v48 = vld [vmem:[%s4349_s13 + $0x478] sm:$0xff] }
 0x16a   : > { %2843 = vmatprep.subr.bf16.mxu0 %v3559_v50  ;;  %2884 = vmatprep.subr.bf16.mxu1 %v3561_v51  ;;  %v960_v49 = vld [vmem:[%s4349_s13 + $0x4f8] sm:$0xff]  ;;  %v3530_v50 = vcombine.low %v911_v38, %v927_v39  ;;  %v3563_v51 = vcombine.high %v943_v46, %v959_v47 }
 0x16b   : > { %v3565_v52 = vcombine.high %v944_v48, %v960_v49 }
 0x16d   : > { %2844 = vmatpush1.bf16.msra.mxu0 %v3558_v56  ;;  %2885 = vmatpush1.bf16.msra.mxu1 %v3560_v57  ;;  %v992_v56 = vld [vmem:[%s4349_s13 + $0x5f8] sm:$0xff]  ;;  %v3562_v57 = vcombine.low %v943_v46, %v959_v47 }
 0x16e   : > { %2845 = vmatprep.subr.bf16.mxu0 %v3591_v58  ;;  %2886 = vmatprep.subr.bf16.mxu1 %v3593_v59  ;;  %v3564_v58 = vcombine.low %v944_v48, %v960_v49  ;;  %v3595_v59 = vcombine.high %v975_v53, %v991_v54  ;;  %v3597_v60 = vcombine.high %v976_v55, %v992_v56 }
 0x171   : > { %2846 = vmatpush1.bf16.msra.mxu0 %v3590_v0  ;;  %2887 = vmatpush1.bf16.msra.mxu1 %v3592_v2  ;;  %v1024_v0 = vld [vmem:[%s4349_s13 + $0x6f8] sm:$0xff]  ;;  %v4644_v2 = vpop.permute.xlu0 %1060 }
 0x172   : > { %2847 = vmatprep.subr.bf16.mxu0 %v3623_v3  ;;  %2888 = vmatprep.subr.bf16.mxu1 %v3625_v4  ;;  %v3594_v3 = vcombine.low %v975_v53, %v991_v54  ;;  %v3596_v4 = vcombine.low %v976_v55, %v992_v56 }
 0x175   : > { %2848 = vmatpush1.bf16.msra.mxu0 %v3622_v9  ;;  %2889 = vmatpush1.bf16.msra.mxu1 %v3624_v10  ;;  %v3629_v9 = vcombine.high %v1008_v63, %v1024_v0  ;;  %v1040_v10 = vld [vmem:[%s4349_s13 + $0x778] sm:$0xff] }
 0x176   : > { %2849 = vmatprep.subr.bf16.mxu0 %v3655_v11  ;;  %2890 = vmatprep.subr.bf16.mxu1 %v3657_v12  ;;  %v1056_v11 = vld [vmem:[%s4349_s13 + $0x7f8] sm:$0xff] }
 0x179   : > { %2850 = vmatpush1.bf16.msra.mxu0 %v3654_v18  ;;  %2891 = vmatpush1.bf16.msra.mxu1 %v3656_v19 }
 0x17a   : > { %2917 = vmatprep.subr.bf16.mxu0 %v3435_v20  ;;  %2958 = vmatprep.subr.bf16.mxu1 %v3437_v21  ;;  %v3628_v21 = vcombine.low %v1008_v63, %v1024_v0 }
 0x17c   : > { %2868 = vmatmul.mubr.bf16.vlgmr.msra.gmra.mrb[24].mxu0 %v4584_v32  ;;  %2909 = vmatmul.mubr.bf16.vlgmr.msra.gmra.mrb[24].mxu1 %v4584_v32 }
 0x17d   : > { %2918 = vmatpush1.bf16.msra.mxu0 %v3434_v26  ;;  %2959 = vmatpush1.bf16.msra.mxu1 %v3436_v27 }
 0x17e   : > { %2919 = vmatprep.subr.bf16.mxu0 %v3467_v28  ;;  %2960 = vmatprep.subr.bf16.mxu1 %v3469_v29  ;;  %v3661_v28 = vcombine.high %v1040_v10, %v1056_v11 }
 0x17f   : > { %2949 = vmatprep.mubr.bf16.mxu0 %v3749_v1  ;;  %2990 = vmatprep.mubr.bf16.mxu1 %v3749_v1  ;;  %v3532_v1 = vcombine.low %v912_v40, %v928_v41  ;;  %v3658_v41 = vcombine.low %v1039_v6, %v1055_v7 }
 0x181   : > { %2920 = vmatpush1.bf16.msra.mxu0 %v3466_v35  ;;  %2961 = vmatpush1.bf16.msra.mxu1 %v3468_v13 }
 0x182   : > { %2921 = vmatprep.subr.bf16.mxu0 %v3499_v36  ;;  %2962 = vmatprep.subr.bf16.mxu1 %v3501_v37 }
 0x185   : > { %2922 = vmatpush1.bf16.msra.mxu0 %v3498_v42  ;;  %2963 = vmatpush1.bf16.msra.mxu1 %v3500_v43 }
 0x186   : > { %2923 = vmatprep.subr.bf16.mxu0 %v3531_v44  ;;  %2964 = vmatprep.subr.bf16.mxu1 %v3533_v45  ;;  %v3660_v45 = vcombine.low %v1040_v10, %v1056_v11 }
 0x189   : > { %2924 = vmatpush1.bf16.msra.mxu0 %v3530_v50  ;;  %2965 = vmatpush1.bf16.msra.mxu1 %v3532_v1 }
 0x18a   : > { %2925 = vmatprep.subr.bf16.mxu0 %v3563_v51  ;;  %2966 = vmatprep.subr.bf16.mxu1 %v3565_v52 }
 0x18d   : > { %2926 = vmatpush1.bf16.msra.mxu0 %v3562_v57  ;;  %2967 = vmatpush1.bf16.msra.mxu1 %v3564_v58 }
 0x18e   : > { %2927 = vmatprep.subr.bf16.mxu0 %v3595_v59  ;;  %2968 = vmatprep.subr.bf16.mxu1 %v3597_v60 }
 0x18f   : > { %v2377_v8 = vpop.f32.mrb[0].mxu0  ;;  %v2418_v15 = vpop.f32.mrb[0].mxu1 }
 0x190   : > { %v2378_v12 = vadd.f32 %v2377_v8, %v4644_v2  ;;  %v2379_v14 = vpop.f32.mrb[1].mxu0  ;;  %v2419_v19 = vadd.f32 %v2418_v15, %v4644_v2  ;;  %v2420_v20 = vpop.f32.mrb[1].mxu1 }
 0x191   : > { %v2380_v17 = vadd.f32 %v2379_v14, %v4644_v2  ;;  %v2381_v18 = vpop.f32.mrb[2].mxu0  ;;  %2928 = vmatpush1.bf16.msra.mxu0 %v3594_v3  ;;  %2969 = vmatpush1.bf16.msra.mxu1 %v3596_v4  ;;  %v2421_v26 = vadd.f32 %v2420_v20, %v4644_v2  ;;  %v2422_v27 = vpop.f32.mrb[2].mxu1 }
 0x192   : > { %v3088_v23 = vsel %vm3087_vm0, %v2378_v12, 0.0  ;;  %v3157_v24 = vmul.f32 %v2378_v12, %v2378_v12  ;;  %v2382_v25 = vpop.f32.mrb[3].mxu0  ;;  %2929 = vmatprep.subr.bf16.mxu0 %v3627_v5  ;;  %v3091_v33 = vsel %vm3087_vm0, %v2419_v19, 0.0  ;;  %v2423_v34 = vpop.f32.mrb[3].mxu1  ;;  %2970 = vmatprep.subr.bf16.mxu1 %v3629_v9  ;;  %v3159_v36 = vmul.f32 %v2419_v19, %v2419_v19 }
 0x193   : > { %v3031_v29 = vcombine.low %v2378_v12, %v2380_v17  ;;  %v3089_v30 = vsel %vm3087_vm0, %v2380_v17, 0.0  ;;  %v3158_v31 = vmul.f32 %v2380_v17, %v2380_v17  ;;  %v3032_v37 = vcombine.low %v2419_v19, %v2421_v26 }
 0x194   : > { %v3090_v35 = vadd.f32 %v3089_v30, %v3088_v23  ;;  %v3189_v13 = vsel %vm3087_vm0, %v3157_v24, 0.0  ;;  %v3093_v39 = vsel %vm3087_vm0, %v2421_v26, 0.0  ;;  %v3160_v40 = vmul.f32 %v2421_v26, %v2421_v26 }
 0x195   : > { %3063 = vst [vmem:[%s4657_s28] sm:$0xff] %v3031_v29  ;;  %v3190_v38 = vsel %vm3087_vm0, %v3158_v31, 0.0  ;;  %2930 = vmatpush1.bf16.msra.mxu0 %v3626_v16  ;;  %v3192_v44 = vsel %vm3087_vm0, %v3159_v36, 0.0  ;;  %3064 = vst [vmem:[%s4657_s28 + $0x8] sm:$0xff] %v3032_v37  ;;  %2971 = vmatpush1.bf16.msra.mxu1 %v3628_v21 }
 0x196   : > { %v3191_v42 = vadd.f32 %v3190_v38, %v3189_v13  ;;  %v3092_v43 = vadd.f32 %v3091_v33, %v3090_v35  ;;  %2931 = vmatprep.subr.bf16.mxu0 %v3659_v22  ;;  %v3194_v46 = vsel %vm3087_vm0, %v3160_v40, 0.0  ;;  %2972 = vmatprep.subr.bf16.mxu1 %v3661_v28 }
 0x198   : > { %v3193_v47 = vadd.f32 %v3192_v44, %v3191_v42  ;;  %v3094_v48 = vadd.f32 %v3093_v39, %v3092_v43 }
 0x199   : > { %2932 = vmatpush1.bf16.msra.mxu0 %v3658_v41  ;;  %2973 = vmatpush1.bf16.msra.mxu1 %v3660_v45 }
 0x19a   : > { %v3195_v49 = vadd.f32 %v3194_v46, %v3193_v47 }
 0x19c   : > { %2950 = vmatmul.mubr.bf16.vlgmr.msra.gmra.mrb[28].mxu0 %v4584_v32  ;;  %2991 = vmatmul.mubr.bf16.vlgmr.msra.gmra.mrb[28].mxu1 %v4584_v32 }
 0x1af   : > { %v2459_v50 = vpop.f32.mrb[4].mxu0  ;;  %v2500_v52 = vpop.f32.mrb[4].mxu1 }
 0x1b0   : > { %v2460_v1 = vadd.f32 %v2459_v50, %v4644_v2  ;;  %v2461_v51 = vpop.f32.mrb[5].mxu0  ;;  %v2501_v55 = vadd.f32 %v2500_v52, %v4644_v2  ;;  %v2502_v56 = vpop.f32.mrb[5].mxu1 }
 0x1b1   : > { %v2462_v53 = vadd.f32 %v2461_v51, %v4644_v2  ;;  %v2463_v54 = vpop.f32.mrb[6].mxu0  ;;  %v2503_v60 = vadd.f32 %v2502_v56, %v4644_v2  ;;  %v2504_v32 = vpop.f32.mrb[6].mxu1 }
 0x1b2   : > { %v3095_v57 = vsel %vm3087_vm0, %v2460_v1, 0.0  ;;  %v3161_v58 = vmul.f32 %v2460_v1, %v2460_v1  ;;  %v2464_v59 = vpop.f32.mrb[7].mxu0  ;;  %v2505_v3 = vpop.f32.mrb[7].mxu1  ;;  %v3099_v5 = vsel %vm3087_vm0, %v2501_v55, 0.0  ;;  %v3163_v6 = vmul.f32 %v2501_v55, %v2501_v55 }
 0x1b3   : > { %v3096_v61 = vadd.f32 %v3095_v57, %v3094_v48  ;;  %v3033_v62 = vcombine.low %v2460_v1, %v2462_v53  ;;  %v3097_v63 = vsel %vm3087_vm0, %v2462_v53, 0.0  ;;  %v3162_v0 = vmul.f32 %v2462_v53, %v2462_v53 }
 0x1b4   : > { %v3196_v4 = vsel %vm3087_vm0, %v3161_v58, 0.0  ;;  %v3034_v7 = vcombine.low %v2501_v55, %v2503_v60  ;;  %v3200_v11 = vsel %vm3087_vm0, %v3163_v6, 0.0  ;;  %v3101_v12 = vsel %vm3087_vm0, %v2503_v60, 0.0 }
 0x1b5   : > { %v3197_v8 = vadd.f32 %v3196_v4, %v3195_v49  ;;  %3065 = vst [vmem:[%s4657_s28 + $0x10] sm:$0xff] %v3033_v62  ;;  %v3098_v9 = vadd.f32 %v3097_v63, %v3096_v61  ;;  %v3198_v10 = vsel %vm3087_vm0, %v3162_v0, 0.0  ;;  %v3164_v14 = vmul.f32 %v2503_v60, %v2503_v60 }
 0x1b6   : > { %3066 = vst [vmem:[%s4657_s28 + $0x18] sm:$0xff] %v3034_v7 }
 0x1b7   : > { %v3199_v15 = vadd.f32 %v3198_v10, %v3197_v8  ;;  %v3100_v16 = vadd.f32 %v3099_v5, %v3098_v9  ;;  %v3202_v17 = vsel %vm3087_vm0, %v3164_v14, 0.0 }
 0x1b9   : > { %v3201_v18 = vadd.f32 %v3200_v11, %v3199_v15  ;;  %v3102_v19 = vadd.f32 %v3101_v12, %v3100_v16 }
 0x1bb   : > { %v3203_v20 = vadd.f32 %v3202_v17, %v3201_v18 }
 0x1cf   : > { %v2541_v21 = vpop.f32.mrb[8].mxu0  ;;  %v2582_v24 = vpop.f32.mrb[8].mxu1 }
 0x1d0   : > { %v2542_v22 = vadd.f32 %v2541_v21, %v4644_v2  ;;  %v2543_v23 = vpop.f32.mrb[9].mxu0  ;;  %v2583_v27 = vadd.f32 %v2582_v24, %v4644_v2  ;;  %v2584_v28 = vpop.f32.mrb[9].mxu1 }
 0x1d1   : > { %v2544_v25 = vadd.f32 %v2543_v23, %v4644_v2  ;;  %v2545_v26 = vpop.f32.mrb[10].mxu0  ;;  %v2585_v33 = vadd.f32 %v2584_v28, %v4644_v2  ;;  %v2586_v34 = vpop.f32.mrb[10].mxu1 }
 0x1d2   : > { %v3103_v29 = vsel %vm3087_vm0, %v2542_v22, 0.0  ;;  %v3165_v30 = vmul.f32 %v2542_v22, %v2542_v22  ;;  %v2546_v31 = vpop.f32.mrb[11].mxu0  ;;  %v2587_v38 = vpop.f32.mrb[11].mxu1  ;;  %v3107_v40 = vsel %vm3087_vm0, %v2583_v27, 0.0  ;;  %v3167_v41 = vmul.f32 %v2583_v27, %v2583_v27 }
 0x1d3   : > { %v3104_v35 = vadd.f32 %v3103_v29, %v3102_v19  ;;  %v3035_v13 = vcombine.low %v2542_v22, %v2544_v25  ;;  %v3105_v36 = vsel %vm3087_vm0, %v2544_v25, 0.0  ;;  %v3166_v37 = vmul.f32 %v2544_v25, %v2544_v25 }
 0x1d4   : > { %v3204_v39 = vsel %vm3087_vm0, %v3165_v30, 0.0  ;;  %v3036_v42 = vcombine.low %v2583_v27, %v2585_v33  ;;  %v3208_v46 = vsel %vm3087_vm0, %v3167_v41, 0.0  ;;  %v3109_v47 = vsel %vm3087_vm0, %v2585_v33, 0.0 }
 0x1d5   : > { %v3205_v43 = vadd.f32 %v3204_v39, %v3203_v20  ;;  %3067 = vst [vmem:[%s4657_s28 + $0x20] sm:$0xff] %v3035_v13  ;;  %v3106_v44 = vadd.f32 %v3105_v36, %v3104_v35  ;;  %v3206_v45 = vsel %vm3087_vm0, %v3166_v37, 0.0  ;;  %v3168_v48 = vmul.f32 %v2585_v33, %v2585_v33 }
 0x1d6   : > { %3068 = vst [vmem:[%s4657_s28 + $0x28] sm:$0xff] %v3036_v42  ;;  %v3750_v26 = vmov 0.0  }
 0x1d7   : > { %v3207_v49 = vadd.f32 %v3206_v45, %v3205_v43  ;;  %v3108_v50 = vadd.f32 %v3107_v40, %v3106_v44  ;;  %v3210_v1 = vsel %vm3087_vm0, %v3168_v48, 0.0  ;;  %3084 = vst.msk [vmem:[%s4724_s7] sm:$0xf] %vm3083_vm1, %v3750_v26  ;;  %3085 = vst.msk [vmem:[%s798_s10] sm:$0xf] %vm3083_vm1, %v3750_v26 }
 0x1d9   : > { %v3209_v51 = vadd.f32 %v3208_v46, %v3207_v49  ;;  %v3110_v52 = vadd.f32 %v3109_v47, %v3108_v50 }
 0x1db   : > { %v3211_v53 = vadd.f32 %v3210_v1, %v3209_v51 }
 0x1ef   : > { %v2623_v54 = vpop.f32.mrb[12].mxu0  ;;  %v2664_v57 = vpop.f32.mrb[12].mxu1 }
 0x1f0   : > { %v2624_v55 = vadd.f32 %v2623_v54, %v4644_v2  ;;  %v2625_v56 = vpop.f32.mrb[13].mxu0  ;;  %v2665_v60 = vadd.f32 %v2664_v57, %v4644_v2  ;;  %v2666_v32 = vpop.f32.mrb[13].mxu1 }
 0x1f1   : > { %v2626_v58 = vadd.f32 %v2625_v56, %v4644_v2  ;;  %v2627_v59 = vpop.f32.mrb[14].mxu0  ;;  %v2667_v0 = vadd.f32 %v2666_v32, %v4644_v2  ;;  %v2668_v3 = vpop.f32.mrb[14].mxu1 }
 0x1f2   : > { %v3111_v61 = vsel %vm3087_vm0, %v2624_v55, 0.0  ;;  %v3169_v62 = vmul.f32 %v2624_v55, %v2624_v55  ;;  %v2628_v63 = vpop.f32.mrb[15].mxu0  ;;  %v2669_v8 = vpop.f32.mrb[15].mxu1  ;;  %v3115_v10 = vsel %vm3087_vm0, %v2665_v60, 0.0  ;;  %v3171_v11 = vmul.f32 %v2665_v60, %v2665_v60 }
 0x1f3   : > { %v3112_v4 = vadd.f32 %v3111_v61, %v3110_v52  ;;  %v3037_v5 = vcombine.low %v2624_v55, %v2626_v58  ;;  %v3113_v6 = vsel %vm3087_vm0, %v2626_v58, 0.0  ;;  %v3170_v7 = vmul.f32 %v2626_v58, %v2626_v58 }
 0x1f4   : > { %v3212_v9 = vsel %vm3087_vm0, %v3169_v62, 0.0  ;;  %v3038_v12 = vcombine.low %v2665_v60, %v2667_v0  ;;  %v3216_v17 = vsel %vm3087_vm0, %v3171_v11, 0.0  ;;  %v3117_v18 = vsel %vm3087_vm0, %v2667_v0, 0.0 }
 0x1f5   : > { %v3213_v14 = vadd.f32 %v3212_v9, %v3211_v53  ;;  %3069 = vst [vmem:[%s4657_s28 + $0x30] sm:$0xff] %v3037_v5  ;;  %v3114_v15 = vadd.f32 %v3113_v6, %v3112_v4  ;;  %v3214_v16 = vsel %vm3087_vm0, %v3170_v7, 0.0  ;;  %v3172_v19 = vmul.f32 %v2667_v0, %v2667_v0 }
 0x1f6   : > { %3070 = vst [vmem:[%s4657_s28 + $0x38] sm:$0xff] %v3038_v12 }
 0x1f7   : > { %v3215_v20 = vadd.f32 %v3214_v16, %v3213_v14  ;;  %v3116_v21 = vadd.f32 %v3115_v10, %v3114_v15  ;;  %v3218_v22 = vsel %vm3087_vm0, %v3172_v19, 0.0 }
 0x1f9   : > { %v3217_v23 = vadd.f32 %v3216_v17, %v3215_v20  ;;  %v3118_v24 = vadd.f32 %v3117_v18, %v3116_v21 }
 0x1fb   : > { %v3219_v25 = vadd.f32 %v3218_v22, %v3217_v23 }
 0x20f   : > { %v2705_v27 = vpop.f32.mrb[16].mxu0  ;;  %v2746_v30 = vpop.f32.mrb[16].mxu1 }
 0x210   : > { %v2706_v28 = vadd.f32 %v2705_v27, %v4644_v2  ;;  %v2707_v29 = vpop.f32.mrb[17].mxu0  ;;  %v2747_v34 = vadd.f32 %v2746_v30, %v4644_v2  ;;  %v2748_v35 = vpop.f32.mrb[17].mxu1 }
 0x211   : > { %v2708_v31 = vadd.f32 %v2707_v29, %v4644_v2  ;;  %v2709_v33 = vpop.f32.mrb[18].mxu0  ;;  %v2749_v38 = vadd.f32 %v2748_v35, %v4644_v2  ;;  %v2750_v39 = vpop.f32.mrb[18].mxu1 }
 0x212   : > { %v3119_v13 = vsel %vm3087_vm0, %v2706_v28, 0.0  ;;  %v3173_v36 = vmul.f32 %v2706_v28, %v2706_v28  ;;  %v2710_v37 = vpop.f32.mrb[19].mxu0  ;;  %v2751_v44 = vpop.f32.mrb[19].mxu1  ;;  %v3123_v46 = vsel %vm3087_vm0, %v2747_v34, 0.0  ;;  %v3175_v47 = vmul.f32 %v2747_v34, %v2747_v34 }
 0x213   : > { %v3120_v40 = vadd.f32 %v3119_v13, %v3118_v24  ;;  %v3039_v41 = vcombine.low %v2706_v28, %v2708_v31  ;;  %v3121_v42 = vsel %vm3087_vm0, %v2708_v31, 0.0  ;;  %v3174_v43 = vmul.f32 %v2708_v31, %v2708_v31 }
 0x214   : > { %v3220_v45 = vsel %vm3087_vm0, %v3173_v36, 0.0  ;;  %v3040_v48 = vcombine.low %v2747_v34, %v2749_v38  ;;  %v3224_v51 = vsel %vm3087_vm0, %v3175_v47, 0.0  ;;  %v3125_v52 = vsel %vm3087_vm0, %v2749_v38, 0.0 }
 0x215   : > { %v3221_v49 = vadd.f32 %v3220_v45, %v3219_v25  ;;  %3071 = vst [vmem:[%s4657_s28 + $0x40] sm:$0xff] %v3039_v41  ;;  %v3122_v50 = vadd.f32 %v3121_v42, %v3120_v40  ;;  %v3222_v1 = vsel %vm3087_vm0, %v3174_v43, 0.0  ;;  %v3176_v53 = vmul.f32 %v2749_v38, %v2749_v38 }
 0x216   : > { %3072 = vst [vmem:[%s4657_s28 + $0x48] sm:$0xff] %v3040_v48 }
 0x217   : > { %v3223_v54 = vadd.f32 %v3222_v1, %v3221_v49  ;;  %v3124_v55 = vadd.f32 %v3123_v46, %v3122_v50  ;;  %v3226_v56 = vsel %vm3087_vm0, %v3176_v53, 0.0 }
 0x219   : > { %v3225_v57 = vadd.f32 %v3224_v51, %v3223_v54  ;;  %v3126_v58 = vadd.f32 %v3125_v52, %v3124_v55 }
 0x21b   : > { %v3227_v59 = vadd.f32 %v3226_v56, %v3225_v57 }
 0x22f   : > { %v2787_v60 = vpop.f32.mrb[20].mxu0  ;;  %v2828_v62 = vpop.f32.mrb[20].mxu1 }
 0x230   : > { %v2788_v32 = vadd.f32 %v2787_v60, %v4644_v2  ;;  %v2789_v61 = vpop.f32.mrb[21].mxu0  ;;  %v2829_v3 = vadd.f32 %v2828_v62, %v4644_v2  ;;  %v2830_v4 = vpop.f32.mrb[21].mxu1 }
 0x231   : > { %v2790_v63 = vadd.f32 %v2789_v61, %v4644_v2  ;;  %v2791_v0 = vpop.f32.mrb[22].mxu0  ;;  %v2831_v8 = vadd.f32 %v2830_v4, %v4644_v2  ;;  %v2832_v9 = vpop.f32.mrb[22].mxu1 }
 0x232   : > { %v3127_v5 = vsel %vm3087_vm0, %v2788_v32, 0.0  ;;  %v3177_v6 = vmul.f32 %v2788_v32, %v2788_v32  ;;  %v2792_v7 = vpop.f32.mrb[23].mxu0  ;;  %v2833_v15 = vpop.f32.mrb[23].mxu1  ;;  %v3131_v17 = vsel %vm3087_vm0, %v2829_v3, 0.0  ;;  %v3179_v18 = vmul.f32 %v2829_v3, %v2829_v3 }
 0x233   : > { %v3128_v10 = vadd.f32 %v3127_v5, %v3126_v58  ;;  %v3041_v11 = vcombine.low %v2788_v32, %v2790_v63  ;;  %v3129_v12 = vsel %vm3087_vm0, %v2790_v63, 0.0  ;;  %v3178_v14 = vmul.f32 %v2790_v63, %v2790_v63 }
 0x234   : > { %v3228_v16 = vsel %vm3087_vm0, %v3177_v6, 0.0  ;;  %v3042_v19 = vcombine.low %v2829_v3, %v2831_v8  ;;  %v3232_v23 = vsel %vm3087_vm0, %v3179_v18, 0.0  ;;  %v3133_v24 = vsel %vm3087_vm0, %v2831_v8, 0.0 }
 0x235   : > { %v3229_v20 = vadd.f32 %v3228_v16, %v3227_v59  ;;  %3073 = vst [vmem:[%s4657_s28 + $0x50] sm:$0xff] %v3041_v11  ;;  %v3130_v21 = vadd.f32 %v3129_v12, %v3128_v10  ;;  %v3230_v22 = vsel %vm3087_vm0, %v3178_v14, 0.0  ;;  %v3180_v25 = vmul.f32 %v2831_v8, %v2831_v8 }
 0x236   : > { %3074 = vst [vmem:[%s4657_s28 + $0x58] sm:$0xff] %v3042_v19 }
 0x237   : > { %v3231_v27 = vadd.f32 %v3230_v22, %v3229_v20  ;;  %v3132_v28 = vadd.f32 %v3131_v17, %v3130_v21  ;;  %v3234_v29 = vsel %vm3087_vm0, %v3180_v25, 0.0 }
 0x239   : > { %v3233_v30 = vadd.f32 %v3232_v23, %v3231_v27  ;;  %v3134_v31 = vadd.f32 %v3133_v24, %v3132_v28 }
 0x23b   : > { %v3235_v33 = vadd.f32 %v3234_v29, %v3233_v30 }
 0x24f   : > { %v2869_v34 = vpop.f32.mrb[24].mxu0  ;;  %v2910_v13 = vpop.f32.mrb[24].mxu1 }
 0x250   : > { %v2870_v35 = vadd.f32 %v2869_v34, %v4644_v2  ;;  %v2871_v36 = vpop.f32.mrb[25].mxu0  ;;  %v2911_v37 = vadd.f32 %v2910_v13, %v4644_v2  ;;  %v2912_v39 = vpop.f32.mrb[25].mxu1 }
 0x251   : > { %v2872_v38 = vadd.f32 %v2871_v36, %v4644_v2  ;;  %v2873_v40 = vpop.f32.mrb[26].mxu0  ;;  %v2913_v43 = vadd.f32 %v2912_v39, %v4644_v2  ;;  %v2914_v45 = vpop.f32.mrb[26].mxu1 }
 0x252   : > { %v3135_v41 = vsel %vm3087_vm0, %v2870_v35, 0.0  ;;  %v3181_v42 = vmul.f32 %v2870_v35, %v2870_v35  ;;  %v2874_v44 = vpop.f32.mrb[27].mxu0  ;;  %v3183_v47 = vmul.f32 %v2911_v37, %v2911_v37  ;;  %v2915_v49 = vpop.f32.mrb[27].mxu1  ;;  %v3139_v55 = vsel %vm3087_vm0, %v2911_v37, 0.0 }
 0x253   : > { %v3136_v46 = vadd.f32 %v3135_v41, %v3134_v31  ;;  %v3043_v48 = vcombine.low %v2870_v35, %v2872_v38  ;;  %v3137_v1 = vsel %vm3087_vm0, %v2872_v38, 0.0  ;;  %v3182_v51 = vmul.f32 %v2872_v38, %v2872_v38  ;;  %v3086_v38 = vld [vmem:[%s4724_s7] sm:$0xf] }
 0x254   : > { %v3236_v50 = vsel %vm3087_vm0, %v3181_v42, 0.0  ;;  %v3044_v52 = vcombine.low %v2911_v37, %v2913_v43  ;;  %v3184_v57 = vmul.f32 %v2913_v43, %v2913_v43  ;;  %v3240_v60 = vsel %vm3087_vm0, %v3183_v47, 0.0  ;;  %v3156_v41 = vld [vmem:[%s798_s10] sm:$0xf] }
 0x255   : > { %v3237_v53 = vadd.f32 %v3236_v50, %v3235_v33  ;;  %3075 = vst [vmem:[%s4657_s28 + $0x60] sm:$0xff] %v3043_v48  ;;  %v3138_v54 = vadd.f32 %v3137_v1, %v3136_v46  ;;  %v3238_v56 = vsel %vm3087_vm0, %v3182_v51, 0.0  ;;  %v3141_v32 = vsel %vm3087_vm0, %v2913_v43, 0.0 }
 0x256   : > { %3076 = vst [vmem:[%s4657_s28 + $0x68] sm:$0xff] %v3044_v52  ;;  %v3242_v63 = vsel %vm3087_vm0, %v3184_v57, 0.0 }
 0x257   : > { %v3239_v58 = vadd.f32 %v3238_v56, %v3237_v53  ;;  %v3140_v59 = vadd.f32 %v3139_v55, %v3138_v54 }
 0x259   : > { %v3142_v61 = vadd.f32 %v3141_v32, %v3140_v59  ;;  %v3241_v62 = vadd.f32 %v3240_v60, %v3239_v58 }
 0x25b   : > { %v3243_v0 = vadd.f32 %v3242_v63, %v3241_v62 }
 0x26f   : > { %v2951_v3 = vpop.f32.mrb[28].mxu0  ;;  %v2992_v5 = vpop.f32.mrb[28].mxu1 }
 0x270   : > { %v2952_v4 = vadd.f32 %v2951_v3, %v4644_v2  ;;  %v2953_v6 = vpop.f32.mrb[29].mxu0  ;;  %v2993_v7 = vadd.f32 %v2992_v5, %v4644_v2  ;;  %v2994_v9 = vpop.f32.mrb[29].mxu1 }
 0x271   : > { %v2954_v8 = vadd.f32 %v2953_v6, %v4644_v2  ;;  %v2955_v10 = vpop.f32.mrb[30].mxu0  ;;  %v2995_v14 = vadd.f32 %v2994_v9, %v4644_v2  ;;  %v2996_v16 = vpop.f32.mrb[30].mxu1 }
 0x272   : > { %v3143_v11 = vsel %vm3087_vm0, %v2952_v4, 0.0  ;;  %v3185_v12 = vmul.f32 %v2952_v4, %v2952_v4  ;;  %v2956_v15 = vpop.f32.mrb[31].mxu0  ;;  %v2997_v21 = vpop.f32.mrb[31].mxu1  ;;  %v3187_v24 = vmul.f32 %v2993_v7, %v2993_v7  ;;  %v3147_v2 = vsel %vm3087_vm0, %v2993_v7, 0.0 }
 0x273   : > { %v3144_v17 = vadd.f32 %v3143_v11, %v3142_v61  ;;  %v3045_v18 = vcombine.low %v2952_v4, %v2954_v8  ;;  %v3145_v19 = vsel %vm3087_vm0, %v2954_v8, 0.0  ;;  %v3186_v20 = vmul.f32 %v2954_v8, %v2954_v8 }
 0x274   : > { %v3046_v22 = vcombine.low %v2993_v7, %v2995_v14  ;;  %v3244_v25 = vsel %vm3087_vm0, %v3185_v12, 0.0  ;;  %v3188_v30 = vmul.f32 %v2995_v14, %v2995_v14  ;;  %v3149_v31 = vsel %vm3087_vm0, %v2995_v14, 0.0 }
 0x275   : > { %3077 = vst [vmem:[%s4657_s28 + $0x70] sm:$0xff] %v3045_v18  ;;  %v3146_v23 = vadd.f32 %v3145_v19, %v3144_v17  ;;  %v3246_v27 = vsel %vm3087_vm0, %v3186_v20, 0.0  ;;  %v3245_v28 = vadd.f32 %v3244_v25, %v3243_v0  ;;  %v3248_v35 = vsel %vm3087_vm0, %v3187_v24, 0.0 }
 0x276   : > { %3078 = vst [vmem:[%s4657_s28 + $0x78] sm:$0xff] %v3046_v22  ;;  %v3250_v36 = vsel %vm3087_vm0, %v3188_v30, 0.0 }
 0x277   : > { %v3148_v29 = vadd.f32 %v3147_v2, %v3146_v23  ;;  %v3247_v33 = vadd.f32 %v3246_v27, %v3245_v28 }
 0x279   : > { %v3150_v34 = vadd.f32 %v3149_v31, %v3148_v29  ;;  %v3249_v13 = vadd.f32 %v3248_v35, %v3247_v33 }
 0x27b   : > { %3151 = vadd.xlane.f32.xlu0 %v3150_v34  ;;  %v3251_v37 = vadd.f32 %v3250_v36, %v3249_v13 }
 0x27d   : > { %3252 = vadd.xlane.f32.xlu1 %v3251_v37 }
 0x308   : > { %v3152_v39 = vpop.xlane.xlu0 %3151 }
 0x309   : > { %v3153_v40 = vadd.f32 %v3152_v39, %v3086_v38 }
 0x30a   : > { %v3253_v42 = vpop.xlane.xlu1 %3252 }
 0x30b   : > { %3155 = vst.msk [vmem:[%s4724_s7] sm:$0xf] %vm3083_vm1, %v3153_v40  ;;  %v3254_v43 = vadd.f32 %v3253_v42, %v3156_v41 }
 0x30d   : > { %3255 = vst.msk [vmem:[%s798_s10] sm:$0xf] %vm3083_vm1, %v3254_v43 }
 0x30e PF: > { %s16_s22 = sadd.s32 1, %s3747_s22   ;;  %s4817_s18 = smov %s3735_s19 }
 0x30f   : > { %p13_p11 = scmp.ge.s32.totalorder %s16_s22, 4   ;;  %s4818_s19 = smov %s3816_s26 }
 0x310   : > { %s4819_s20 = smov %s3743_s21  ;;  %s4820_s21 = smov %s4822_s23 }
 0x311   :  { %15 = sbr.rel (!%p13_p11) target bundleno = 3 (0x3), region = 118 }

// kernel: voxel_encoder64.13
= control target key start
LH: loop header
LB: loop body
LE: loop exit
PB: predicated region body
PF: predicated region fallthrough
CT: control target
= control target key end

     0   :  { %s338_s12 = smov 0   ;;  %s361_s0 = inlined_call_operand.vmem [shape: f32[8,1024], index: 0, kind: input, shape index: {}]   ;;  %s362_s1 = inlined_call_operand.vmem [shape: f32[8,1], index: 1, kind: input, shape index: {}]   ;;  %s363_s2 = inlined_call_operand.vmem [shape: f32[8,1], index: 2, kind: input, shape index: {}]   ;;  %s364_s3 = inlined_call_operand.vmem [shape: bf16[8,1024], index: 3, kind: output, shape index: {}]  }
   0x1 LB: > { %s284_s13 = sadd.s32 4294967295, %s315_s12   ;;  %p288_p0 = scmp.ge.s32.totalorder %s315_s12, 1  ;;  %s315_s12 = sphi %s338_s12, %s13_s12  }
   0x2   : > { %p138_p1 = scmp.lt.s32.totalorder %s315_s12, 3 }
   0x4   : > { %p139_p2 = pnand %p288_p0, %p138_p1 }
   0x5   : > { %v178_v0 = vld [vmem:[%s362_s1] sm:$0xff] (!%p139_p2)  ;;  %v317_v1 = vmov (!%p139_p2), 0   ;;  %s289_s18 = sshll.u32 (!%p139_p2), %s284_s13, 2 }
   0x6   : > { %142 = sbr.rel (%p139_p2) target bundleno = 149 (0x95), region = 32  ;;  %308 = vset.pattern.permute.xlu0 (!%p139_p2), %v317_v1  ;;  %v188_v2 = vld [vmem:[%s363_s2] sm:$0xff] (!%p139_p2)  ;;  %p163_p3 = scmp.lt.s32.totalorder (!%p139_p2), %s289_s18, 7 }
   0x7   : > { %181 = vperm.xlu0 (!%p139_p2), %308, %v178_v0  }
   0xb   : > { %191 = vperm.xlu0 (!%p139_p2), %308, %v188_v2  }
   0xd   : > { %s366_s18 = smov (!%p163_p3, %s289_s18), 7 }
   0xe   : > { %s290_s19 = sshll.u32 %s366_s18, 3  ;;  %s292_s23 = sshll.u32 %s366_s18, 2 }
   0xf   : > { %s166_s22 = scalar_lea.vmem %s361_s0, %s290_s19  ;;  %s172_s26 = scalar_lea.vmem %s364_s3, %s292_s23 }
  0x10   : > { %v174_v3 = vld [vmem:[%s166_s22] sm:$0xff]  ;;  %v175_v5 = vld [vmem:[%s166_s22 + $0x8] sm:$0xff]  ;;  %v176_v6 = vld [vmem:[%s166_s22 + $0x10] sm:$0xff] }
  0x11   : > { %v177_v7 = vld [vmem:[%s166_s22 + $0x18] sm:$0xff] }
  0x86   : > { %v182_v4 = vpop.permute.xlu0 %181 }
  0x87   : > { %v184_v8 = vmul.f32 %v182_v4, %v174_v3  ;;  %v185_v9 = vmul.f32 %v182_v4, %v175_v5  ;;  %v186_v10 = vmul.f32 %v182_v4, %v176_v6  ;;  %v187_v11 = vmul.f32 %v182_v4, %v177_v7 }
  0x8a   : > { %v192_v12 = vpop.permute.xlu0 %191 }
  0x8b   : > { %v194_v13 = vadd.f32 %v192_v12, %v184_v8  ;;  %v195_v14 = vadd.f32 %v192_v12, %v185_v9  ;;  %v196_v15 = vadd.f32 %v192_v12, %v186_v10  ;;  %v197_v16 = vadd.f32 %v192_v12, %v187_v11 }
  0x8d   : > { %vm198_vm0 = vcmp.ge.f32.partialorder %v194_v13, 0.0  ;;  %vm199_vm1 = vcmp.ge.f32.partialorder %v195_v14, 0.0  ;;  %vm200_vm2 = vcmp.ge.f32.partialorder %v196_v15, 0.0  ;;  %vm201_vm3 = vcmp.ge.f32.partialorder %v197_v16, 0.0 }
  0x8e   : > { %v202_v17 = vmul.f32 0.2, %v194_v13  ;;  %v203_v18 = vmul.f32 0.2, %v195_v14  ;;  %v204_v19 = vmul.f32 0.2, %v196_v15 }
  0x8f   : > { %v205_v20 = vmul.f32 0.2, %v197_v16 }
  0x90   : > { %v206_v21 = vsel %vm198_vm0, %v194_v13, %v202_v17  ;;  %v207_v22 = vsel %vm199_vm1, %v195_v14, %v203_v18  ;;  %v208_v23 = vsel %vm200_vm2, %v196_v15, %v204_v19 }
  0x91   : > { %v209_v24 = vsel %vm201_vm3, %v197_v16, %v205_v20  ;;  %v297_v25 = vpack.c.bf16 %v207_v22, %v206_v21 }
  0x92   : > { %v298_v26 = vpack.c.bf16 %v209_v24, %v208_v23 }
  0x93   : > { %226 = vst [vmem:[%s172_s26] sm:$0xff] %v297_v25 }
  0x94   : > { %227 = vst [vmem:[%s172_s26 + $0x8] sm:$0xff] %v298_v26 }
  0x95 PF: > { %s13_s12 = sadd.s32 1, %s315_s12  }
  0x96   : > { %p10_p4 = scmp.ge.s32.totalorder %s13_s12, 4  }
  0x98   :  { %12 = sbr.rel (!%p10_p4) target bundleno = 1 (0x1), region = 62 }

// kernel: voxel_encoder64.12
= control target key start
LH: loop header
LB: loop body
LE: loop exit
PB: predicated region body
PF: predicated region fallthrough
CT: control target
= control target key end

     0   :  { %s1359_s18 = smov 0   ;;  %s1361_s19 = smov 0   ;;  %s1658_s0 = inlined_call_operand.vmem [shape: bf16[8,256], index: 0, kind: input, shape index: {}]   ;;  %s1659_s1 = inlined_call_operand.vmem [shape: bf16[256,1024], index: 1, kind: input, shape index: {}]   ;;  %s1660_s2 = inlined_call_operand.vmem [shape: f32[8,1], index: 2, kind: input, shape index: {}]   ;;  %s1661_s3 = inlined_call_operand.vmem [shape: f32[8,1024], index: 3, kind: output, shape index: {0}]   ;;  %s1662_s4 = inlined_call_operand.vmem [shape: f32[2,8,1], index: 4, kind: output, shape index: {1}]   ;;  %s1663_s5 = inlined_call_operand.vmem [shape: f32[2,8,1], index: 5, kind: output, shape index: {2}]  }
   0x1   :  { %s1363_s20 = smov 0   ;;  %s1365_s21 = smov 0  }
   0x2   :  { %s1367_s22 = smov 0  }
   0x3 LB: > { %s28_s23 = sadd.s32 1, %s1321_s21  ;;  %p65_p1 = scmp.ne.s32.totalorder %s1313_s19, %s1309_s18  ;;  %s1325_s22 = sphi %s1367_s22, %s16_s22   ;;  %s1321_s21 = sphi %s1365_s21, %s1667_s21   ;;  %s1317_s20 = sphi %s1363_s20, %s1666_s20   ;;  %s1313_s19 = sphi %s1361_s19, %s1665_s19   ;;  %s1309_s18 = sphi %s1359_s18, %s1664_s18  }
   0x4   : > { %p30_p0 = scmp.ge.s32.totalorder %s28_s23, 2  ;;  %p66_p2 = scmp.eq.s32.totalorder %s1325_s22, 0 }
   0x5   : > { %s58_s25 = sadd.s32 1, %s1313_s19  ;;  %p1067_p5 = scmp.ge.s32.totalorder %s1325_s22, 2 }
   0x6   : > { %s1669_s23 = smov (%p30_p0, %s28_s23), 0  ;;  %p67_p3 = por %p66_p2, %p65_p1 }
   0x7   : > { %s55_s24 = ssub.s32 %s1321_s21, %s1669_s23  ;;  %198 = sbr.rel (%p1067_p5) target bundleno = 50 (0x32), region = 24 }
   0x8   : > { %p56_p4 = scmp.eq.s32.totalorder %s55_s24, 0 }
   0xa   : > { %s1394_s26 = scalar_select %p56_p4, %s1313_s19, %s58_s25  }
   0xe   : > { %201 = sbr.rel (!%p67_p3) target bundleno = 50 (0x32), region = 28  ;;  %s203_s27 = sand.u32 (%p67_p3), 1, %s1313_s19  }
   0xf   : > { %s1145_s28 = sshll.u32 (%p67_p3), %s1321_s21, 4  ;;  %s1068_s29 = sshll.u32 (%p67_p3), %s203_s27, 9 }
  0x10   : > { %s1402_s7 = scalar_lea.vmem (%p67_p3), %s1659_s1, %s1145_s28  ;;  %s1407_s8 = scalar_lea.vmem (%p67_p3), [#allocation2], %s1068_s29 }
  0x11   : > { %v222_v0 = vld [vmem:[%s1402_s7] sm:$0xff] (%p67_p3)  ;;  %v224_v1 = vld [vmem:[%s1402_s7 + $0x8] sm:$0xff] (%p67_p3) }
  0x12   : > { %v226_v2 = vld [vmem:[%s1402_s7 + $0x20] sm:$0xff] (%p67_p3)  ;;  %223 = vst [vmem:[%s1407_s8] sm:$0xff] (%p67_p3), %v222_v0  ;;  %225 = vst [vmem:[%s1407_s8 + $0x8] sm:$0xff] (%p67_p3), %v224_v1  ;;  %v228_v3 = vld [vmem:[%s1402_s7 + $0x28] sm:$0xff] (%p67_p3) }
  0x13   : > { %227 = vst [vmem:[%s1407_s8 + $0x10] sm:$0xff] (%p67_p3), %v226_v2  ;;  %v230_v4 = vld [vmem:[%s1402_s7 + $0x40] sm:$0xff] (%p67_p3)  ;;  %v232_v5 = vld [vmem:[%s1402_s7 + $0x48] sm:$0xff] (%p67_p3)  ;;  %229 = vst [vmem:[%s1407_s8 + $0x18] sm:$0xff] (%p67_p3), %v228_v3 }
  0x14   : > { %231 = vst [vmem:[%s1407_s8 + $0x20] sm:$0xff] (%p67_p3), %v230_v4  ;;  %233 = vst [vmem:[%s1407_s8 + $0x28] sm:$0xff] (%p67_p3), %v232_v5  ;;  %v234_v6 = vld [vmem:[%s1402_s7 + $0x60] sm:$0xff] (%p67_p3)  ;;  %v236_v7 = vld [vmem:[%s1402_s7 + $0x68] sm:$0xff] (%p67_p3) }
  0x15   : > { %v238_v8 = vld [vmem:[%s1402_s7 + $0x80] sm:$0xff]  ;;  %235 = vst [vmem:[%s1407_s8 + $0x30] sm:$0xff] %v234_v6  ;;  %237 = vst [vmem:[%s1407_s8 + $0x38] sm:$0xff] %v236_v7  ;;  %v240_v9 = vld [vmem:[%s1402_s7 + $0x88] sm:$0xff] }
  0x16   : > { %239 = vst [vmem:[%s1407_s8 + $0x40] sm:$0xff] %v238_v8  ;;  %v242_v10 = vld [vmem:[%s1402_s7 + $0xa0] sm:$0xff]  ;;  %v244_v11 = vld [vmem:[%s1402_s7 + $0xa8] sm:$0xff]  ;;  %241 = vst [vmem:[%s1407_s8 + $0x48] sm:$0xff] %v240_v9 }
  0x17   : > { %243 = vst [vmem:[%s1407_s8 + $0x50] sm:$0xff] %v242_v10  ;;  %245 = vst [vmem:[%s1407_s8 + $0x58] sm:$0xff] %v244_v11  ;;  %v246_v12 = vld [vmem:[%s1402_s7 + $0xc0] sm:$0xff]  ;;  %v248_v13 = vld [vmem:[%s1402_s7 + $0xc8] sm:$0xff] }
  0x18   : > { %v250_v14 = vld [vmem:[%s1402_s7 + $0xe0] sm:$0xff]  ;;  %247 = vst [vmem:[%s1407_s8 + $0x60] sm:$0xff] %v246_v12  ;;  %249 = vst [vmem:[%s1407_s8 + $0x68] sm:$0xff] %v248_v13  ;;  %v252_v15 = vld [vmem:[%s1402_s7 + $0xe8] sm:$0xff] }
  0x19   : > { %251 = vst [vmem:[%s1407_s8 + $0x70] sm:$0xff] %v250_v14  ;;  %v254_v16 = vld [vmem:[%s1402_s7 + $0x100] sm:$0xff]  ;;  %v256_v17 = vld [vmem:[%s1402_s7 + $0x108] sm:$0xff]  ;;  %253 = vst [vmem:[%s1407_s8 + $0x78] sm:$0xff] %v252_v15 }
  0x1a   : > { %255 = vst [vmem:[%s1407_s8 + $0x80] sm:$0xff] %v254_v16  ;;  %257 = vst [vmem:[%s1407_s8 + $0x88] sm:$0xff] %v256_v17  ;;  %v258_v18 = vld [vmem:[%s1402_s7 + $0x120] sm:$0xff]  ;;  %v260_v19 = vld [vmem:[%s1402_s7 + $0x128] sm:$0xff] }
  0x1b   : > { %v262_v20 = vld [vmem:[%s1402_s7 + $0x140] sm:$0xff]  ;;  %259 = vst [vmem:[%s1407_s8 + $0x90] sm:$0xff] %v258_v18  ;;  %261 = vst [vmem:[%s1407_s8 + $0x98] sm:$0xff] %v260_v19  ;;  %v264_v21 = vld [vmem:[%s1402_s7 + $0x148] sm:$0xff] }
  0x1c   : > { %263 = vst [vmem:[%s1407_s8 + $0xa0] sm:$0xff] %v262_v20  ;;  %v266_v22 = vld [vmem:[%s1402_s7 + $0x160] sm:$0xff]  ;;  %v268_v23 = vld [vmem:[%s1402_s7 + $0x168] sm:$0xff]  ;;  %265 = vst [vmem:[%s1407_s8 + $0xa8] sm:$0xff] %v264_v21 }
  0x1d   : > { %267 = vst [vmem:[%s1407_s8 + $0xb0] sm:$0xff] %v266_v22  ;;  %269 = vst [vmem:[%s1407_s8 + $0xb8] sm:$0xff] %v268_v23  ;;  %v270_v24 = vld [vmem:[%s1402_s7 + $0x180] sm:$0xff]  ;;  %v272_v25 = vld [vmem:[%s1402_s7 + $0x188] sm:$0xff] }
  0x1e   : > { %v274_v26 = vld [vmem:[%s1402_s7 + $0x1a0] sm:$0xff]  ;;  %271 = vst [vmem:[%s1407_s8 + $0xc0] sm:$0xff] %v270_v24  ;;  %273 = vst [vmem:[%s1407_s8 + $0xc8] sm:$0xff] %v272_v25  ;;  %v276_v27 = vld [vmem:[%s1402_s7 + $0x1a8] sm:$0xff] }
  0x1f   : > { %275 = vst [vmem:[%s1407_s8 + $0xd0] sm:$0xff] %v274_v26  ;;  %v278_v28 = vld [vmem:[%s1402_s7 + $0x1c0] sm:$0xff]  ;;  %v280_v29 = vld [vmem:[%s1402_s7 + $0x1c8] sm:$0xff]  ;;  %277 = vst [vmem:[%s1407_s8 + $0xd8] sm:$0xff] %v276_v27 }
  0x20   : > { %279 = vst [vmem:[%s1407_s8 + $0xe0] sm:$0xff] %v278_v28  ;;  %281 = vst [vmem:[%s1407_s8 + $0xe8] sm:$0xff] %v280_v29  ;;  %v282_v30 = vld [vmem:[%s1402_s7 + $0x1e0] sm:$0xff]  ;;  %v284_v31 = vld [vmem:[%s1402_s7 + $0x1e8] sm:$0xff] }
  0x21   : > { %v286_v32 = vld [vmem:[%s1402_s7 + $0x200] sm:$0xff]  ;;  %283 = vst [vmem:[%s1407_s8 + $0xf0] sm:$0xff] %v282_v30  ;;  %285 = vst [vmem:[%s1407_s8 + $0xf8] sm:$0xff] %v284_v31  ;;  %v288_v33 = vld [vmem:[%s1402_s7 + $0x208] sm:$0xff] }
  0x22   : > { %287 = vst [vmem:[%s1407_s8 + $0x100] sm:$0xff] %v286_v32  ;;  %v290_v34 = vld [vmem:[%s1402_s7 + $0x220] sm:$0xff]  ;;  %v292_v35 = vld [vmem:[%s1402_s7 + $0x228] sm:$0xff]  ;;  %289 = vst [vmem:[%s1407_s8 + $0x108] sm:$0xff] %v288_v33 }
  0x23   : > { %291 = vst [vmem:[%s1407_s8 + $0x110] sm:$0xff] %v290_v34  ;;  %293 = vst [vmem:[%s1407_s8 + $0x118] sm:$0xff] %v292_v35  ;;  %v294_v36 = vld [vmem:[%s1402_s7 + $0x240] sm:$0xff]  ;;  %v296_v37 = vld [vmem:[%s1402_s7 + $0x248] sm:$0xff] }
  0x24   : > { %v298_v38 = vld [vmem:[%s1402_s7 + $0x260] sm:$0xff]  ;;  %295 = vst [vmem:[%s1407_s8 + $0x120] sm:$0xff] %v294_v36  ;;  %297 = vst [vmem:[%s1407_s8 + $0x128] sm:$0xff] %v296_v37  ;;  %v300_v39 = vld [vmem:[%s1402_s7 + $0x268] sm:$0xff] }
  0x25   : > { %299 = vst [vmem:[%s1407_s8 + $0x130] sm:$0xff] %v298_v38  ;;  %v302_v40 = vld [vmem:[%s1402_s7 + $0x280] sm:$0xff]  ;;  %v304_v41 = vld [vmem:[%s1402_s7 + $0x288] sm:$0xff]  ;;  %301 = vst [vmem:[%s1407_s8 + $0x138] sm:$0xff] %v300_v39 }
  0x26   : > { %303 = vst [vmem:[%s1407_s8 + $0x140] sm:$0xff] %v302_v40  ;;  %305 = vst [vmem:[%s1407_s8 + $0x148] sm:$0xff] %v304_v41  ;;  %v306_v42 = vld [vmem:[%s1402_s7 + $0x2a0] sm:$0xff]  ;;  %v308_v43 = vld [vmem:[%s1402_s7 + $0x2a8] sm:$0xff] }
  0x27   : > { %v310_v44 = vld [vmem:[%s1402_s7 + $0x2c0] sm:$0xff]  ;;  %307 = vst [vmem:[%s1407_s8 + $0x150] sm:$0xff] %v306_v42  ;;  %309 = vst [vmem:[%s1407_s8 + $0x158] sm:$0xff] %v308_v43  ;;  %v312_v45 = vld [vmem:[%s1402_s7 + $0x2c8] sm:$0xff] }
  0x28   : > { %311 = vst [vmem:[%s1407_s8 + $0x160] sm:$0xff] %v310_v44  ;;  %v314_v46 = vld [vmem:[%s1402_s7 + $0x2e0] sm:$0xff]  ;;  %v316_v47 = vld [vmem:[%s1402_s7 + $0x2e8] sm:$0xff]  ;;  %313 = vst [vmem:[%s1407_s8 + $0x168] sm:$0xff] %v312_v45 }
  0x29   : > { %315 = vst [vmem:[%s1407_s8 + $0x170] sm:$0xff] %v314_v46  ;;  %317 = vst [vmem:[%s1407_s8 + $0x178] sm:$0xff] %v316_v47  ;;  %v318_v48 = vld [vmem:[%s1402_s7 + $0x300] sm:$0xff]  ;;  %v320_v49 = vld [vmem:[%s1402_s7 + $0x308] sm:$0xff] }
  0x2a   : > { %v322_v50 = vld [vmem:[%s1402_s7 + $0x320] sm:$0xff]  ;;  %319 = vst [vmem:[%s1407_s8 + $0x180] sm:$0xff] %v318_v48  ;;  %321 = vst [vmem:[%s1407_s8 + $0x188] sm:$0xff] %v320_v49  ;;  %v324_v51 = vld [vmem:[%s1402_s7 + $0x328] sm:$0xff] }
  0x2b   : > { %323 = vst [vmem:[%s1407_s8 + $0x190] sm:$0xff] %v322_v50  ;;  %v326_v52 = vld [vmem:[%s1402_s7 + $0x340] sm:$0xff]  ;;  %v328_v53 = vld [vmem:[%s1402_s7 + $0x348] sm:$0xff]  ;;  %325 = vst [vmem:[%s1407_s8 + $0x198] sm:$0xff] %v324_v51 }
  0x2c   : > { %327 = vst [vmem:[%s1407_s8 + $0x1a0] sm:$0xff] %v326_v52  ;;  %329 = vst [vmem:[%s1407_s8 + $0x1a8] sm:$0xff] %v328_v53  ;;  %v330_v54 = vld [vmem:[%s1402_s7 + $0x360] sm:$0xff]  ;;  %v332_v55 = vld [vmem:[%s1402_s7 + $0x368] sm:$0xff] }
  0x2d   : > { %v334_v56 = vld [vmem:[%s1402_s7 + $0x380] sm:$0xff]  ;;  %331 = vst [vmem:[%s1407_s8 + $0x1b0] sm:$0xff] %v330_v54  ;;  %333 = vst [vmem:[%s1407_s8 + $0x1b8] sm:$0xff] %v332_v55  ;;  %v336_v57 = vld [vmem:[%s1402_s7 + $0x388] sm:$0xff] }
  0x2e   : > { %335 = vst [vmem:[%s1407_s8 + $0x1c0] sm:$0xff] %v334_v56  ;;  %v338_v58 = vld [vmem:[%s1402_s7 + $0x3a0] sm:$0xff]  ;;  %v340_v59 = vld [vmem:[%s1402_s7 + $0x3a8] sm:$0xff]  ;;  %337 = vst [vmem:[%s1407_s8 + $0x1c8] sm:$0xff] %v336_v57 }
  0x2f   : > { %339 = vst [vmem:[%s1407_s8 + $0x1d0] sm:$0xff] %v338_v58  ;;  %341 = vst [vmem:[%s1407_s8 + $0x1d8] sm:$0xff] %v340_v59  ;;  %v342_v60 = vld [vmem:[%s1402_s7 + $0x3c0] sm:$0xff]  ;;  %v344_v61 = vld [vmem:[%s1402_s7 + $0x3c8] sm:$0xff] }
  0x30   : > { %v346_v62 = vld [vmem:[%s1402_s7 + $0x3e0] sm:$0xff]  ;;  %343 = vst [vmem:[%s1407_s8 + $0x1e0] sm:$0xff] %v342_v60  ;;  %345 = vst [vmem:[%s1407_s8 + $0x1e8] sm:$0xff] %v344_v61  ;;  %v348_v63 = vld [vmem:[%s1402_s7 + $0x3e8] sm:$0xff] }
  0x31   : > { %347 = vst [vmem:[%s1407_s8 + $0x1f0] sm:$0xff] %v346_v62  ;;  %349 = vst [vmem:[%s1407_s8 + $0x1f8] sm:$0xff] %v348_v63 }
  0x32 PF: > { %p1071_p6 = scmp.ge.s32.totalorder %s1325_s22, 1  ;;  %p354_p7 = scmp.lt.s32.totalorder %s1325_s22, 3 }
  0x34   : > { %p355_p8 = pnand %p1071_p6, %p354_p7 }
  0x35   : > { %s361_s9 = sand.u32 (!%p355_p8), 1, %s1309_s18   ;;  %v1540_v0 = vld [vmem:[%s1658_s0] sm:$0xff] (!%p355_p8)  ;;  %v1327_v3 = vmov (!%p355_p8), 0   ;;  %p407_p9 = scmp.lt.s32.totalorder (!%p355_p8), %s1317_s20, 1  ;;  %vm903_vm0 = vcmask (!%p355_p8), 7168  }
  0x36   : > { %358 = sbr.rel (%p355_p8) target bundleno = 489 (0x1e9), region = 51  ;;  %v480_v1 = vld [vmem:[%s1660_s2] sm:$0xff] (!%p355_p8)  ;;  %s1072_s14 = sshll.u32 (!%p355_p8), %s361_s9, 9  ;;  %v1078_v2 = vcombine.high (!%p355_p8), %v1540_v0, %v1540_v0  ;;  %1188 = vset.pattern.permute.xlu0 (!%p355_p8), %v1327_v3 }
  0x37   : > { %483 = vperm.xlu0 (!%p355_p8), %1188, %v480_v1   ;;  %s1547_s15 = scalar_lea.vmem (!%p355_p8), [#allocation2], %s1072_s14  ;;  %s1073_s27 = sshll.u32 (!%p355_p8), %s1317_s20, 2 }
  0x38   : > { %v1189_v4 = vld [vmem:[%s1547_s15 + $0x4] ss:$16 sps:$4 sm:$0xff] (!%p355_p8)   ;;  %845 = vmatprep.mubr.bf16.mxu0 (!%p355_p8), %v1078_v2  ;;  %886 = vmatprep.mubr.bf16.mxu1 (!%p355_p8), %v1078_v2  ;;  %v1191_v5 = vld [vmem:[%s1547_s15 + $0xc] ss:$16 sps:$4 sm:$0xff] (!%p355_p8)   ;;  %v1193_v6 = vld [vmem:[%s1547_s15] ss:$16 sps:$4 sm:$0xff] (!%p355_p8)  }
  0x39   : > { %813 = vmatprep.subr.bf16.mxu0 (!%p355_p8), %v1189_v4  ;;  %v1194_v7 = vld [vmem:[%s1547_s15 + $0x8] ss:$16 sps:$4 sm:$0xff] (!%p355_p8)   ;;  %854 = vmatprep.subr.bf16.mxu1 (!%p355_p8), %v1191_v5  ;;  %v1195_v8 = vld [vmem:[%s1547_s15 + $0x24] ss:$16 sps:$4 sm:$0xff] (!%p355_p8)   ;;  %v1197_v9 = vld [vmem:[%s1547_s15 + $0x2c] ss:$16 sps:$4 sm:$0xff] (!%p355_p8)   ;;  %v1077_v5 = vcombine.low (!%p355_p8), %v1540_v0, %v1540_v0 }
  0x3a   : > { %814 = vmatpush1.bf16.msra.mxu0 (!%p355_p8), %v1193_v6  ;;  %855 = vmatpush1.bf16.msra.mxu1 (!%p355_p8), %v1194_v7  ;;  %v1199_v10 = vld [vmem:[%s1547_s15 + $0x20] ss:$16 sps:$4 sm:$0xff] (!%p355_p8)   ;;  %v1200_v11 = vld [vmem:[%s1547_s15 + $0x28] ss:$16 sps:$4 sm:$0xff] (!%p355_p8)   ;;  %v1201_v12 = vld [vmem:[%s1547_s15 + $0x44] ss:$16 sps:$4 sm:$0xff] (!%p355_p8)  }
  0x3b   : > { %815 = vmatprep.subr.bf16.mxu0 (!%p355_p8), %v1195_v8  ;;  %856 = vmatprep.subr.bf16.mxu1 (!%p355_p8), %v1197_v9  ;;  %v1203_v13 = vld [vmem:[%s1547_s15 + $0x4c] ss:$16 sps:$4 sm:$0xff] (!%p355_p8)   ;;  %v1205_v14 = vld [vmem:[%s1547_s15 + $0x40] ss:$16 sps:$4 sm:$0xff] (!%p355_p8)   ;;  %v1206_v15 = vld [vmem:[%s1547_s15 + $0x48] ss:$16 sps:$4 sm:$0xff] (!%p355_p8)  }
  0x3c   : > { %v1207_v16 = vld [vmem:[%s1547_s15 + $0x64] ss:$16 sps:$4 sm:$0xff] (!%p355_p8)   ;;  %v1209_v17 = vld [vmem:[%s1547_s15 + $0x6c] ss:$16 sps:$4 sm:$0xff] (!%p355_p8)   ;;  %v1211_v18 = vld [vmem:[%s1547_s15 + $0x60] ss:$16 sps:$4 sm:$0xff] (!%p355_p8)  }
  0x3d   : > { %v1212_v19 = vld [vmem:[%s1547_s15 + $0x68] ss:$16 sps:$4 sm:$0xff]   ;;  %v1213_v20 = vld [vmem:[%s1547_s15 + $0x84] ss:$16 sps:$4 sm:$0xff]   ;;  %v1215_v21 = vld [vmem:[%s1547_s15 + $0x8c] ss:$16 sps:$4 sm:$0xff]  }
  0x3e   : > { %816 = vmatpush1.bf16.msra.mxu0 %v1199_v10  ;;  %857 = vmatpush1.bf16.msra.mxu1 %v1200_v11  ;;  %v1217_v22 = vld [vmem:[%s1547_s15 + $0x80] ss:$16 sps:$4 sm:$0xff]   ;;  %v1218_v23 = vld [vmem:[%s1547_s15 + $0x88] ss:$16 sps:$4 sm:$0xff]   ;;  %v1219_v24 = vld [vmem:[%s1547_s15 + $0xa4] ss:$16 sps:$4 sm:$0xff]  }
  0x3f   : > { %817 = vmatprep.subr.bf16.mxu0 %v1201_v12  ;;  %858 = vmatprep.subr.bf16.mxu1 %v1203_v13  ;;  %v1221_v25 = vld [vmem:[%s1547_s15 + $0xac] ss:$16 sps:$4 sm:$0xff]   ;;  %v1223_v26 = vld [vmem:[%s1547_s15 + $0xa0] ss:$16 sps:$4 sm:$0xff]   ;;  %v1224_v27 = vld [vmem:[%s1547_s15 + $0xa8] ss:$16 sps:$4 sm:$0xff]  }
  0x40   : > { %v1225_v28 = vld [vmem:[%s1547_s15 + $0xc4] ss:$16 sps:$4 sm:$0xff]   ;;  %v1227_v29 = vld [vmem:[%s1547_s15 + $0xcc] ss:$16 sps:$4 sm:$0xff]   ;;  %v1229_v30 = vld [vmem:[%s1547_s15 + $0xc0] ss:$16 sps:$4 sm:$0xff]  }
  0x41   : > { %v1230_v31 = vld [vmem:[%s1547_s15 + $0xc8] ss:$16 sps:$4 sm:$0xff]   ;;  %v1231_v32 = vld [vmem:[%s1547_s15 + $0xe4] ss:$16 sps:$4 sm:$0xff]   ;;  %v1233_v33 = vld [vmem:[%s1547_s15 + $0xec] ss:$16 sps:$4 sm:$0xff]  }
  0x42   : > { %818 = vmatpush1.bf16.msra.mxu0 %v1205_v14  ;;  %859 = vmatpush1.bf16.msra.mxu1 %v1206_v15  ;;  %v1235_v34 = vld [vmem:[%s1547_s15 + $0xe0] ss:$16 sps:$4 sm:$0xff]   ;;  %v1236_v35 = vld [vmem:[%s1547_s15 + $0xe8] ss:$16 sps:$4 sm:$0xff]   ;;  %v1237_v36 = vld [vmem:[%s1547_s15 + $0x104] ss:$16 sps:$4 sm:$0xff]  }
  0x43   : > { %819 = vmatprep.subr.bf16.mxu0 %v1207_v16  ;;  %860 = vmatprep.subr.bf16.mxu1 %v1209_v17  ;;  %v1239_v37 = vld [vmem:[%s1547_s15 + $0x10c] ss:$16 sps:$4 sm:$0xff]   ;;  %v1241_v38 = vld [vmem:[%s1547_s15 + $0x100] ss:$16 sps:$4 sm:$0xff]   ;;  %v1242_v39 = vld [vmem:[%s1547_s15 + $0x108] ss:$16 sps:$4 sm:$0xff]  }
  0x44   : > { %v1243_v40 = vld [vmem:[%s1547_s15 + $0x124] ss:$16 sps:$4 sm:$0xff]   ;;  %v1245_v41 = vld [vmem:[%s1547_s15 + $0x12c] ss:$16 sps:$4 sm:$0xff]   ;;  %v1247_v42 = vld [vmem:[%s1547_s15 + $0x120] ss:$16 sps:$4 sm:$0xff]  }
  0x45   : > { %v1248_v43 = vld [vmem:[%s1547_s15 + $0x128] ss:$16 sps:$4 sm:$0xff]   ;;  %v1249_v44 = vld [vmem:[%s1547_s15 + $0x144] ss:$16 sps:$4 sm:$0xff]   ;;  %v1251_v45 = vld [vmem:[%s1547_s15 + $0x14c] ss:$16 sps:$4 sm:$0xff]  }
  0x46   : > { %820 = vmatpush1.bf16.msra.mxu0 %v1211_v18  ;;  %861 = vmatpush1.bf16.msra.mxu1 %v1212_v19  ;;  %v1253_v46 = vld [vmem:[%s1547_s15 + $0x140] ss:$16 sps:$4 sm:$0xff]   ;;  %v1254_v47 = vld [vmem:[%s1547_s15 + $0x148] ss:$16 sps:$4 sm:$0xff]   ;;  %v1255_v48 = vld [vmem:[%s1547_s15 + $0x164] ss:$16 sps:$4 sm:$0xff]  }
  0x47   : > { %821 = vmatprep.subr.bf16.mxu0 %v1213_v20  ;;  %862 = vmatprep.subr.bf16.mxu1 %v1215_v21  ;;  %v1257_v49 = vld [vmem:[%s1547_s15 + $0x16c] ss:$16 sps:$4 sm:$0xff]   ;;  %v1259_v50 = vld [vmem:[%s1547_s15 + $0x160] ss:$16 sps:$4 sm:$0xff]   ;;  %v1260_v51 = vld [vmem:[%s1547_s15 + $0x168] ss:$16 sps:$4 sm:$0xff]  }
  0x48   : > { %v1261_v52 = vld [vmem:[%s1547_s15 + $0x184] ss:$16 sps:$4 sm:$0xff]   ;;  %v1263_v53 = vld [vmem:[%s1547_s15 + $0x18c] ss:$16 sps:$4 sm:$0xff]   ;;  %v1265_v54 = vld [vmem:[%s1547_s15 + $0x180] ss:$16 sps:$4 sm:$0xff]  }
  0x49   : > { %v1266_v55 = vld [vmem:[%s1547_s15 + $0x188] ss:$16 sps:$4 sm:$0xff]   ;;  %v1267_v56 = vld [vmem:[%s1547_s15 + $0x1a4] ss:$16 sps:$4 sm:$0xff]   ;;  %v1269_v57 = vld [vmem:[%s1547_s15 + $0x1ac] ss:$16 sps:$4 sm:$0xff]  }
  0x4a   : > { %822 = vmatpush1.bf16.msra.mxu0 %v1217_v22  ;;  %863 = vmatpush1.bf16.msra.mxu1 %v1218_v23  ;;  %v1271_v58 = vld [vmem:[%s1547_s15 + $0x1a0] ss:$16 sps:$4 sm:$0xff]   ;;  %v1272_v59 = vld [vmem:[%s1547_s15 + $0x1a8] ss:$16 sps:$4 sm:$0xff]   ;;  %v1273_v60 = vld [vmem:[%s1547_s15 + $0x1c4] ss:$16 sps:$4 sm:$0xff]  }
  0x4b   : > { %823 = vmatprep.subr.bf16.mxu0 %v1219_v24  ;;  %864 = vmatprep.subr.bf16.mxu1 %v1221_v25  ;;  %v1275_v61 = vld [vmem:[%s1547_s15 + $0x1cc] ss:$16 sps:$4 sm:$0xff]   ;;  %v1277_v62 = vld [vmem:[%s1547_s15 + $0x1c0] ss:$16 sps:$4 sm:$0xff]   ;;  %v1278_v63 = vld [vmem:[%s1547_s15 + $0x1c8] ss:$16 sps:$4 sm:$0xff]  }
  0x4c   : > { %v1279_v1 = vld [vmem:[%s1547_s15 + $0x1e4] ss:$16 sps:$4 sm:$0xff]   ;;  %v1281_v2 = vld [vmem:[%s1547_s15 + $0x1ec] ss:$16 sps:$4 sm:$0xff]   ;;  %v1283_v3 = vld [vmem:[%s1547_s15 + $0x1e0] ss:$16 sps:$4 sm:$0xff]  }
  0x4d   : > { %v1284_v4 = vld [vmem:[%s1547_s15 + $0x1e8] ss:$16 sps:$4 sm:$0xff]   ;;  %s1617_s16 = scalar_select %p407_p9, %s1317_s20, 1  ;;  %v1328_v6 = vmov 0.0  }
  0x4e   : > { %824 = vmatpush1.bf16.msra.mxu0 %v1223_v26  ;;  %865 = vmatpush1.bf16.msra.mxu1 %v1224_v27  ;;  %p401_p10 = scmp.lt.s32.totalorder %s1073_s27, 7 }
  0x4f   : > { %825 = vmatprep.subr.bf16.mxu0 %v1225_v28  ;;  %866 = vmatprep.subr.bf16.mxu1 %v1227_v29  ;;  %s1075_s17 = sshll.u32 %s1617_s16, 3 }
  0x50   : > { %s1625_s25 = scalar_lea.vmem %s1662_s4, %s1075_s17  ;;  %s1671_s27 = smov (!%p401_p10, %s1073_s27), 7 }
  0x51   : > { %904 = vst.msk [vmem:[%s1625_s25] sm:$0xff] %vm903_vm0, %v1328_v6  ;;  %s1074_s28 = sshll.u32 %s1671_s27, 3  ;;  %s414_s8 = scalar_lea.vmem %s1663_s5, %s1075_s17 }
  0x52   : > { %826 = vmatpush1.bf16.msra.mxu0 %v1229_v30  ;;  %867 = vmatpush1.bf16.msra.mxu1 %v1230_v31  ;;  %s404_s6 = scalar_lea.vmem %s1661_s3, %s1074_s28  ;;  %905 = vst.msk [vmem:[%s414_s8] sm:$0xff] %vm903_vm0, %v1328_v6 }
  0x53   : > { %827 = vmatprep.subr.bf16.mxu0 %v1231_v32  ;;  %868 = vmatprep.subr.bf16.mxu1 %v1233_v33 }
  0x56   : > { %828 = vmatpush1.bf16.msra.mxu0 %v1235_v34  ;;  %869 = vmatpush1.bf16.msra.mxu1 %v1236_v35 }
  0x57   : > { %829 = vmatprep.subr.bf16.mxu0 %v1237_v36  ;;  %870 = vmatprep.subr.bf16.mxu1 %v1239_v37 }
  0x58   : > { %v906_v29 = vld [vmem:[%s1625_s25] sm:$0xff] }
  0x59   : > { %v915_v31 = vld [vmem:[%s414_s8] sm:$0xff] }
  0x5a   : > { %830 = vmatpush1.bf16.msra.mxu0 %v1241_v38  ;;  %871 = vmatpush1.bf16.msra.mxu1 %v1242_v39 }
  0x5b   : > { %831 = vmatprep.subr.bf16.mxu0 %v1243_v40  ;;  %872 = vmatprep.subr.bf16.mxu1 %v1245_v41 }
  0x5e   : > { %832 = vmatpush1.bf16.msra.mxu0 %v1247_v42  ;;  %873 = vmatpush1.bf16.msra.mxu1 %v1248_v43 }
  0x5f   : > { %833 = vmatprep.subr.bf16.mxu0 %v1249_v44  ;;  %874 = vmatprep.subr.bf16.mxu1 %v1251_v45 }
  0x62   : > { %834 = vmatpush1.bf16.msra.mxu0 %v1253_v46  ;;  %875 = vmatpush1.bf16.msra.mxu1 %v1254_v47 }
  0x63   : > { %835 = vmatprep.subr.bf16.mxu0 %v1255_v48  ;;  %876 = vmatprep.subr.bf16.mxu1 %v1257_v49 }
  0x66   : > { %836 = vmatpush1.bf16.msra.mxu0 %v1259_v50  ;;  %877 = vmatpush1.bf16.msra.mxu1 %v1260_v51 }
  0x67   : > { %837 = vmatprep.subr.bf16.mxu0 %v1261_v52  ;;  %878 = vmatprep.subr.bf16.mxu1 %v1263_v53 }
  0x6a   : > { %838 = vmatpush1.bf16.msra.mxu0 %v1265_v54  ;;  %879 = vmatpush1.bf16.msra.mxu1 %v1266_v55 }
  0x6b   : > { %839 = vmatprep.subr.bf16.mxu0 %v1267_v56  ;;  %880 = vmatprep.subr.bf16.mxu1 %v1269_v57 }
  0x6e   : > { %840 = vmatpush1.bf16.msra.mxu0 %v1271_v58  ;;  %881 = vmatpush1.bf16.msra.mxu1 %v1272_v59 }
  0x6f   : > { %841 = vmatprep.subr.bf16.mxu0 %v1273_v60  ;;  %882 = vmatprep.subr.bf16.mxu1 %v1275_v61 }
  0x72   : > { %842 = vmatpush1.bf16.msra.mxu0 %v1277_v62  ;;  %883 = vmatpush1.bf16.msra.mxu1 %v1278_v63 }
  0x73   : > { %843 = vmatprep.subr.bf16.mxu0 %v1279_v1  ;;  %884 = vmatprep.subr.bf16.mxu1 %v1281_v2 }
  0x76   : > { %844 = vmatpush1.bf16.msra.mxu0 %v1283_v3  ;;  %885 = vmatpush1.bf16.msra.mxu1 %v1284_v4 }
  0x79   : > { %846 = vmatmul.mubr.bf16.vlgmr.msra.gmra.mrb[0].mxu0 %v1077_v5  ;;  %887 = vmatmul.mubr.bf16.vlgmr.msra.gmra.mrb[0].mxu1 %v1077_v5 }
  0xb6   : > { %v484_v0 = vpop.permute.xlu0 %483 }
 0x14c   : > { %v847_v7 = vpop.f32.mrb[0].mxu0  ;;  %v888_v8 = vpop.f32.mrb[0].mxu1 }
 0x14d   : > { %v848_v9 = vadd.f32 %v847_v7, %v484_v0  ;;  %v889_v10 = vadd.f32 %v888_v8, %v484_v0  ;;  %v849_v11 = vpop.f32.mrb[1].mxu0  ;;  %v890_v12 = vpop.f32.mrb[1].mxu1 }
 0x14e   : > { %v850_v13 = vadd.f32 %v849_v11, %v484_v0  ;;  %v851_v14 = vpop.f32.mrb[2].mxu0  ;;  %v892_v15 = vpop.f32.mrb[2].mxu1  ;;  %v891_v21 = vadd.f32 %v890_v12, %v484_v0 }
 0x14f   : > { %895 = vst [vmem:[%s404_s6] sm:$0xff] %v848_v9  ;;  %v916_v16 = vmul.f32 %v848_v9, %v848_v9  ;;  %v852_v17 = vpop.f32.mrb[3].mxu0  ;;  %v893_v18 = vpop.f32.mrb[3].mxu1  ;;  %897 = vst [vmem:[%s404_s6 + $0x10] sm:$0xff] %v889_v10  ;;  %v918_v23 = vmul.f32 %v889_v10, %v889_v10 }
 0x150   : > { %896 = vst [vmem:[%s404_s6 + $0x8] sm:$0xff] %v850_v13  ;;  %v907_v19 = vadd.f32 %v850_v13, %v848_v9  ;;  %v917_v20 = vmul.f32 %v850_v13, %v850_v13  ;;  %898 = vst [vmem:[%s404_s6 + $0x18] sm:$0xff] %v891_v21  ;;  %v919_v26 = vmul.f32 %v891_v21, %v891_v21 }
 0x152   : > { %v908_v22 = vadd.f32 %v907_v19, %v889_v10  ;;  %v920_v24 = vadd.f32 %v917_v20, %v916_v16 }
 0x154   : > { %v909_v25 = vadd.f32 %v908_v22, %v891_v21  ;;  %v921_v27 = vadd.f32 %v920_v24, %v918_v23 }
 0x156   : > { %910 = vadd.xlane.f32.xlu0 %v909_v25  ;;  %v922_v28 = vadd.f32 %v921_v27, %v919_v26 }
 0x158   : > { %923 = vadd.xlane.f32.xlu1 %v922_v28 }
 0x1e3   : > { %v911_v30 = vpop.xlane.xlu0 %910 }
 0x1e4   : > { %v912_v32 = vadd.f32 %v911_v30, %v906_v29 }
 0x1e5   : > { %v924_v33 = vpop.xlane.xlu1 %923 }
 0x1e6   : > { %914 = vst.msk [vmem:[%s1625_s25] sm:$0xff] %vm903_vm0, %v912_v32  ;;  %v925_v34 = vadd.f32 %v924_v33, %v915_v31 }
 0x1e8   : > { %926 = vst.msk [vmem:[%s414_s8] sm:$0xff] %vm903_vm0, %v925_v34 }
 0x1e9 PF: > { %s16_s22 = sadd.s32 1, %s1325_s22   ;;  %s1664_s18 = smov %s1313_s19 }
 0x1ea   : > { %p13_p11 = scmp.ge.s32.totalorder %s16_s22, 4   ;;  %s1665_s19 = smov %s1394_s26 }
 0x1eb   : > { %s1666_s20 = smov %s1321_s21  ;;  %s1667_s21 = smov %s1669_s23 }
 0x1ec   :  { %15 = sbr.rel (!%p13_p11) target bundleno = 3 (0x3), region = 118 }

// kernel: voxel_encoder64.15
= control target key start
LH: loop header
LB: loop body
LE: loop exit
PB: predicated region body
PF: predicated region fallthrough
CT: control target
= control target key end

     0   :  { %v76_v0 = vmov 0   ;;  %s118_s2 = inlined_call_operand.vmem [shape: f32[16,1], index: 2, kind: input, shape index: {}]   ;;  %s119_s1 = inlined_call_operand.vmem [shape: f32[16,1], index: 1, kind: input, shape index: {}]   ;;  %s120_s0 = inlined_call_operand.vmem [shape: f32[16,128], index: 0, kind: input, shape index: {}]   ;;  %s121_s3 = inlined_call_operand.vmem [shape: bf16[16,128], index: 3, kind: output, shape index: {}]  }
   0x1   :  { %75 = vset.pattern.permute.xlu1 %v76_v0  ;;  %74 = vset.pattern.permute.xlu0 %v76_v0  ;;  %v30_v1 = vld [vmem:[%s118_s2] sm:$0xff]  ;;  %v31_v3 = vld [vmem:[%s118_s2 + $0x8] sm:$0xff] }
   0x2   :  { %v16_v2 = vld [vmem:[%s119_s1] sm:$0xff]  ;;  %34 = vperm.xlu1 %75, %v30_v1   ;;  %v17_v4 = vld [vmem:[%s119_s1 + $0x8] sm:$0xff] }
   0x3   :  { %20 = vperm.xlu0 %74, %v16_v2   ;;  %v14_v5 = vld [vmem:[%s120_s0] sm:$0xff]  ;;  %v15_v9 = vld [vmem:[%s120_s0 + $0x8] sm:$0xff] }
   0x6   :  { %39 = vperm.xlu1 %75, %v31_v3  }
   0x7   :  { %25 = vperm.xlu0 %74, %v17_v4  }
  0x81   :  { %v35_v6 = vpop.permute.xlu1 %34 }
  0x82   :  { %v21_v7 = vpop.permute.xlu0 %20 }
  0x83   :  { %v28_v8 = vmul.f32 %v21_v7, %v14_v5 }
  0x85   :  { %v42_v10 = vadd.f32 %v35_v6, %v28_v8  ;;  %v40_v13 = vpop.permute.xlu1 %39 }
  0x86   :  { %v26_v11 = vpop.permute.xlu0 %25 }
  0x87   :  { %v29_v12 = vmul.f32 %v26_v11, %v15_v9  ;;  %v46_v14 = vmul.f32 0.2, %v42_v10  ;;  %vm44_vm0 = vcmp.ge.f32.partialorder %v42_v10, 0.0 }
  0x89   :  { %v43_v15 = vadd.f32 %v40_v13, %v29_v12  ;;  %v48_v17 = vsel %vm44_vm0, %v42_v10, %v46_v14 }
  0x8b   :  { %vm45_vm1 = vcmp.ge.f32.partialorder %v43_v15, 0.0  ;;  %v47_v16 = vmul.f32 0.2, %v43_v15 }
  0x8d   :  { %v49_v18 = vsel %vm45_vm1, %v43_v15, %v47_v16 }
  0x8e   :  { %v71_v19 = vpack.c.bf16 %v49_v18, %v48_v17 }
  0x90   :  { %72 = vst [vmem:[%s121_s3] sm:$0xff] %v71_v19  }

// kernel: voxel_encoder64.14
= control target key start
LH: loop header
LB: loop body
LE: loop exit
PB: predicated region body
PF: predicated region fallthrough
CT: control target
= control target key end

     0   :  { %v612_v1 = vmov 0   ;;  %vm426_vm0 = vcmask 7168   ;;  %v613_v39 = vmov 0.0   ;;  %s808_s1 = inlined_call_operand.vmem [shape: bf16[512,128], index: 1, kind: input, shape index: {}]   ;;  %s809_s0 = inlined_call_operand.vmem [shape: bf16[16,512], index: 0, kind: input, shape index: {}]   ;;  %s810_s2 = inlined_call_operand.vmem [shape: f32[16,1], index: 2, kind: input, shape index: {}]   ;;  %s811_s4 = inlined_call_operand.vmem [shape: f32[1,16,1], index: 4, kind: output, shape index: {1}]   ;;  %s812_s3 = inlined_call_operand.vmem [shape: f32[16,128], index: 3, kind: output, shape index: {0}]   ;;  %s813_s5 = inlined_call_operand.vmem [shape: f32[1,16,1], index: 5, kind: output, shape index: {2}]  }
   0x1   :  { %v574_v0 = vld [vmem:[%s808_s1 + $0x40] sm:$0xff]   ;;  %573 = vset.pattern.permute.xlu0 %v612_v1  ;;  %v578_v5 = vld [vmem:[%s808_s1 + $0x48] sm:$0xff]   ;;  %v582_v9 = vld [vmem:[%s808_s1 + $0x50] sm:$0xff]   ;;  %427 = vst.msk [vmem:[%s811_s4] sm:$0xff] %vm426_vm0, %v613_v39 }
   0x2   :  { %v575_v2 = vld [vmem:[%s808_s1 + $0xc0] sm:$0xff]   ;;  %527 = vmatprep.subr.bf16.mxu0 %v574_v0  ;;  %v579_v6 = vld [vmem:[%s808_s1 + $0xc8] sm:$0xff]   ;;  %v583_v10 = vld [vmem:[%s808_s1 + $0xd0] sm:$0xff]   ;;  %428 = vst.msk [vmem:[%s811_s4 + $0x8] sm:$0xff] %vm426_vm0, %v613_v39 }
   0x3   :  { %v576_v3 = vld [vmem:[%s808_s1] sm:$0xff]   ;;  %549 = vmatprep.subr.bf16.mxu1 %v575_v2  ;;  %v580_v7 = vld [vmem:[%s808_s1 + $0x8] sm:$0xff]   ;;  %v584_v11 = vld [vmem:[%s808_s1 + $0x10] sm:$0xff]   ;;  %429 = vst.msk [vmem:[%s813_s5] sm:$0xff] %vm426_vm0, %v613_v39 }
   0x4   :  { %v577_v4 = vld [vmem:[%s808_s1 + $0x80] sm:$0xff]   ;;  %528 = vmatpush3.bf16.msra.mxu0 %v576_v3  ;;  %v581_v8 = vld [vmem:[%s808_s1 + $0x88] sm:$0xff]   ;;  %v585_v12 = vld [vmem:[%s808_s1 + $0x90] sm:$0xff]   ;;  %430 = vst.msk [vmem:[%s813_s5 + $0x8] sm:$0xff] %vm426_vm0, %v613_v39 }
   0x5   :  { %550 = vmatpush3.bf16.msra.mxu1 %v577_v4  ;;  %529 = vmatprep.subr.bf16.mxu0 %v578_v5  ;;  %v586_v13 = vld [vmem:[%s808_s1 + $0x58] sm:$0xff]   ;;  %v590_v17 = vld [vmem:[%s808_s1 + $0x60] sm:$0xff]   ;;  %v594_v21 = vld [vmem:[%s808_s1 + $0x68] sm:$0xff]  }
   0x6   :  { %551 = vmatprep.subr.bf16.mxu1 %v579_v6  ;;  %v587_v14 = vld [vmem:[%s808_s1 + $0xd8] sm:$0xff]   ;;  %v591_v18 = vld [vmem:[%s808_s1 + $0xe0] sm:$0xff]   ;;  %v595_v22 = vld [vmem:[%s808_s1 + $0xe8] sm:$0xff]  }
   0x7   :  { %v588_v15 = vld [vmem:[%s808_s1 + $0x18] sm:$0xff]   ;;  %v592_v19 = vld [vmem:[%s808_s1 + $0x20] sm:$0xff]   ;;  %v596_v23 = vld [vmem:[%s808_s1 + $0x28] sm:$0xff]  }
   0x8   :  { %530 = vmatpush3.bf16.msra.mxu0 %v580_v7  ;;  %v589_v16 = vld [vmem:[%s808_s1 + $0x98] sm:$0xff]   ;;  %v593_v20 = vld [vmem:[%s808_s1 + $0xa0] sm:$0xff]   ;;  %v597_v24 = vld [vmem:[%s808_s1 + $0xa8] sm:$0xff]  }
   0x9   :  { %552 = vmatpush3.bf16.msra.mxu1 %v581_v8  ;;  %531 = vmatprep.subr.bf16.mxu0 %v582_v9  ;;  %v598_v25 = vld [vmem:[%s808_s1 + $0x70] sm:$0xff]   ;;  %v602_v29 = vld [vmem:[%s808_s1 + $0x78] sm:$0xff]   ;;  %v114_v37 = vld [vmem:[%s810_s2] sm:$0xff] }
   0xa   :  { %553 = vmatprep.subr.bf16.mxu1 %v583_v10  ;;  %v599_v26 = vld [vmem:[%s808_s1 + $0xf0] sm:$0xff]   ;;  %v603_v30 = vld [vmem:[%s808_s1 + $0xf8] sm:$0xff]   ;;  %118 = vperm.xlu0 %573, %v114_v37   ;;  %v115_v38 = vld [vmem:[%s810_s2 + $0x8] sm:$0xff] }
   0xb   :  { %v600_v27 = vld [vmem:[%s808_s1 + $0x30] sm:$0xff]   ;;  %v604_v31 = vld [vmem:[%s808_s1 + $0x38] sm:$0xff]   ;;  %v431_v60 = vld [vmem:[%s811_s4] sm:$0xff] }
   0xc   :  { %532 = vmatpush3.bf16.msra.mxu0 %v584_v11  ;;  %v601_v28 = vld [vmem:[%s808_s1 + $0xb0] sm:$0xff]   ;;  %v605_v32 = vld [vmem:[%s808_s1 + $0xb8] sm:$0xff]   ;;  %v442_v62 = vld [vmem:[%s813_s5] sm:$0xff] }
   0xd   :  { %554 = vmatpush3.bf16.msra.mxu1 %v585_v12  ;;  %533 = vmatprep.subr.bf16.mxu0 %v586_v13  ;;  %v606_v33 = vld [vmem:[%s809_s0] ss:$16 sps:$4 sm:$0xff]   ;;  %v608_v34 = vld [vmem:[%s809_s0 + $0x4] ss:$16 sps:$4 sm:$0xff]   ;;  %v609_v35 = vld [vmem:[%s809_s0 + $0x8] ss:$16 sps:$4 sm:$0xff]  }
   0xe   :  { %555 = vmatprep.subr.bf16.mxu1 %v587_v14  ;;  %v611_v36 = vld [vmem:[%s809_s0 + $0xc] ss:$16 sps:$4 sm:$0xff]   ;;  %370 = vmatprep.mubr.bf16.mxu0 %v608_v34 }
   0xf   :  { %411 = vmatprep.mubr.bf16.mxu1 %v611_v36  ;;  %123 = vperm.xlu0 %573, %v115_v38   ;;  %v432_v1 = vld [vmem:[%s811_s4 + $0x8] sm:$0xff] }
  0x10   :  { %534 = vmatpush3.bf16.msra.mxu0 %v588_v15  ;;  %v443_v5 = vld [vmem:[%s813_s5 + $0x8] sm:$0xff] }
  0x11   :  { %556 = vmatpush3.bf16.msra.mxu1 %v589_v16  ;;  %535 = vmatprep.subr.bf16.mxu0 %v590_v17 }
  0x12   :  { %557 = vmatprep.subr.bf16.mxu1 %v591_v18 }
  0x14   :  { %536 = vmatpush3.bf16.msra.mxu0 %v592_v19 }
  0x15   :  { %558 = vmatpush3.bf16.msra.mxu1 %v593_v20  ;;  %537 = vmatprep.subr.bf16.mxu0 %v594_v21 }
  0x16   :  { %559 = vmatprep.subr.bf16.mxu1 %v595_v22 }
  0x18   :  { %538 = vmatpush3.bf16.msra.mxu0 %v596_v23 }
  0x19   :  { %560 = vmatpush3.bf16.msra.mxu1 %v597_v24  ;;  %539 = vmatprep.subr.bf16.mxu0 %v598_v25 }
  0x1a   :  { %561 = vmatprep.subr.bf16.mxu1 %v599_v26 }
  0x1c   :  { %540 = vmatpush3.bf16.msra.mxu0 %v600_v27 }
  0x1d   :  { %562 = vmatpush3.bf16.msra.mxu1 %v601_v28  ;;  %541 = vmatprep.subr.bf16.mxu0 %v602_v29 }
  0x1e   :  { %563 = vmatprep.subr.bf16.mxu1 %v603_v30 }
  0x20   :  { %542 = vmatpush3.bf16.msra.mxu0 %v604_v31 }
  0x21   :  { %564 = vmatpush3.bf16.msra.mxu1 %v605_v32 }
  0x23   :  { %371 = vmatmul.mubr.bf16.vlgmr.msra.gmra.mrb[0].mxu0 %v606_v33 }
  0x24   :  { %412 = vmatmul.mubr.bf16.vlgmr.msra.gmra.mrb[0].mxu1 %v609_v35 }
  0x89   :  { %v119_v40 = vpop.permute.xlu0 %118 }
  0x8e   :  { %v124_v53 = vpop.permute.xlu0 %123 }
  0xf6   :  { %v543_v41 = vpop.f32.mrb[0].mxu0 }
  0xf7   :  { %v565_v42 = vpop.f32.mrb[0].mxu1  ;;  %v544_v43 = vpop.f32.mrb[1].mxu0 }
  0xf8   :  { %v545_v44 = vadd.f32 %v544_v43, %v543_v41  ;;  %v566_v45 = vpop.f32.mrb[1].mxu1  ;;  %v546_v46 = vpop.f32.mrb[2].mxu0 }
  0xf9   :  { %v567_v47 = vadd.f32 %v566_v45, %v565_v42  ;;  %v568_v48 = vpop.f32.mrb[2].mxu1  ;;  %v547_v49 = vpop.f32.mrb[3].mxu0 }
  0xfa   :  { %v373_v50 = vadd.f32 %v545_v44, %v119_v40  ;;  %v548_v51 = vadd.f32 %v547_v49, %v546_v46  ;;  %v569_v52 = vpop.f32.mrb[3].mxu1 }
  0xfb   :  { %v570_v54 = vadd.f32 %v569_v52, %v568_v48 }
  0xfc   :  { %v414_v55 = vadd.f32 %v567_v47, %v373_v50  ;;  %v376_v56 = vadd.f32 %v548_v51, %v124_v53 }
  0xfe   :  { %420 = vst [vmem:[%s812_s3] sm:$0xff] %v414_v55  ;;  %v417_v57 = vadd.f32 %v570_v54, %v376_v56  ;;  %433 = vadd.xlane.f32.xlu1 %v414_v55  ;;  %v444_v58 = vmul.f32 %v414_v55, %v414_v55 }
 0x100   :  { %421 = vst [vmem:[%s812_s3 + $0x8] sm:$0xff] %v417_v57  ;;  %446 = vadd.xlane.f32.xlu0 %v444_v58  ;;  %v445_v59 = vmul.f32 %v417_v57, %v417_v57 }
 0x102   :  { %435 = vadd.xlane.f32.xlu1 %v417_v57 }
 0x106   :  { %448 = vadd.xlane.f32.xlu1 %v445_v59 }
 0x18b   :  { %v434_v61 = vpop.xlane.xlu1 %433 }
 0x18c   :  { %v437_v63 = vadd.f32 %v434_v61, %v431_v60 }
 0x18d   :  { %v447_v0 = vpop.xlane.xlu0 %446 }
 0x18e   :  { %440 = vst.msk [vmem:[%s811_s4] sm:$0xff] %vm426_vm0, %v437_v63  ;;  %v450_v2 = vadd.f32 %v447_v0, %v442_v62 }
 0x18f   :  { %v436_v3 = vpop.xlane.xlu1 %435 }
 0x190   :  { %452 = vst.msk [vmem:[%s813_s5] sm:$0xff] %vm426_vm0, %v450_v2  ;;  %v438_v4 = vadd.f32 %v436_v3, %v432_v1 }
 0x192   :  { %441 = vst.msk [vmem:[%s811_s4 + $0x8] sm:$0xff] %vm426_vm0, %v438_v4 }
 0x193   :  { %v449_v6 = vpop.xlane.xlu1 %448 }
 0x194   :  { %v451_v7 = vadd.f32 %v449_v6, %v443_v5 }
 0x196   :  { %453 = vst.msk [vmem:[%s813_s5 + $0x8] sm:$0xff] %vm426_vm0, %v451_v7 }

</bundles_post_ra>
